<compile_context>
chip_gen: v6e
topology: v6e:2x2x1
jax: 0.10.0
libtpu: 0.0.40
codegen_flags: <defaults>
</compile_context>

<pallas_src>
import functools

import numpy as np
import jax
import jax.numpy as jnp
from jax.experimental import pallas as pl
from jax.experimental.pallas import tpu as pltpu

_BN_EPS = 1e-5
_TAPS = tuple((dh, dw) for dh in (-1, 0, 1) for dw in (-1, 0, 1))


def _round_up(v, m):
    return ((v + m - 1) // m) * m


# ---------------------------------------------------------------------------
# Host-side constant tables (compile-time constants under jit)
# ---------------------------------------------------------------------------

@functools.lru_cache(maxsize=None)
def _tap_masks(n, h, w):
    """[9, 1, M] validity masks for the 9 conv taps ("same" padding)."""
    m = n * h * w
    hs = (np.arange(m) // w) % h
    ws = np.arange(m) % w
    out = np.zeros((9, 1, m), np.float32)
    for t, (dh, dw) in enumerate(_TAPS):
        valid = (hs + dh >= 0) & (hs + dh < h) & (ws + dw >= 0) & (ws + dw < w)
        out[t, 0, :] = valid
    return out


@functools.lru_cache(maxsize=None)
def _tap_shift_mats(n, h, w):
    """[9, M, M] combined shift+mask 0/1 matrices (used when M % 128 != 0)."""
    m = n * h * w
    out = np.zeros((9, m, m), np.float32)
    for t, (dh, dw) in enumerate(_TAPS):
        for nn in range(n):
            for hh in range(h):
                for ww in range(w):
                    h2, w2 = hh + dh, ww + dw
                    if 0 <= h2 < h and 0 <= w2 < w:
                        dst = (nn * h + hh) * w + ww
                        src = (nn * h + h2) * w + w2
                        out[t, src, dst] = 1.0
    return out


@functools.lru_cache(maxsize=None)
def _pool_select(n, h, w):
    """[M, M/4] 0/1 matrix selecting the top-left anchor of every 2x2 cell."""
    m = n * h * w
    ho, wo = h // 2, w // 2
    out = np.zeros((m, n * ho * wo), np.float32)
    for nn in range(n):
        for i in range(ho):
            for j in range(wo):
                out[(nn * h + 2 * i) * w + 2 * j, (nn * ho + i) * wo + j] = 1.0
    return out


@functools.lru_cache(maxsize=None)
def _upsample_scatter(n, h, w):
    """[4, M, 4M] 0/1 scatter placing tap (i, j) of a 2x2/stride-2 ConvT."""
    m = n * h * w
    out = np.zeros((4, m, 4 * m), np.float32)
    for t in range(4):
        i, j = divmod(t, 2)
        for nn in range(n):
            for hh in range(h):
                for ww in range(w):
                    src = (nn * h + hh) * w + ww
                    dst = (nn * 2 * h + 2 * hh + i) * (2 * w) + 2 * ww + j
                    out[t, src, dst] = 1.0
    return out


def _full_spec(shape):
    """Whole-array block (grid=(1,)) — everything fits VMEM at these sizes."""
    zeros = (0,) * len(shape)
    return pl.BlockSpec(tuple(shape), lambda i, _z=zeros: _z)


# ---------------------------------------------------------------------------
# Single fused forward pass
# ---------------------------------------------------------------------------

def unet_forward(x_nchw, params):
    """Full _UNetFactory forward as one Pallas kernel.  NCHW in, NCHW out."""
    n, c_in, h0, w0 = x_nchw.shape
    enc = params["encoder"]
    ups = params["ups"]
    decs = params["decodes"]
    cls = params["cls"]
    depth = len(enc)

    enc_ch = [int(b["g1"].shape[0]) for b in enc]
    dec_out = []
    ch = enc_ch[-1]
    for _ in range(depth - 1):
        ch //= 2
        dec_out.append(ch)
    n_class = int(cls["w"].shape[0])

    assert h0 % (1 << (depth - 1)) == 0 and w0 % (1 << (depth - 1)) == 0, \
        "spatial dims must be divisible by 2**(depth-1)"
    assert all(c % 8 == 0 for c in enc_ch + dec_out), \
        "channel counts must be multiples of 8 (sublane-aligned tap stacking)"
    # TODO(synk): _UNetDecoder._crop is a no-op for this even / same-padding
    # geometry (guarded by the asserts above); odd spatial sizes not supported.

    cin_pad = _round_up(c_in, 8)
    lv_h = [h0 >> i for i in range(depth)]
    lv_w = [w0 >> i for i in range(depth)]
    lv_m = [n * lv_h[i] * lv_w[i] for i in range(depth)]
    use_roll = [lv_m[i] % 128 == 0 for i in range(depth)]

    # ---- input slab: [C, N*H*W], channel-padded to a multiple of 8 ---------
    x = jnp.transpose(x_nchw, (1, 0, 2, 3)).reshape(c_in, lv_m[0])
    x = x.astype(jnp.float32)
    if cin_pad > c_in:
        x = jnp.concatenate(
            [x, jnp.zeros((cin_pad - c_in, lv_m[0]), jnp.float32)], axis=0)

    # ---- consolidated BN gamma/beta (stage order) ---------------------------
    g_list, b_list, ch_list = [], [], []
    for blk in enc:
        g_list += [blk["g1"], blk["g2"]]
        b_list += [blk["b1"], blk["b2"]]
        ch_list += [int(blk["g1"].shape[0]), int(blk["g2"].shape[0])]
    for dec in decs:
        g_list += [dec["g1"], dec["g2"]]
        b_list += [dec["b1"], dec["b2"]]
        ch_list += [int(dec["g1"].shape[0]), int(dec["g2"].shape[0])]
    g_all = jnp.concatenate(g_list, axis=0)
    b_all = jnp.concatenate(b_list, axis=0)
    bn_off = [int(v) for v in np.cumsum([0] + ch_list[:-1])]

    # ---- structural constants (one copy per resolution, reused by stages) --
    tapcons, sels, scats = [], [], []
    for i in range(depth):
        if use_roll[i]:
            tapcons.append(jnp.asarray(_tap_masks(n, lv_h[i], lv_w[i])))
        else:
            tapcons.append(jnp.asarray(_tap_shift_mats(n, lv_h[i], lv_w[i]),
                                       dtype=jnp.bfloat16))
    for i in range(depth - 1):
        sels.append(jnp.asarray(_pool_select(n, lv_h[i], lv_w[i]),
                                dtype=jnp.bfloat16))
    for i in range(1, depth):
        scats.append(jnp.asarray(_upsample_scatter(n, lv_h[i], lv_w[i]),
                                 dtype=jnp.bfloat16))

    # ---- ordered input list (names shared with the kernel) -----------------
    names, inputs = [], []

    def add(name, arr):
        names.append(name)
        inputs.append(arr)

    add("x", x)
    for i, blk in enumerate(enc):
        add(f"enc{i}_w1", blk["w1"])
        add(f"enc{i}_w2", blk["w2"])
    for j, (up, dec) in enumerate(zip(ups, decs)):
        add(f"up{j}_w", up["w"])
        add(f"up{j}_b", up["b"])
        add(f"dec{j}_w1", dec["w1"])
        add(f"dec{j}_w2", dec["w2"])
    add("cls_w", cls["w"])
    add("cls_b", cls["b"])
    add("g_all", g_all)
    add("b_all", b_all)
    for i in range(depth):
        add(f"tap{i}", tapcons[i])
    for i in range(depth - 1):
        add(f"sel{i}", sels[i])
    for i in range(1, depth):
        add(f"scat{i}", scats[i - 1])

    n_in = len(inputs)
    name_idx = {nm: k for k, nm in enumerate(names)}

    # ---- per-level stacked-operand scratch sizes ----------------------------
    max_rows = []
    prev_c = cin_pad
    for i in range(depth):
        cands = [prev_c, enc_ch[i]]
        if i < depth - 1:
            j = depth - 2 - i
            cands += [dec_out[j] + enc_ch[i], dec_out[j]]
        max_rows.append(9 * max(cands))
        prev_c = enc_ch[i]
    scratch_shapes = [pltpu.VMEM((max_rows[i], lv_m[i]), jnp.float32)
                      for i in range(depth)]

    # ---- rough cost estimate ------------------------------------------------
    conv_plan = []                              # (cin_total, cout, m)
    prev_c = cin_pad
    for i in range(depth):
        conv_plan.append((prev_c, enc_ch[i], lv_m[i]))
        conv_plan.append((enc_ch[i], enc_ch[i], lv_m[i]))
        prev_c = enc_ch[i]
    ch = enc_ch[-1]
    for j in range(depth - 1):
        lvl = depth - 2 - j
        out_ch = dec_out[j]
        conv_plan.append((out_ch + enc_ch[lvl], out_ch, lv_m[lvl]))
        conv_plan.append((out_ch, out_ch, lv_m[lvl]))
        ch = out_ch
    flops = sum(2 * 9 * ci * co * m for ci, co, m in conv_plan)
    for i in range(depth - 1):
        flops += 2 * enc_ch[i] * lv_m[i] * (lv_m[i] // 4)
    chh = enc_ch[-1]
    for j in range(depth - 1):
        src = depth - 1 - j
        out_ch = chh // 2
        flops += 8 * out_ch * chh * lv_m[src] + 8 * out_ch * lv_m[src] * lv_m[src - 1]
        chh = out_ch
    flops += 2 * n_class * chh * lv_m[0]
    trans = sum(co for _, co, _ in conv_plan)
    bytes_accessed = int(sum(int(a.size) * a.dtype.itemsize for a in inputs)
                         + n_class * lv_m[0] * 4)

    # ------------------------------------------------------------------------
    # The single fused kernel
    # ------------------------------------------------------------------------
    def kernel(*refs):
        R = {nm: refs[k] for nm, k in name_idx.items()}
        out_ref = refs[n_in]
        scratch = list(refs[n_in + 1:])

        def bn_relu(acc, stage_idx):
            c = acc.shape[0]
            off = bn_off[stage_idx]
            g = R["g_all"][off:off + c, :]
            b = R["b_all"][off:off + c, :]
            mean = jnp.mean(acc, axis=1, keepdims=True)
            d = acc - mean
            var = jnp.mean(d * d, axis=1, keepdims=True)      # biased, centered
            y = d * (g * jax.lax.rsqrt(var + _BN_EPS)) + b
            return jnp.maximum(y, 0.0)

        def write_taps(level, x_val, row0):
            """Write the 9 shifted+masked tap copies of x_val into the level's
            f32 scratch starting at row row0 (8-sublane-aligned blocks)."""
            cin, m = x_val.shape
            sref = scratch[level]
            if use_roll[level]:
                masks = R[f"tap{level}"]                      # [9, 1, M] f32
                img_w = lv_w[level]
                for t, (dh, dw) in enumerate(_TAPS):
                    off = dh * img_w + dw
                    xt = x_val if off == 0 else pltpu.roll(
                        x_val, shift=(-off) % m, axis=1)
                    if dh or dw:
                        xt = xt * masks[t]
                    sref[row0 + t * cin: row0 + (t + 1) * cin, :] = xt
            else:
                shifts = R[f"tap{level}"]                     # [9, M, M] bf16
                xb = x_val.astype(jnp.bfloat16)
                for t in range(9):
                    sref[row0 + t * cin: row0 + (t + 1) * cin, :] = jnp.dot(
                        xb, shifts[t], preferred_element_type=jnp.float32)
            return row0 + 9 * cin

        def conv(level, rows, w_ref, stage_idx):
            """One stacked-K bf16 MXU dot + fused BN(batch stats) + ReLU."""
            op = scratch[level][0:rows, :].astype(jnp.bfloat16)
            acc = jnp.dot(w_ref[...], op, preferred_element_type=jnp.float32)
            return bn_relu(acc, stage_idx)

        def pool(level, y):
            """2x2 max pool: roll+max then bf16 0/1 anchor-compaction dot."""
            m = lv_m[level]
            hm = jnp.maximum(y, pltpu.roll(y, shift=m - 1, axis=1))
            vm = jnp.maximum(hm, pltpu.roll(hm, shift=m - lv_w[level], axis=1))
            return jnp.dot(vm.astype(jnp.bfloat16), R[f"sel{level}"][...],
                           preferred_element_type=jnp.float32)

        def upsample(level_src, x_val, w_ref, b_ref):
            """ConvTranspose2d(k=2, s=2): per-tap dot + bf16 0/1 scatter dot,
            written directly in the final upsampled [Cout, 4M] layout."""
            xb = x_val.astype(jnp.bfloat16)
            cout = w_ref.shape[1]
            m_out = lv_m[level_src - 1]
            scat = R[f"scat{level_src}"]                      # [4, M, 4M] bf16
            u = jnp.zeros((cout, m_out), jnp.float32)
            for t in range(4):
                yt = jnp.dot(w_ref[t], xb, preferred_element_type=jnp.float32)
                u = u + jnp.dot(yt.astype(jnp.bfloat16), scat[t],
                                preferred_element_type=jnp.float32)
            return u + b_ref[...]

        # ------------------------------- encoder ----------------------------
        stage = 0
        cur = R["x"][...]
        shortcuts = [None] * depth
        for i in range(depth):
            rows = write_taps(i, cur, 0)
            cur = conv(i, rows, R[f"enc{i}_w1"], stage); stage += 1
            rows = write_taps(i, cur, 0)
            cur = conv(i, rows, R[f"enc{i}_w2"], stage); stage += 1
            if i < depth - 1:
                shortcuts[i] = cur
                cur = pool(i, cur)

        # ------------------------------- decoder ----------------------------
        for j in range(depth - 1):
            lvl_src = depth - 1 - j
            lvl = lvl_src - 1
            cur = upsample(lvl_src, cur, R[f"up{j}_w"], R[f"up{j}_b"])
            # conv(cat(up, shortcut)): shortcut taps written after the up taps
            rows = write_taps(lvl, cur, 0)
            rows = write_taps(lvl, shortcuts[lvl], rows)
            cur = conv(lvl, rows, R[f"dec{j}_w1"], stage); stage += 1
            rows = write_taps(lvl, cur, 0)
            cur = conv(lvl, rows, R[f"dec{j}_w2"], stage); stage += 1

        # --------------------------- 1x1 classifier -------------------------
        out_ref[...] = (jnp.dot(R["cls_w"][...], cur.astype(jnp.bfloat16),
                                preferred_element_type=jnp.float32)
                        + R["cls_b"][...])

    out = pl.pallas_call(
        kernel,
        out_shape=jax.ShapeDtypeStruct((n_class, lv_m[0]), jnp.float32),
        grid=(1,),
        in_specs=[_full_spec(a.shape) for a in inputs],
        out_specs=_full_spec((n_class, lv_m[0])),
        scratch_shapes=scratch_shapes,
        compiler_params=pltpu.CompilerParams(
            dimension_semantics=("arbitrary",)),
        cost_estimate=pl.CostEstimate(flops=int(flops),
                                      transcendentals=int(trans),
                                      bytes_accessed=int(bytes_accessed)),
    )(*inputs)

    out = out.reshape(n_class, n, h0, w0)
    return jnp.transpose(out, (1, 0, 2, 3))                   # -> NCHW


# ---------------------------------------------------------------------------
# Deterministic parameter init (Kaiming fan_out, BN gamma=1 / beta=0)
# ---------------------------------------------------------------------------

def _init_conv3x3(key, cin, cout, cin_pad=None):
    """3x3 conv weight stored stacked as [Cout, 9*Cin] (tap-major columns)."""
    std = (2.0 / (cout * 9)) ** 0.5                           # kaiming fan_out
    w = jax.random.normal(key, (cout, 9, cin), jnp.float32) * std
    if cin_pad is not None and cin_pad > cin:
        w = jnp.pad(w, ((0, 0), (0, 0), (0, cin_pad - cin)))  # zero pad channels
    return w.reshape(cout, -1).astype(jnp.bfloat16)


def _init_unet_conv(key, cin, cout, cin_pad=None, split=None):
    k1, k2, k3 = jax.random.split(key, 3)
    if split is None:
        w1 = _init_conv3x3(k1, cin, cout, cin_pad)
    else:                                                     # conv over concat
        ca, cb = split
        w1 = jnp.concatenate([_init_conv3x3(k1, ca, cout),
                              _init_conv3x3(k2, cb, cout)], axis=1)
    return {"w1": w1,
            "g1": jnp.ones((cout, 1), jnp.float32),
            "b1": jnp.zeros((cout, 1), jnp.float32),
            "w2": _init_conv3x3(k3, cout, cout),
            "g2": jnp.ones((cout, 1), jnp.float32),
            "b2": jnp.zeros((cout, 1), jnp.float32)}


def _init_convt2x2(key, cin, cout):
    kw, kb = jax.random.split(key)
    std = (2.0 / (cin * 4)) ** 0.5                            # ConvT fan_out
    w = jax.random.normal(kw, (4, cout, cin), jnp.float32) * std
    bound = 1.0 / ((cout * 4) ** 0.5)                         # default bias init
    b = jax.random.uniform(kb, (cout, 1), jnp.float32, -bound, bound)
    return {"w": w.astype(jnp.bfloat16), "b": b}


def _init_conv1x1(key, cin, n_class):
    kw, kb = jax.random.split(key)
    std = (2.0 / n_class) ** 0.5
    w = jax.random.normal(kw, (n_class, cin), jnp.float32) * std
    bound = 1.0 / (cin ** 0.5)
    b = jax.random.uniform(kb, (n_class, 1), jnp.float32, -bound, bound)
    return {"w": w.astype(jnp.bfloat16), "b": b}


def init_unet_params(key, in_channels, encode_out_channels, n_class):
    depth = len(encode_out_channels)
    num_keys = depth + 2 * (depth - 1) + 1
    keys = iter(jax.random.split(key, num_keys))
    cin_pad = _round_up(in_channels, 8)

    encoder = []
    cin = in_channels
    for i, cout in enumerate(encode_out_channels):
        encoder.append(_init_unet_conv(next(keys), cin, cout,
                                       cin_pad=cin_pad if i == 0 else None))
        cin = cout

    ups, decodes = [], []
    in_ch = encode_out_channels[-1]
    for cat_ch in reversed(encode_out_channels[:-1]):
        out_ch = in_ch // 2
        ups.append(_init_convt2x2(next(keys), in_ch, out_ch))
        decodes.append(_init_unet_conv(next(keys), out_ch + cat_ch, out_ch,
                                       split=(out_ch, cat_ch)))
        in_ch = out_ch

    cls = _init_conv1x1(next(keys), in_ch, n_class)
    return {"encoder": encoder, "ups": ups, "decodes": decodes, "cls": cls}


# ---------------------------------------------------------------------------
# Main
# ---------------------------------------------------------------------------

if __name__ == "__main__":
    key = jax.random.PRNGKey(0)
    kx, kp = jax.random.split(key)

    batch, in_channels, spatial = 2, 4, 16
    encode_out_channels = [8, 16, 32]
    n_class = 3

    x = jax.random.normal(kx, (batch, in_channels, spatial, spatial),
                          jnp.float32)
    params = init_unet_params(kp, in_channels, encode_out_channels, n_class)

    fwd = jax.jit(unet_forward)
    out = jax.block_until_ready(fwd(x, params))

    assert out.shape == (batch, n_class, spatial, spatial), out.shape
    assert bool(jnp.all(jnp.isfinite(out))), "non-finite output"
    print("KERNEL_OK")
</pallas_src>

<mosaic_0001>
module attributes {stable_mosaic.version = 11 : i64} {
  func.func @kernel(%arg0: i32, %arg1: memref<8x512xf32, #tpu.memory_space<vmem>>, %arg2: memref<8x72xbf16, #tpu.memory_space<vmem>>, %arg3: memref<8x72xbf16, #tpu.memory_space<vmem>>, %arg4: memref<16x72xbf16, #tpu.memory_space<vmem>>, %arg5: memref<16x144xbf16, #tpu.memory_space<vmem>>, %arg6: memref<32x144xbf16, #tpu.memory_space<vmem>>, %arg7: memref<32x288xbf16, #tpu.memory_space<vmem>>, %arg8: memref<4x16x32xbf16, #tpu.memory_space<vmem>>, %arg9: memref<16x1xf32, #tpu.memory_space<vmem>>, %arg10: memref<16x288xbf16, #tpu.memory_space<vmem>>, %arg11: memref<16x144xbf16, #tpu.memory_space<vmem>>, %arg12: memref<4x8x16xbf16, #tpu.memory_space<vmem>>, %arg13: memref<8x1xf32, #tpu.memory_space<vmem>>, %arg14: memref<8x144xbf16, #tpu.memory_space<vmem>>, %arg15: memref<8x72xbf16, #tpu.memory_space<vmem>>, %arg16: memref<3x8xbf16, #tpu.memory_space<vmem>>, %arg17: memref<3x1xf32, #tpu.memory_space<vmem>>, %arg18: memref<160x1xf32, #tpu.memory_space<vmem>>, %arg19: memref<160x1xf32, #tpu.memory_space<vmem>>, %arg20: memref<9x1x512xf32, #tpu.memory_space<vmem>>, %arg21: memref<9x1x128xf32, #tpu.memory_space<vmem>>, %arg22: memref<9x32x32xbf16, #tpu.memory_space<vmem>>, %arg23: memref<512x128xbf16, #tpu.memory_space<vmem>>, %arg24: memref<128x32xbf16, #tpu.memory_space<vmem>>, %arg25: memref<4x128x512xbf16, #tpu.memory_space<vmem>>, %arg26: memref<4x32x128xbf16, #tpu.memory_space<vmem>>, %arg27: memref<3x512xf32, #tpu.memory_space<vmem>>, %arg28: memref<144x512xf32, #tpu.memory_space<vmem>>, %arg29: memref<288x128xf32, #tpu.memory_space<vmem>>, %arg30: memref<288x32xf32, #tpu.memory_space<vmem>>) attributes {dimension_semantics = [#tpu.dimension_semantics<arbitrary>], iteration_bounds = array<i64: 1>, scalar_prefetch = 0 : i64, scratch_operands = 3 : i64, tpu.core_type = #tpu.core_type<tc>, window_params = [{pipeline_mode = #tpu.pipeline_mode<synchronous>, transform_indices = @transform_0, window_bounds = array<i64: 8, 512>}, {pipeline_mode = #tpu.pipeline_mode<synchronous>, transform_indices = @transform_1, window_bounds = array<i64: 8, 72>}, {pipeline_mode = #tpu.pipeline_mode<synchronous>, transform_indices = @transform_2, window_bounds = array<i64: 8, 72>}, {pipeline_mode = #tpu.pipeline_mode<synchronous>, transform_indices = @transform_3, window_bounds = array<i64: 16, 72>}, {pipeline_mode = #tpu.pipeline_mode<synchronous>, transform_indices = @transform_4, window_bounds = array<i64: 16, 144>}, {pipeline_mode = #tpu.pipeline_mode<synchronous>, transform_indices = @transform_5, window_bounds = array<i64: 32, 144>}, {pipeline_mode = #tpu.pipeline_mode<synchronous>, transform_indices = @transform_6, window_bounds = array<i64: 32, 288>}, {pipeline_mode = #tpu.pipeline_mode<synchronous>, transform_indices = @transform_7, window_bounds = array<i64: 4, 16, 32>}, {pipeline_mode = #tpu.pipeline_mode<synchronous>, transform_indices = @transform_8, window_bounds = array<i64: 16, 1>}, {pipeline_mode = #tpu.pipeline_mode<synchronous>, transform_indices = @transform_9, window_bounds = array<i64: 16, 288>}, {pipeline_mode = #tpu.pipeline_mode<synchronous>, transform_indices = @transform_10, window_bounds = array<i64: 16, 144>}, {pipeline_mode = #tpu.pipeline_mode<synchronous>, transform_indices = @transform_11, window_bounds = array<i64: 4, 8, 16>}, {pipeline_mode = #tpu.pipeline_mode<synchronous>, transform_indices = @transform_12, window_bounds = array<i64: 8, 1>}, {pipeline_mode = #tpu.pipeline_mode<synchronous>, transform_indices = @transform_13, window_bounds = array<i64: 8, 144>}, {pipeline_mode = #tpu.pipeline_mode<synchronous>, transform_indices = @transform_14, window_bounds = array<i64: 8, 72>}, {pipeline_mode = #tpu.pipeline_mode<synchronous>, transform_indices = @transform_15, window_bounds = array<i64: 3, 8>}, {pipeline_mode = #tpu.pipeline_mode<synchronous>, transform_indices = @transform_16, window_bounds = array<i64: 3, 1>}, {pipeline_mode = #tpu.pipeline_mode<synchronous>, transform_indices = @transform_17, window_bounds = array<i64: 160, 1>}, {pipeline_mode = #tpu.pipeline_mode<synchronous>, transform_indices = @transform_18, window_bounds = array<i64: 160, 1>}, {pipeline_mode = #tpu.pipeline_mode<synchronous>, transform_indices = @transform_19, window_bounds = array<i64: 9, 1, 512>}, {pipeline_mode = #tpu.pipeline_mode<synchronous>, transform_indices = @transform_20, window_bounds = array<i64: 9, 1, 128>}, {pipeline_mode = #tpu.pipeline_mode<synchronous>, transform_indices = @transform_21, window_bounds = array<i64: 9, 32, 32>}, {pipeline_mode = #tpu.pipeline_mode<synchronous>, transform_indices = @transform_22, window_bounds = array<i64: 512, 128>}, {pipeline_mode = #tpu.pipeline_mode<synchronous>, transform_indices = @transform_23, window_bounds = array<i64: 128, 32>}, {pipeline_mode = #tpu.pipeline_mode<synchronous>, transform_indices = @transform_24, window_bounds = array<i64: 4, 128, 512>}, {pipeline_mode = #tpu.pipeline_mode<synchronous>, transform_indices = @transform_25, window_bounds = array<i64: 4, 32, 128>}, {pipeline_mode = #tpu.pipeline_mode<synchronous>, transform_indices = @transform_26, window_bounds = array<i64: 3, 512>}]} {
    %c0 = arith.constant 0 : index
    %c0_0 = arith.constant 0 : index
    %0 = vector.load %arg1[%c0, %c0_0] : memref<8x512xf32, #tpu.memory_space<vmem>>, vector<8x512xf32>
    %c17_i32 = arith.constant 17 : i32
    %1 = tpu.dynamic_rotate %0 by %c17_i32 dim 1 : vector<8x512xf32>, i32 -> vector<8x512xf32>
    %c0_1 = arith.constant 0 : index
    %c0_2 = arith.constant 0 : index
    %c0_3 = arith.constant 0 : index
    %2 = vector.load %arg20[%c0_1, %c0_2, %c0_3] : memref<9x1x512xf32, #tpu.memory_space<vmem>>, vector<1x1x512xf32>
    %3 = vector.shape_cast %2 : vector<1x1x512xf32> to vector<1x512xf32>
    %4 = vector.broadcast %3 : vector<1x512xf32> to vector<8x512xf32>
    %5 = arith.mulf %1, %4 : vector<8x512xf32>
    %c0_4 = arith.constant 0 : index
    %c0_5 = arith.constant 0 : index
    %6 = vector.load %arg28[%c0_4, %c0_5] : memref<144x512xf32, #tpu.memory_space<vmem>>, vector<8x512xf32>
    tpu.vector_store %arg28[%c0_4, %c0_5], %5 {strides = array<i32>} : memref<144x512xf32, #tpu.memory_space<vmem>>, vector<8x512xf32>,
    %c16_i32 = arith.constant 16 : i32
    %7 = tpu.dynamic_rotate %0 by %c16_i32 dim 1 : vector<8x512xf32>, i32 -> vector<8x512xf32>
    %c1 = arith.constant 1 : index
    %c0_6 = arith.constant 0 : index
    %c0_7 = arith.constant 0 : index
    %8 = vector.load %arg20[%c1, %c0_6, %c0_7] : memref<9x1x512xf32, #tpu.memory_space<vmem>>, vector<1x1x512xf32>
    %9 = vector.shape_cast %8 : vector<1x1x512xf32> to vector<1x512xf32>
    %10 = vector.broadcast %9 : vector<1x512xf32> to vector<8x512xf32>
    %11 = arith.mulf %7, %10 : vector<8x512xf32>
    %c8 = arith.constant 8 : index
    %c0_8 = arith.constant 0 : index
    %12 = vector.load %arg28[%c8, %c0_8] : memref<144x512xf32, #tpu.memory_space<vmem>>, vector<8x512xf32>
    tpu.vector_store %arg28[%c8, %c0_8], %11 {strides = array<i32>} : memref<144x512xf32, #tpu.memory_space<vmem>>, vector<8x512xf32>,
    %c15_i32 = arith.constant 15 : i32
    %13 = tpu.dynamic_rotate %0 by %c15_i32 dim 1 : vector<8x512xf32>, i32 -> vector<8x512xf32>
    %c2 = arith.constant 2 : index
    %c0_9 = arith.constant 0 : index
    %c0_10 = arith.constant 0 : index
    %14 = vector.load %arg20[%c2, %c0_9, %c0_10] : memref<9x1x512xf32, #tpu.memory_space<vmem>>, vector<1x1x512xf32>
    %15 = vector.shape_cast %14 : vector<1x1x512xf32> to vector<1x512xf32>
    %16 = vector.broadcast %15 : vector<1x512xf32> to vector<8x512xf32>
    %17 = arith.mulf %13, %16 : vector<8x512xf32>
    %c16 = arith.constant 16 : index
    %c0_11 = arith.constant 0 : index
    %18 = vector.load %arg28[%c16, %c0_11] : memref<144x512xf32, #tpu.memory_space<vmem>>, vector<8x512xf32>
    tpu.vector_store %arg28[%c16, %c0_11], %17 {strides = array<i32>} : memref<144x512xf32, #tpu.memory_space<vmem>>, vector<8x512xf32>,
    %c1_i32 = arith.constant 1 : i32
    %19 = tpu.dynamic_rotate %0 by %c1_i32 dim 1 : vector<8x512xf32>, i32 -> vector<8x512xf32>
    %c3 = arith.constant 3 : index
    %c0_12 = arith.constant 0 : index
    %c0_13 = arith.constant 0 : index
    %20 = vector.load %arg20[%c3, %c0_12, %c0_13] : memref<9x1x512xf32, #tpu.memory_space<vmem>>, vector<1x1x512xf32>
    %21 = vector.shape_cast %20 : vector<1x1x512xf32> to vector<1x512xf32>
    %22 = vector.broadcast %21 : vector<1x512xf32> to vector<8x512xf32>
    %23 = arith.mulf %19, %22 : vector<8x512xf32>
    %c24 = arith.constant 24 : index
    %c0_14 = arith.constant 0 : index
    %24 = vector.load %arg28[%c24, %c0_14] : memref<144x512xf32, #tpu.memory_space<vmem>>, vector<8x512xf32>
    tpu.vector_store %arg28[%c24, %c0_14], %23 {strides = array<i32>} : memref<144x512xf32, #tpu.memory_space<vmem>>, vector<8x512xf32>,
    %c32 = arith.constant 32 : index
    %c0_15 = arith.constant 0 : index
    %25 = vector.load %arg28[%c32, %c0_15] : memref<144x512xf32, #tpu.memory_space<vmem>>, vector<8x512xf32>
    tpu.vector_store %arg28[%c32, %c0_15], %0 {strides = array<i32>} : memref<144x512xf32, #tpu.memory_space<vmem>>, vector<8x512xf32>,
    %c511_i32 = arith.constant 511 : i32
    %26 = tpu.dynamic_rotate %0 by %c511_i32 dim 1 : vector<8x512xf32>, i32 -> vector<8x512xf32>
    %c5 = arith.constant 5 : index
    %c0_16 = arith.constant 0 : index
    %c0_17 = arith.constant 0 : index
    %27 = vector.load %arg20[%c5, %c0_16, %c0_17] : memref<9x1x512xf32, #tpu.memory_space<vmem>>, vector<1x1x512xf32>
    %28 = vector.shape_cast %27 : vector<1x1x512xf32> to vector<1x512xf32>
    %29 = vector.broadcast %28 : vector<1x512xf32> to vector<8x512xf32>
    %30 = arith.mulf %26, %29 : vector<8x512xf32>
    %c40 = arith.constant 40 : index
    %c0_18 = arith.constant 0 : index
    %31 = vector.load %arg28[%c40, %c0_18] : memref<144x512xf32, #tpu.memory_space<vmem>>, vector<8x512xf32>
    tpu.vector_store %arg28[%c40, %c0_18], %30 {strides = array<i32>} : memref<144x512xf32, #tpu.memory_space<vmem>>, vector<8x512xf32>,
    %c497_i32 = arith.constant 497 : i32
    %32 = tpu.dynamic_rotate %0 by %c497_i32 dim 1 : vector<8x512xf32>, i32 -> vector<8x512xf32>
    %c6 = arith.constant 6 : index
    %c0_19 = arith.constant 0 : index
    %c0_20 = arith.constant 0 : index
    %33 = vector.load %arg20[%c6, %c0_19, %c0_20] : memref<9x1x512xf32, #tpu.memory_space<vmem>>, vector<1x1x512xf32>
    %34 = vector.shape_cast %33 : vector<1x1x512xf32> to vector<1x512xf32>
    %35 = vector.broadcast %34 : vector<1x512xf32> to vector<8x512xf32>
    %36 = arith.mulf %32, %35 : vector<8x512xf32>
    %c48 = arith.constant 48 : index
    %c0_21 = arith.constant 0 : index
    %37 = vector.load %arg28[%c48, %c0_21] : memref<144x512xf32, #tpu.memory_space<vmem>>, vector<8x512xf32>
    tpu.vector_store %arg28[%c48, %c0_21], %36 {strides = array<i32>} : memref<144x512xf32, #tpu.memory_space<vmem>>, vector<8x512xf32>,
    %c496_i32 = arith.constant 496 : i32
    %38 = tpu.dynamic_rotate %0 by %c496_i32 dim 1 : vector<8x512xf32>, i32 -> vector<8x512xf32>
    %c7 = arith.constant 7 : index
    %c0_22 = arith.constant 0 : index
    %c0_23 = arith.constant 0 : index
    %39 = vector.load %arg20[%c7, %c0_22, %c0_23] : memref<9x1x512xf32, #tpu.memory_space<vmem>>, vector<1x1x512xf32>
    %40 = vector.shape_cast %39 : vector<1x1x512xf32> to vector<1x512xf32>
    %41 = vector.broadcast %40 : vector<1x512xf32> to vector<8x512xf32>
    %42 = arith.mulf %38, %41 : vector<8x512xf32>
    %c56 = arith.constant 56 : index
    %c0_24 = arith.constant 0 : index
    %43 = vector.load %arg28[%c56, %c0_24] : memref<144x512xf32, #tpu.memory_space<vmem>>, vector<8x512xf32>
    tpu.vector_store %arg28[%c56, %c0_24], %42 {strides = array<i32>} : memref<144x512xf32, #tpu.memory_space<vmem>>, vector<8x512xf32>,
    %c495_i32 = arith.constant 495 : i32
    %44 = tpu.dynamic_rotate %0 by %c495_i32 dim 1 : vector<8x512xf32>, i32 -> vector<8x512xf32>
    %c8_25 = arith.constant 8 : index
    %c0_26 = arith.constant 0 : index
    %c0_27 = arith.constant 0 : index
    %45 = vector.load %arg20[%c8_25, %c0_26, %c0_27] : memref<9x1x512xf32, #tpu.memory_space<vmem>>, vector<1x1x512xf32>
    %46 = vector.shape_cast %45 : vector<1x1x512xf32> to vector<1x512xf32>
    %47 = vector.broadcast %46 : vector<1x512xf32> to vector<8x512xf32>
    %48 = arith.mulf %44, %47 : vector<8x512xf32>
    %c64 = arith.constant 64 : index
    %c0_28 = arith.constant 0 : index
    %49 = vector.load %arg28[%c64, %c0_28] : memref<144x512xf32, #tpu.memory_space<vmem>>, vector<8x512xf32>
    tpu.vector_store %arg28[%c64, %c0_28], %48 {strides = array<i32>} : memref<144x512xf32, #tpu.memory_space<vmem>>, vector<8x512xf32>,
    %c0_29 = arith.constant 0 : index
    %c0_30 = arith.constant 0 : index
    %50 = vector.load %arg28[%c0_29, %c0_30] : memref<144x512xf32, #tpu.memory_space<vmem>>, vector<72x512xf32>
    %51 = arith.truncf %50 : vector<72x512xf32> to vector<72x512xbf16>
    %c0_31 = arith.constant 0 : index
    %c0_32 = arith.constant 0 : index
    %52 = vector.load %arg2[%c0_31, %c0_32] : memref<8x72xbf16, #tpu.memory_space<vmem>>, vector<8x72xbf16>
    %cst = arith.constant dense<0.000000e+00> : vector<8x512xf32>
    %53 = tpu.matmul %52, %51, %cst {dimension_numbers = #tpu.dot_dimension_numbers<[1], [0], [0], [1], [0, 0, 1, 1], [], []>} : vector<8x72xbf16>, vector<72x512xbf16>, vector<8x512xf32> -> vector<8x512xf32>
    %c0_33 = arith.constant 0 : index
    %c0_34 = arith.constant 0 : index
    %54 = vector.load %arg18[%c0_33, %c0_34] : memref<160x1xf32, #tpu.memory_space<vmem>>, vector<8x1xf32>
    %c0_35 = arith.constant 0 : index
    %c0_36 = arith.constant 0 : index
    %55 = vector.load %arg19[%c0_35, %c0_36] : memref<160x1xf32, #tpu.memory_space<vmem>>, vector<8x1xf32>
    %cst_37 = arith.constant dense<0.000000e+00> : vector<8xf32>
    %56 = vector.multi_reduction <add>, %53, %cst_37 [1] : vector<8x512xf32> to vector<8xf32>
    %57 = vector.shape_cast %56 : vector<8xf32> to vector<8x1xf32>
    %cst_38 = arith.constant 5.120000e+02 : f32
    %58 = vector.broadcast %cst_38 : f32 to vector<8x1xf32>
    %59 = arith.divf %57, %58 : vector<8x1xf32>
    %60 = vector.broadcast %59 : vector<8x1xf32> to vector<8x512xf32>
    %61 = arith.subf %53, %60 : vector<8x512xf32>
    %62 = arith.mulf %61, %61 : vector<8x512xf32>
    %cst_39 = arith.constant dense<0.000000e+00> : vector<8xf32>
    %63 = vector.multi_reduction <add>, %62, %cst_39 [1] : vector<8x512xf32> to vector<8xf32>
    %64 = vector.shape_cast %63 : vector<8xf32> to vector<8x1xf32>
    %cst_40 = arith.constant 5.120000e+02 : f32
    %65 = vector.broadcast %cst_40 : f32 to vector<8x1xf32>
    %66 = arith.divf %64, %65 : vector<8x1xf32>
    %cst_41 = arith.constant 9.99999974E-6 : f32
    %67 = vector.broadcast %cst_41 : f32 to vector<8x1xf32>
    %68 = arith.addf %66, %67 : vector<8x1xf32>
    %69 = math.rsqrt %68 : vector<8x1xf32>
    %70 = arith.mulf %54, %69 : vector<8x1xf32>
    %71 = vector.broadcast %70 : vector<8x1xf32> to vector<8x512xf32>
    %72 = arith.mulf %61, %71 : vector<8x512xf32>
    %73 = vector.broadcast %55 : vector<8x1xf32> to vector<8x512xf32>
    %74 = arith.addf %72, %73 : vector<8x512xf32>
    %cst_42 = arith.constant 0.000000e+00 : f32
    %75 = vector.broadcast %cst_42 : f32 to vector<8x512xf32>
    %76 = arith.maximumf %74, %75 : vector<8x512xf32>
    %c17_i32_43 = arith.constant 17 : i32
    %77 = tpu.dynamic_rotate %76 by %c17_i32_43 dim 1 : vector<8x512xf32>, i32 -> vector<8x512xf32>
    %c0_44 = arith.constant 0 : index
    %c0_45 = arith.constant 0 : index
    %c0_46 = arith.constant 0 : index
    %78 = vector.load %arg20[%c0_44, %c0_45, %c0_46] : memref<9x1x512xf32, #tpu.memory_space<vmem>>, vector<1x1x512xf32>
    %79 = vector.shape_cast %78 : vector<1x1x512xf32> to vector<1x512xf32>
    %80 = vector.broadcast %79 : vector<1x512xf32> to vector<8x512xf32>
    %81 = arith.mulf %77, %80 : vector<8x512xf32>
    %c0_47 = arith.constant 0 : index
    %c0_48 = arith.constant 0 : index
    %82 = vector.load %arg28[%c0_47, %c0_48] : memref<144x512xf32, #tpu.memory_space<vmem>>, vector<8x512xf32>
    tpu.vector_store %arg28[%c0_47, %c0_48], %81 {strides = array<i32>} : memref<144x512xf32, #tpu.memory_space<vmem>>, vector<8x512xf32>,
    %c16_i32_49 = arith.constant 16 : i32
    %83 = tpu.dynamic_rotate %76 by %c16_i32_49 dim 1 : vector<8x512xf32>, i32 -> vector<8x512xf32>
    %c1_50 = arith.constant 1 : index
    %c0_51 = arith.constant 0 : index
    %c0_52 = arith.constant 0 : index
    %84 = vector.load %arg20[%c1_50, %c0_51, %c0_52] : memref<9x1x512xf32, #tpu.memory_space<vmem>>, vector<1x1x512xf32>
    %85 = vector.shape_cast %84 : vector<1x1x512xf32> to vector<1x512xf32>
    %86 = vector.broadcast %85 : vector<1x512xf32> to vector<8x512xf32>
    %87 = arith.mulf %83, %86 : vector<8x512xf32>
    %c8_53 = arith.constant 8 : index
    %c0_54 = arith.constant 0 : index
    %88 = vector.load %arg28[%c8_53, %c0_54] : memref<144x512xf32, #tpu.memory_space<vmem>>, vector<8x512xf32>
    tpu.vector_store %arg28[%c8_53, %c0_54], %87 {strides = array<i32>} : memref<144x512xf32, #tpu.memory_space<vmem>>, vector<8x512xf32>,
    %c15_i32_55 = arith.constant 15 : i32
    %89 = tpu.dynamic_rotate %76 by %c15_i32_55 dim 1 : vector<8x512xf32>, i32 -> vector<8x512xf32>
    %c2_56 = arith.constant 2 : index
    %c0_57 = arith.constant 0 : index
    %c0_58 = arith.constant 0 : index
    %90 = vector.load %arg20[%c2_56, %c0_57, %c0_58] : memref<9x1x512xf32, #tpu.memory_space<vmem>>, vector<1x1x512xf32>
    %91 = vector.shape_cast %90 : vector<1x1x512xf32> to vector<1x512xf32>
    %92 = vector.broadcast %91 : vector<1x512xf32> to vector<8x512xf32>
    %93 = arith.mulf %89, %92 : vector<8x512xf32>
    %c16_59 = arith.constant 16 : index
    %c0_60 = arith.constant 0 : index
    %94 = vector.load %arg28[%c16_59, %c0_60] : memref<144x512xf32, #tpu.memory_space<vmem>>, vector<8x512xf32>
    tpu.vector_store %arg28[%c16_59, %c0_60], %93 {strides = array<i32>} : memref<144x512xf32, #tpu.memory_space<vmem>>, vector<8x512xf32>,
    %c1_i32_61 = arith.constant 1 : i32
    %95 = tpu.dynamic_rotate %76 by %c1_i32_61 dim 1 : vector<8x512xf32>, i32 -> vector<8x512xf32>
    %c3_62 = arith.constant 3 : index
    %c0_63 = arith.constant 0 : index
    %c0_64 = arith.constant 0 : index
    %96 = vector.load %arg20[%c3_62, %c0_63, %c0_64] : memref<9x1x512xf32, #tpu.memory_space<vmem>>, vector<1x1x512xf32>
    %97 = vector.shape_cast %96 : vector<1x1x512xf32> to vector<1x512xf32>
    %98 = vector.broadcast %97 : vector<1x512xf32> to vector<8x512xf32>
    %99 = arith.mulf %95, %98 : vector<8x512xf32>
    %c24_65 = arith.constant 24 : index
    %c0_66 = arith.constant 0 : index
    %100 = vector.load %arg28[%c24_65, %c0_66] : memref<144x512xf32, #tpu.memory_space<vmem>>, vector<8x512xf32>
    tpu.vector_store %arg28[%c24_65, %c0_66], %99 {strides = array<i32>} : memref<144x512xf32, #tpu.memory_space<vmem>>, vector<8x512xf32>,
    %c32_67 = arith.constant 32 : index
    %c0_68 = arith.constant 0 : index
    %101 = vector.load %arg28[%c32_67, %c0_68] : memref<144x512xf32, #tpu.memory_space<vmem>>, vector<8x512xf32>
    tpu.vector_store %arg28[%c32_67, %c0_68], %76 {strides = array<i32>} : memref<144x512xf32, #tpu.memory_space<vmem>>, vector<8x512xf32>,
    %c511_i32_69 = arith.constant 511 : i32
    %102 = tpu.dynamic_rotate %76 by %c511_i32_69 dim 1 : vector<8x512xf32>, i32 -> vector<8x512xf32>
    %c5_70 = arith.constant 5 : index
    %c0_71 = arith.constant 0 : index
    %c0_72 = arith.constant 0 : index
    %103 = vector.load %arg20[%c5_70, %c0_71, %c0_72] : memref<9x1x512xf32, #tpu.memory_space<vmem>>, vector<1x1x512xf32>
    %104 = vector.shape_cast %103 : vector<1x1x512xf32> to vector<1x512xf32>
    %105 = vector.broadcast %104 : vector<1x512xf32> to vector<8x512xf32>
    %106 = arith.mulf %102, %105 : vector<8x512xf32>
    %c40_73 = arith.constant 40 : index
    %c0_74 = arith.constant 0 : index
    %107 = vector.load %arg28[%c40_73, %c0_74] : memref<144x512xf32, #tpu.memory_space<vmem>>, vector<8x512xf32>
    tpu.vector_store %arg28[%c40_73, %c0_74], %106 {strides = array<i32>} : memref<144x512xf32, #tpu.memory_space<vmem>>, vector<8x512xf32>,
    %c497_i32_75 = arith.constant 497 : i32
    %108 = tpu.dynamic_rotate %76 by %c497_i32_75 dim 1 : vector<8x512xf32>, i32 -> vector<8x512xf32>
    %c6_76 = arith.constant 6 : index
    %c0_77 = arith.constant 0 : index
    %c0_78 = arith.constant 0 : index
    %109 = vector.load %arg20[%c6_76, %c0_77, %c0_78] : memref<9x1x512xf32, #tpu.memory_space<vmem>>, vector<1x1x512xf32>
    %110 = vector.shape_cast %109 : vector<1x1x512xf32> to vector<1x512xf32>
    %111 = vector.broadcast %110 : vector<1x512xf32> to vector<8x512xf32>
    %112 = arith.mulf %108, %111 : vector<8x512xf32>
    %c48_79 = arith.constant 48 : index
    %c0_80 = arith.constant 0 : index
    %113 = vector.load %arg28[%c48_79, %c0_80] : memref<144x512xf32, #tpu.memory_space<vmem>>, vector<8x512xf32>
    tpu.vector_store %arg28[%c48_79, %c0_80], %112 {strides = array<i32>} : memref<144x512xf32, #tpu.memory_space<vmem>>, vector<8x512xf32>,
    %c496_i32_81 = arith.constant 496 : i32
    %114 = tpu.dynamic_rotate %76 by %c496_i32_81 dim 1 : vector<8x512xf32>, i32 -> vector<8x512xf32>
    %c7_82 = arith.constant 7 : index
    %c0_83 = arith.constant 0 : index
    %c0_84 = arith.constant 0 : index
    %115 = vector.load %arg20[%c7_82, %c0_83, %c0_84] : memref<9x1x512xf32, #tpu.memory_space<vmem>>, vector<1x1x512xf32>
    %116 = vector.shape_cast %115 : vector<1x1x512xf32> to vector<1x512xf32>
    %117 = vector.broadcast %116 : vector<1x512xf32> to vector<8x512xf32>
    %118 = arith.mulf %114, %117 : vector<8x512xf32>
    %c56_85 = arith.constant 56 : index
    %c0_86 = arith.constant 0 : index
    %119 = vector.load %arg28[%c56_85, %c0_86] : memref<144x512xf32, #tpu.memory_space<vmem>>, vector<8x512xf32>
    tpu.vector_store %arg28[%c56_85, %c0_86], %118 {strides = array<i32>} : memref<144x512xf32, #tpu.memory_space<vmem>>, vector<8x512xf32>,
    %c495_i32_87 = arith.constant 495 : i32
    %120 = tpu.dynamic_rotate %76 by %c495_i32_87 dim 1 : vector<8x512xf32>, i32 -> vector<8x512xf32>
    %c8_88 = arith.constant 8 : index
    %c0_89 = arith.constant 0 : index
    %c0_90 = arith.constant 0 : index
    %121 = vector.load %arg20[%c8_88, %c0_89, %c0_90] : memref<9x1x512xf32, #tpu.memory_space<vmem>>, vector<1x1x512xf32>
    %122 = vector.shape_cast %121 : vector<1x1x512xf32> to vector<1x512xf32>
    %123 = vector.broadcast %122 : vector<1x512xf32> to vector<8x512xf32>
    %124 = arith.mulf %120, %123 : vector<8x512xf32>
    %c64_91 = arith.constant 64 : index
    %c0_92 = arith.constant 0 : index
    %125 = vector.load %arg28[%c64_91, %c0_92] : memref<144x512xf32, #tpu.memory_space<vmem>>, vector<8x512xf32>
    tpu.vector_store %arg28[%c64_91, %c0_92], %124 {strides = array<i32>} : memref<144x512xf32, #tpu.memory_space<vmem>>, vector<8x512xf32>,
    %c0_93 = arith.constant 0 : index
    %c0_94 = arith.constant 0 : index
    %126 = vector.load %arg28[%c0_93, %c0_94] : memref<144x512xf32, #tpu.memory_space<vmem>>, vector<72x512xf32>
    %127 = arith.truncf %126 : vector<72x512xf32> to vector<72x512xbf16>
    %c0_95 = arith.constant 0 : index
    %c0_96 = arith.constant 0 : index
    %128 = vector.load %arg3[%c0_95, %c0_96] : memref<8x72xbf16, #tpu.memory_space<vmem>>, vector<8x72xbf16>
    %cst_97 = arith.constant dense<0.000000e+00> : vector<8x512xf32>
    %129 = tpu.matmul %128, %127, %cst_97 {dimension_numbers = #tpu.dot_dimension_numbers<[1], [0], [0], [1], [0, 0, 1, 1], [], []>} : vector<8x72xbf16>, vector<72x512xbf16>, vector<8x512xf32> -> vector<8x512xf32>
    %c8_98 = arith.constant 8 : index
    %c0_99 = arith.constant 0 : index
    %130 = vector.load %arg18[%c8_98, %c0_99] : memref<160x1xf32, #tpu.memory_space<vmem>>, vector<8x1xf32>
    %c8_100 = arith.constant 8 : index
    %c0_101 = arith.constant 0 : index
    %131 = vector.load %arg19[%c8_100, %c0_101] : memref<160x1xf32, #tpu.memory_space<vmem>>, vector<8x1xf32>
    %cst_102 = arith.constant dense<0.000000e+00> : vector<8xf32>
    %132 = vector.multi_reduction <add>, %129, %cst_102 [1] : vector<8x512xf32> to vector<8xf32>
    %133 = vector.shape_cast %132 : vector<8xf32> to vector<8x1xf32>
    %cst_103 = arith.constant 5.120000e+02 : f32
    %134 = vector.broadcast %cst_103 : f32 to vector<8x1xf32>
    %135 = arith.divf %133, %134 : vector<8x1xf32>
    %136 = vector.broadcast %135 : vector<8x1xf32> to vector<8x512xf32>
    %137 = arith.subf %129, %136 : vector<8x512xf32>
    %138 = arith.mulf %137, %137 : vector<8x512xf32>
    %cst_104 = arith.constant dense<0.000000e+00> : vector<8xf32>
    %139 = vector.multi_reduction <add>, %138, %cst_104 [1] : vector<8x512xf32> to vector<8xf32>
    %140 = vector.shape_cast %139 : vector<8xf32> to vector<8x1xf32>
    %cst_105 = arith.constant 5.120000e+02 : f32
    %141 = vector.broadcast %cst_105 : f32 to vector<8x1xf32>
    %142 = arith.divf %140, %141 : vector<8x1xf32>
    %cst_106 = arith.constant 9.99999974E-6 : f32
    %143 = vector.broadcast %cst_106 : f32 to vector<8x1xf32>
    %144 = arith.addf %142, %143 : vector<8x1xf32>
    %145 = math.rsqrt %144 : vector<8x1xf32>
    %146 = arith.mulf %130, %145 : vector<8x1xf32>
    %147 = vector.broadcast %146 : vector<8x1xf32> to vector<8x512xf32>
    %148 = arith.mulf %137, %147 : vector<8x512xf32>
    %149 = vector.broadcast %131 : vector<8x1xf32> to vector<8x512xf32>
    %150 = arith.addf %148, %149 : vector<8x512xf32>
    %cst_107 = arith.constant 0.000000e+00 : f32
    %151 = vector.broadcast %cst_107 : f32 to vector<8x512xf32>
    %152 = arith.maximumf %150, %151 : vector<8x512xf32>
    %c511_i32_108 = arith.constant 511 : i32
    %153 = tpu.dynamic_rotate %152 by %c511_i32_108 dim 1 : vector<8x512xf32>, i32 -> vector<8x512xf32>
    %154 = arith.maximumf %152, %153 : vector<8x512xf32>
    %c496_i32_109 = arith.constant 496 : i32
    %155 = tpu.dynamic_rotate %154 by %c496_i32_109 dim 1 : vector<8x512xf32>, i32 -> vector<8x512xf32>
    %156 = arith.maximumf %154, %155 : vector<8x512xf32>
    %157 = arith.truncf %156 : vector<8x512xf32> to vector<8x512xbf16>
    %c0_110 = arith.constant 0 : index
    %c0_111 = arith.constant 0 : index
    %158 = vector.load %arg23[%c0_110, %c0_111] : memref<512x128xbf16, #tpu.memory_space<vmem>>, vector<512x128xbf16>
    %cst_112 = arith.constant dense<0.000000e+00> : vector<8x128xf32>
    %159 = tpu.matmul %157, %158, %cst_112 {dimension_numbers = #tpu.dot_dimension_numbers<[1], [0], [0], [1], [0, 0, 1, 1], [], []>} : vector<8x512xbf16>, vector<512x128xbf16>, vector<8x128xf32> -> vector<8x128xf32>
    %c9_i32 = arith.constant 9 : i32
    %160 = tpu.dynamic_rotate %159 by %c9_i32 dim 1 : vector<8x128xf32>, i32 -> vector<8x128xf32>
    %c0_113 = arith.constant 0 : index
    %c0_114 = arith.constant 0 : index
    %c0_115 = arith.constant 0 : index
    %161 = vector.load %arg21[%c0_113, %c0_114, %c0_115] : memref<9x1x128xf32, #tpu.memory_space<vmem>>, vector<1x1x128xf32>
    %162 = vector.shape_cast %161 : vector<1x1x128xf32> to vector<1x128xf32>
    %163 = vector.broadcast %162 : vector<1x128xf32> to vector<8x128xf32>
    %164 = arith.mulf %160, %163 : vector<8x128xf32>
    %c0_116 = arith.constant 0 : index
    %c0_117 = arith.constant 0 : index
    %165 = vector.load %arg29[%c0_116, %c0_117] : memref<288x128xf32, #tpu.memory_space<vmem>>, vector<8x128xf32>
    tpu.vector_store %arg29[%c0_116, %c0_117], %164 {strides = array<i32>} : memref<288x128xf32, #tpu.memory_space<vmem>>, vector<8x128xf32>,
    %c8_i32 = arith.constant 8 : i32
    %166 = tpu.dynamic_rotate %159 by %c8_i32 dim 1 : vector<8x128xf32>, i32 -> vector<8x128xf32>
    %c1_118 = arith.constant 1 : index
    %c0_119 = arith.constant 0 : index
    %c0_120 = arith.constant 0 : index
    %167 = vector.load %arg21[%c1_118, %c0_119, %c0_120] : memref<9x1x128xf32, #tpu.memory_space<vmem>>, vector<1x1x128xf32>
    %168 = vector.shape_cast %167 : vector<1x1x128xf32> to vector<1x128xf32>
    %169 = vector.broadcast %168 : vector<1x128xf32> to vector<8x128xf32>
    %170 = arith.mulf %166, %169 : vector<8x128xf32>
    %c8_121 = arith.constant 8 : index
    %c0_122 = arith.constant 0 : index
    %171 = vector.load %arg29[%c8_121, %c0_122] : memref<288x128xf32, #tpu.memory_space<vmem>>, vector<8x128xf32>
    tpu.vector_store %arg29[%c8_121, %c0_122], %170 {strides = array<i32>} : memref<288x128xf32, #tpu.memory_space<vmem>>, vector<8x128xf32>,
    %c7_i32 = arith.constant 7 : i32
    %172 = tpu.dynamic_rotate %159 by %c7_i32 dim 1 : vector<8x128xf32>, i32 -> vector<8x128xf32>
    %c2_123 = arith.constant 2 : index
    %c0_124 = arith.constant 0 : index
    %c0_125 = arith.constant 0 : index
    %173 = vector.load %arg21[%c2_123, %c0_124, %c0_125] : memref<9x1x128xf32, #tpu.memory_space<vmem>>, vector<1x1x128xf32>
    %174 = vector.shape_cast %173 : vector<1x1x128xf32> to vector<1x128xf32>
    %175 = vector.broadcast %174 : vector<1x128xf32> to vector<8x128xf32>
    %176 = arith.mulf %172, %175 : vector<8x128xf32>
    %c16_126 = arith.constant 16 : index
    %c0_127 = arith.constant 0 : index
    %177 = vector.load %arg29[%c16_126, %c0_127] : memref<288x128xf32, #tpu.memory_space<vmem>>, vector<8x128xf32>
    tpu.vector_store %arg29[%c16_126, %c0_127], %176 {strides = array<i32>} : memref<288x128xf32, #tpu.memory_space<vmem>>, vector<8x128xf32>,
    %c1_i32_128 = arith.constant 1 : i32
    %178 = tpu.dynamic_rotate %159 by %c1_i32_128 dim 1 : vector<8x128xf32>, i32 -> vector<8x128xf32>
    %c3_129 = arith.constant 3 : index
    %c0_130 = arith.constant 0 : index
    %c0_131 = arith.constant 0 : index
    %179 = vector.load %arg21[%c3_129, %c0_130, %c0_131] : memref<9x1x128xf32, #tpu.memory_space<vmem>>, vector<1x1x128xf32>
    %180 = vector.shape_cast %179 : vector<1x1x128xf32> to vector<1x128xf32>
    %181 = vector.broadcast %180 : vector<1x128xf32> to vector<8x128xf32>
    %182 = arith.mulf %178, %181 : vector<8x128xf32>
    %c24_132 = arith.constant 24 : index
    %c0_133 = arith.constant 0 : index
    %183 = vector.load %arg29[%c24_132, %c0_133] : memref<288x128xf32, #tpu.memory_space<vmem>>, vector<8x128xf32>
    tpu.vector_store %arg29[%c24_132, %c0_133], %182 {strides = array<i32>} : memref<288x128xf32, #tpu.memory_space<vmem>>, vector<8x128xf32>,
    %c32_134 = arith.constant 32 : index
    %c0_135 = arith.constant 0 : index
    %184 = vector.load %arg29[%c32_134, %c0_135] : memref<288x128xf32, #tpu.memory_space<vmem>>, vector<8x128xf32>
    tpu.vector_store %arg29[%c32_134, %c0_135], %159 {strides = array<i32>} : memref<288x128xf32, #tpu.memory_space<vmem>>, vector<8x128xf32>,
    %c127_i32 = arith.constant 127 : i32
    %185 = tpu.dynamic_rotate %159 by %c127_i32 dim 1 : vector<8x128xf32>, i32 -> vector<8x128xf32>
    %c5_136 = arith.constant 5 : index
    %c0_137 = arith.constant 0 : index
    %c0_138 = arith.constant 0 : index
    %186 = vector.load %arg21[%c5_136, %c0_137, %c0_138] : memref<9x1x128xf32, #tpu.memory_space<vmem>>, vector<1x1x128xf32>
    %187 = vector.shape_cast %186 : vector<1x1x128xf32> to vector<1x128xf32>
    %188 = vector.broadcast %187 : vector<1x128xf32> to vector<8x128xf32>
    %189 = arith.mulf %185, %188 : vector<8x128xf32>
    %c40_139 = arith.constant 40 : index
    %c0_140 = arith.constant 0 : index
    %190 = vector.load %arg29[%c40_139, %c0_140] : memref<288x128xf32, #tpu.memory_space<vmem>>, vector<8x128xf32>
    tpu.vector_store %arg29[%c40_139, %c0_140], %189 {strides = array<i32>} : memref<288x128xf32, #tpu.memory_space<vmem>>, vector<8x128xf32>,
    %c121_i32 = arith.constant 121 : i32
    %191 = tpu.dynamic_rotate %159 by %c121_i32 dim 1 : vector<8x128xf32>, i32 -> vector<8x128xf32>
    %c6_141 = arith.constant 6 : index
    %c0_142 = arith.constant 0 : index
    %c0_143 = arith.constant 0 : index
    %192 = vector.load %arg21[%c6_141, %c0_142, %c0_143] : memref<9x1x128xf32, #tpu.memory_space<vmem>>, vector<1x1x128xf32>
    %193 = vector.shape_cast %192 : vector<1x1x128xf32> to vector<1x128xf32>
    %194 = vector.broadcast %193 : vector<1x128xf32> to vector<8x128xf32>
    %195 = arith.mulf %191, %194 : vector<8x128xf32>
    %c48_144 = arith.constant 48 : index
    %c0_145 = arith.constant 0 : index
    %196 = vector.load %arg29[%c48_144, %c0_145] : memref<288x128xf32, #tpu.memory_space<vmem>>, vector<8x128xf32>
    tpu.vector_store %arg29[%c48_144, %c0_145], %195 {strides = array<i32>} : memref<288x128xf32, #tpu.memory_space<vmem>>, vector<8x128xf32>,
    %c120_i32 = arith.constant 120 : i32
    %197 = tpu.dynamic_rotate %159 by %c120_i32 dim 1 : vector<8x128xf32>, i32 -> vector<8x128xf32>
    %c7_146 = arith.constant 7 : index
    %c0_147 = arith.constant 0 : index
    %c0_148 = arith.constant 0 : index
    %198 = vector.load %arg21[%c7_146, %c0_147, %c0_148] : memref<9x1x128xf32, #tpu.memory_space<vmem>>, vector<1x1x128xf32>
    %199 = vector.shape_cast %198 : vector<1x1x128xf32> to vector<1x128xf32>
    %200 = vector.broadcast %199 : vector<1x128xf32> to vector<8x128xf32>
    %201 = arith.mulf %197, %200 : vector<8x128xf32>
    %c56_149 = arith.constant 56 : index
    %c0_150 = arith.constant 0 : index
    %202 = vector.load %arg29[%c56_149, %c0_150] : memref<288x128xf32, #tpu.memory_space<vmem>>, vector<8x128xf32>
    tpu.vector_store %arg29[%c56_149, %c0_150], %201 {strides = array<i32>} : memref<288x128xf32, #tpu.memory_space<vmem>>, vector<8x128xf32>,
    %c119_i32 = arith.constant 119 : i32
    %203 = tpu.dynamic_rotate %159 by %c119_i32 dim 1 : vector<8x128xf32>, i32 -> vector<8x128xf32>
    %c8_151 = arith.constant 8 : index
    %c0_152 = arith.constant 0 : index
    %c0_153 = arith.constant 0 : index
    %204 = vector.load %arg21[%c8_151, %c0_152, %c0_153] : memref<9x1x128xf32, #tpu.memory_space<vmem>>, vector<1x1x128xf32>
    %205 = vector.shape_cast %204 : vector<1x1x128xf32> to vector<1x128xf32>
    %206 = vector.broadcast %205 : vector<1x128xf32> to vector<8x128xf32>
    %207 = arith.mulf %203, %206 : vector<8x128xf32>
    %c64_154 = arith.constant 64 : index
    %c0_155 = arith.constant 0 : index
    %208 = vector.load %arg29[%c64_154, %c0_155] : memref<288x128xf32, #tpu.memory_space<vmem>>, vector<8x128xf32>
    tpu.vector_store %arg29[%c64_154, %c0_155], %207 {strides = array<i32>} : memref<288x128xf32, #tpu.memory_space<vmem>>, vector<8x128xf32>,
    %c0_156 = arith.constant 0 : index
    %c0_157 = arith.constant 0 : index
    %209 = vector.load %arg29[%c0_156, %c0_157] : memref<288x128xf32, #tpu.memory_space<vmem>>, vector<72x128xf32>
    %210 = arith.truncf %209 : vector<72x128xf32> to vector<72x128xbf16>
    %c0_158 = arith.constant 0 : index
    %c0_159 = arith.constant 0 : index
    %211 = vector.load %arg4[%c0_158, %c0_159] : memref<16x72xbf16, #tpu.memory_space<vmem>>, vector<16x72xbf16>
    %cst_160 = arith.constant dense<0.000000e+00> : vector<16x128xf32>
    %212 = tpu.matmul %211, %210, %cst_160 {dimension_numbers = #tpu.dot_dimension_numbers<[1], [0], [0], [1], [0, 0, 1, 1], [], []>} : vector<16x72xbf16>, vector<72x128xbf16>, vector<16x128xf32> -> vector<16x128xf32>
    %c16_161 = arith.constant 16 : index
    %c0_162 = arith.constant 0 : index
    %213 = vector.load %arg18[%c16_161, %c0_162] : memref<160x1xf32, #tpu.memory_space<vmem>>, vector<16x1xf32>
    %c16_163 = arith.constant 16 : index
    %c0_164 = arith.constant 0 : index
    %214 = vector.load %arg19[%c16_163, %c0_164] : memref<160x1xf32, #tpu.memory_space<vmem>>, vector<16x1xf32>
    %cst_165 = arith.constant dense<0.000000e+00> : vector<16xf32>
    %215 = vector.multi_reduction <add>, %212, %cst_165 [1] : vector<16x128xf32> to vector<16xf32>
    %216 = vector.shape_cast %215 : vector<16xf32> to vector<16x1xf32>
    %cst_166 = arith.constant 1.280000e+02 : f32
    %217 = vector.broadcast %cst_166 : f32 to vector<16x1xf32>
    %218 = arith.divf %216, %217 : vector<16x1xf32>
    %219 = vector.broadcast %218 : vector<16x1xf32> to vector<16x128xf32>
    %220 = arith.subf %212, %219 : vector<16x128xf32>
    %221 = arith.mulf %220, %220 : vector<16x128xf32>
    %cst_167 = arith.constant dense<0.000000e+00> : vector<16xf32>
    %222 = vector.multi_reduction <add>, %221, %cst_167 [1] : vector<16x128xf32> to vector<16xf32>
    %223 = vector.shape_cast %222 : vector<16xf32> to vector<16x1xf32>
    %cst_168 = arith.constant 1.280000e+02 : f32
    %224 = vector.broadcast %cst_168 : f32 to vector<16x1xf32>
    %225 = arith.divf %223, %224 : vector<16x1xf32>
    %cst_169 = arith.constant 9.99999974E-6 : f32
    %226 = vector.broadcast %cst_169 : f32 to vector<16x1xf32>
    %227 = arith.addf %225, %226 : vector<16x1xf32>
    %228 = math.rsqrt %227 : vector<16x1xf32>
    %229 = arith.mulf %213, %228 : vector<16x1xf32>
    %230 = vector.broadcast %229 : vector<16x1xf32> to vector<16x128xf32>
    %231 = arith.mulf %220, %230 : vector<16x128xf32>
    %232 = vector.broadcast %214 : vector<16x1xf32> to vector<16x128xf32>
    %233 = arith.addf %231, %232 : vector<16x128xf32>
    %cst_170 = arith.constant 0.000000e+00 : f32
    %234 = vector.broadcast %cst_170 : f32 to vector<16x128xf32>
    %235 = arith.maximumf %233, %234 : vector<16x128xf32>
    %c9_i32_171 = arith.constant 9 : i32
    %236 = tpu.dynamic_rotate %235 by %c9_i32_171 dim 1 : vector<16x128xf32>, i32 -> vector<16x128xf32>
    %c0_172 = arith.constant 0 : index
    %c0_173 = arith.constant 0 : index
    %c0_174 = arith.constant 0 : index
    %237 = vector.load %arg21[%c0_172, %c0_173, %c0_174] : memref<9x1x128xf32, #tpu.memory_space<vmem>>, vector<1x1x128xf32>
    %238 = vector.shape_cast %237 : vector<1x1x128xf32> to vector<1x128xf32>
    %239 = vector.broadcast %238 : vector<1x128xf32> to vector<16x128xf32>
    %240 = arith.mulf %236, %239 : vector<16x128xf32>
    %c0_175 = arith.constant 0 : index
    %c0_176 = arith.constant 0 : index
    %241 = vector.load %arg29[%c0_175, %c0_176] : memref<288x128xf32, #tpu.memory_space<vmem>>, vector<16x128xf32>
    tpu.vector_store %arg29[%c0_175, %c0_176], %240 {strides = array<i32>} : memref<288x128xf32, #tpu.memory_space<vmem>>, vector<16x128xf32>,
    %c8_i32_177 = arith.constant 8 : i32
    %242 = tpu.dynamic_rotate %235 by %c8_i32_177 dim 1 : vector<16x128xf32>, i32 -> vector<16x128xf32>
    %c1_178 = arith.constant 1 : index
    %c0_179 = arith.constant 0 : index
    %c0_180 = arith.constant 0 : index
    %243 = vector.load %arg21[%c1_178, %c0_179, %c0_180] : memref<9x1x128xf32, #tpu.memory_space<vmem>>, vector<1x1x128xf32>
    %244 = vector.shape_cast %243 : vector<1x1x128xf32> to vector<1x128xf32>
    %245 = vector.broadcast %244 : vector<1x128xf32> to vector<16x128xf32>
    %246 = arith.mulf %242, %245 : vector<16x128xf32>
    %c16_181 = arith.constant 16 : index
    %c0_182 = arith.constant 0 : index
    %247 = vector.load %arg29[%c16_181, %c0_182] : memref<288x128xf32, #tpu.memory_space<vmem>>, vector<16x128xf32>
    tpu.vector_store %arg29[%c16_181, %c0_182], %246 {strides = array<i32>} : memref<288x128xf32, #tpu.memory_space<vmem>>, vector<16x128xf32>,
    %c7_i32_183 = arith.constant 7 : i32
    %248 = tpu.dynamic_rotate %235 by %c7_i32_183 dim 1 : vector<16x128xf32>, i32 -> vector<16x128xf32>
    %c2_184 = arith.constant 2 : index
    %c0_185 = arith.constant 0 : index
    %c0_186 = arith.constant 0 : index
    %249 = vector.load %arg21[%c2_184, %c0_185, %c0_186] : memref<9x1x128xf32, #tpu.memory_space<vmem>>, vector<1x1x128xf32>
    %250 = vector.shape_cast %249 : vector<1x1x128xf32> to vector<1x128xf32>
    %251 = vector.broadcast %250 : vector<1x128xf32> to vector<16x128xf32>
    %252 = arith.mulf %248, %251 : vector<16x128xf32>
    %c32_187 = arith.constant 32 : index
    %c0_188 = arith.constant 0 : index
    %253 = vector.load %arg29[%c32_187, %c0_188] : memref<288x128xf32, #tpu.memory_space<vmem>>, vector<16x128xf32>
    tpu.vector_store %arg29[%c32_187, %c0_188], %252 {strides = array<i32>} : memref<288x128xf32, #tpu.memory_space<vmem>>, vector<16x128xf32>,
    %c1_i32_189 = arith.constant 1 : i32
    %254 = tpu.dynamic_rotate %235 by %c1_i32_189 dim 1 : vector<16x128xf32>, i32 -> vector<16x128xf32>
    %c3_190 = arith.constant 3 : index
    %c0_191 = arith.constant 0 : index
    %c0_192 = arith.constant 0 : index
    %255 = vector.load %arg21[%c3_190, %c0_191, %c0_192] : memref<9x1x128xf32, #tpu.memory_space<vmem>>, vector<1x1x128xf32>
    %256 = vector.shape_cast %255 : vector<1x1x128xf32> to vector<1x128xf32>
    %257 = vector.broadcast %256 : vector<1x128xf32> to vector<16x128xf32>
    %258 = arith.mulf %254, %257 : vector<16x128xf32>
    %c48_193 = arith.constant 48 : index
    %c0_194 = arith.constant 0 : index
    %259 = vector.load %arg29[%c48_193, %c0_194] : memref<288x128xf32, #tpu.memory_space<vmem>>, vector<16x128xf32>
    tpu.vector_store %arg29[%c48_193, %c0_194], %258 {strides = array<i32>} : memref<288x128xf32, #tpu.memory_space<vmem>>, vector<16x128xf32>,
    %c64_195 = arith.constant 64 : index
    %c0_196 = arith.constant 0 : index
    %260 = vector.load %arg29[%c64_195, %c0_196] : memref<288x128xf32, #tpu.memory_space<vmem>>, vector<16x128xf32>
    tpu.vector_store %arg29[%c64_195, %c0_196], %235 {strides = array<i32>} : memref<288x128xf32, #tpu.memory_space<vmem>>, vector<16x128xf32>,
    %c127_i32_197 = arith.constant 127 : i32
    %261 = tpu.dynamic_rotate %235 by %c127_i32_197 dim 1 : vector<16x128xf32>, i32 -> vector<16x128xf32>
    %c5_198 = arith.constant 5 : index
    %c0_199 = arith.constant 0 : index
    %c0_200 = arith.constant 0 : index
    %262 = vector.load %arg21[%c5_198, %c0_199, %c0_200] : memref<9x1x128xf32, #tpu.memory_space<vmem>>, vector<1x1x128xf32>
    %263 = vector.shape_cast %262 : vector<1x1x128xf32> to vector<1x128xf32>
    %264 = vector.broadcast %263 : vector<1x128xf32> to vector<16x128xf32>
    %265 = arith.mulf %261, %264 : vector<16x128xf32>
    %c80 = arith.constant 80 : index
    %c0_201 = arith.constant 0 : index
    %266 = vector.load %arg29[%c80, %c0_201] : memref<288x128xf32, #tpu.memory_space<vmem>>, vector<16x128xf32>
    tpu.vector_store %arg29[%c80, %c0_201], %265 {strides = array<i32>} : memref<288x128xf32, #tpu.memory_space<vmem>>, vector<16x128xf32>,
    %c121_i32_202 = arith.constant 121 : i32
    %267 = tpu.dynamic_rotate %235 by %c121_i32_202 dim 1 : vector<16x128xf32>, i32 -> vector<16x128xf32>
    %c6_203 = arith.constant 6 : index
    %c0_204 = arith.constant 0 : index
    %c0_205 = arith.constant 0 : index
    %268 = vector.load %arg21[%c6_203, %c0_204, %c0_205] : memref<9x1x128xf32, #tpu.memory_space<vmem>>, vector<1x1x128xf32>
    %269 = vector.shape_cast %268 : vector<1x1x128xf32> to vector<1x128xf32>
    %270 = vector.broadcast %269 : vector<1x128xf32> to vector<16x128xf32>
    %271 = arith.mulf %267, %270 : vector<16x128xf32>
    %c96 = arith.constant 96 : index
    %c0_206 = arith.constant 0 : index
    %272 = vector.load %arg29[%c96, %c0_206] : memref<288x128xf32, #tpu.memory_space<vmem>>, vector<16x128xf32>
    tpu.vector_store %arg29[%c96, %c0_206], %271 {strides = array<i32>} : memref<288x128xf32, #tpu.memory_space<vmem>>, vector<16x128xf32>,
    %c120_i32_207 = arith.constant 120 : i32
    %273 = tpu.dynamic_rotate %235 by %c120_i32_207 dim 1 : vector<16x128xf32>, i32 -> vector<16x128xf32>
    %c7_208 = arith.constant 7 : index
    %c0_209 = arith.constant 0 : index
    %c0_210 = arith.constant 0 : index
    %274 = vector.load %arg21[%c7_208, %c0_209, %c0_210] : memref<9x1x128xf32, #tpu.memory_space<vmem>>, vector<1x1x128xf32>
    %275 = vector.shape_cast %274 : vector<1x1x128xf32> to vector<1x128xf32>
    %276 = vector.broadcast %275 : vector<1x128xf32> to vector<16x128xf32>
    %277 = arith.mulf %273, %276 : vector<16x128xf32>
    %c112 = arith.constant 112 : index
    %c0_211 = arith.constant 0 : index
    %278 = vector.load %arg29[%c112, %c0_211] : memref<288x128xf32, #tpu.memory_space<vmem>>, vector<16x128xf32>
    tpu.vector_store %arg29[%c112, %c0_211], %277 {strides = array<i32>} : memref<288x128xf32, #tpu.memory_space<vmem>>, vector<16x128xf32>,
    %c119_i32_212 = arith.constant 119 : i32
    %279 = tpu.dynamic_rotate %235 by %c119_i32_212 dim 1 : vector<16x128xf32>, i32 -> vector<16x128xf32>
    %c8_213 = arith.constant 8 : index
    %c0_214 = arith.constant 0 : index
    %c0_215 = arith.constant 0 : index
    %280 = vector.load %arg21[%c8_213, %c0_214, %c0_215] : memref<9x1x128xf32, #tpu.memory_space<vmem>>, vector<1x1x128xf32>
    %281 = vector.shape_cast %280 : vector<1x1x128xf32> to vector<1x128xf32>
    %282 = vector.broadcast %281 : vector<1x128xf32> to vector<16x128xf32>
    %283 = arith.mulf %279, %282 : vector<16x128xf32>
    %c128 = arith.constant 128 : index
    %c0_216 = arith.constant 0 : index
    %284 = vector.load %arg29[%c128, %c0_216] : memref<288x128xf32, #tpu.memory_space<vmem>>, vector<16x128xf32>
    tpu.vector_store %arg29[%c128, %c0_216], %283 {strides = array<i32>} : memref<288x128xf32, #tpu.memory_space<vmem>>, vector<16x128xf32>,
    %c0_217 = arith.constant 0 : index
    %c0_218 = arith.constant 0 : index
    %285 = vector.load %arg29[%c0_217, %c0_218] : memref<288x128xf32, #tpu.memory_space<vmem>>, vector<144x128xf32>
    %286 = arith.truncf %285 : vector<144x128xf32> to vector<144x128xbf16>
    %c0_219 = arith.constant 0 : index
    %c0_220 = arith.constant 0 : index
    %287 = vector.load %arg5[%c0_219, %c0_220] : memref<16x144xbf16, #tpu.memory_space<vmem>>, vector<16x144xbf16>
    %cst_221 = arith.constant dense<0.000000e+00> : vector<16x128xf32>
    %288 = tpu.matmul %287, %286, %cst_221 {dimension_numbers = #tpu.dot_dimension_numbers<[1], [0], [0], [1], [0, 0, 1, 1], [], []>} : vector<16x144xbf16>, vector<144x128xbf16>, vector<16x128xf32> -> vector<16x128xf32>
    %c32_222 = arith.constant 32 : index
    %c0_223 = arith.constant 0 : index
    %289 = vector.load %arg18[%c32_222, %c0_223] : memref<160x1xf32, #tpu.memory_space<vmem>>, vector<16x1xf32>
    %c32_224 = arith.constant 32 : index
    %c0_225 = arith.constant 0 : index
    %290 = vector.load %arg19[%c32_224, %c0_225] : memref<160x1xf32, #tpu.memory_space<vmem>>, vector<16x1xf32>
    %cst_226 = arith.constant dense<0.000000e+00> : vector<16xf32>
    %291 = vector.multi_reduction <add>, %288, %cst_226 [1] : vector<16x128xf32> to vector<16xf32>
    %292 = vector.shape_cast %291 : vector<16xf32> to vector<16x1xf32>
    %cst_227 = arith.constant 1.280000e+02 : f32
    %293 = vector.broadcast %cst_227 : f32 to vector<16x1xf32>
    %294 = arith.divf %292, %293 : vector<16x1xf32>
    %295 = vector.broadcast %294 : vector<16x1xf32> to vector<16x128xf32>
    %296 = arith.subf %288, %295 : vector<16x128xf32>
    %297 = arith.mulf %296, %296 : vector<16x128xf32>
    %cst_228 = arith.constant dense<0.000000e+00> : vector<16xf32>
    %298 = vector.multi_reduction <add>, %297, %cst_228 [1] : vector<16x128xf32> to vector<16xf32>
    %299 = vector.shape_cast %298 : vector<16xf32> to vector<16x1xf32>
    %cst_229 = arith.constant 1.280000e+02 : f32
    %300 = vector.broadcast %cst_229 : f32 to vector<16x1xf32>
    %301 = arith.divf %299, %300 : vector<16x1xf32>
    %cst_230 = arith.constant 9.99999974E-6 : f32
    %302 = vector.broadcast %cst_230 : f32 to vector<16x1xf32>
    %303 = arith.addf %301, %302 : vector<16x1xf32>
    %304 = math.rsqrt %303 : vector<16x1xf32>
    %305 = arith.mulf %289, %304 : vector<16x1xf32>
    %306 = vector.broadcast %305 : vector<16x1xf32> to vector<16x128xf32>
    %307 = arith.mulf %296, %306 : vector<16x128xf32>
    %308 = vector.broadcast %290 : vector<16x1xf32> to vector<16x128xf32>
    %309 = arith.addf %307, %308 : vector<16x128xf32>
    %cst_231 = arith.constant 0.000000e+00 : f32
    %310 = vector.broadcast %cst_231 : f32 to vector<16x128xf32>
    %311 = arith.maximumf %309, %310 : vector<16x128xf32>
    %c127_i32_232 = arith.constant 127 : i32
    %312 = tpu.dynamic_rotate %311 by %c127_i32_232 dim 1 : vector<16x128xf32>, i32 -> vector<16x128xf32>
    %313 = arith.maximumf %311, %312 : vector<16x128xf32>
    %c120_i32_233 = arith.constant 120 : i32
    %314 = tpu.dynamic_rotate %313 by %c120_i32_233 dim 1 : vector<16x128xf32>, i32 -> vector<16x128xf32>
    %315 = arith.maximumf %313, %314 : vector<16x128xf32>
    %316 = arith.truncf %315 : vector<16x128xf32> to vector<16x128xbf16>
    %c0_234 = arith.constant 0 : index
    %c0_235 = arith.constant 0 : index
    %317 = vector.load %arg24[%c0_234, %c0_235] : memref<128x32xbf16, #tpu.memory_space<vmem>>, vector<128x32xbf16>
    %cst_236 = arith.constant dense<0.000000e+00> : vector<16x32xf32>
    %318 = tpu.matmul %316, %317, %cst_236 {dimension_numbers = #tpu.dot_dimension_numbers<[1], [0], [0], [1], [0, 0, 1, 1], [], []>} : vector<16x128xbf16>, vector<128x32xbf16>, vector<16x32xf32> -> vector<16x32xf32>
    %319 = arith.truncf %318 : vector<16x32xf32> to vector<16x32xbf16>
    %c0_237 = arith.constant 0 : index
    %c0_238 = arith.constant 0 : index
    %c0_239 = arith.constant 0 : index
    %320 = vector.load %arg22[%c0_237, %c0_238, %c0_239] : memref<9x32x32xbf16, #tpu.memory_space<vmem>>, vector<1x32x32xbf16>
    %321 = vector.shape_cast %320 : vector<1x32x32xbf16> to vector<32x32xbf16>
    %cst_240 = arith.constant dense<0.000000e+00> : vector<16x32xf32>
    %322 = tpu.matmul %319, %321, %cst_240 {dimension_numbers = #tpu.dot_dimension_numbers<[1], [0], [0], [1], [0, 0, 1, 1], [], []>} : vector<16x32xbf16>, vector<32x32xbf16>, vector<16x32xf32> -> vector<16x32xf32>
    %c0_241 = arith.constant 0 : index
    %c0_242 = arith.constant 0 : index
    %323 = vector.load %arg30[%c0_241, %c0_242] : memref<288x32xf32, #tpu.memory_space<vmem>>, vector<16x32xf32>
    tpu.vector_store %arg30[%c0_241, %c0_242], %322 {strides = array<i32>} : memref<288x32xf32, #tpu.memory_space<vmem>>, vector<16x32xf32>,
    %c1_243 = arith.constant 1 : index
    %c0_244 = arith.constant 0 : index
    %c0_245 = arith.constant 0 : index
    %324 = vector.load %arg22[%c1_243, %c0_244, %c0_245] : memref<9x32x32xbf16, #tpu.memory_space<vmem>>, vector<1x32x32xbf16>
    %325 = vector.shape_cast %324 : vector<1x32x32xbf16> to vector<32x32xbf16>
    %cst_246 = arith.constant dense<0.000000e+00> : vector<16x32xf32>
    %326 = tpu.matmul %319, %325, %cst_246 {dimension_numbers = #tpu.dot_dimension_numbers<[1], [0], [0], [1], [0, 0, 1, 1], [], []>} : vector<16x32xbf16>, vector<32x32xbf16>, vector<16x32xf32> -> vector<16x32xf32>
    %c16_247 = arith.constant 16 : index
    %c0_248 = arith.constant 0 : index
    %327 = vector.load %arg30[%c16_247, %c0_248] : memref<288x32xf32, #tpu.memory_space<vmem>>, vector<16x32xf32>
    tpu.vector_store %arg30[%c16_247, %c0_248], %326 {strides = array<i32>} : memref<288x32xf32, #tpu.memory_space<vmem>>, vector<16x32xf32>,
    %c2_249 = arith.constant 2 : index
    %c0_250 = arith.constant 0 : index
    %c0_251 = arith.constant 0 : index
    %328 = vector.load %arg22[%c2_249, %c0_250, %c0_251] : memref<9x32x32xbf16, #tpu.memory_space<vmem>>, vector<1x32x32xbf16>
    %329 = vector.shape_cast %328 : vector<1x32x32xbf16> to vector<32x32xbf16>
    %cst_252 = arith.constant dense<0.000000e+00> : vector<16x32xf32>
    %330 = tpu.matmul %319, %329, %cst_252 {dimension_numbers = #tpu.dot_dimension_numbers<[1], [0], [0], [1], [0, 0, 1, 1], [], []>} : vector<16x32xbf16>, vector<32x32xbf16>, vector<16x32xf32> -> vector<16x32xf32>
    %c32_253 = arith.constant 32 : index
    %c0_254 = arith.constant 0 : index
    %331 = vector.load %arg30[%c32_253, %c0_254] : memref<288x32xf32, #tpu.memory_space<vmem>>, vector<16x32xf32>
    tpu.vector_store %arg30[%c32_253, %c0_254], %330 {strides = array<i32>} : memref<288x32xf32, #tpu.memory_space<vmem>>, vector<16x32xf32>,
    %c3_255 = arith.constant 3 : index
    %c0_256 = arith.constant 0 : index
    %c0_257 = arith.constant 0 : index
    %332 = vector.load %arg22[%c3_255, %c0_256, %c0_257] : memref<9x32x32xbf16, #tpu.memory_space<vmem>>, vector<1x32x32xbf16>
    %333 = vector.shape_cast %332 : vector<1x32x32xbf16> to vector<32x32xbf16>
    %cst_258 = arith.constant dense<0.000000e+00> : vector<16x32xf32>
    %334 = tpu.matmul %319, %333, %cst_258 {dimension_numbers = #tpu.dot_dimension_numbers<[1], [0], [0], [1], [0, 0, 1, 1], [], []>} : vector<16x32xbf16>, vector<32x32xbf16>, vector<16x32xf32> -> vector<16x32xf32>
    %c48_259 = arith.constant 48 : index
    %c0_260 = arith.constant 0 : index
    %335 = vector.load %arg30[%c48_259, %c0_260] : memref<288x32xf32, #tpu.memory_space<vmem>>, vector<16x32xf32>
    tpu.vector_store %arg30[%c48_259, %c0_260], %334 {strides = array<i32>} : memref<288x32xf32, #tpu.memory_space<vmem>>, vector<16x32xf32>,
    %c4 = arith.constant 4 : index
    %c0_261 = arith.constant 0 : index
    %c0_262 = arith.constant 0 : index
    %336 = vector.load %arg22[%c4, %c0_261, %c0_262] : memref<9x32x32xbf16, #tpu.memory_space<vmem>>, vector<1x32x32xbf16>
    %337 = vector.shape_cast %336 : vector<1x32x32xbf16> to vector<32x32xbf16>
    %cst_263 = arith.constant dense<0.000000e+00> : vector<16x32xf32>
    %338 = tpu.matmul %319, %337, %cst_263 {dimension_numbers = #tpu.dot_dimension_numbers<[1], [0], [0], [1], [0, 0, 1, 1], [], []>} : vector<16x32xbf16>, vector<32x32xbf16>, vector<16x32xf32> -> vector<16x32xf32>
    %c64_264 = arith.constant 64 : index
    %c0_265 = arith.constant 0 : index
    %339 = vector.load %arg30[%c64_264, %c0_265] : memref<288x32xf32, #tpu.memory_space<vmem>>, vector<16x32xf32>
    tpu.vector_store %arg30[%c64_264, %c0_265], %338 {strides = array<i32>} : memref<288x32xf32, #tpu.memory_space<vmem>>, vector<16x32xf32>,
    %c5_266 = arith.constant 5 : index
    %c0_267 = arith.constant 0 : index
    %c0_268 = arith.constant 0 : index
    %340 = vector.load %arg22[%c5_266, %c0_267, %c0_268] : memref<9x32x32xbf16, #tpu.memory_space<vmem>>, vector<1x32x32xbf16>
    %341 = vector.shape_cast %340 : vector<1x32x32xbf16> to vector<32x32xbf16>
    %cst_269 = arith.constant dense<0.000000e+00> : vector<16x32xf32>
    %342 = tpu.matmul %319, %341, %cst_269 {dimension_numbers = #tpu.dot_dimension_numbers<[1], [0], [0], [1], [0, 0, 1, 1], [], []>} : vector<16x32xbf16>, vector<32x32xbf16>, vector<16x32xf32> -> vector<16x32xf32>
    %c80_270 = arith.constant 80 : index
    %c0_271 = arith.constant 0 : index
    %343 = vector.load %arg30[%c80_270, %c0_271] : memref<288x32xf32, #tpu.memory_space<vmem>>, vector<16x32xf32>
    tpu.vector_store %arg30[%c80_270, %c0_271], %342 {strides = array<i32>} : memref<288x32xf32, #tpu.memory_space<vmem>>, vector<16x32xf32>,
    %c6_272 = arith.constant 6 : index
    %c0_273 = arith.constant 0 : index
    %c0_274 = arith.constant 0 : index
    %344 = vector.load %arg22[%c6_272, %c0_273, %c0_274] : memref<9x32x32xbf16, #tpu.memory_space<vmem>>, vector<1x32x32xbf16>
    %345 = vector.shape_cast %344 : vector<1x32x32xbf16> to vector<32x32xbf16>
    %cst_275 = arith.constant dense<0.000000e+00> : vector<16x32xf32>
    %346 = tpu.matmul %319, %345, %cst_275 {dimension_numbers = #tpu.dot_dimension_numbers<[1], [0], [0], [1], [0, 0, 1, 1], [], []>} : vector<16x32xbf16>, vector<32x32xbf16>, vector<16x32xf32> -> vector<16x32xf32>
    %c96_276 = arith.constant 96 : index
    %c0_277 = arith.constant 0 : index
    %347 = vector.load %arg30[%c96_276, %c0_277] : memref<288x32xf32, #tpu.memory_space<vmem>>, vector<16x32xf32>
    tpu.vector_store %arg30[%c96_276, %c0_277], %346 {strides = array<i32>} : memref<288x32xf32, #tpu.memory_space<vmem>>, vector<16x32xf32>,
    %c7_278 = arith.constant 7 : index
    %c0_279 = arith.constant 0 : index
    %c0_280 = arith.constant 0 : index
    %348 = vector.load %arg22[%c7_278, %c0_279, %c0_280] : memref<9x32x32xbf16, #tpu.memory_space<vmem>>, vector<1x32x32xbf16>
    %349 = vector.shape_cast %348 : vector<1x32x32xbf16> to vector<32x32xbf16>
    %cst_281 = arith.constant dense<0.000000e+00> : vector<16x32xf32>
    %350 = tpu.matmul %319, %349, %cst_281 {dimension_numbers = #tpu.dot_dimension_numbers<[1], [0], [0], [1], [0, 0, 1, 1], [], []>} : vector<16x32xbf16>, vector<32x32xbf16>, vector<16x32xf32> -> vector<16x32xf32>
    %c112_282 = arith.constant 112 : index
    %c0_283 = arith.constant 0 : index
    %351 = vector.load %arg30[%c112_282, %c0_283] : memref<288x32xf32, #tpu.memory_space<vmem>>, vector<16x32xf32>
    tpu.vector_store %arg30[%c112_282, %c0_283], %350 {strides = array<i32>} : memref<288x32xf32, #tpu.memory_space<vmem>>, vector<16x32xf32>,
    %c8_284 = arith.constant 8 : index
    %c0_285 = arith.constant 0 : index
    %c0_286 = arith.constant 0 : index
    %352 = vector.load %arg22[%c8_284, %c0_285, %c0_286] : memref<9x32x32xbf16, #tpu.memory_space<vmem>>, vector<1x32x32xbf16>
    %353 = vector.shape_cast %352 : vector<1x32x32xbf16> to vector<32x32xbf16>
    %cst_287 = arith.constant dense<0.000000e+00> : vector<16x32xf32>
    %354 = tpu.matmul %319, %353, %cst_287 {dimension_numbers = #tpu.dot_dimension_numbers<[1], [0], [0], [1], [0, 0, 1, 1], [], []>} : vector<16x32xbf16>, vector<32x32xbf16>, vector<16x32xf32> -> vector<16x32xf32>
    %c128_288 = arith.constant 128 : index
    %c0_289 = arith.constant 0 : index
    %355 = vector.load %arg30[%c128_288, %c0_289] : memref<288x32xf32, #tpu.memory_space<vmem>>, vector<16x32xf32>
    tpu.vector_store %arg30[%c128_288, %c0_289], %354 {strides = array<i32>} : memref<288x32xf32, #tpu.memory_space<vmem>>, vector<16x32xf32>,
    %c0_290 = arith.constant 0 : index
    %c0_291 = arith.constant 0 : index
    %356 = vector.load %arg30[%c0_290, %c0_291] : memref<288x32xf32, #tpu.memory_space<vmem>>, vector<144x32xf32>
    %357 = arith.truncf %356 : vector<144x32xf32> to vector<144x32xbf16>
    %c0_292 = arith.constant 0 : index
    %c0_293 = arith.constant 0 : index
    %358 = vector.load %arg6[%c0_292, %c0_293] : memref<32x144xbf16, #tpu.memory_space<vmem>>, vector<32x144xbf16>
    %cst_294 = arith.constant dense<0.000000e+00> : vector<32x32xf32>
    %359 = tpu.matmul %358, %357, %cst_294 {dimension_numbers = #tpu.dot_dimension_numbers<[1], [0], [0], [1], [0, 0, 1, 1], [], []>} : vector<32x144xbf16>, vector<144x32xbf16>, vector<32x32xf32> -> vector<32x32xf32>
    %c48_295 = arith.constant 48 : index
    %c0_296 = arith.constant 0 : index
    %360 = vector.load %arg18[%c48_295, %c0_296] : memref<160x1xf32, #tpu.memory_space<vmem>>, vector<32x1xf32>
    %c48_297 = arith.constant 48 : index
    %c0_298 = arith.constant 0 : index
    %361 = vector.load %arg19[%c48_297, %c0_298] : memref<160x1xf32, #tpu.memory_space<vmem>>, vector<32x1xf32>
    %cst_299 = arith.constant dense<0.000000e+00> : vector<32xf32>
    %362 = vector.multi_reduction <add>, %359, %cst_299 [1] : vector<32x32xf32> to vector<32xf32>
    %363 = vector.shape_cast %362 : vector<32xf32> to vector<32x1xf32>
    %cst_300 = arith.constant 3.200000e+01 : f32
    %364 = vector.broadcast %cst_300 : f32 to vector<32x1xf32>
    %365 = arith.divf %363, %364 : vector<32x1xf32>
    %366 = vector.broadcast %365 : vector<32x1xf32> to vector<32x32xf32>
    %367 = arith.subf %359, %366 : vector<32x32xf32>
    %368 = arith.mulf %367, %367 : vector<32x32xf32>
    %cst_301 = arith.constant dense<0.000000e+00> : vector<32xf32>
    %369 = vector.multi_reduction <add>, %368, %cst_301 [1] : vector<32x32xf32> to vector<32xf32>
    %370 = vector.shape_cast %369 : vector<32xf32> to vector<32x1xf32>
    %cst_302 = arith.constant 3.200000e+01 : f32
    %371 = vector.broadcast %cst_302 : f32 to vector<32x1xf32>
    %372 = arith.divf %370, %371 : vector<32x1xf32>
    %cst_303 = arith.constant 9.99999974E-6 : f32
    %373 = vector.broadcast %cst_303 : f32 to vector<32x1xf32>
    %374 = arith.addf %372, %373 : vector<32x1xf32>
    %375 = math.rsqrt %374 : vector<32x1xf32>
    %376 = arith.mulf %360, %375 : vector<32x1xf32>
    %377 = vector.broadcast %376 : vector<32x1xf32> to vector<32x32xf32>
    %378 = arith.mulf %367, %377 : vector<32x32xf32>
    %379 = vector.broadcast %361 : vector<32x1xf32> to vector<32x32xf32>
    %380 = arith.addf %378, %379 : vector<32x32xf32>
    %cst_304 = arith.constant 0.000000e+00 : f32
    %381 = vector.broadcast %cst_304 : f32 to vector<32x32xf32>
    %382 = arith.maximumf %380, %381 : vector<32x32xf32>
    %383 = arith.truncf %382 : vector<32x32xf32> to vector<32x32xbf16>
    %c0_305 = arith.constant 0 : index
    %c0_306 = arith.constant 0 : index
    %c0_307 = arith.constant 0 : index
    %384 = vector.load %arg22[%c0_305, %c0_306, %c0_307] : memref<9x32x32xbf16, #tpu.memory_space<vmem>>, vector<1x32x32xbf16>
    %385 = vector.shape_cast %384 : vector<1x32x32xbf16> to vector<32x32xbf16>
    %cst_308 = arith.constant dense<0.000000e+00> : vector<32x32xf32>
    %386 = tpu.matmul %383, %385, %cst_308 {dimension_numbers = #tpu.dot_dimension_numbers<[1], [0], [0], [1], [0, 0, 1, 1], [], []>} : vector<32x32xbf16>, vector<32x32xbf16>, vector<32x32xf32> -> vector<32x32xf32>
    %c0_309 = arith.constant 0 : index
    %c0_310 = arith.constant 0 : index
    %387 = vector.load %arg30[%c0_309, %c0_310] : memref<288x32xf32, #tpu.memory_space<vmem>>, vector<32x32xf32>
    tpu.vector_store %arg30[%c0_309, %c0_310], %386 {strides = array<i32>} : memref<288x32xf32, #tpu.memory_space<vmem>>, vector<32x32xf32>,
    %c1_311 = arith.constant 1 : index
    %c0_312 = arith.constant 0 : index
    %c0_313 = arith.constant 0 : index
    %388 = vector.load %arg22[%c1_311, %c0_312, %c0_313] : memref<9x32x32xbf16, #tpu.memory_space<vmem>>, vector<1x32x32xbf16>
    %389 = vector.shape_cast %388 : vector<1x32x32xbf16> to vector<32x32xbf16>
    %cst_314 = arith.constant dense<0.000000e+00> : vector<32x32xf32>
    %390 = tpu.matmul %383, %389, %cst_314 {dimension_numbers = #tpu.dot_dimension_numbers<[1], [0], [0], [1], [0, 0, 1, 1], [], []>} : vector<32x32xbf16>, vector<32x32xbf16>, vector<32x32xf32> -> vector<32x32xf32>
    %c32_315 = arith.constant 32 : index
    %c0_316 = arith.constant 0 : index
    %391 = vector.load %arg30[%c32_315, %c0_316] : memref<288x32xf32, #tpu.memory_space<vmem>>, vector<32x32xf32>
    tpu.vector_store %arg30[%c32_315, %c0_316], %390 {strides = array<i32>} : memref<288x32xf32, #tpu.memory_space<vmem>>, vector<32x32xf32>,
    %c2_317 = arith.constant 2 : index
    %c0_318 = arith.constant 0 : index
    %c0_319 = arith.constant 0 : index
    %392 = vector.load %arg22[%c2_317, %c0_318, %c0_319] : memref<9x32x32xbf16, #tpu.memory_space<vmem>>, vector<1x32x32xbf16>
    %393 = vector.shape_cast %392 : vector<1x32x32xbf16> to vector<32x32xbf16>
    %cst_320 = arith.constant dense<0.000000e+00> : vector<32x32xf32>
    %394 = tpu.matmul %383, %393, %cst_320 {dimension_numbers = #tpu.dot_dimension_numbers<[1], [0], [0], [1], [0, 0, 1, 1], [], []>} : vector<32x32xbf16>, vector<32x32xbf16>, vector<32x32xf32> -> vector<32x32xf32>
    %c64_321 = arith.constant 64 : index
    %c0_322 = arith.constant 0 : index
    %395 = vector.load %arg30[%c64_321, %c0_322] : memref<288x32xf32, #tpu.memory_space<vmem>>, vector<32x32xf32>
    tpu.vector_store %arg30[%c64_321, %c0_322], %394 {strides = array<i32>} : memref<288x32xf32, #tpu.memory_space<vmem>>, vector<32x32xf32>,
    %c3_323 = arith.constant 3 : index
    %c0_324 = arith.constant 0 : index
    %c0_325 = arith.constant 0 : index
    %396 = vector.load %arg22[%c3_323, %c0_324, %c0_325] : memref<9x32x32xbf16, #tpu.memory_space<vmem>>, vector<1x32x32xbf16>
    %397 = vector.shape_cast %396 : vector<1x32x32xbf16> to vector<32x32xbf16>
    %cst_326 = arith.constant dense<0.000000e+00> : vector<32x32xf32>
    %398 = tpu.matmul %383, %397, %cst_326 {dimension_numbers = #tpu.dot_dimension_numbers<[1], [0], [0], [1], [0, 0, 1, 1], [], []>} : vector<32x32xbf16>, vector<32x32xbf16>, vector<32x32xf32> -> vector<32x32xf32>
    %c96_327 = arith.constant 96 : index
    %c0_328 = arith.constant 0 : index
    %399 = vector.load %arg30[%c96_327, %c0_328] : memref<288x32xf32, #tpu.memory_space<vmem>>, vector<32x32xf32>
    tpu.vector_store %arg30[%c96_327, %c0_328], %398 {strides = array<i32>} : memref<288x32xf32, #tpu.memory_space<vmem>>, vector<32x32xf32>,
    %c4_329 = arith.constant 4 : index
    %c0_330 = arith.constant 0 : index
    %c0_331 = arith.constant 0 : index
    %400 = vector.load %arg22[%c4_329, %c0_330, %c0_331] : memref<9x32x32xbf16, #tpu.memory_space<vmem>>, vector<1x32x32xbf16>
    %401 = vector.shape_cast %400 : vector<1x32x32xbf16> to vector<32x32xbf16>
    %cst_332 = arith.constant dense<0.000000e+00> : vector<32x32xf32>
    %402 = tpu.matmul %383, %401, %cst_332 {dimension_numbers = #tpu.dot_dimension_numbers<[1], [0], [0], [1], [0, 0, 1, 1], [], []>} : vector<32x32xbf16>, vector<32x32xbf16>, vector<32x32xf32> -> vector<32x32xf32>
    %c128_333 = arith.constant 128 : index
    %c0_334 = arith.constant 0 : index
    %403 = vector.load %arg30[%c128_333, %c0_334] : memref<288x32xf32, #tpu.memory_space<vmem>>, vector<32x32xf32>
    tpu.vector_store %arg30[%c128_333, %c0_334], %402 {strides = array<i32>} : memref<288x32xf32, #tpu.memory_space<vmem>>, vector<32x32xf32>,
    %c5_335 = arith.constant 5 : index
    %c0_336 = arith.constant 0 : index
    %c0_337 = arith.constant 0 : index
    %404 = vector.load %arg22[%c5_335, %c0_336, %c0_337] : memref<9x32x32xbf16, #tpu.memory_space<vmem>>, vector<1x32x32xbf16>
    %405 = vector.shape_cast %404 : vector<1x32x32xbf16> to vector<32x32xbf16>
    %cst_338 = arith.constant dense<0.000000e+00> : vector<32x32xf32>
    %406 = tpu.matmul %383, %405, %cst_338 {dimension_numbers = #tpu.dot_dimension_numbers<[1], [0], [0], [1], [0, 0, 1, 1], [], []>} : vector<32x32xbf16>, vector<32x32xbf16>, vector<32x32xf32> -> vector<32x32xf32>
    %c160 = arith.constant 160 : index
    %c0_339 = arith.constant 0 : index
    %407 = vector.load %arg30[%c160, %c0_339] : memref<288x32xf32, #tpu.memory_space<vmem>>, vector<32x32xf32>
    tpu.vector_store %arg30[%c160, %c0_339], %406 {strides = array<i32>} : memref<288x32xf32, #tpu.memory_space<vmem>>, vector<32x32xf32>,
    %c6_340 = arith.constant 6 : index
    %c0_341 = arith.constant 0 : index
    %c0_342 = arith.constant 0 : index
    %408 = vector.load %arg22[%c6_340, %c0_341, %c0_342] : memref<9x32x32xbf16, #tpu.memory_space<vmem>>, vector<1x32x32xbf16>
    %409 = vector.shape_cast %408 : vector<1x32x32xbf16> to vector<32x32xbf16>
    %cst_343 = arith.constant dense<0.000000e+00> : vector<32x32xf32>
    %410 = tpu.matmul %383, %409, %cst_343 {dimension_numbers = #tpu.dot_dimension_numbers<[1], [0], [0], [1], [0, 0, 1, 1], [], []>} : vector<32x32xbf16>, vector<32x32xbf16>, vector<32x32xf32> -> vector<32x32xf32>
    %c192 = arith.constant 192 : index
    %c0_344 = arith.constant 0 : index
    %411 = vector.load %arg30[%c192, %c0_344] : memref<288x32xf32, #tpu.memory_space<vmem>>, vector<32x32xf32>
    tpu.vector_store %arg30[%c192, %c0_344], %410 {strides = array<i32>} : memref<288x32xf32, #tpu.memory_space<vmem>>, vector<32x32xf32>,
    %c7_345 = arith.constant 7 : index
    %c0_346 = arith.constant 0 : index
    %c0_347 = arith.constant 0 : index
    %412 = vector.load %arg22[%c7_345, %c0_346, %c0_347] : memref<9x32x32xbf16, #tpu.memory_space<vmem>>, vector<1x32x32xbf16>
    %413 = vector.shape_cast %412 : vector<1x32x32xbf16> to vector<32x32xbf16>
    %cst_348 = arith.constant dense<0.000000e+00> : vector<32x32xf32>
    %414 = tpu.matmul %383, %413, %cst_348 {dimension_numbers = #tpu.dot_dimension_numbers<[1], [0], [0], [1], [0, 0, 1, 1], [], []>} : vector<32x32xbf16>, vector<32x32xbf16>, vector<32x32xf32> -> vector<32x32xf32>
    %c224 = arith.constant 224 : index
    %c0_349 = arith.constant 0 : index
    %415 = vector.load %arg30[%c224, %c0_349] : memref<288x32xf32, #tpu.memory_space<vmem>>, vector<32x32xf32>
    tpu.vector_store %arg30[%c224, %c0_349], %414 {strides = array<i32>} : memref<288x32xf32, #tpu.memory_space<vmem>>, vector<32x32xf32>,
    %c8_350 = arith.constant 8 : index
    %c0_351 = arith.constant 0 : index
    %c0_352 = arith.constant 0 : index
    %416 = vector.load %arg22[%c8_350, %c0_351, %c0_352] : memref<9x32x32xbf16, #tpu.memory_space<vmem>>, vector<1x32x32xbf16>
    %417 = vector.shape_cast %416 : vector<1x32x32xbf16> to vector<32x32xbf16>
    %cst_353 = arith.constant dense<0.000000e+00> : vector<32x32xf32>
    %418 = tpu.matmul %383, %417, %cst_353 {dimension_numbers = #tpu.dot_dimension_numbers<[1], [0], [0], [1], [0, 0, 1, 1], [], []>} : vector<32x32xbf16>, vector<32x32xbf16>, vector<32x32xf32> -> vector<32x32xf32>
    %c256 = arith.constant 256 : index
    %c0_354 = arith.constant 0 : index
    %419 = vector.load %arg30[%c256, %c0_354] : memref<288x32xf32, #tpu.memory_space<vmem>>, vector<32x32xf32>
    tpu.vector_store %arg30[%c256, %c0_354], %418 {strides = array<i32>} : memref<288x32xf32, #tpu.memory_space<vmem>>, vector<32x32xf32>,
    %c0_355 = arith.constant 0 : index
    %c0_356 = arith.constant 0 : index
    %420 = vector.load %arg30[%c0_355, %c0_356] : memref<288x32xf32, #tpu.memory_space<vmem>>, vector<288x32xf32>
    %421 = arith.truncf %420 : vector<288x32xf32> to vector<288x32xbf16>
    %c0_357 = arith.constant 0 : index
    %c0_358 = arith.constant 0 : index
    %422 = vector.load %arg7[%c0_357, %c0_358] : memref<32x288xbf16, #tpu.memory_space<vmem>>, vector<32x288xbf16>
    %cst_359 = arith.constant dense<0.000000e+00> : vector<32x32xf32>
    %423 = tpu.matmul %422, %421, %cst_359 {dimension_numbers = #tpu.dot_dimension_numbers<[1], [0], [0], [1], [0, 0, 1, 1], [], []>} : vector<32x288xbf16>, vector<288x32xbf16>, vector<32x32xf32> -> vector<32x32xf32>
    %c80_360 = arith.constant 80 : index
    %c0_361 = arith.constant 0 : index
    %424 = vector.load %arg18[%c80_360, %c0_361] : memref<160x1xf32, #tpu.memory_space<vmem>>, vector<32x1xf32>
    %c80_362 = arith.constant 80 : index
    %c0_363 = arith.constant 0 : index
    %425 = vector.load %arg19[%c80_362, %c0_363] : memref<160x1xf32, #tpu.memory_space<vmem>>, vector<32x1xf32>
    %cst_364 = arith.constant dense<0.000000e+00> : vector<32xf32>
    %426 = vector.multi_reduction <add>, %423, %cst_364 [1] : vector<32x32xf32> to vector<32xf32>
    %427 = vector.shape_cast %426 : vector<32xf32> to vector<32x1xf32>
    %cst_365 = arith.constant 3.200000e+01 : f32
    %428 = vector.broadcast %cst_365 : f32 to vector<32x1xf32>
    %429 = arith.divf %427, %428 : vector<32x1xf32>
    %430 = vector.broadcast %429 : vector<32x1xf32> to vector<32x32xf32>
    %431 = arith.subf %423, %430 : vector<32x32xf32>
    %432 = arith.mulf %431, %431 : vector<32x32xf32>
    %cst_366 = arith.constant dense<0.000000e+00> : vector<32xf32>
    %433 = vector.multi_reduction <add>, %432, %cst_366 [1] : vector<32x32xf32> to vector<32xf32>
    %434 = vector.shape_cast %433 : vector<32xf32> to vector<32x1xf32>
    %cst_367 = arith.constant 3.200000e+01 : f32
    %435 = vector.broadcast %cst_367 : f32 to vector<32x1xf32>
    %436 = arith.divf %434, %435 : vector<32x1xf32>
    %cst_368 = arith.constant 9.99999974E-6 : f32
    %437 = vector.broadcast %cst_368 : f32 to vector<32x1xf32>
    %438 = arith.addf %436, %437 : vector<32x1xf32>
    %439 = math.rsqrt %438 : vector<32x1xf32>
    %440 = arith.mulf %424, %439 : vector<32x1xf32>
    %441 = vector.broadcast %440 : vector<32x1xf32> to vector<32x32xf32>
    %442 = arith.mulf %431, %441 : vector<32x32xf32>
    %443 = vector.broadcast %425 : vector<32x1xf32> to vector<32x32xf32>
    %444 = arith.addf %442, %443 : vector<32x32xf32>
    %cst_369 = arith.constant 0.000000e+00 : f32
    %445 = vector.broadcast %cst_369 : f32 to vector<32x32xf32>
    %446 = arith.maximumf %444, %445 : vector<32x32xf32>
    %447 = arith.truncf %446 : vector<32x32xf32> to vector<32x32xbf16>
    %cst_370 = arith.constant 0.000000e+00 : f32
    %448 = vector.broadcast %cst_370 : f32 to vector<16x128xf32>
    %c0_371 = arith.constant 0 : index
    %c0_372 = arith.constant 0 : index
    %c0_373 = arith.constant 0 : index
    %449 = vector.load %arg8[%c0_371, %c0_372, %c0_373] : memref<4x16x32xbf16, #tpu.memory_space<vmem>>, vector<1x16x32xbf16>
    %450 = vector.shape_cast %449 : vector<1x16x32xbf16> to vector<16x32xbf16>
    %cst_374 = arith.constant dense<0.000000e+00> : vector<16x32xf32>
    %451 = tpu.matmul %450, %447, %cst_374 {dimension_numbers = #tpu.dot_dimension_numbers<[1], [0], [0], [1], [0, 0, 1, 1], [], []>} : vector<16x32xbf16>, vector<32x32xbf16>, vector<16x32xf32> -> vector<16x32xf32>
    %452 = arith.truncf %451 : vector<16x32xf32> to vector<16x32xbf16>
    %c0_375 = arith.constant 0 : index
    %c0_376 = arith.constant 0 : index
    %c0_377 = arith.constant 0 : index
    %453 = vector.load %arg26[%c0_375, %c0_376, %c0_377] : memref<4x32x128xbf16, #tpu.memory_space<vmem>>, vector<1x32x128xbf16>
    %454 = vector.shape_cast %453 : vector<1x32x128xbf16> to vector<32x128xbf16>
    %cst_378 = arith.constant dense<0.000000e+00> : vector<16x128xf32>
    %455 = tpu.matmul %452, %454, %cst_378 {dimension_numbers = #tpu.dot_dimension_numbers<[1], [0], [0], [1], [0, 0, 1, 1], [], []>} : vector<16x32xbf16>, vector<32x128xbf16>, vector<16x128xf32> -> vector<16x128xf32>
    %456 = arith.addf %448, %455 : vector<16x128xf32>
    %c1_379 = arith.constant 1 : index
    %c0_380 = arith.constant 0 : index
    %c0_381 = arith.constant 0 : index
    %457 = vector.load %arg8[%c1_379, %c0_380, %c0_381] : memref<4x16x32xbf16, #tpu.memory_space<vmem>>, vector<1x16x32xbf16>
    %458 = vector.shape_cast %457 : vector<1x16x32xbf16> to vector<16x32xbf16>
    %cst_382 = arith.constant dense<0.000000e+00> : vector<16x32xf32>
    %459 = tpu.matmul %458, %447, %cst_382 {dimension_numbers = #tpu.dot_dimension_numbers<[1], [0], [0], [1], [0, 0, 1, 1], [], []>} : vector<16x32xbf16>, vector<32x32xbf16>, vector<16x32xf32> -> vector<16x32xf32>
    %460 = arith.truncf %459 : vector<16x32xf32> to vector<16x32xbf16>
    %c1_383 = arith.constant 1 : index
    %c0_384 = arith.constant 0 : index
    %c0_385 = arith.constant 0 : index
    %461 = vector.load %arg26[%c1_383, %c0_384, %c0_385] : memref<4x32x128xbf16, #tpu.memory_space<vmem>>, vector<1x32x128xbf16>
    %462 = vector.shape_cast %461 : vector<1x32x128xbf16> to vector<32x128xbf16>
    %cst_386 = arith.constant dense<0.000000e+00> : vector<16x128xf32>
    %463 = tpu.matmul %460, %462, %cst_386 {dimension_numbers = #tpu.dot_dimension_numbers<[1], [0], [0], [1], [0, 0, 1, 1], [], []>} : vector<16x32xbf16>, vector<32x128xbf16>, vector<16x128xf32> -> vector<16x128xf32>
    %464 = arith.addf %456, %463 : vector<16x128xf32>
    %c2_387 = arith.constant 2 : index
    %c0_388 = arith.constant 0 : index
    %c0_389 = arith.constant 0 : index
    %465 = vector.load %arg8[%c2_387, %c0_388, %c0_389] : memref<4x16x32xbf16, #tpu.memory_space<vmem>>, vector<1x16x32xbf16>
    %466 = vector.shape_cast %465 : vector<1x16x32xbf16> to vector<16x32xbf16>
    %cst_390 = arith.constant dense<0.000000e+00> : vector<16x32xf32>
    %467 = tpu.matmul %466, %447, %cst_390 {dimension_numbers = #tpu.dot_dimension_numbers<[1], [0], [0], [1], [0, 0, 1, 1], [], []>} : vector<16x32xbf16>, vector<32x32xbf16>, vector<16x32xf32> -> vector<16x32xf32>
    %468 = arith.truncf %467 : vector<16x32xf32> to vector<16x32xbf16>
    %c2_391 = arith.constant 2 : index
    %c0_392 = arith.constant 0 : index
    %c0_393 = arith.constant 0 : index
    %469 = vector.load %arg26[%c2_391, %c0_392, %c0_393] : memref<4x32x128xbf16, #tpu.memory_space<vmem>>, vector<1x32x128xbf16>
    %470 = vector.shape_cast %469 : vector<1x32x128xbf16> to vector<32x128xbf16>
    %cst_394 = arith.constant dense<0.000000e+00> : vector<16x128xf32>
    %471 = tpu.matmul %468, %470, %cst_394 {dimension_numbers = #tpu.dot_dimension_numbers<[1], [0], [0], [1], [0, 0, 1, 1], [], []>} : vector<16x32xbf16>, vector<32x128xbf16>, vector<16x128xf32> -> vector<16x128xf32>
    %472 = arith.addf %464, %471 : vector<16x128xf32>
    %c3_395 = arith.constant 3 : index
    %c0_396 = arith.constant 0 : index
    %c0_397 = arith.constant 0 : index
    %473 = vector.load %arg8[%c3_395, %c0_396, %c0_397] : memref<4x16x32xbf16, #tpu.memory_space<vmem>>, vector<1x16x32xbf16>
    %474 = vector.shape_cast %473 : vector<1x16x32xbf16> to vector<16x32xbf16>
    %cst_398 = arith.constant dense<0.000000e+00> : vector<16x32xf32>
    %475 = tpu.matmul %474, %447, %cst_398 {dimension_numbers = #tpu.dot_dimension_numbers<[1], [0], [0], [1], [0, 0, 1, 1], [], []>} : vector<16x32xbf16>, vector<32x32xbf16>, vector<16x32xf32> -> vector<16x32xf32>
    %476 = arith.truncf %475 : vector<16x32xf32> to vector<16x32xbf16>
    %c3_399 = arith.constant 3 : index
    %c0_400 = arith.constant 0 : index
    %c0_401 = arith.constant 0 : index
    %477 = vector.load %arg26[%c3_399, %c0_400, %c0_401] : memref<4x32x128xbf16, #tpu.memory_space<vmem>>, vector<1x32x128xbf16>
    %478 = vector.shape_cast %477 : vector<1x32x128xbf16> to vector<32x128xbf16>
    %cst_402 = arith.constant dense<0.000000e+00> : vector<16x128xf32>
    %479 = tpu.matmul %476, %478, %cst_402 {dimension_numbers = #tpu.dot_dimension_numbers<[1], [0], [0], [1], [0, 0, 1, 1], [], []>} : vector<16x32xbf16>, vector<32x128xbf16>, vector<16x128xf32> -> vector<16x128xf32>
    %480 = arith.addf %472, %479 : vector<16x128xf32>
    %c0_403 = arith.constant 0 : index
    %c0_404 = arith.constant 0 : index
    %481 = vector.load %arg9[%c0_403, %c0_404] : memref<16x1xf32, #tpu.memory_space<vmem>>, vector<16x1xf32>
    %482 = vector.broadcast %481 : vector<16x1xf32> to vector<16x128xf32>
    %483 = arith.addf %480, %482 : vector<16x128xf32>
    %c9_i32_405 = arith.constant 9 : i32
    %484 = tpu.dynamic_rotate %483 by %c9_i32_405 dim 1 : vector<16x128xf32>, i32 -> vector<16x128xf32>
    %c0_406 = arith.constant 0 : index
    %c0_407 = arith.constant 0 : index
    %c0_408 = arith.constant 0 : index
    %485 = vector.load %arg21[%c0_406, %c0_407, %c0_408] : memref<9x1x128xf32, #tpu.memory_space<vmem>>, vector<1x1x128xf32>
    %486 = vector.shape_cast %485 : vector<1x1x128xf32> to vector<1x128xf32>
    %487 = vector.broadcast %486 : vector<1x128xf32> to vector<16x128xf32>
    %488 = arith.mulf %484, %487 : vector<16x128xf32>
    %c0_409 = arith.constant 0 : index
    %c0_410 = arith.constant 0 : index
    %489 = vector.load %arg29[%c0_409, %c0_410] : memref<288x128xf32, #tpu.memory_space<vmem>>, vector<16x128xf32>
    tpu.vector_store %arg29[%c0_409, %c0_410], %488 {strides = array<i32>} : memref<288x128xf32, #tpu.memory_space<vmem>>, vector<16x128xf32>,
    %c8_i32_411 = arith.constant 8 : i32
    %490 = tpu.dynamic_rotate %483 by %c8_i32_411 dim 1 : vector<16x128xf32>, i32 -> vector<16x128xf32>
    %c1_412 = arith.constant 1 : index
    %c0_413 = arith.constant 0 : index
    %c0_414 = arith.constant 0 : index
    %491 = vector.load %arg21[%c1_412, %c0_413, %c0_414] : memref<9x1x128xf32, #tpu.memory_space<vmem>>, vector<1x1x128xf32>
    %492 = vector.shape_cast %491 : vector<1x1x128xf32> to vector<1x128xf32>
    %493 = vector.broadcast %492 : vector<1x128xf32> to vector<16x128xf32>
    %494 = arith.mulf %490, %493 : vector<16x128xf32>
    %c16_415 = arith.constant 16 : index
    %c0_416 = arith.constant 0 : index
    %495 = vector.load %arg29[%c16_415, %c0_416] : memref<288x128xf32, #tpu.memory_space<vmem>>, vector<16x128xf32>
    tpu.vector_store %arg29[%c16_415, %c0_416], %494 {strides = array<i32>} : memref<288x128xf32, #tpu.memory_space<vmem>>, vector<16x128xf32>,
    %c7_i32_417 = arith.constant 7 : i32
    %496 = tpu.dynamic_rotate %483 by %c7_i32_417 dim 1 : vector<16x128xf32>, i32 -> vector<16x128xf32>
    %c2_418 = arith.constant 2 : index
    %c0_419 = arith.constant 0 : index
    %c0_420 = arith.constant 0 : index
    %497 = vector.load %arg21[%c2_418, %c0_419, %c0_420] : memref<9x1x128xf32, #tpu.memory_space<vmem>>, vector<1x1x128xf32>
    %498 = vector.shape_cast %497 : vector<1x1x128xf32> to vector<1x128xf32>
    %499 = vector.broadcast %498 : vector<1x128xf32> to vector<16x128xf32>
    %500 = arith.mulf %496, %499 : vector<16x128xf32>
    %c32_421 = arith.constant 32 : index
    %c0_422 = arith.constant 0 : index
    %501 = vector.load %arg29[%c32_421, %c0_422] : memref<288x128xf32, #tpu.memory_space<vmem>>, vector<16x128xf32>
    tpu.vector_store %arg29[%c32_421, %c0_422], %500 {strides = array<i32>} : memref<288x128xf32, #tpu.memory_space<vmem>>, vector<16x128xf32>,
    %c1_i32_423 = arith.constant 1 : i32
    %502 = tpu.dynamic_rotate %483 by %c1_i32_423 dim 1 : vector<16x128xf32>, i32 -> vector<16x128xf32>
    %c3_424 = arith.constant 3 : index
    %c0_425 = arith.constant 0 : index
    %c0_426 = arith.constant 0 : index
    %503 = vector.load %arg21[%c3_424, %c0_425, %c0_426] : memref<9x1x128xf32, #tpu.memory_space<vmem>>, vector<1x1x128xf32>
    %504 = vector.shape_cast %503 : vector<1x1x128xf32> to vector<1x128xf32>
    %505 = vector.broadcast %504 : vector<1x128xf32> to vector<16x128xf32>
    %506 = arith.mulf %502, %505 : vector<16x128xf32>
    %c48_427 = arith.constant 48 : index
    %c0_428 = arith.constant 0 : index
    %507 = vector.load %arg29[%c48_427, %c0_428] : memref<288x128xf32, #tpu.memory_space<vmem>>, vector<16x128xf32>
    tpu.vector_store %arg29[%c48_427, %c0_428], %506 {strides = array<i32>} : memref<288x128xf32, #tpu.memory_space<vmem>>, vector<16x128xf32>,
    %c64_429 = arith.constant 64 : index
    %c0_430 = arith.constant 0 : index
    %508 = vector.load %arg29[%c64_429, %c0_430] : memref<288x128xf32, #tpu.memory_space<vmem>>, vector<16x128xf32>
    tpu.vector_store %arg29[%c64_429, %c0_430], %483 {strides = array<i32>} : memref<288x128xf32, #tpu.memory_space<vmem>>, vector<16x128xf32>,
    %c127_i32_431 = arith.constant 127 : i32
    %509 = tpu.dynamic_rotate %483 by %c127_i32_431 dim 1 : vector<16x128xf32>, i32 -> vector<16x128xf32>
    %c5_432 = arith.constant 5 : index
    %c0_433 = arith.constant 0 : index
    %c0_434 = arith.constant 0 : index
    %510 = vector.load %arg21[%c5_432, %c0_433, %c0_434] : memref<9x1x128xf32, #tpu.memory_space<vmem>>, vector<1x1x128xf32>
    %511 = vector.shape_cast %510 : vector<1x1x128xf32> to vector<1x128xf32>
    %512 = vector.broadcast %511 : vector<1x128xf32> to vector<16x128xf32>
    %513 = arith.mulf %509, %512 : vector<16x128xf32>
    %c80_435 = arith.constant 80 : index
    %c0_436 = arith.constant 0 : index
    %514 = vector.load %arg29[%c80_435, %c0_436] : memref<288x128xf32, #tpu.memory_space<vmem>>, vector<16x128xf32>
    tpu.vector_store %arg29[%c80_435, %c0_436], %513 {strides = array<i32>} : memref<288x128xf32, #tpu.memory_space<vmem>>, vector<16x128xf32>,
    %c121_i32_437 = arith.constant 121 : i32
    %515 = tpu.dynamic_rotate %483 by %c121_i32_437 dim 1 : vector<16x128xf32>, i32 -> vector<16x128xf32>
    %c6_438 = arith.constant 6 : index
    %c0_439 = arith.constant 0 : index
    %c0_440 = arith.constant 0 : index
    %516 = vector.load %arg21[%c6_438, %c0_439, %c0_440] : memref<9x1x128xf32, #tpu.memory_space<vmem>>, vector<1x1x128xf32>
    %517 = vector.shape_cast %516 : vector<1x1x128xf32> to vector<1x128xf32>
    %518 = vector.broadcast %517 : vector<1x128xf32> to vector<16x128xf32>
    %519 = arith.mulf %515, %518 : vector<16x128xf32>
    %c96_441 = arith.constant 96 : index
    %c0_442 = arith.constant 0 : index
    %520 = vector.load %arg29[%c96_441, %c0_442] : memref<288x128xf32, #tpu.memory_space<vmem>>, vector<16x128xf32>
    tpu.vector_store %arg29[%c96_441, %c0_442], %519 {strides = array<i32>} : memref<288x128xf32, #tpu.memory_space<vmem>>, vector<16x128xf32>,
    %c120_i32_443 = arith.constant 120 : i32
    %521 = tpu.dynamic_rotate %483 by %c120_i32_443 dim 1 : vector<16x128xf32>, i32 -> vector<16x128xf32>
    %c7_444 = arith.constant 7 : index
    %c0_445 = arith.constant 0 : index
    %c0_446 = arith.constant 0 : index
    %522 = vector.load %arg21[%c7_444, %c0_445, %c0_446] : memref<9x1x128xf32, #tpu.memory_space<vmem>>, vector<1x1x128xf32>
    %523 = vector.shape_cast %522 : vector<1x1x128xf32> to vector<1x128xf32>
    %524 = vector.broadcast %523 : vector<1x128xf32> to vector<16x128xf32>
    %525 = arith.mulf %521, %524 : vector<16x128xf32>
    %c112_447 = arith.constant 112 : index
    %c0_448 = arith.constant 0 : index
    %526 = vector.load %arg29[%c112_447, %c0_448] : memref<288x128xf32, #tpu.memory_space<vmem>>, vector<16x128xf32>
    tpu.vector_store %arg29[%c112_447, %c0_448], %525 {strides = array<i32>} : memref<288x128xf32, #tpu.memory_space<vmem>>, vector<16x128xf32>,
    %c119_i32_449 = arith.constant 119 : i32
    %527 = tpu.dynamic_rotate %483 by %c119_i32_449 dim 1 : vector<16x128xf32>, i32 -> vector<16x128xf32>
    %c8_450 = arith.constant 8 : index
    %c0_451 = arith.constant 0 : index
    %c0_452 = arith.constant 0 : index
    %528 = vector.load %arg21[%c8_450, %c0_451, %c0_452] : memref<9x1x128xf32, #tpu.memory_space<vmem>>, vector<1x1x128xf32>
    %529 = vector.shape_cast %528 : vector<1x1x128xf32> to vector<1x128xf32>
    %530 = vector.broadcast %529 : vector<1x128xf32> to vector<16x128xf32>
    %531 = arith.mulf %527, %530 : vector<16x128xf32>
    %c128_453 = arith.constant 128 : index
    %c0_454 = arith.constant 0 : index
    %532 = vector.load %arg29[%c128_453, %c0_454] : memref<288x128xf32, #tpu.memory_space<vmem>>, vector<16x128xf32>
    tpu.vector_store %arg29[%c128_453, %c0_454], %531 {strides = array<i32>} : memref<288x128xf32, #tpu.memory_space<vmem>>, vector<16x128xf32>,
    %c9_i32_455 = arith.constant 9 : i32
    %533 = tpu.dynamic_rotate %311 by %c9_i32_455 dim 1 : vector<16x128xf32>, i32 -> vector<16x128xf32>
    %c0_456 = arith.constant 0 : index
    %c0_457 = arith.constant 0 : index
    %c0_458 = arith.constant 0 : index
    %534 = vector.load %arg21[%c0_456, %c0_457, %c0_458] : memref<9x1x128xf32, #tpu.memory_space<vmem>>, vector<1x1x128xf32>
    %535 = vector.shape_cast %534 : vector<1x1x128xf32> to vector<1x128xf32>
    %536 = vector.broadcast %535 : vector<1x128xf32> to vector<16x128xf32>
    %537 = arith.mulf %533, %536 : vector<16x128xf32>
    %c144 = arith.constant 144 : index
    %c0_459 = arith.constant 0 : index
    %538 = vector.load %arg29[%c144, %c0_459] : memref<288x128xf32, #tpu.memory_space<vmem>>, vector<16x128xf32>
    tpu.vector_store %arg29[%c144, %c0_459], %537 {strides = array<i32>} : memref<288x128xf32, #tpu.memory_space<vmem>>, vector<16x128xf32>,
    %c8_i32_460 = arith.constant 8 : i32
    %539 = tpu.dynamic_rotate %311 by %c8_i32_460 dim 1 : vector<16x128xf32>, i32 -> vector<16x128xf32>
    %c1_461 = arith.constant 1 : index
    %c0_462 = arith.constant 0 : index
    %c0_463 = arith.constant 0 : index
    %540 = vector.load %arg21[%c1_461, %c0_462, %c0_463] : memref<9x1x128xf32, #tpu.memory_space<vmem>>, vector<1x1x128xf32>
    %541 = vector.shape_cast %540 : vector<1x1x128xf32> to vector<1x128xf32>
    %542 = vector.broadcast %541 : vector<1x128xf32> to vector<16x128xf32>
    %543 = arith.mulf %539, %542 : vector<16x128xf32>
    %c160_464 = arith.constant 160 : index
    %c0_465 = arith.constant 0 : index
    %544 = vector.load %arg29[%c160_464, %c0_465] : memref<288x128xf32, #tpu.memory_space<vmem>>, vector<16x128xf32>
    tpu.vector_store %arg29[%c160_464, %c0_465], %543 {strides = array<i32>} : memref<288x128xf32, #tpu.memory_space<vmem>>, vector<16x128xf32>,
    %c7_i32_466 = arith.constant 7 : i32
    %545 = tpu.dynamic_rotate %311 by %c7_i32_466 dim 1 : vector<16x128xf32>, i32 -> vector<16x128xf32>
    %c2_467 = arith.constant 2 : index
    %c0_468 = arith.constant 0 : index
    %c0_469 = arith.constant 0 : index
    %546 = vector.load %arg21[%c2_467, %c0_468, %c0_469] : memref<9x1x128xf32, #tpu.memory_space<vmem>>, vector<1x1x128xf32>
    %547 = vector.shape_cast %546 : vector<1x1x128xf32> to vector<1x128xf32>
    %548 = vector.broadcast %547 : vector<1x128xf32> to vector<16x128xf32>
    %549 = arith.mulf %545, %548 : vector<16x128xf32>
    %c176 = arith.constant 176 : index
    %c0_470 = arith.constant 0 : index
    %550 = vector.load %arg29[%c176, %c0_470] : memref<288x128xf32, #tpu.memory_space<vmem>>, vector<16x128xf32>
    tpu.vector_store %arg29[%c176, %c0_470], %549 {strides = array<i32>} : memref<288x128xf32, #tpu.memory_space<vmem>>, vector<16x128xf32>,
    %c1_i32_471 = arith.constant 1 : i32
    %551 = tpu.dynamic_rotate %311 by %c1_i32_471 dim 1 : vector<16x128xf32>, i32 -> vector<16x128xf32>
    %c3_472 = arith.constant 3 : index
    %c0_473 = arith.constant 0 : index
    %c0_474 = arith.constant 0 : index
    %552 = vector.load %arg21[%c3_472, %c0_473, %c0_474] : memref<9x1x128xf32, #tpu.memory_space<vmem>>, vector<1x1x128xf32>
    %553 = vector.shape_cast %552 : vector<1x1x128xf32> to vector<1x128xf32>
    %554 = vector.broadcast %553 : vector<1x128xf32> to vector<16x128xf32>
    %555 = arith.mulf %551, %554 : vector<16x128xf32>
    %c192_475 = arith.constant 192 : index
    %c0_476 = arith.constant 0 : index
    %556 = vector.load %arg29[%c192_475, %c0_476] : memref<288x128xf32, #tpu.memory_space<vmem>>, vector<16x128xf32>
    tpu.vector_store %arg29[%c192_475, %c0_476], %555 {strides = array<i32>} : memref<288x128xf32, #tpu.memory_space<vmem>>, vector<16x128xf32>,
    %c208 = arith.constant 208 : index
    %c0_477 = arith.constant 0 : index
    %557 = vector.load %arg29[%c208, %c0_477] : memref<288x128xf32, #tpu.memory_space<vmem>>, vector<16x128xf32>
    tpu.vector_store %arg29[%c208, %c0_477], %311 {strides = array<i32>} : memref<288x128xf32, #tpu.memory_space<vmem>>, vector<16x128xf32>,
    %c127_i32_478 = arith.constant 127 : i32
    %558 = tpu.dynamic_rotate %311 by %c127_i32_478 dim 1 : vector<16x128xf32>, i32 -> vector<16x128xf32>
    %c5_479 = arith.constant 5 : index
    %c0_480 = arith.constant 0 : index
    %c0_481 = arith.constant 0 : index
    %559 = vector.load %arg21[%c5_479, %c0_480, %c0_481] : memref<9x1x128xf32, #tpu.memory_space<vmem>>, vector<1x1x128xf32>
    %560 = vector.shape_cast %559 : vector<1x1x128xf32> to vector<1x128xf32>
    %561 = vector.broadcast %560 : vector<1x128xf32> to vector<16x128xf32>
    %562 = arith.mulf %558, %561 : vector<16x128xf32>
    %c224_482 = arith.constant 224 : index
    %c0_483 = arith.constant 0 : index
    %563 = vector.load %arg29[%c224_482, %c0_483] : memref<288x128xf32, #tpu.memory_space<vmem>>, vector<16x128xf32>
    tpu.vector_store %arg29[%c224_482, %c0_483], %562 {strides = array<i32>} : memref<288x128xf32, #tpu.memory_space<vmem>>, vector<16x128xf32>,
    %c121_i32_484 = arith.constant 121 : i32
    %564 = tpu.dynamic_rotate %311 by %c121_i32_484 dim 1 : vector<16x128xf32>, i32 -> vector<16x128xf32>
    %c6_485 = arith.constant 6 : index
    %c0_486 = arith.constant 0 : index
    %c0_487 = arith.constant 0 : index
    %565 = vector.load %arg21[%c6_485, %c0_486, %c0_487] : memref<9x1x128xf32, #tpu.memory_space<vmem>>, vector<1x1x128xf32>
    %566 = vector.shape_cast %565 : vector<1x1x128xf32> to vector<1x128xf32>
    %567 = vector.broadcast %566 : vector<1x128xf32> to vector<16x128xf32>
    %568 = arith.mulf %564, %567 : vector<16x128xf32>
    %c240 = arith.constant 240 : index
    %c0_488 = arith.constant 0 : index
    %569 = vector.load %arg29[%c240, %c0_488] : memref<288x128xf32, #tpu.memory_space<vmem>>, vector<16x128xf32>
    tpu.vector_store %arg29[%c240, %c0_488], %568 {strides = array<i32>} : memref<288x128xf32, #tpu.memory_space<vmem>>, vector<16x128xf32>,
    %c120_i32_489 = arith.constant 120 : i32
    %570 = tpu.dynamic_rotate %311 by %c120_i32_489 dim 1 : vector<16x128xf32>, i32 -> vector<16x128xf32>
    %c7_490 = arith.constant 7 : index
    %c0_491 = arith.constant 0 : index
    %c0_492 = arith.constant 0 : index
    %571 = vector.load %arg21[%c7_490, %c0_491, %c0_492] : memref<9x1x128xf32, #tpu.memory_space<vmem>>, vector<1x1x128xf32>
    %572 = vector.shape_cast %571 : vector<1x1x128xf32> to vector<1x128xf32>
    %573 = vector.broadcast %572 : vector<1x128xf32> to vector<16x128xf32>
    %574 = arith.mulf %570, %573 : vector<16x128xf32>
    %c256_493 = arith.constant 256 : index
    %c0_494 = arith.constant 0 : index
    %575 = vector.load %arg29[%c256_493, %c0_494] : memref<288x128xf32, #tpu.memory_space<vmem>>, vector<16x128xf32>
    tpu.vector_store %arg29[%c256_493, %c0_494], %574 {strides = array<i32>} : memref<288x128xf32, #tpu.memory_space<vmem>>, vector<16x128xf32>,
    %c119_i32_495 = arith.constant 119 : i32
    %576 = tpu.dynamic_rotate %311 by %c119_i32_495 dim 1 : vector<16x128xf32>, i32 -> vector<16x128xf32>
    %c8_496 = arith.constant 8 : index
    %c0_497 = arith.constant 0 : index
    %c0_498 = arith.constant 0 : index
    %577 = vector.load %arg21[%c8_496, %c0_497, %c0_498] : memref<9x1x128xf32, #tpu.memory_space<vmem>>, vector<1x1x128xf32>
    %578 = vector.shape_cast %577 : vector<1x1x128xf32> to vector<1x128xf32>
    %579 = vector.broadcast %578 : vector<1x128xf32> to vector<16x128xf32>
    %580 = arith.mulf %576, %579 : vector<16x128xf32>
    %c272 = arith.constant 272 : index
    %c0_499 = arith.constant 0 : index
    %581 = vector.load %arg29[%c272, %c0_499] : memref<288x128xf32, #tpu.memory_space<vmem>>, vector<16x128xf32>
    tpu.vector_store %arg29[%c272, %c0_499], %580 {strides = array<i32>} : memref<288x128xf32, #tpu.memory_space<vmem>>, vector<16x128xf32>,
    %c0_500 = arith.constant 0 : index
    %c0_501 = arith.constant 0 : index
    %582 = vector.load %arg29[%c0_500, %c0_501] : memref<288x128xf32, #tpu.memory_space<vmem>>, vector<288x128xf32>
    %583 = arith.truncf %582 : vector<288x128xf32> to vector<288x128xbf16>
    %c0_502 = arith.constant 0 : index
    %c0_503 = arith.constant 0 : index
    %584 = vector.load %arg10[%c0_502, %c0_503] : memref<16x288xbf16, #tpu.memory_space<vmem>>, vector<16x288xbf16>
    %cst_504 = arith.constant dense<0.000000e+00> : vector<16x128xf32>
    %585 = tpu.matmul %584, %583, %cst_504 {dimension_numbers = #tpu.dot_dimension_numbers<[1], [0], [0], [1], [0, 0, 1, 1], [], []>} : vector<16x288xbf16>, vector<288x128xbf16>, vector<16x128xf32> -> vector<16x128xf32>
    %c112_505 = arith.constant 112 : index
    %c0_506 = arith.constant 0 : index
    %586 = vector.load %arg18[%c112_505, %c0_506] : memref<160x1xf32, #tpu.memory_space<vmem>>, vector<16x1xf32>
    %c112_507 = arith.constant 112 : index
    %c0_508 = arith.constant 0 : index
    %587 = vector.load %arg19[%c112_507, %c0_508] : memref<160x1xf32, #tpu.memory_space<vmem>>, vector<16x1xf32>
    %cst_509 = arith.constant dense<0.000000e+00> : vector<16xf32>
    %588 = vector.multi_reduction <add>, %585, %cst_509 [1] : vector<16x128xf32> to vector<16xf32>
    %589 = vector.shape_cast %588 : vector<16xf32> to vector<16x1xf32>
    %cst_510 = arith.constant 1.280000e+02 : f32
    %590 = vector.broadcast %cst_510 : f32 to vector<16x1xf32>
    %591 = arith.divf %589, %590 : vector<16x1xf32>
    %592 = vector.broadcast %591 : vector<16x1xf32> to vector<16x128xf32>
    %593 = arith.subf %585, %592 : vector<16x128xf32>
    %594 = arith.mulf %593, %593 : vector<16x128xf32>
    %cst_511 = arith.constant dense<0.000000e+00> : vector<16xf32>
    %595 = vector.multi_reduction <add>, %594, %cst_511 [1] : vector<16x128xf32> to vector<16xf32>
    %596 = vector.shape_cast %595 : vector<16xf32> to vector<16x1xf32>
    %cst_512 = arith.constant 1.280000e+02 : f32
    %597 = vector.broadcast %cst_512 : f32 to vector<16x1xf32>
    %598 = arith.divf %596, %597 : vector<16x1xf32>
    %cst_513 = arith.constant 9.99999974E-6 : f32
    %599 = vector.broadcast %cst_513 : f32 to vector<16x1xf32>
    %600 = arith.addf %598, %599 : vector<16x1xf32>
    %601 = math.rsqrt %600 : vector<16x1xf32>
    %602 = arith.mulf %586, %601 : vector<16x1xf32>
    %603 = vector.broadcast %602 : vector<16x1xf32> to vector<16x128xf32>
    %604 = arith.mulf %593, %603 : vector<16x128xf32>
    %605 = vector.broadcast %587 : vector<16x1xf32> to vector<16x128xf32>
    %606 = arith.addf %604, %605 : vector<16x128xf32>
    %cst_514 = arith.constant 0.000000e+00 : f32
    %607 = vector.broadcast %cst_514 : f32 to vector<16x128xf32>
    %608 = arith.maximumf %606, %607 : vector<16x128xf32>
    %c9_i32_515 = arith.constant 9 : i32
    %609 = tpu.dynamic_rotate %608 by %c9_i32_515 dim 1 : vector<16x128xf32>, i32 -> vector<16x128xf32>
    %c0_516 = arith.constant 0 : index
    %c0_517 = arith.constant 0 : index
    %c0_518 = arith.constant 0 : index
    %610 = vector.load %arg21[%c0_516, %c0_517, %c0_518] : memref<9x1x128xf32, #tpu.memory_space<vmem>>, vector<1x1x128xf32>
    %611 = vector.shape_cast %610 : vector<1x1x128xf32> to vector<1x128xf32>
    %612 = vector.broadcast %611 : vector<1x128xf32> to vector<16x128xf32>
    %613 = arith.mulf %609, %612 : vector<16x128xf32>
    %c0_519 = arith.constant 0 : index
    %c0_520 = arith.constant 0 : index
    %614 = vector.load %arg29[%c0_519, %c0_520] : memref<288x128xf32, #tpu.memory_space<vmem>>, vector<16x128xf32>
    tpu.vector_store %arg29[%c0_519, %c0_520], %613 {strides = array<i32>} : memref<288x128xf32, #tpu.memory_space<vmem>>, vector<16x128xf32>,
    %c8_i32_521 = arith.constant 8 : i32
    %615 = tpu.dynamic_rotate %608 by %c8_i32_521 dim 1 : vector<16x128xf32>, i32 -> vector<16x128xf32>
    %c1_522 = arith.constant 1 : index
    %c0_523 = arith.constant 0 : index
    %c0_524 = arith.constant 0 : index
    %616 = vector.load %arg21[%c1_522, %c0_523, %c0_524] : memref<9x1x128xf32, #tpu.memory_space<vmem>>, vector<1x1x128xf32>
    %617 = vector.shape_cast %616 : vector<1x1x128xf32> to vector<1x128xf32>
    %618 = vector.broadcast %617 : vector<1x128xf32> to vector<16x128xf32>
    %619 = arith.mulf %615, %618 : vector<16x128xf32>
    %c16_525 = arith.constant 16 : index
    %c0_526 = arith.constant 0 : index
    %620 = vector.load %arg29[%c16_525, %c0_526] : memref<288x128xf32, #tpu.memory_space<vmem>>, vector<16x128xf32>
    tpu.vector_store %arg29[%c16_525, %c0_526], %619 {strides = array<i32>} : memref<288x128xf32, #tpu.memory_space<vmem>>, vector<16x128xf32>,
    %c7_i32_527 = arith.constant 7 : i32
    %621 = tpu.dynamic_rotate %608 by %c7_i32_527 dim 1 : vector<16x128xf32>, i32 -> vector<16x128xf32>
    %c2_528 = arith.constant 2 : index
    %c0_529 = arith.constant 0 : index
    %c0_530 = arith.constant 0 : index
    %622 = vector.load %arg21[%c2_528, %c0_529, %c0_530] : memref<9x1x128xf32, #tpu.memory_space<vmem>>, vector<1x1x128xf32>
    %623 = vector.shape_cast %622 : vector<1x1x128xf32> to vector<1x128xf32>
    %624 = vector.broadcast %623 : vector<1x128xf32> to vector<16x128xf32>
    %625 = arith.mulf %621, %624 : vector<16x128xf32>
    %c32_531 = arith.constant 32 : index
    %c0_532 = arith.constant 0 : index
    %626 = vector.load %arg29[%c32_531, %c0_532] : memref<288x128xf32, #tpu.memory_space<vmem>>, vector<16x128xf32>
    tpu.vector_store %arg29[%c32_531, %c0_532], %625 {strides = array<i32>} : memref<288x128xf32, #tpu.memory_space<vmem>>, vector<16x128xf32>,
    %c1_i32_533 = arith.constant 1 : i32
    %627 = tpu.dynamic_rotate %608 by %c1_i32_533 dim 1 : vector<16x128xf32>, i32 -> vector<16x128xf32>
    %c3_534 = arith.constant 3 : index
    %c0_535 = arith.constant 0 : index
    %c0_536 = arith.constant 0 : index
    %628 = vector.load %arg21[%c3_534, %c0_535, %c0_536] : memref<9x1x128xf32, #tpu.memory_space<vmem>>, vector<1x1x128xf32>
    %629 = vector.shape_cast %628 : vector<1x1x128xf32> to vector<1x128xf32>
    %630 = vector.broadcast %629 : vector<1x128xf32> to vector<16x128xf32>
    %631 = arith.mulf %627, %630 : vector<16x128xf32>
    %c48_537 = arith.constant 48 : index
    %c0_538 = arith.constant 0 : index
    %632 = vector.load %arg29[%c48_537, %c0_538] : memref<288x128xf32, #tpu.memory_space<vmem>>, vector<16x128xf32>
    tpu.vector_store %arg29[%c48_537, %c0_538], %631 {strides = array<i32>} : memref<288x128xf32, #tpu.memory_space<vmem>>, vector<16x128xf32>,
    %c64_539 = arith.constant 64 : index
    %c0_540 = arith.constant 0 : index
    %633 = vector.load %arg29[%c64_539, %c0_540] : memref<288x128xf32, #tpu.memory_space<vmem>>, vector<16x128xf32>
    tpu.vector_store %arg29[%c64_539, %c0_540], %608 {strides = array<i32>} : memref<288x128xf32, #tpu.memory_space<vmem>>, vector<16x128xf32>,
    %c127_i32_541 = arith.constant 127 : i32
    %634 = tpu.dynamic_rotate %608 by %c127_i32_541 dim 1 : vector<16x128xf32>, i32 -> vector<16x128xf32>
    %c5_542 = arith.constant 5 : index
    %c0_543 = arith.constant 0 : index
    %c0_544 = arith.constant 0 : index
    %635 = vector.load %arg21[%c5_542, %c0_543, %c0_544] : memref<9x1x128xf32, #tpu.memory_space<vmem>>, vector<1x1x128xf32>
    %636 = vector.shape_cast %635 : vector<1x1x128xf32> to vector<1x128xf32>
    %637 = vector.broadcast %636 : vector<1x128xf32> to vector<16x128xf32>
    %638 = arith.mulf %634, %637 : vector<16x128xf32>
    %c80_545 = arith.constant 80 : index
    %c0_546 = arith.constant 0 : index
    %639 = vector.load %arg29[%c80_545, %c0_546] : memref<288x128xf32, #tpu.memory_space<vmem>>, vector<16x128xf32>
    tpu.vector_store %arg29[%c80_545, %c0_546], %638 {strides = array<i32>} : memref<288x128xf32, #tpu.memory_space<vmem>>, vector<16x128xf32>,
    %c121_i32_547 = arith.constant 121 : i32
    %640 = tpu.dynamic_rotate %608 by %c121_i32_547 dim 1 : vector<16x128xf32>, i32 -> vector<16x128xf32>
    %c6_548 = arith.constant 6 : index
    %c0_549 = arith.constant 0 : index
    %c0_550 = arith.constant 0 : index
    %641 = vector.load %arg21[%c6_548, %c0_549, %c0_550] : memref<9x1x128xf32, #tpu.memory_space<vmem>>, vector<1x1x128xf32>
    %642 = vector.shape_cast %641 : vector<1x1x128xf32> to vector<1x128xf32>
    %643 = vector.broadcast %642 : vector<1x128xf32> to vector<16x128xf32>
    %644 = arith.mulf %640, %643 : vector<16x128xf32>
    %c96_551 = arith.constant 96 : index
    %c0_552 = arith.constant 0 : index
    %645 = vector.load %arg29[%c96_551, %c0_552] : memref<288x128xf32, #tpu.memory_space<vmem>>, vector<16x128xf32>
    tpu.vector_store %arg29[%c96_551, %c0_552], %644 {strides = array<i32>} : memref<288x128xf32, #tpu.memory_space<vmem>>, vector<16x128xf32>,
    %c120_i32_553 = arith.constant 120 : i32
    %646 = tpu.dynamic_rotate %608 by %c120_i32_553 dim 1 : vector<16x128xf32>, i32 -> vector<16x128xf32>
    %c7_554 = arith.constant 7 : index
    %c0_555 = arith.constant 0 : index
    %c0_556 = arith.constant 0 : index
    %647 = vector.load %arg21[%c7_554, %c0_555, %c0_556] : memref<9x1x128xf32, #tpu.memory_space<vmem>>, vector<1x1x128xf32>
    %648 = vector.shape_cast %647 : vector<1x1x128xf32> to vector<1x128xf32>
    %649 = vector.broadcast %648 : vector<1x128xf32> to vector<16x128xf32>
    %650 = arith.mulf %646, %649 : vector<16x128xf32>
    %c112_557 = arith.constant 112 : index
    %c0_558 = arith.constant 0 : index
    %651 = vector.load %arg29[%c112_557, %c0_558] : memref<288x128xf32, #tpu.memory_space<vmem>>, vector<16x128xf32>
    tpu.vector_store %arg29[%c112_557, %c0_558], %650 {strides = array<i32>} : memref<288x128xf32, #tpu.memory_space<vmem>>, vector<16x128xf32>,
    %c119_i32_559 = arith.constant 119 : i32
    %652 = tpu.dynamic_rotate %608 by %c119_i32_559 dim 1 : vector<16x128xf32>, i32 -> vector<16x128xf32>
    %c8_560 = arith.constant 8 : index
    %c0_561 = arith.constant 0 : index
    %c0_562 = arith.constant 0 : index
    %653 = vector.load %arg21[%c8_560, %c0_561, %c0_562] : memref<9x1x128xf32, #tpu.memory_space<vmem>>, vector<1x1x128xf32>
    %654 = vector.shape_cast %653 : vector<1x1x128xf32> to vector<1x128xf32>
    %655 = vector.broadcast %654 : vector<1x128xf32> to vector<16x128xf32>
    %656 = arith.mulf %652, %655 : vector<16x128xf32>
    %c128_563 = arith.constant 128 : index
    %c0_564 = arith.constant 0 : index
    %657 = vector.load %arg29[%c128_563, %c0_564] : memref<288x128xf32, #tpu.memory_space<vmem>>, vector<16x128xf32>
    tpu.vector_store %arg29[%c128_563, %c0_564], %656 {strides = array<i32>} : memref<288x128xf32, #tpu.memory_space<vmem>>, vector<16x128xf32>,
    %c0_565 = arith.constant 0 : index
    %c0_566 = arith.constant 0 : index
    %658 = vector.load %arg29[%c0_565, %c0_566] : memref<288x128xf32, #tpu.memory_space<vmem>>, vector<144x128xf32>
    %659 = arith.truncf %658 : vector<144x128xf32> to vector<144x128xbf16>
    %c0_567 = arith.constant 0 : index
    %c0_568 = arith.constant 0 : index
    %660 = vector.load %arg11[%c0_567, %c0_568] : memref<16x144xbf16, #tpu.memory_space<vmem>>, vector<16x144xbf16>
    %cst_569 = arith.constant dense<0.000000e+00> : vector<16x128xf32>
    %661 = tpu.matmul %660, %659, %cst_569 {dimension_numbers = #tpu.dot_dimension_numbers<[1], [0], [0], [1], [0, 0, 1, 1], [], []>} : vector<16x144xbf16>, vector<144x128xbf16>, vector<16x128xf32> -> vector<16x128xf32>
    %c128_570 = arith.constant 128 : index
    %c0_571 = arith.constant 0 : index
    %662 = vector.load %arg18[%c128_570, %c0_571] : memref<160x1xf32, #tpu.memory_space<vmem>>, vector<16x1xf32>
    %c128_572 = arith.constant 128 : index
    %c0_573 = arith.constant 0 : index
    %663 = vector.load %arg19[%c128_572, %c0_573] : memref<160x1xf32, #tpu.memory_space<vmem>>, vector<16x1xf32>
    %cst_574 = arith.constant dense<0.000000e+00> : vector<16xf32>
    %664 = vector.multi_reduction <add>, %661, %cst_574 [1] : vector<16x128xf32> to vector<16xf32>
    %665 = vector.shape_cast %664 : vector<16xf32> to vector<16x1xf32>
    %cst_575 = arith.constant 1.280000e+02 : f32
    %666 = vector.broadcast %cst_575 : f32 to vector<16x1xf32>
    %667 = arith.divf %665, %666 : vector<16x1xf32>
    %668 = vector.broadcast %667 : vector<16x1xf32> to vector<16x128xf32>
    %669 = arith.subf %661, %668 : vector<16x128xf32>
    %670 = arith.mulf %669, %669 : vector<16x128xf32>
    %cst_576 = arith.constant dense<0.000000e+00> : vector<16xf32>
    %671 = vector.multi_reduction <add>, %670, %cst_576 [1] : vector<16x128xf32> to vector<16xf32>
    %672 = vector.shape_cast %671 : vector<16xf32> to vector<16x1xf32>
    %cst_577 = arith.constant 1.280000e+02 : f32
    %673 = vector.broadcast %cst_577 : f32 to vector<16x1xf32>
    %674 = arith.divf %672, %673 : vector<16x1xf32>
    %cst_578 = arith.constant 9.99999974E-6 : f32
    %675 = vector.broadcast %cst_578 : f32 to vector<16x1xf32>
    %676 = arith.addf %674, %675 : vector<16x1xf32>
    %677 = math.rsqrt %676 : vector<16x1xf32>
    %678 = arith.mulf %662, %677 : vector<16x1xf32>
    %679 = vector.broadcast %678 : vector<16x1xf32> to vector<16x128xf32>
    %680 = arith.mulf %669, %679 : vector<16x128xf32>
    %681 = vector.broadcast %663 : vector<16x1xf32> to vector<16x128xf32>
    %682 = arith.addf %680, %681 : vector<16x128xf32>
    %cst_579 = arith.constant 0.000000e+00 : f32
    %683 = vector.broadcast %cst_579 : f32 to vector<16x128xf32>
    %684 = arith.maximumf %682, %683 : vector<16x128xf32>
    %685 = arith.truncf %684 : vector<16x128xf32> to vector<16x128xbf16>
    %cst_580 = arith.constant 0.000000e+00 : f32
    %686 = vector.broadcast %cst_580 : f32 to vector<8x512xf32>
    %c0_581 = arith.constant 0 : index
    %c0_582 = arith.constant 0 : index
    %c0_583 = arith.constant 0 : index
    %687 = vector.load %arg12[%c0_581, %c0_582, %c0_583] : memref<4x8x16xbf16, #tpu.memory_space<vmem>>, vector<1x8x16xbf16>
    %688 = vector.shape_cast %687 : vector<1x8x16xbf16> to vector<8x16xbf16>
    %cst_584 = arith.constant dense<0.000000e+00> : vector<8x128xf32>
    %689 = tpu.matmul %688, %685, %cst_584 {dimension_numbers = #tpu.dot_dimension_numbers<[1], [0], [0], [1], [0, 0, 1, 1], [], []>} : vector<8x16xbf16>, vector<16x128xbf16>, vector<8x128xf32> -> vector<8x128xf32>
    %690 = arith.truncf %689 : vector<8x128xf32> to vector<8x128xbf16>
    %c0_585 = arith.constant 0 : index
    %c0_586 = arith.constant 0 : index
    %c0_587 = arith.constant 0 : index
    %691 = vector.load %arg25[%c0_585, %c0_586, %c0_587] : memref<4x128x512xbf16, #tpu.memory_space<vmem>>, vector<1x128x512xbf16>
    %692 = vector.shape_cast %691 : vector<1x128x512xbf16> to vector<128x512xbf16>
    %cst_588 = arith.constant dense<0.000000e+00> : vector<8x512xf32>
    %693 = tpu.matmul %690, %692, %cst_588 {dimension_numbers = #tpu.dot_dimension_numbers<[1], [0], [0], [1], [0, 0, 1, 1], [], []>} : vector<8x128xbf16>, vector<128x512xbf16>, vector<8x512xf32> -> vector<8x512xf32>
    %694 = arith.addf %686, %693 : vector<8x512xf32>
    %c1_589 = arith.constant 1 : index
    %c0_590 = arith.constant 0 : index
    %c0_591 = arith.constant 0 : index
    %695 = vector.load %arg12[%c1_589, %c0_590, %c0_591] : memref<4x8x16xbf16, #tpu.memory_space<vmem>>, vector<1x8x16xbf16>
    %696 = vector.shape_cast %695 : vector<1x8x16xbf16> to vector<8x16xbf16>
    %cst_592 = arith.constant dense<0.000000e+00> : vector<8x128xf32>
    %697 = tpu.matmul %696, %685, %cst_592 {dimension_numbers = #tpu.dot_dimension_numbers<[1], [0], [0], [1], [0, 0, 1, 1], [], []>} : vector<8x16xbf16>, vector<16x128xbf16>, vector<8x128xf32> -> vector<8x128xf32>
    %698 = arith.truncf %697 : vector<8x128xf32> to vector<8x128xbf16>
    %c1_593 = arith.constant 1 : index
    %c0_594 = arith.constant 0 : index
    %c0_595 = arith.constant 0 : index
    %699 = vector.load %arg25[%c1_593, %c0_594, %c0_595] : memref<4x128x512xbf16, #tpu.memory_space<vmem>>, vector<1x128x512xbf16>
    %700 = vector.shape_cast %699 : vector<1x128x512xbf16> to vector<128x512xbf16>
    %cst_596 = arith.constant dense<0.000000e+00> : vector<8x512xf32>
    %701 = tpu.matmul %698, %700, %cst_596 {dimension_numbers = #tpu.dot_dimension_numbers<[1], [0], [0], [1], [0, 0, 1, 1], [], []>} : vector<8x128xbf16>, vector<128x512xbf16>, vector<8x512xf32> -> vector<8x512xf32>
    %702 = arith.addf %694, %701 : vector<8x512xf32>
    %c2_597 = arith.constant 2 : index
    %c0_598 = arith.constant 0 : index
    %c0_599 = arith.constant 0 : index
    %703 = vector.load %arg12[%c2_597, %c0_598, %c0_599] : memref<4x8x16xbf16, #tpu.memory_space<vmem>>, vector<1x8x16xbf16>
    %704 = vector.shape_cast %703 : vector<1x8x16xbf16> to vector<8x16xbf16>
    %cst_600 = arith.constant dense<0.000000e+00> : vector<8x128xf32>
    %705 = tpu.matmul %704, %685, %cst_600 {dimension_numbers = #tpu.dot_dimension_numbers<[1], [0], [0], [1], [0, 0, 1, 1], [], []>} : vector<8x16xbf16>, vector<16x128xbf16>, vector<8x128xf32> -> vector<8x128xf32>
    %706 = arith.truncf %705 : vector<8x128xf32> to vector<8x128xbf16>
    %c2_601 = arith.constant 2 : index
    %c0_602 = arith.constant 0 : index
    %c0_603 = arith.constant 0 : index
    %707 = vector.load %arg25[%c2_601, %c0_602, %c0_603] : memref<4x128x512xbf16, #tpu.memory_space<vmem>>, vector<1x128x512xbf16>
    %708 = vector.shape_cast %707 : vector<1x128x512xbf16> to vector<128x512xbf16>
    %cst_604 = arith.constant dense<0.000000e+00> : vector<8x512xf32>
    %709 = tpu.matmul %706, %708, %cst_604 {dimension_numbers = #tpu.dot_dimension_numbers<[1], [0], [0], [1], [0, 0, 1, 1], [], []>} : vector<8x128xbf16>, vector<128x512xbf16>, vector<8x512xf32> -> vector<8x512xf32>
    %710 = arith.addf %702, %709 : vector<8x512xf32>
    %c3_605 = arith.constant 3 : index
    %c0_606 = arith.constant 0 : index
    %c0_607 = arith.constant 0 : index
    %711 = vector.load %arg12[%c3_605, %c0_606, %c0_607] : memref<4x8x16xbf16, #tpu.memory_space<vmem>>, vector<1x8x16xbf16>
    %712 = vector.shape_cast %711 : vector<1x8x16xbf16> to vector<8x16xbf16>
    %cst_608 = arith.constant dense<0.000000e+00> : vector<8x128xf32>
    %713 = tpu.matmul %712, %685, %cst_608 {dimension_numbers = #tpu.dot_dimension_numbers<[1], [0], [0], [1], [0, 0, 1, 1], [], []>} : vector<8x16xbf16>, vector<16x128xbf16>, vector<8x128xf32> -> vector<8x128xf32>
    %714 = arith.truncf %713 : vector<8x128xf32> to vector<8x128xbf16>
    %c3_609 = arith.constant 3 : index
    %c0_610 = arith.constant 0 : index
    %c0_611 = arith.constant 0 : index
    %715 = vector.load %arg25[%c3_609, %c0_610, %c0_611] : memref<4x128x512xbf16, #tpu.memory_space<vmem>>, vector<1x128x512xbf16>
    %716 = vector.shape_cast %715 : vector<1x128x512xbf16> to vector<128x512xbf16>
    %cst_612 = arith.constant dense<0.000000e+00> : vector<8x512xf32>
    %717 = tpu.matmul %714, %716, %cst_612 {dimension_numbers = #tpu.dot_dimension_numbers<[1], [0], [0], [1], [0, 0, 1, 1], [], []>} : vector<8x128xbf16>, vector<128x512xbf16>, vector<8x512xf32> -> vector<8x512xf32>
    %718 = arith.addf %710, %717 : vector<8x512xf32>
    %c0_613 = arith.constant 0 : index
    %c0_614 = arith.constant 0 : index
    %719 = vector.load %arg13[%c0_613, %c0_614] : memref<8x1xf32, #tpu.memory_space<vmem>>, vector<8x1xf32>
    %720 = vector.broadcast %719 : vector<8x1xf32> to vector<8x512xf32>
    %721 = arith.addf %718, %720 : vector<8x512xf32>
    %c17_i32_615 = arith.constant 17 : i32
    %722 = tpu.dynamic_rotate %721 by %c17_i32_615 dim 1 : vector<8x512xf32>, i32 -> vector<8x512xf32>
    %c0_616 = arith.constant 0 : index
    %c0_617 = arith.constant 0 : index
    %c0_618 = arith.constant 0 : index
    %723 = vector.load %arg20[%c0_616, %c0_617, %c0_618] : memref<9x1x512xf32, #tpu.memory_space<vmem>>, vector<1x1x512xf32>
    %724 = vector.shape_cast %723 : vector<1x1x512xf32> to vector<1x512xf32>
    %725 = vector.broadcast %724 : vector<1x512xf32> to vector<8x512xf32>
    %726 = arith.mulf %722, %725 : vector<8x512xf32>
    %c0_619 = arith.constant 0 : index
    %c0_620 = arith.constant 0 : index
    %727 = vector.load %arg28[%c0_619, %c0_620] : memref<144x512xf32, #tpu.memory_space<vmem>>, vector<8x512xf32>
    tpu.vector_store %arg28[%c0_619, %c0_620], %726 {strides = array<i32>} : memref<144x512xf32, #tpu.memory_space<vmem>>, vector<8x512xf32>,
    %c16_i32_621 = arith.constant 16 : i32
    %728 = tpu.dynamic_rotate %721 by %c16_i32_621 dim 1 : vector<8x512xf32>, i32 -> vector<8x512xf32>
    %c1_622 = arith.constant 1 : index
    %c0_623 = arith.constant 0 : index
    %c0_624 = arith.constant 0 : index
    %729 = vector.load %arg20[%c1_622, %c0_623, %c0_624] : memref<9x1x512xf32, #tpu.memory_space<vmem>>, vector<1x1x512xf32>
    %730 = vector.shape_cast %729 : vector<1x1x512xf32> to vector<1x512xf32>
    %731 = vector.broadcast %730 : vector<1x512xf32> to vector<8x512xf32>
    %732 = arith.mulf %728, %731 : vector<8x512xf32>
    %c8_625 = arith.constant 8 : index
    %c0_626 = arith.constant 0 : index
    %733 = vector.load %arg28[%c8_625, %c0_626] : memref<144x512xf32, #tpu.memory_space<vmem>>, vector<8x512xf32>
    tpu.vector_store %arg28[%c8_625, %c0_626], %732 {strides = array<i32>} : memref<144x512xf32, #tpu.memory_space<vmem>>, vector<8x512xf32>,
    %c15_i32_627 = arith.constant 15 : i32
    %734 = tpu.dynamic_rotate %721 by %c15_i32_627 dim 1 : vector<8x512xf32>, i32 -> vector<8x512xf32>
    %c2_628 = arith.constant 2 : index
    %c0_629 = arith.constant 0 : index
    %c0_630 = arith.constant 0 : index
    %735 = vector.load %arg20[%c2_628, %c0_629, %c0_630] : memref<9x1x512xf32, #tpu.memory_space<vmem>>, vector<1x1x512xf32>
    %736 = vector.shape_cast %735 : vector<1x1x512xf32> to vector<1x512xf32>
    %737 = vector.broadcast %736 : vector<1x512xf32> to vector<8x512xf32>
    %738 = arith.mulf %734, %737 : vector<8x512xf32>
    %c16_631 = arith.constant 16 : index
    %c0_632 = arith.constant 0 : index
    %739 = vector.load %arg28[%c16_631, %c0_632] : memref<144x512xf32, #tpu.memory_space<vmem>>, vector<8x512xf32>
    tpu.vector_store %arg28[%c16_631, %c0_632], %738 {strides = array<i32>} : memref<144x512xf32, #tpu.memory_space<vmem>>, vector<8x512xf32>,
    %c1_i32_633 = arith.constant 1 : i32
    %740 = tpu.dynamic_rotate %721 by %c1_i32_633 dim 1 : vector<8x512xf32>, i32 -> vector<8x512xf32>
    %c3_634 = arith.constant 3 : index
    %c0_635 = arith.constant 0 : index
    %c0_636 = arith.constant 0 : index
    %741 = vector.load %arg20[%c3_634, %c0_635, %c0_636] : memref<9x1x512xf32, #tpu.memory_space<vmem>>, vector<1x1x512xf32>
    %742 = vector.shape_cast %741 : vector<1x1x512xf32> to vector<1x512xf32>
    %743 = vector.broadcast %742 : vector<1x512xf32> to vector<8x512xf32>
    %744 = arith.mulf %740, %743 : vector<8x512xf32>
    %c24_637 = arith.constant 24 : index
    %c0_638 = arith.constant 0 : index
    %745 = vector.load %arg28[%c24_637, %c0_638] : memref<144x512xf32, #tpu.memory_space<vmem>>, vector<8x512xf32>
    tpu.vector_store %arg28[%c24_637, %c0_638], %744 {strides = array<i32>} : memref<144x512xf32, #tpu.memory_space<vmem>>, vector<8x512xf32>,
    %c32_639 = arith.constant 32 : index
    %c0_640 = arith.constant 0 : index
    %746 = vector.load %arg28[%c32_639, %c0_640] : memref<144x512xf32, #tpu.memory_space<vmem>>, vector<8x512xf32>
    tpu.vector_store %arg28[%c32_639, %c0_640], %721 {strides = array<i32>} : memref<144x512xf32, #tpu.memory_space<vmem>>, vector<8x512xf32>,
    %c511_i32_641 = arith.constant 511 : i32
    %747 = tpu.dynamic_rotate %721 by %c511_i32_641 dim 1 : vector<8x512xf32>, i32 -> vector<8x512xf32>
    %c5_642 = arith.constant 5 : index
    %c0_643 = arith.constant 0 : index
    %c0_644 = arith.constant 0 : index
    %748 = vector.load %arg20[%c5_642, %c0_643, %c0_644] : memref<9x1x512xf32, #tpu.memory_space<vmem>>, vector<1x1x512xf32>
    %749 = vector.shape_cast %748 : vector<1x1x512xf32> to vector<1x512xf32>
    %750 = vector.broadcast %749 : vector<1x512xf32> to vector<8x512xf32>
    %751 = arith.mulf %747, %750 : vector<8x512xf32>
    %c40_645 = arith.constant 40 : index
    %c0_646 = arith.constant 0 : index
    %752 = vector.load %arg28[%c40_645, %c0_646] : memref<144x512xf32, #tpu.memory_space<vmem>>, vector<8x512xf32>
    tpu.vector_store %arg28[%c40_645, %c0_646], %751 {strides = array<i32>} : memref<144x512xf32, #tpu.memory_space<vmem>>, vector<8x512xf32>,
    %c497_i32_647 = arith.constant 497 : i32
    %753 = tpu.dynamic_rotate %721 by %c497_i32_647 dim 1 : vector<8x512xf32>, i32 -> vector<8x512xf32>
    %c6_648 = arith.constant 6 : index
    %c0_649 = arith.constant 0 : index
    %c0_650 = arith.constant 0 : index
    %754 = vector.load %arg20[%c6_648, %c0_649, %c0_650] : memref<9x1x512xf32, #tpu.memory_space<vmem>>, vector<1x1x512xf32>
    %755 = vector.shape_cast %754 : vector<1x1x512xf32> to vector<1x512xf32>
    %756 = vector.broadcast %755 : vector<1x512xf32> to vector<8x512xf32>
    %757 = arith.mulf %753, %756 : vector<8x512xf32>
    %c48_651 = arith.constant 48 : index
    %c0_652 = arith.constant 0 : index
    %758 = vector.load %arg28[%c48_651, %c0_652] : memref<144x512xf32, #tpu.memory_space<vmem>>, vector<8x512xf32>
    tpu.vector_store %arg28[%c48_651, %c0_652], %757 {strides = array<i32>} : memref<144x512xf32, #tpu.memory_space<vmem>>, vector<8x512xf32>,
    %c496_i32_653 = arith.constant 496 : i32
    %759 = tpu.dynamic_rotate %721 by %c496_i32_653 dim 1 : vector<8x512xf32>, i32 -> vector<8x512xf32>
    %c7_654 = arith.constant 7 : index
    %c0_655 = arith.constant 0 : index
    %c0_656 = arith.constant 0 : index
    %760 = vector.load %arg20[%c7_654, %c0_655, %c0_656] : memref<9x1x512xf32, #tpu.memory_space<vmem>>, vector<1x1x512xf32>
    %761 = vector.shape_cast %760 : vector<1x1x512xf32> to vector<1x512xf32>
    %762 = vector.broadcast %761 : vector<1x512xf32> to vector<8x512xf32>
    %763 = arith.mulf %759, %762 : vector<8x512xf32>
    %c56_657 = arith.constant 56 : index
    %c0_658 = arith.constant 0 : index
    %764 = vector.load %arg28[%c56_657, %c0_658] : memref<144x512xf32, #tpu.memory_space<vmem>>, vector<8x512xf32>
    tpu.vector_store %arg28[%c56_657, %c0_658], %763 {strides = array<i32>} : memref<144x512xf32, #tpu.memory_space<vmem>>, vector<8x512xf32>,
    %c495_i32_659 = arith.constant 495 : i32
    %765 = tpu.dynamic_rotate %721 by %c495_i32_659 dim 1 : vector<8x512xf32>, i32 -> vector<8x512xf32>
    %c8_660 = arith.constant 8 : index
    %c0_661 = arith.constant 0 : index
    %c0_662 = arith.constant 0 : index
    %766 = vector.load %arg20[%c8_660, %c0_661, %c0_662] : memref<9x1x512xf32, #tpu.memory_space<vmem>>, vector<1x1x512xf32>
    %767 = vector.shape_cast %766 : vector<1x1x512xf32> to vector<1x512xf32>
    %768 = vector.broadcast %767 : vector<1x512xf32> to vector<8x512xf32>
    %769 = arith.mulf %765, %768 : vector<8x512xf32>
    %c64_663 = arith.constant 64 : index
    %c0_664 = arith.constant 0 : index
    %770 = vector.load %arg28[%c64_663, %c0_664] : memref<144x512xf32, #tpu.memory_space<vmem>>, vector<8x512xf32>
    tpu.vector_store %arg28[%c64_663, %c0_664], %769 {strides = array<i32>} : memref<144x512xf32, #tpu.memory_space<vmem>>, vector<8x512xf32>,
    %c17_i32_665 = arith.constant 17 : i32
    %771 = tpu.dynamic_rotate %152 by %c17_i32_665 dim 1 : vector<8x512xf32>, i32 -> vector<8x512xf32>
    %c0_666 = arith.constant 0 : index
    %c0_667 = arith.constant 0 : index
    %c0_668 = arith.constant 0 : index
    %772 = vector.load %arg20[%c0_666, %c0_667, %c0_668] : memref<9x1x512xf32, #tpu.memory_space<vmem>>, vector<1x1x512xf32>
    %773 = vector.shape_cast %772 : vector<1x1x512xf32> to vector<1x512xf32>
    %774 = vector.broadcast %773 : vector<1x512xf32> to vector<8x512xf32>
    %775 = arith.mulf %771, %774 : vector<8x512xf32>
    %c72 = arith.constant 72 : index
    %c0_669 = arith.constant 0 : index
    %776 = vector.load %arg28[%c72, %c0_669] : memref<144x512xf32, #tpu.memory_space<vmem>>, vector<8x512xf32>
    tpu.vector_store %arg28[%c72, %c0_669], %775 {strides = array<i32>} : memref<144x512xf32, #tpu.memory_space<vmem>>, vector<8x512xf32>,
    %c16_i32_670 = arith.constant 16 : i32
    %777 = tpu.dynamic_rotate %152 by %c16_i32_670 dim 1 : vector<8x512xf32>, i32 -> vector<8x512xf32>
    %c1_671 = arith.constant 1 : index
    %c0_672 = arith.constant 0 : index
    %c0_673 = arith.constant 0 : index
    %778 = vector.load %arg20[%c1_671, %c0_672, %c0_673] : memref<9x1x512xf32, #tpu.memory_space<vmem>>, vector<1x1x512xf32>
    %779 = vector.shape_cast %778 : vector<1x1x512xf32> to vector<1x512xf32>
    %780 = vector.broadcast %779 : vector<1x512xf32> to vector<8x512xf32>
    %781 = arith.mulf %777, %780 : vector<8x512xf32>
    %c80_674 = arith.constant 80 : index
    %c0_675 = arith.constant 0 : index
    %782 = vector.load %arg28[%c80_674, %c0_675] : memref<144x512xf32, #tpu.memory_space<vmem>>, vector<8x512xf32>
    tpu.vector_store %arg28[%c80_674, %c0_675], %781 {strides = array<i32>} : memref<144x512xf32, #tpu.memory_space<vmem>>, vector<8x512xf32>,
    %c15_i32_676 = arith.constant 15 : i32
    %783 = tpu.dynamic_rotate %152 by %c15_i32_676 dim 1 : vector<8x512xf32>, i32 -> vector<8x512xf32>
    %c2_677 = arith.constant 2 : index
    %c0_678 = arith.constant 0 : index
    %c0_679 = arith.constant 0 : index
    %784 = vector.load %arg20[%c2_677, %c0_678, %c0_679] : memref<9x1x512xf32, #tpu.memory_space<vmem>>, vector<1x1x512xf32>
    %785 = vector.shape_cast %784 : vector<1x1x512xf32> to vector<1x512xf32>
    %786 = vector.broadcast %785 : vector<1x512xf32> to vector<8x512xf32>
    %787 = arith.mulf %783, %786 : vector<8x512xf32>
    %c88 = arith.constant 88 : index
    %c0_680 = arith.constant 0 : index
    %788 = vector.load %arg28[%c88, %c0_680] : memref<144x512xf32, #tpu.memory_space<vmem>>, vector<8x512xf32>
    tpu.vector_store %arg28[%c88, %c0_680], %787 {strides = array<i32>} : memref<144x512xf32, #tpu.memory_space<vmem>>, vector<8x512xf32>,
    %c1_i32_681 = arith.constant 1 : i32
    %789 = tpu.dynamic_rotate %152 by %c1_i32_681 dim 1 : vector<8x512xf32>, i32 -> vector<8x512xf32>
    %c3_682 = arith.constant 3 : index
    %c0_683 = arith.constant 0 : index
    %c0_684 = arith.constant 0 : index
    %790 = vector.load %arg20[%c3_682, %c0_683, %c0_684] : memref<9x1x512xf32, #tpu.memory_space<vmem>>, vector<1x1x512xf32>
    %791 = vector.shape_cast %790 : vector<1x1x512xf32> to vector<1x512xf32>
    %792 = vector.broadcast %791 : vector<1x512xf32> to vector<8x512xf32>
    %793 = arith.mulf %789, %792 : vector<8x512xf32>
    %c96_685 = arith.constant 96 : index
    %c0_686 = arith.constant 0 : index
    %794 = vector.load %arg28[%c96_685, %c0_686] : memref<144x512xf32, #tpu.memory_space<vmem>>, vector<8x512xf32>
    tpu.vector_store %arg28[%c96_685, %c0_686], %793 {strides = array<i32>} : memref<144x512xf32, #tpu.memory_space<vmem>>, vector<8x512xf32>,
    %c104 = arith.constant 104 : index
    %c0_687 = arith.constant 0 : index
    %795 = vector.load %arg28[%c104, %c0_687] : memref<144x512xf32, #tpu.memory_space<vmem>>, vector<8x512xf32>
    tpu.vector_store %arg28[%c104, %c0_687], %152 {strides = array<i32>} : memref<144x512xf32, #tpu.memory_space<vmem>>, vector<8x512xf32>,
    %c511_i32_688 = arith.constant 511 : i32
    %796 = tpu.dynamic_rotate %152 by %c511_i32_688 dim 1 : vector<8x512xf32>, i32 -> vector<8x512xf32>
    %c5_689 = arith.constant 5 : index
    %c0_690 = arith.constant 0 : index
    %c0_691 = arith.constant 0 : index
    %797 = vector.load %arg20[%c5_689, %c0_690, %c0_691] : memref<9x1x512xf32, #tpu.memory_space<vmem>>, vector<1x1x512xf32>
    %798 = vector.shape_cast %797 : vector<1x1x512xf32> to vector<1x512xf32>
    %799 = vector.broadcast %798 : vector<1x512xf32> to vector<8x512xf32>
    %800 = arith.mulf %796, %799 : vector<8x512xf32>
    %c112_692 = arith.constant 112 : index
    %c0_693 = arith.constant 0 : index
    %801 = vector.load %arg28[%c112_692, %c0_693] : memref<144x512xf32, #tpu.memory_space<vmem>>, vector<8x512xf32>
    tpu.vector_store %arg28[%c112_692, %c0_693], %800 {strides = array<i32>} : memref<144x512xf32, #tpu.memory_space<vmem>>, vector<8x512xf32>,
    %c497_i32_694 = arith.constant 497 : i32
    %802 = tpu.dynamic_rotate %152 by %c497_i32_694 dim 1 : vector<8x512xf32>, i32 -> vector<8x512xf32>
    %c6_695 = arith.constant 6 : index
    %c0_696 = arith.constant 0 : index
    %c0_697 = arith.constant 0 : index
    %803 = vector.load %arg20[%c6_695, %c0_696, %c0_697] : memref<9x1x512xf32, #tpu.memory_space<vmem>>, vector<1x1x512xf32>
    %804 = vector.shape_cast %803 : vector<1x1x512xf32> to vector<1x512xf32>
    %805 = vector.broadcast %804 : vector<1x512xf32> to vector<8x512xf32>
    %806 = arith.mulf %802, %805 : vector<8x512xf32>
    %c120 = arith.constant 120 : index
    %c0_698 = arith.constant 0 : index
    %807 = vector.load %arg28[%c120, %c0_698] : memref<144x512xf32, #tpu.memory_space<vmem>>, vector<8x512xf32>
    tpu.vector_store %arg28[%c120, %c0_698], %806 {strides = array<i32>} : memref<144x512xf32, #tpu.memory_space<vmem>>, vector<8x512xf32>,
    %c496_i32_699 = arith.constant 496 : i32
    %808 = tpu.dynamic_rotate %152 by %c496_i32_699 dim 1 : vector<8x512xf32>, i32 -> vector<8x512xf32>
    %c7_700 = arith.constant 7 : index
    %c0_701 = arith.constant 0 : index
    %c0_702 = arith.constant 0 : index
    %809 = vector.load %arg20[%c7_700, %c0_701, %c0_702] : memref<9x1x512xf32, #tpu.memory_space<vmem>>, vector<1x1x512xf32>
    %810 = vector.shape_cast %809 : vector<1x1x512xf32> to vector<1x512xf32>
    %811 = vector.broadcast %810 : vector<1x512xf32> to vector<8x512xf32>
    %812 = arith.mulf %808, %811 : vector<8x512xf32>
    %c128_703 = arith.constant 128 : index
    %c0_704 = arith.constant 0 : index
    %813 = vector.load %arg28[%c128_703, %c0_704] : memref<144x512xf32, #tpu.memory_space<vmem>>, vector<8x512xf32>
    tpu.vector_store %arg28[%c128_703, %c0_704], %812 {strides = array<i32>} : memref<144x512xf32, #tpu.memory_space<vmem>>, vector<8x512xf32>,
    %c495_i32_705 = arith.constant 495 : i32
    %814 = tpu.dynamic_rotate %152 by %c495_i32_705 dim 1 : vector<8x512xf32>, i32 -> vector<8x512xf32>
    %c8_706 = arith.constant 8 : index
    %c0_707 = arith.constant 0 : index
    %c0_708 = arith.constant 0 : index
    %815 = vector.load %arg20[%c8_706, %c0_707, %c0_708] : memref<9x1x512xf32, #tpu.memory_space<vmem>>, vector<1x1x512xf32>
    %816 = vector.shape_cast %815 : vector<1x1x512xf32> to vector<1x512xf32>
    %817 = vector.broadcast %816 : vector<1x512xf32> to vector<8x512xf32>
    %818 = arith.mulf %814, %817 : vector<8x512xf32>
    %c136 = arith.constant 136 : index
    %c0_709 = arith.constant 0 : index
    %819 = vector.load %arg28[%c136, %c0_709] : memref<144x512xf32, #tpu.memory_space<vmem>>, vector<8x512xf32>
    tpu.vector_store %arg28[%c136, %c0_709], %818 {strides = array<i32>} : memref<144x512xf32, #tpu.memory_space<vmem>>, vector<8x512xf32>,
    %c0_710 = arith.constant 0 : index
    %c0_711 = arith.constant 0 : index
    %820 = vector.load %arg28[%c0_710, %c0_711] : memref<144x512xf32, #tpu.memory_space<vmem>>, vector<144x512xf32>
    %821 = arith.truncf %820 : vector<144x512xf32> to vector<144x512xbf16>
    %c0_712 = arith.constant 0 : index
    %c0_713 = arith.constant 0 : index
    %822 = vector.load %arg14[%c0_712, %c0_713] : memref<8x144xbf16, #tpu.memory_space<vmem>>, vector<8x144xbf16>
    %cst_714 = arith.constant dense<0.000000e+00> : vector<8x512xf32>
    %823 = tpu.matmul %822, %821, %cst_714 {dimension_numbers = #tpu.dot_dimension_numbers<[1], [0], [0], [1], [0, 0, 1, 1], [], []>} : vector<8x144xbf16>, vector<144x512xbf16>, vector<8x512xf32> -> vector<8x512xf32>
    %c144_715 = arith.constant 144 : index
    %c0_716 = arith.constant 0 : index
    %824 = vector.load %arg18[%c144_715, %c0_716] : memref<160x1xf32, #tpu.memory_space<vmem>>, vector<8x1xf32>
    %c144_717 = arith.constant 144 : index
    %c0_718 = arith.constant 0 : index
    %825 = vector.load %arg19[%c144_717, %c0_718] : memref<160x1xf32, #tpu.memory_space<vmem>>, vector<8x1xf32>
    %cst_719 = arith.constant dense<0.000000e+00> : vector<8xf32>
    %826 = vector.multi_reduction <add>, %823, %cst_719 [1] : vector<8x512xf32> to vector<8xf32>
    %827 = vector.shape_cast %826 : vector<8xf32> to vector<8x1xf32>
    %cst_720 = arith.constant 5.120000e+02 : f32
    %828 = vector.broadcast %cst_720 : f32 to vector<8x1xf32>
    %829 = arith.divf %827, %828 : vector<8x1xf32>
    %830 = vector.broadcast %829 : vector<8x1xf32> to vector<8x512xf32>
    %831 = arith.subf %823, %830 : vector<8x512xf32>
    %832 = arith.mulf %831, %831 : vector<8x512xf32>
    %cst_721 = arith.constant dense<0.000000e+00> : vector<8xf32>
    %833 = vector.multi_reduction <add>, %832, %cst_721 [1] : vector<8x512xf32> to vector<8xf32>
    %834 = vector.shape_cast %833 : vector<8xf32> to vector<8x1xf32>
    %cst_722 = arith.constant 5.120000e+02 : f32
    %835 = vector.broadcast %cst_722 : f32 to vector<8x1xf32>
    %836 = arith.divf %834, %835 : vector<8x1xf32>
    %cst_723 = arith.constant 9.99999974E-6 : f32
    %837 = vector.broadcast %cst_723 : f32 to vector<8x1xf32>
    %838 = arith.addf %836, %837 : vector<8x1xf32>
    %839 = math.rsqrt %838 : vector<8x1xf32>
    %840 = arith.mulf %824, %839 : vector<8x1xf32>
    %841 = vector.broadcast %840 : vector<8x1xf32> to vector<8x512xf32>
    %842 = arith.mulf %831, %841 : vector<8x512xf32>
    %843 = vector.broadcast %825 : vector<8x1xf32> to vector<8x512xf32>
    %844 = arith.addf %842, %843 : vector<8x512xf32>
    %cst_724 = arith.constant 0.000000e+00 : f32
    %845 = vector.broadcast %cst_724 : f32 to vector<8x512xf32>
    %846 = arith.maximumf %844, %845 : vector<8x512xf32>
    %c17_i32_725 = arith.constant 17 : i32
    %847 = tpu.dynamic_rotate %846 by %c17_i32_725 dim 1 : vector<8x512xf32>, i32 -> vector<8x512xf32>
    %c0_726 = arith.constant 0 : index
    %c0_727 = arith.constant 0 : index
    %c0_728 = arith.constant 0 : index
    %848 = vector.load %arg20[%c0_726, %c0_727, %c0_728] : memref<9x1x512xf32, #tpu.memory_space<vmem>>, vector<1x1x512xf32>
    %849 = vector.shape_cast %848 : vector<1x1x512xf32> to vector<1x512xf32>
    %850 = vector.broadcast %849 : vector<1x512xf32> to vector<8x512xf32>
    %851 = arith.mulf %847, %850 : vector<8x512xf32>
    %c0_729 = arith.constant 0 : index
    %c0_730 = arith.constant 0 : index
    %852 = vector.load %arg28[%c0_729, %c0_730] : memref<144x512xf32, #tpu.memory_space<vmem>>, vector<8x512xf32>
    tpu.vector_store %arg28[%c0_729, %c0_730], %851 {strides = array<i32>} : memref<144x512xf32, #tpu.memory_space<vmem>>, vector<8x512xf32>,
    %c16_i32_731 = arith.constant 16 : i32
    %853 = tpu.dynamic_rotate %846 by %c16_i32_731 dim 1 : vector<8x512xf32>, i32 -> vector<8x512xf32>
    %c1_732 = arith.constant 1 : index
    %c0_733 = arith.constant 0 : index
    %c0_734 = arith.constant 0 : index
    %854 = vector.load %arg20[%c1_732, %c0_733, %c0_734] : memref<9x1x512xf32, #tpu.memory_space<vmem>>, vector<1x1x512xf32>
    %855 = vector.shape_cast %854 : vector<1x1x512xf32> to vector<1x512xf32>
    %856 = vector.broadcast %855 : vector<1x512xf32> to vector<8x512xf32>
    %857 = arith.mulf %853, %856 : vector<8x512xf32>
    %c8_735 = arith.constant 8 : index
    %c0_736 = arith.constant 0 : index
    %858 = vector.load %arg28[%c8_735, %c0_736] : memref<144x512xf32, #tpu.memory_space<vmem>>, vector<8x512xf32>
    tpu.vector_store %arg28[%c8_735, %c0_736], %857 {strides = array<i32>} : memref<144x512xf32, #tpu.memory_space<vmem>>, vector<8x512xf32>,
    %c15_i32_737 = arith.constant 15 : i32
    %859 = tpu.dynamic_rotate %846 by %c15_i32_737 dim 1 : vector<8x512xf32>, i32 -> vector<8x512xf32>
    %c2_738 = arith.constant 2 : index
    %c0_739 = arith.constant 0 : index
    %c0_740 = arith.constant 0 : index
    %860 = vector.load %arg20[%c2_738, %c0_739, %c0_740] : memref<9x1x512xf32, #tpu.memory_space<vmem>>, vector<1x1x512xf32>
    %861 = vector.shape_cast %860 : vector<1x1x512xf32> to vector<1x512xf32>
    %862 = vector.broadcast %861 : vector<1x512xf32> to vector<8x512xf32>
    %863 = arith.mulf %859, %862 : vector<8x512xf32>
    %c16_741 = arith.constant 16 : index
    %c0_742 = arith.constant 0 : index
    %864 = vector.load %arg28[%c16_741, %c0_742] : memref<144x512xf32, #tpu.memory_space<vmem>>, vector<8x512xf32>
    tpu.vector_store %arg28[%c16_741, %c0_742], %863 {strides = array<i32>} : memref<144x512xf32, #tpu.memory_space<vmem>>, vector<8x512xf32>,
    %c1_i32_743 = arith.constant 1 : i32
    %865 = tpu.dynamic_rotate %846 by %c1_i32_743 dim 1 : vector<8x512xf32>, i32 -> vector<8x512xf32>
    %c3_744 = arith.constant 3 : index
    %c0_745 = arith.constant 0 : index
    %c0_746 = arith.constant 0 : index
    %866 = vector.load %arg20[%c3_744, %c0_745, %c0_746] : memref<9x1x512xf32, #tpu.memory_space<vmem>>, vector<1x1x512xf32>
    %867 = vector.shape_cast %866 : vector<1x1x512xf32> to vector<1x512xf32>
    %868 = vector.broadcast %867 : vector<1x512xf32> to vector<8x512xf32>
    %869 = arith.mulf %865, %868 : vector<8x512xf32>
    %c24_747 = arith.constant 24 : index
    %c0_748 = arith.constant 0 : index
    %870 = vector.load %arg28[%c24_747, %c0_748] : memref<144x512xf32, #tpu.memory_space<vmem>>, vector<8x512xf32>
    tpu.vector_store %arg28[%c24_747, %c0_748], %869 {strides = array<i32>} : memref<144x512xf32, #tpu.memory_space<vmem>>, vector<8x512xf32>,
    %c32_749 = arith.constant 32 : index
    %c0_750 = arith.constant 0 : index
    %871 = vector.load %arg28[%c32_749, %c0_750] : memref<144x512xf32, #tpu.memory_space<vmem>>, vector<8x512xf32>
    tpu.vector_store %arg28[%c32_749, %c0_750], %846 {strides = array<i32>} : memref<144x512xf32, #tpu.memory_space<vmem>>, vector<8x512xf32>,
    %c511_i32_751 = arith.constant 511 : i32
    %872 = tpu.dynamic_rotate %846 by %c511_i32_751 dim 1 : vector<8x512xf32>, i32 -> vector<8x512xf32>
    %c5_752 = arith.constant 5 : index
    %c0_753 = arith.constant 0 : index
    %c0_754 = arith.constant 0 : index
    %873 = vector.load %arg20[%c5_752, %c0_753, %c0_754] : memref<9x1x512xf32, #tpu.memory_space<vmem>>, vector<1x1x512xf32>
    %874 = vector.shape_cast %873 : vector<1x1x512xf32> to vector<1x512xf32>
    %875 = vector.broadcast %874 : vector<1x512xf32> to vector<8x512xf32>
    %876 = arith.mulf %872, %875 : vector<8x512xf32>
    %c40_755 = arith.constant 40 : index
    %c0_756 = arith.constant 0 : index
    %877 = vector.load %arg28[%c40_755, %c0_756] : memref<144x512xf32, #tpu.memory_space<vmem>>, vector<8x512xf32>
    tpu.vector_store %arg28[%c40_755, %c0_756], %876 {strides = array<i32>} : memref<144x512xf32, #tpu.memory_space<vmem>>, vector<8x512xf32>,
    %c497_i32_757 = arith.constant 497 : i32
    %878 = tpu.dynamic_rotate %846 by %c497_i32_757 dim 1 : vector<8x512xf32>, i32 -> vector<8x512xf32>
    %c6_758 = arith.constant 6 : index
    %c0_759 = arith.constant 0 : index
    %c0_760 = arith.constant 0 : index
    %879 = vector.load %arg20[%c6_758, %c0_759, %c0_760] : memref<9x1x512xf32, #tpu.memory_space<vmem>>, vector<1x1x512xf32>
    %880 = vector.shape_cast %879 : vector<1x1x512xf32> to vector<1x512xf32>
    %881 = vector.broadcast %880 : vector<1x512xf32> to vector<8x512xf32>
    %882 = arith.mulf %878, %881 : vector<8x512xf32>
    %c48_761 = arith.constant 48 : index
    %c0_762 = arith.constant 0 : index
    %883 = vector.load %arg28[%c48_761, %c0_762] : memref<144x512xf32, #tpu.memory_space<vmem>>, vector<8x512xf32>
    tpu.vector_store %arg28[%c48_761, %c0_762], %882 {strides = array<i32>} : memref<144x512xf32, #tpu.memory_space<vmem>>, vector<8x512xf32>,
    %c496_i32_763 = arith.constant 496 : i32
    %884 = tpu.dynamic_rotate %846 by %c496_i32_763 dim 1 : vector<8x512xf32>, i32 -> vector<8x512xf32>
    %c7_764 = arith.constant 7 : index
    %c0_765 = arith.constant 0 : index
    %c0_766 = arith.constant 0 : index
    %885 = vector.load %arg20[%c7_764, %c0_765, %c0_766] : memref<9x1x512xf32, #tpu.memory_space<vmem>>, vector<1x1x512xf32>
    %886 = vector.shape_cast %885 : vector<1x1x512xf32> to vector<1x512xf32>
    %887 = vector.broadcast %886 : vector<1x512xf32> to vector<8x512xf32>
    %888 = arith.mulf %884, %887 : vector<8x512xf32>
    %c56_767 = arith.constant 56 : index
    %c0_768 = arith.constant 0 : index
    %889 = vector.load %arg28[%c56_767, %c0_768] : memref<144x512xf32, #tpu.memory_space<vmem>>, vector<8x512xf32>
    tpu.vector_store %arg28[%c56_767, %c0_768], %888 {strides = array<i32>} : memref<144x512xf32, #tpu.memory_space<vmem>>, vector<8x512xf32>,
    %c495_i32_769 = arith.constant 495 : i32
    %890 = tpu.dynamic_rotate %846 by %c495_i32_769 dim 1 : vector<8x512xf32>, i32 -> vector<8x512xf32>
    %c8_770 = arith.constant 8 : index
    %c0_771 = arith.constant 0 : index
    %c0_772 = arith.constant 0 : index
    %891 = vector.load %arg20[%c8_770, %c0_771, %c0_772] : memref<9x1x512xf32, #tpu.memory_space<vmem>>, vector<1x1x512xf32>
    %892 = vector.shape_cast %891 : vector<1x1x512xf32> to vector<1x512xf32>
    %893 = vector.broadcast %892 : vector<1x512xf32> to vector<8x512xf32>
    %894 = arith.mulf %890, %893 : vector<8x512xf32>
    %c64_773 = arith.constant 64 : index
    %c0_774 = arith.constant 0 : index
    %895 = vector.load %arg28[%c64_773, %c0_774] : memref<144x512xf32, #tpu.memory_space<vmem>>, vector<8x512xf32>
    tpu.vector_store %arg28[%c64_773, %c0_774], %894 {strides = array<i32>} : memref<144x512xf32, #tpu.memory_space<vmem>>, vector<8x512xf32>,
    %c0_775 = arith.constant 0 : index
    %c0_776 = arith.constant 0 : index
    %896 = vector.load %arg28[%c0_775, %c0_776] : memref<144x512xf32, #tpu.memory_space<vmem>>, vector<72x512xf32>
    %897 = arith.truncf %896 : vector<72x512xf32> to vector<72x512xbf16>
    %c0_777 = arith.constant 0 : index
    %c0_778 = arith.constant 0 : index
    %898 = vector.load %arg15[%c0_777, %c0_778] : memref<8x72xbf16, #tpu.memory_space<vmem>>, vector<8x72xbf16>
    %cst_779 = arith.constant dense<0.000000e+00> : vector<8x512xf32>
    %899 = tpu.matmul %898, %897, %cst_779 {dimension_numbers = #tpu.dot_dimension_numbers<[1], [0], [0], [1], [0, 0, 1, 1], [], []>} : vector<8x72xbf16>, vector<72x512xbf16>, vector<8x512xf32> -> vector<8x512xf32>
    %c152 = arith.constant 152 : index
    %c0_780 = arith.constant 0 : index
    %900 = vector.load %arg18[%c152, %c0_780] : memref<160x1xf32, #tpu.memory_space<vmem>>, vector<8x1xf32>
    %c152_781 = arith.constant 152 : index
    %c0_782 = arith.constant 0 : index
    %901 = vector.load %arg19[%c152_781, %c0_782] : memref<160x1xf32, #tpu.memory_space<vmem>>, vector<8x1xf32>
    %cst_783 = arith.constant dense<0.000000e+00> : vector<8xf32>
    %902 = vector.multi_reduction <add>, %899, %cst_783 [1] : vector<8x512xf32> to vector<8xf32>
    %903 = vector.shape_cast %902 : vector<8xf32> to vector<8x1xf32>
    %cst_784 = arith.constant 5.120000e+02 : f32
    %904 = vector.broadcast %cst_784 : f32 to vector<8x1xf32>
    %905 = arith.divf %903, %904 : vector<8x1xf32>
    %906 = vector.broadcast %905 : vector<8x1xf32> to vector<8x512xf32>
    %907 = arith.subf %899, %906 : vector<8x512xf32>
    %908 = arith.mulf %907, %907 : vector<8x512xf32>
    %cst_785 = arith.constant dense<0.000000e+00> : vector<8xf32>
    %909 = vector.multi_reduction <add>, %908, %cst_785 [1] : vector<8x512xf32> to vector<8xf32>
    %910 = vector.shape_cast %909 : vector<8xf32> to vector<8x1xf32>
    %cst_786 = arith.constant 5.120000e+02 : f32
    %911 = vector.broadcast %cst_786 : f32 to vector<8x1xf32>
    %912 = arith.divf %910, %911 : vector<8x1xf32>
    %cst_787 = arith.constant 9.99999974E-6 : f32
    %913 = vector.broadcast %cst_787 : f32 to vector<8x1xf32>
    %914 = arith.addf %912, %913 : vector<8x1xf32>
    %915 = math.rsqrt %914 : vector<8x1xf32>
    %916 = arith.mulf %900, %915 : vector<8x1xf32>
    %917 = vector.broadcast %916 : vector<8x1xf32> to vector<8x512xf32>
    %918 = arith.mulf %907, %917 : vector<8x512xf32>
    %919 = vector.broadcast %901 : vector<8x1xf32> to vector<8x512xf32>
    %920 = arith.addf %918, %919 : vector<8x512xf32>
    %cst_788 = arith.constant 0.000000e+00 : f32
    %921 = vector.broadcast %cst_788 : f32 to vector<8x512xf32>
    %922 = arith.maximumf %920, %921 : vector<8x512xf32>
    %c0_789 = arith.constant 0 : index
    %c0_790 = arith.constant 0 : index
    %923 = vector.load %arg16[%c0_789, %c0_790] : memref<3x8xbf16, #tpu.memory_space<vmem>>, vector<3x8xbf16>
    %924 = arith.truncf %922 : vector<8x512xf32> to vector<8x512xbf16>
    %cst_791 = arith.constant dense<0.000000e+00> : vector<3x512xf32>
    %925 = tpu.matmul %923, %924, %cst_791 {dimension_numbers = #tpu.dot_dimension_numbers<[1], [0], [0], [1], [0, 0, 1, 1], [], []>} : vector<3x8xbf16>, vector<8x512xbf16>, vector<3x512xf32> -> vector<3x512xf32>
    %c0_792 = arith.constant 0 : index
    %c0_793 = arith.constant 0 : index
    %926 = vector.load %arg17[%c0_792, %c0_793] : memref<3x1xf32, #tpu.memory_space<vmem>>, vector<3x1xf32>
    %927 = vector.broadcast %926 : vector<3x1xf32> to vector<3x512xf32>
    %928 = arith.addf %925, %927 : vector<3x512xf32>
    %c0_794 = arith.constant 0 : index
    %c0_795 = arith.constant 0 : index
    %929 = vector.load %arg27[%c0_794, %c0_795] : memref<3x512xf32, #tpu.memory_space<vmem>>, vector<3x512xf32>
    tpu.vector_store %arg27[%c0_794, %c0_795], %928 {strides = array<i32>} : memref<3x512xf32, #tpu.memory_space<vmem>>, vector<3x512xf32>,
    return
  }
  func.func @transform_0(%arg0: i32) -> (i32, i32) {
    %c0_i32 = arith.constant 0 : i32
    %c0_i32_0 = arith.constant 0 : i32
    %c0_i32_1 = arith.constant 0 : i32
    return %c0_i32, %c0_i32_0 : i32, i32
  }
  func.func @transform_1(%arg0: i32) -> (i32, i32) {
    %c0_i32 = arith.constant 0 : i32
    %c0_i32_0 = arith.constant 0 : i32
    %c0_i32_1 = arith.constant 0 : i32
    return %c0_i32, %c0_i32_0 : i32, i32
  }
  func.func @transform_2(%arg0: i32) -> (i32, i32) {
    %c0_i32 = arith.constant 0 : i32
    %c0_i32_0 = arith.constant 0 : i32
    %c0_i32_1 = arith.constant 0 : i32
    return %c0_i32, %c0_i32_0 : i32, i32
  }
  func.func @transform_3(%arg0: i32) -> (i32, i32) {
    %c0_i32 = arith.constant 0 : i32
    %c0_i32_0 = arith.constant 0 : i32
    %c0_i32_1 = arith.constant 0 : i32
    return %c0_i32, %c0_i32_0 : i32, i32
  }
  func.func @transform_4(%arg0: i32) -> (i32, i32) {
    %c0_i32 = arith.constant 0 : i32
    %c0_i32_0 = arith.constant 0 : i32
    %c0_i32_1 = arith.constant 0 : i32
    return %c0_i32, %c0_i32_0 : i32, i32
  }
  func.func @transform_5(%arg0: i32) -> (i32, i32) {
    %c0_i32 = arith.constant 0 : i32
    %c0_i32_0 = arith.constant 0 : i32
    %c0_i32_1 = arith.constant 0 : i32
    return %c0_i32, %c0_i32_0 : i32, i32
  }
  func.func @transform_6(%arg0: i32) -> (i32, i32) {
    %c0_i32 = arith.constant 0 : i32
    %c0_i32_0 = arith.constant 0 : i32
    %c0_i32_1 = arith.constant 0 : i32
    return %c0_i32, %c0_i32_0 : i32, i32
  }
  func.func @transform_7(%arg0: i32) -> (i32, i32, i32) {
    %c0_i32 = arith.constant 0 : i32
    %c0_i32_0 = arith.constant 0 : i32
    %c0_i32_1 = arith.constant 0 : i32
    %c0_i32_2 = arith.constant 0 : i32
    return %c0_i32, %c0_i32_0, %c0_i32_1 : i32, i32, i32
  }
  func.func @transform_8(%arg0: i32) -> (i32, i32) {
    %c0_i32 = arith.constant 0 : i32
    %c0_i32_0 = arith.constant 0 : i32
    %c0_i32_1 = arith.constant 0 : i32
    return %c0_i32, %c0_i32_0 : i32, i32
  }
  func.func @transform_9(%arg0: i32) -> (i32, i32) {
    %c0_i32 = arith.constant 0 : i32
    %c0_i32_0 = arith.constant 0 : i32
    %c0_i32_1 = arith.constant 0 : i32
    return %c0_i32, %c0_i32_0 : i32, i32
  }
  func.func @transform_10(%arg0: i32) -> (i32, i32) {
    %c0_i32 = arith.constant 0 : i32
    %c0_i32_0 = arith.constant 0 : i32
    %c0_i32_1 = arith.constant 0 : i32
    return %c0_i32, %c0_i32_0 : i32, i32
  }
  func.func @transform_11(%arg0: i32) -> (i32, i32, i32) {
    %c0_i32 = arith.constant 0 : i32
    %c0_i32_0 = arith.constant 0 : i32
    %c0_i32_1 = arith.constant 0 : i32
    %c0_i32_2 = arith.constant 0 : i32
    return %c0_i32, %c0_i32_0, %c0_i32_1 : i32, i32, i32
  }
  func.func @transform_12(%arg0: i32) -> (i32, i32) {
    %c0_i32 = arith.constant 0 : i32
    %c0_i32_0 = arith.constant 0 : i32
    %c0_i32_1 = arith.constant 0 : i32
    return %c0_i32, %c0_i32_0 : i32, i32
  }
  func.func @transform_13(%arg0: i32) -> (i32, i32) {
    %c0_i32 = arith.constant 0 : i32
    %c0_i32_0 = arith.constant 0 : i32
    %c0_i32_1 = arith.constant 0 : i32
    return %c0_i32, %c0_i32_0 : i32, i32
  }
  func.func @transform_14(%arg0: i32) -> (i32, i32) {
    %c0_i32 = arith.constant 0 : i32
    %c0_i32_0 = arith.constant 0 : i32
    %c0_i32_1 = arith.constant 0 : i32
    return %c0_i32, %c0_i32_0 : i32, i32
  }
  func.func @transform_15(%arg0: i32) -> (i32, i32) {
    %c0_i32 = arith.constant 0 : i32
    %c0_i32_0 = arith.constant 0 : i32
    %c0_i32_1 = arith.constant 0 : i32
    return %c0_i32, %c0_i32_0 : i32, i32
  }
  func.func @transform_16(%arg0: i32) -> (i32, i32) {
    %c0_i32 = arith.constant 0 : i32
    %c0_i32_0 = arith.constant 0 : i32
    %c0_i32_1 = arith.constant 0 : i32
    return %c0_i32, %c0_i32_0 : i32, i32
  }
  func.func @transform_17(%arg0: i32) -> (i32, i32) {
    %c0_i32 = arith.constant 0 : i32
    %c0_i32_0 = arith.constant 0 : i32
    %c0_i32_1 = arith.constant 0 : i32
    return %c0_i32, %c0_i32_0 : i32, i32
  }
  func.func @transform_18(%arg0: i32) -> (i32, i32) {
    %c0_i32 = arith.constant 0 : i32
    %c0_i32_0 = arith.constant 0 : i32
    %c0_i32_1 = arith.constant 0 : i32
    return %c0_i32, %c0_i32_0 : i32, i32
  }
  func.func @transform_19(%arg0: i32) -> (i32, i32, i32) {
    %c0_i32 = arith.constant 0 : i32
    %c0_i32_0 = arith.constant 0 : i32
    %c0_i32_1 = arith.constant 0 : i32
    %c0_i32_2 = arith.constant 0 : i32
    return %c0_i32, %c0_i32_0, %c0_i32_1 : i32, i32, i32
  }
  func.func @transform_20(%arg0: i32) -> (i32, i32, i32) {
    %c0_i32 = arith.constant 0 : i32
    %c0_i32_0 = arith.constant 0 : i32
    %c0_i32_1 = arith.constant 0 : i32
    %c0_i32_2 = arith.constant 0 : i32
    return %c0_i32, %c0_i32_0, %c0_i32_1 : i32, i32, i32
  }
  func.func @transform_21(%arg0: i32) -> (i32, i32, i32) {
    %c0_i32 = arith.constant 0 : i32
    %c0_i32_0 = arith.constant 0 : i32
    %c0_i32_1 = arith.constant 0 : i32
    %c0_i32_2 = arith.constant 0 : i32
    return %c0_i32, %c0_i32_0, %c0_i32_1 : i32, i32, i32
  }
  func.func @transform_22(%arg0: i32) -> (i32, i32) {
    %c0_i32 = arith.constant 0 : i32
    %c0_i32_0 = arith.constant 0 : i32
    %c0_i32_1 = arith.constant 0 : i32
    return %c0_i32, %c0_i32_0 : i32, i32
  }
  func.func @transform_23(%arg0: i32) -> (i32, i32) {
    %c0_i32 = arith.constant 0 : i32
    %c0_i32_0 = arith.constant 0 : i32
    %c0_i32_1 = arith.constant 0 : i32
    return %c0_i32, %c0_i32_0 : i32, i32
  }
  func.func @transform_24(%arg0: i32) -> (i32, i32, i32) {
    %c0_i32 = arith.constant 0 : i32
    %c0_i32_0 = arith.constant 0 : i32
    %c0_i32_1 = arith.constant 0 : i32
    %c0_i32_2 = arith.constant 0 : i32
    return %c0_i32, %c0_i32_0, %c0_i32_1 : i32, i32, i32
  }
  func.func @transform_25(%arg0: i32) -> (i32, i32, i32) {
    %c0_i32 = arith.constant 0 : i32
    %c0_i32_0 = arith.constant 0 : i32
    %c0_i32_1 = arith.constant 0 : i32
    %c0_i32_2 = arith.constant 0 : i32
    return %c0_i32, %c0_i32_0, %c0_i32_1 : i32, i32, i32
  }
  func.func @transform_26(%arg0: i32) -> (i32, i32) {
    %c0_i32 = arith.constant 0 : i32
    %c0_i32_0 = arith.constant 0 : i32
    %c0_i32_1 = arith.constant 0 : i32
    return %c0_i32, %c0_i32_0 : i32, i32
  }
}

</mosaic_0001>

<bundles_post_ra>
// kernel: unet_forward.1
= control target key start
LH: loop header
LB: loop body
LE: loop exit
PB: predicated region body
PF: predicated region fallthrough
CT: control target
= control target key end

     0   :  { %s12014_s0 = inlined_call_operand.vmem [shape: f32[8,512], index: 0, kind: input, shape index: {}]   ;;  %s12015_s1 = inlined_call_operand.vmem [shape: bf16[8,72], index: 1, kind: input, shape index: {}]   ;;  %s12016_s2 = inlined_call_operand.vmem [shape: bf16[8,72], index: 2, kind: input, shape index: {}]   ;;  %s12017_s3 = inlined_call_operand.vmem [shape: bf16[16,72], index: 3, kind: input, shape index: {}]   ;;  %s12018_s4 = inlined_call_operand.vmem [shape: bf16[16,144], index: 4, kind: input, shape index: {}]   ;;  %s12019_s5 = inlined_call_operand.vmem [shape: bf16[32,144], index: 5, kind: input, shape index: {}]   ;;  %s12020_s6 = inlined_call_operand.vmem [shape: bf16[32,288], index: 6, kind: input, shape index: {}]   ;;  %s12021_s7 = inlined_call_operand.vmem [shape: bf16[4,16,32], index: 7, kind: input, shape index: {}]   ;;  %s12022_s8 = inlined_call_operand.vmem [shape: f32[16,1], index: 8, kind: input, shape index: {}]   ;;  %s12023_s9 = inlined_call_operand.vmem [shape: bf16[16,288], index: 9, kind: input, shape index: {}]   ;;  %s12024_s10 = inlined_call_operand.vmem [shape: bf16[16,144], index: 10, kind: input, shape index: {}]   ;;  %s12025_s11 = inlined_call_operand.vmem [shape: bf16[4,8,16], index: 11, kind: input, shape index: {}]   ;;  %s12026_s12 = inlined_call_operand.vmem [shape: f32[8,1], index: 12, kind: input, shape index: {}]   ;;  %s12027_s13 = inlined_call_operand.vmem [shape: bf16[8,144], index: 13, kind: input, shape index: {}]   ;;  %s12028_s14 = inlined_call_operand.vmem [shape: bf16[8,72], index: 14, kind: input, shape index: {}]   ;;  %s12029_s15 = inlined_call_operand.vmem [shape: bf16[3,8], index: 15, kind: input, shape index: {}]   ;;  %s12030_s16 = inlined_call_operand.vmem [shape: f32[3,1], index: 16, kind: input, shape index: {}]   ;;  %s12031_s17 = inlined_call_operand.vmem [shape: f32[160,1], index: 17, kind: input, shape index: {}]   ;;  %s12032_s18 = inlined_call_operand.vmem [shape: f32[160,1], index: 18, kind: input, shape index: {}]   ;;  %s12033_s19 = inlined_call_operand.vmem [shape: f32[9,1,512], index: 19, kind: input, shape index: {}]   ;;  %s12034_s20 = inlined_call_operand.vmem [shape: f32[9,1,128], index: 20, kind: input, shape index: {}]   ;;  %s12035_s21 = inlined_call_operand.vmem [shape: bf16[9,32,32], index: 21, kind: input, shape index: {}]   ;;  %s12036_s22 = inlined_call_operand.vmem [shape: bf16[512,128], index: 22, kind: input, shape index: {}]   ;;  %s12037_s23 = inlined_call_operand.vmem [shape: bf16[128,32], index: 23, kind: input, shape index: {}]   ;;  %s12038_s24 = inlined_call_operand.hbm [shape: bf16[4,128,512], index: 24, kind: input, shape index: {}]   ;;  %s12039_s25 = inlined_call_operand.vmem [shape: bf16[4,32,128], index: 25, kind: input, shape index: {}]   ;;  %s12040_s26 = inlined_call_operand.vmem [shape: f32[3,512], index: 26, kind: output, shape index: {}]  }
   0x1   :  { %12059 = sst [smem:[#allocation8_spill]] %s12014_s0 }
   0x2   :  { %12060 = sst [smem:[#allocation9_spill]] %s12015_s1 }
   0x3   :  { %12061 = sst [smem:[#allocation10_spill]] %s12016_s2 }
   0x4   :  { %12062 = sst [smem:[#allocation11_spill]] %s12017_s3 }
   0x5   :  { %12063 = sst [smem:[#allocation12_spill]] %s12018_s4 }
   0x6   :  { %12064 = sst [smem:[#allocation13_spill]] %s12019_s5 }
   0x7   :  { %12065 = sst [smem:[#allocation14_spill]] %s12020_s6 }
   0x8   :  { %12066 = sst [smem:[#allocation15_spill]] %s12021_s7 }
   0x9   :  { %12067 = sst [smem:[#allocation16_spill]] %s12022_s8 }
   0xa   :  { %12068 = sst [smem:[#allocation17_spill]] %s12023_s9 }
   0xb   :  { %12069 = sst [smem:[#allocation18_spill]] %s12024_s10 }
   0xc   :  { %31 = vsyncpa [#allocation6], 0  ;;  %s9323_s27 = smov [#allocation5]  }
   0xd   :  { %s85_s3 = sshll.u32 %s9323_s27, 4  ;;  %s86_s3 = int_to_ptr.vmem [resolvable:$true] %s85_s3 }
   0xe   :  { %s9309_s7 = scalar_lea.vmem %s86_s3, 16384  ;;  %p9314_p1 = scmp.lt.s32.totalorder %s86_s3, %s86_s3 }
   0xf   :  { %p9310_p0 = scmp.ne.s32.totalorder %s86_s3, %s9309_s7  ;;  %p9315_p2 = scmp.lt.s32.totalorder %s9309_s7, %s9309_s7 }
  0x11   :  { %p9316_p3 = por %p9315_p2, %p9314_p1 }
  0x13   :  { %p9317_p4 = pnand %p9316_p3, %p9310_p0 }
  0x15   :  { %9320 = shalt.err (!%p9317_p4)
}
  0x16   :  { %s9324_s28 = smov 256   ;;  %s12055_s8 = smov 16  }
  0x17   :  { %91 = dma.hbm_to_vmem [thread:$0]  %s12038_s24, 16384, %s86_s3, [#allocation6], %s9324_s28, %s9324_s28, %s12055_s8  }
  0x18   :  { %9321 = dma.done.wait [#allocation6], 16384  }
  0x19   :  { %9322 = vsyncadd [#allocation6], 4294950912  ;;  %s12070_s30 = sld [smem:[#allocation8_spill]]  ;;  %s12049_s10 = smov 111   ;;  %v9333_v4 = vmov 0   ;;  %v110_v5 = vlaneseq  ;;  %vm520_vm1 = vcmask 1043456  }
  0x1a   :  { %s9327_s1 = smov 113   ;;  %s12057_s7 = smov 112   ;;  %565 = vmatprep.mubr.bf16.mxu0 %v9333_v4  ;;  %606 = vmatprep.mubr.bf16.mxu1 %v9333_v4  ;;  %v7933_v10 = vld [vmem:[%s12033_s19 + $0x20] sm:$0xf]  ;;  %v9588_v19 = vld [vmem:[%s12033_s19 + $0x18] sm:$0xf] }
  0x1b   :  { %s9329_s28 = smov 127   ;;  %s12053_s4 = smov 15   ;;  %8935 = vset.pattern.permute.xlu0 %v9333_v4  ;;  %8936 = vset.pattern.permute.xlu1 %v9333_v4  ;;  %v120_v6 = vshrl.u32 %v110_v5, 7  ;;  %v9569_v7 = vand.u32 127, %v110_v5  ;;  %v7932_v24 = vld [vmem:[%s12033_s19 + $0x1c] sm:$0xf] }
  0x1c   :  { %s9331_s29 = smov 1   ;;  %s12051_s0 = smov 17   ;;  %v9620_v46 = vld [vmem:[%s12033_s19 + $0x14] sm:$0xf]  ;;  %vm516_vm9 = vcmask 588800   ;;  %vm9339_vm10 = vmmov 0  }
  0x1d   :  { %v9571_v8 = vsub.s32 1, %v120_v6  ;;  %v9573_v9 = vsub.s32 0, %v120_v6  ;;  %vm423_vm0 = vcmp.lt.s32.totalorder %v9569_v7, 111  ;;  %v9590_v20 = vsub.s32 2, %v120_v6  ;;  %s12071_s2 = sld [smem:[#allocation9_spill]]  ;;  %s9336_s9 = smov 119  }
  0x1e   :  { %v9592_v21 = vsub.s32 3, %v120_v6  ;;  %vm335_vm2 = vcmp.lt.s32.totalorder %v9569_v7, 113  ;;  %vm379_vm3 = vcmp.lt.s32.totalorder %v9569_v7, 112  ;;  %vm291_vm4 = vcmp.lt.s32.totalorder %v9569_v7, 127  ;;  %s9340_s5 = smov 8   ;;  %s9341_s24 = smov 9  }
  0x1f   :  { %v9484_v0 = vld [vmem:[%s12070_s30 + $0x10] sm:$0xff]  ;;  %v9489_v1 = vld [vmem:[%s12070_s30] sm:$0xff]  ;;  %v9498_v2 = vld [vmem:[%s12070_s30 + $0x8] sm:$0xff]  ;;  %v438_v13 = vrot.slane %v7933_v10, %v9571_v8  ;;  %v434_v14 = vrot.slane %v7933_v10, %v9573_v9  ;;  %v350_v29 = vrot.slane %v9588_v19, %v9571_v8  ;;  %v394_v31 = vrot.slane %v7932_v24, %v9571_v8  ;;  %s12077_s27 = sld [smem:[#allocation16_spill]] }
  0x20   :  { %419 = vrot.lane.b32.xlu1 %v9484_v0, %s12049_s10  ;;  %415 = vrot.lane.b32.xlu0 %v9489_v1, %s12049_s10  ;;  %v9507_v3 = vld [vmem:[%s12070_s30 + $0x18] sm:$0xff]  ;;  %v446_v32 = vrot.slane %v7933_v10, %v9592_v21  ;;  %v442_v33 = vrot.slane %v7933_v10, %v9590_v20  ;;  %v390_v37 = vrot.slane %v7932_v24, %v9573_v9  ;;  %vm199_vm5 = vcmp.lt.s32.totalorder %v9569_v7, 15  ;;  %s12072_s30 = sld [smem:[#allocation10_spill]] }
  0x21   :  { %v346_v40 = vrot.slane %v9588_v19, %v9573_v9  ;;  %v306_v57 = vrot.slane %v9620_v46, %v9571_v8  ;;  %v398_v62 = vrot.slane %v7932_v24, %v9590_v20  ;;  %v402_v5 = vrot.slane %v7932_v24, %v9592_v21 }
  0x22   :  { %v354_v6 = vrot.slane %v9588_v19, %v9590_v20  ;;  %v358_v10 = vrot.slane %v9588_v19, %v9592_v21  ;;  %vm243_vm6 = vcmp.lt.s32.totalorder %v9569_v7, 1  ;;  %vm112_vm7 = vcmp.lt.s32.totalorder %v9569_v7, 17 }
  0x23   :  { %vm155_vm8 = vcmp.lt.s32.totalorder %v9569_v7, 16  ;;  %vm1953_vm11 = vcmask 130048   ;;  %vm2185_vm12 = vcmask 261120   ;;  %vm7814_vm13 = vcmask 64512  }
  0x24   :  { %329 = vrot.lane.b32.xlu1 %v9498_v2, %s9327_s1  ;;  %417 = vrot.lane.b32.xlu0 %v9498_v2, %s12049_s10 }
  0x28   :  { %373 = vrot.lane.b32.xlu1 %v9498_v2, %s12057_s7  ;;  %331 = vrot.lane.b32.xlu0 %v9484_v0, %s9327_s1 }
  0x2c   :  { %421 = vrot.lane.b32.xlu1 %v9507_v3, %s12049_s10  ;;  %375 = vrot.lane.b32.xlu0 %v9484_v0, %s12057_s7 }
  0x30   :  { %371 = vrot.lane.b32.xlu1 %v9489_v1, %s12057_s7  ;;  %327 = vrot.lane.b32.xlu0 %v9489_v1, %s9327_s1 }
  0x34   :  { %287 = vrot.lane.b32.xlu1 %v9484_v0, %s9329_s28  ;;  %285 = vrot.lane.b32.xlu0 %v9498_v2, %s9329_s28 }
  0x38   :  { %377 = vrot.lane.b32.xlu1 %v9507_v3, %s12057_s7  ;;  %333 = vrot.lane.b32.xlu0 %v9507_v3, %s9327_s1 }
  0x3c   :  { %191 = vrot.lane.b32.xlu1 %v9489_v1, %s12053_s4  ;;  %283 = vrot.lane.b32.xlu0 %v9489_v1, %s9329_s28 }
  0x40   :  { %235 = vrot.lane.b32.xlu1 %v9489_v1, %s9331_s29  ;;  %193 = vrot.lane.b32.xlu0 %v9498_v2, %s12053_s4 }
  0x44   :  { %289 = vrot.lane.b32.xlu1 %v9507_v3, %s9329_s28  ;;  %237 = vrot.lane.b32.xlu0 %v9498_v2, %s9331_s29 }
  0x48   :  { %241 = vrot.lane.b32.xlu1 %v9507_v3, %s9331_s29  ;;  %197 = vrot.lane.b32.xlu0 %v9507_v3, %s12053_s4 }
  0x4c   :  { %104 = vrot.lane.b32.xlu1 %v9498_v2, %s12051_s0  ;;  %102 = vrot.lane.b32.xlu0 %v9489_v1, %s12051_s0 }
  0x50   :  { %149 = vrot.lane.b32.xlu1 %v9498_v2, %s12055_s8  ;;  %147 = vrot.lane.b32.xlu0 %v9489_v1, %s12055_s8 }
  0x54   :  { %239 = vrot.lane.b32.xlu1 %v9484_v0, %s9331_s29  ;;  %195 = vrot.lane.b32.xlu0 %v9484_v0, %s12053_s4 }
  0x58   :  { %153 = vrot.lane.b32.xlu1 %v9507_v3, %s12055_s8  ;;  %108 = vrot.lane.b32.xlu0 %v9507_v3, %s12051_s0 }
  0x5c   :  { %151 = vrot.lane.b32.xlu1 %v9484_v0, %s12055_s8  ;;  %106 = vrot.lane.b32.xlu0 %v9484_v0, %s12051_s0 }
  0x92   :  { %v420_v11 = vpop.permute.xlu1 %419  ;;  %v416_v12 = vpop.permute.xlu0 %415 }
  0x96   :  { %v330_v15 = vpop.permute.xlu1 %329  ;;  %v418_v16 = vpop.permute.xlu0 %417 }
  0x97   :  { %v426_v17 = vsel %vm423_vm0, %v416_v12, %v418_v16  ;;  %v425_v18 = vsel %vm423_vm0, %v418_v16, %v420_v11 }
  0x98   :  { %v452_v22 = vmul.f32 %v438_v13, %v425_v18  ;;  %v451_v23 = vmul.f32 %v434_v14, %v426_v17  ;;  %v302_v14 = vrot.slane %v9620_v46, %v9573_v9 }
  0x9a   :  { %v374_v25 = vpop.permute.xlu1 %373  ;;  %v332_v26 = vpop.permute.xlu0 %331  ;;  %v512_v27 = vpack.c.bf16 %v452_v22, %v452_v22  ;;  %v511_v28 = vpack.c.bf16 %v451_v23, %v451_v23 }
  0x9b   :  { %v337_v34 = vsel %vm335_vm2, %v330_v15, %v332_v26 }
  0x9c   :  { %7934 = vmatprep.subr.msk.bf16.mxu0 %vm520_vm1, %v512_v27  ;;  %v522_v30 = vsel %vm520_vm1, %v511_v28, 0  ;;  %v364_v42 = vmul.f32 %v350_v29, %v337_v34 }
  0x9d   :  { %540 = vmatpush1.bf16.msra.mxu0 %v522_v30 }
  0x9e   :  { %v422_v35 = vpop.permute.xlu1 %421  ;;  %v376_v36 = vpop.permute.xlu0 %375 }
  0x9f   :  { %v424_v38 = vsel %vm423_vm0, %v420_v11, %v422_v35  ;;  %v381_v39 = vsel %vm379_vm3, %v374_v25, %v376_v36  ;;  %v427_v41 = vsel %vm423_vm0, %v422_v35, %v416_v12 }
  0xa0   :  { %v408_v43 = vmul.f32 %v394_v31, %v381_v39  ;;  %v454_v44 = vmul.f32 %v446_v32, %v427_v41  ;;  %v453_v45 = vmul.f32 %v442_v33, %v424_v38  ;;  %v9660_v31 = vld [vmem:[%s12033_s19 + $0xc] sm:$0xf] }
  0xa1   :  { %v258_v38 = vrot.slane %v9660_v31, %v9571_v8  ;;  %v254_v41 = vrot.slane %v9660_v31, %v9573_v9 }
  0xa2   :  { %v372_v47 = vpop.permute.xlu1 %371  ;;  %v328_v48 = vpop.permute.xlu0 %327  ;;  %v508_v49 = vpack.c.bf16 %v408_v43, %v364_v42  ;;  %v514_v50 = vpack.c.bf16 %v454_v44, %v454_v44  ;;  %v513_v51 = vpack.c.bf16 %v453_v45, %v453_v45 }
  0xa3   :  { %v382_v52 = vsel %vm379_vm3, %v372_v47, %v374_v25  ;;  %v338_v53 = vsel %vm335_vm2, %v328_v48, %v330_v15 }
  0xa4   :  { %v407_v54 = vmul.f32 %v390_v37, %v382_v52  ;;  %v363_v55 = vmul.f32 %v346_v40, %v338_v53  ;;  %541 = vmatprep.subr.bf16.mxu0 %v508_v49  ;;  %7936 = vmatprep.subr.msk.bf16.mxu1 %vm520_vm1, %v514_v50  ;;  %v528_v56 = vsel %vm520_vm1, %v513_v51, 0  ;;  %v314_v37 = vrot.slane %v9620_v46, %v9592_v21 }
  0xa5   :  { %581 = vmatpush1.bf16.msra.mxu1 %v528_v56 }
  0xa6   :  { %v288_v58 = vpop.permute.xlu1 %287  ;;  %v286_v59 = vpop.permute.xlu0 %285  ;;  %v507_v60 = vpack.c.bf16 %v407_v54, %v363_v55 }
  0xa7   :  { %v293_v61 = vsel %vm291_vm4, %v286_v59, %v288_v58 }
  0xa8   :  { %v320_v63 = vmul.f32 %v306_v57, %v293_v61  ;;  %542 = vmatpush1.bf16.msra.mxu0 %v507_v60 }
  0xaa   :  { %v378_v11 = vpop.permute.xlu1 %377  ;;  %v334_v12 = vpop.permute.xlu0 %333  ;;  %v504_v13 = vpack.c.bf16 %v320_v63, %v9498_v2 }
  0xab   :  { %v380_v15 = vsel %vm379_vm3, %v376_v36, %v378_v11  ;;  %v383_v16 = vsel %vm379_vm3, %v378_v11, %v372_v47  ;;  %v336_v17 = vsel %vm335_vm2, %v332_v26, %v334_v12  ;;  %v339_v18 = vsel %vm335_vm2, %v334_v12, %v328_v48  ;;  %v9655_v26 = vld [vmem:[%s12033_s19 + $0x8] sm:$0xf] }
  0xac   :  { %v409_v19 = vmul.f32 %v398_v62, %v380_v15  ;;  %v410_v22 = vmul.f32 %v402_v5, %v383_v16  ;;  %v365_v23 = vmul.f32 %v354_v6, %v336_v17  ;;  %v366_v24 = vmul.f32 %v358_v10, %v339_v18  ;;  %543 = vmatprep.subr.bf16.mxu0 %v504_v13 }
  0xad   :  { %v214_v35 = vrot.slane %v9655_v26, %v9571_v8  ;;  %v310_v36 = vrot.slane %v9620_v46, %v9590_v20  ;;  %v210_v45 = vrot.slane %v9655_v26, %v9573_v9  ;;  %v262_v12 = vrot.slane %v9660_v31, %v9590_v20 }
  0xae   :  { %v192_v2 = vpop.permute.xlu1 %191  ;;  %v284_v25 = vpop.permute.xlu0 %283  ;;  %v510_v27 = vpack.c.bf16 %v410_v22, %v366_v24  ;;  %v509_v28 = vpack.c.bf16 %v409_v19, %v365_v23  ;;  %v266_v13 = vrot.slane %v9660_v31, %v9592_v21  ;;  %v218_v16 = vrot.slane %v9655_v26, %v9590_v20 }
  0xaf   :  { %v294_v29 = vsel %vm291_vm4, %v284_v25, %v286_v59  ;;  %v117_v59 = vld [vmem:[%s12033_s19] sm:$0xf]  ;;  %v222_v17 = vrot.slane %v9655_v26, %v9592_v21 }
  0xb0   :  { %v319_v30 = vmul.f32 %v302_v14, %v294_v29  ;;  %582 = vmatprep.subr.bf16.mxu1 %v510_v27  ;;  %v126_v62 = vrot.slane %v117_v59, %v9571_v8  ;;  %v122_v24 = vrot.slane %v117_v59, %v9573_v9 }
  0xb1   :  { %583 = vmatpush1.bf16.msra.mxu1 %v509_v28 }
  0xb2   :  { %v236_v32 = vpop.permute.xlu1 %235  ;;  %v194_v33 = vpop.permute.xlu0 %193  ;;  %v503_v34 = vpack.c.bf16 %v319_v30, %v9489_v1 }
  0xb3   :  { %v202_v39 = vsel %vm199_vm5, %v192_v2, %v194_v33 }
  0xb4   :  { %544 = vmatpush1.bf16.msra.mxu0 %v503_v34  ;;  %v228_v46 = vmul.f32 %v214_v35, %v202_v39 }
  0xb6   :  { %v290_v40 = vpop.permute.xlu1 %289  ;;  %v238_v1 = vpop.permute.xlu0 %237 }
  0xb7   :  { %v292_v42 = vsel %vm291_vm4, %v288_v58, %v290_v40  ;;  %v295_v43 = vsel %vm291_vm4, %v290_v40, %v284_v25  ;;  %v246_v44 = vsel %vm243_vm6, %v236_v32, %v238_v1 }
  0xb8   :  { %v321_v47 = vmul.f32 %v310_v36, %v292_v42  ;;  %v322_v48 = vmul.f32 %v314_v37, %v295_v43  ;;  %v272_v49 = vmul.f32 %v258_v38, %v246_v44  ;;  %v134_v42 = vrot.slane %v117_v59, %v9592_v21 }
  0xba   :  { %v242_v50 = vpop.permute.xlu1 %241  ;;  %v198_v51 = vpop.permute.xlu0 %197  ;;  %v500_v52 = vpack.c.bf16 %v272_v49, %v228_v46  ;;  %v506_v53 = vpack.c.bf16 %v322_v48, %v9507_v3  ;;  %v505_v54 = vpack.c.bf16 %v321_v47, %v9484_v0  ;;  %v7927_v3 = vld [vmem:[%s12033_s19 + $0x4] sm:$0xf] }
  0xbb   :  { %v247_v55 = vsel %vm243_vm6, %v242_v50, %v236_v32  ;;  %v203_v56 = vsel %vm199_vm5, %v198_v51, %v192_v2  ;;  %v170_v63 = vrot.slane %v7927_v3, %v9571_v8  ;;  %v166_v23 = vrot.slane %v7927_v3, %v9573_v9 }
  0xbc   :  { %v271_v57 = vmul.f32 %v254_v41, %v247_v55  ;;  %v227_v58 = vmul.f32 %v210_v45, %v203_v56  ;;  %545 = vmatprep.subr.bf16.mxu0 %v500_v52  ;;  %584 = vmatprep.subr.bf16.mxu1 %v506_v53  ;;  %v174_v39 = vrot.slane %v7927_v3, %v9590_v20 }
  0xbd   :  { %585 = vmatpush1.bf16.msra.mxu1 %v505_v54  ;;  %v178_v40 = vrot.slane %v7927_v3, %v9592_v21  ;;  %v130_v41 = vrot.slane %v117_v59, %v9590_v20  ;;  %v515_v54 = vld [vmem:[%s12071_s2] sm:$0xf]  ;;  %s9338_s2 = smov 7  }
  0xbe   :  { %v105_v0 = vpop.permute.xlu1 %104  ;;  %v103_v60 = vpop.permute.xlu0 %102  ;;  %v499_v61 = vpack.c.bf16 %v271_v57, %v227_v58 }
  0xbf   :  { %v115_v5 = vsel %vm112_vm7, %v103_v60, %v105_v0 }
  0xc0   :  { %546 = vmatpush1.bf16.msra.mxu0 %v499_v61  ;;  %v140_v14 = vmul.f32 %v126_v62, %v115_v5 }
  0xc2   :  { %v150_v6 = vpop.permute.xlu1 %149  ;;  %v148_v10 = vpop.permute.xlu0 %147 }
  0xc3   :  { %v158_v11 = vsel %vm155_vm8, %v148_v10, %v150_v6 }
  0xc4   :  { %v184_v15 = vmul.f32 %v170_v63, %v158_v11 }
  0xc6   :  { %v240_v18 = vpop.permute.xlu1 %239  ;;  %v196_v19 = vpop.permute.xlu0 %195  ;;  %v496_v22 = vpack.c.bf16 %v184_v15, %v140_v14 }
  0xc7   :  { %v244_v2 = vsel %vm243_vm6, %v240_v18, %v242_v50  ;;  %v245_v25 = vsel %vm243_vm6, %v238_v1, %v240_v18  ;;  %v200_v27 = vsel %vm199_vm5, %v196_v19, %v198_v51  ;;  %v201_v28 = vsel %vm199_vm5, %v194_v33, %v196_v19 }
  0xc8   :  { %v273_v29 = vmul.f32 %v262_v12, %v245_v25  ;;  %v274_v30 = vmul.f32 %v266_v13, %v244_v2  ;;  %v229_v26 = vmul.f32 %v218_v16, %v201_v28  ;;  %v230_v31 = vmul.f32 %v222_v17, %v200_v27  ;;  %547 = vmatprep.subr.bf16.mxu0 %v496_v22  ;;  %v616_v2 = vld [vmem:[%s12032_s18] sm:$0xff] }
  0xca   :  { %v154_v32 = vpop.permute.xlu1 %153  ;;  %v109_v34 = vpop.permute.xlu0 %108  ;;  %v502_v35 = vpack.c.bf16 %v274_v30, %v230_v31  ;;  %v501_v36 = vpack.c.bf16 %v273_v29, %v229_v26  ;;  %v615_v29 = vld [vmem:[%s12031_s17] sm:$0xff] }
  0xcb   :  { %v159_v37 = vsel %vm155_vm8, %v154_v32, %v148_v10  ;;  %v116_v38 = vsel %vm112_vm7, %v109_v34, %v103_v60 }
  0xcc   :  { %v183_v33 = vmul.f32 %v166_v23, %v159_v37  ;;  %v139_v1 = vmul.f32 %v122_v24, %v116_v38  ;;  %586 = vmatprep.subr.bf16.mxu1 %v502_v35 }
  0xcd   :  { %587 = vmatpush1.bf16.msra.mxu1 %v501_v36 }
  0xce   :  { %v152_v43 = vpop.permute.xlu1 %151  ;;  %v107_v44 = vpop.permute.xlu0 %106  ;;  %v495_v45 = vpack.c.bf16 %v183_v33, %v139_v1 }
  0xcf   :  { %v156_v46 = vsel %vm155_vm8, %v152_v43, %v154_v32  ;;  %v157_v47 = vsel %vm155_vm8, %v150_v6, %v152_v43  ;;  %v113_v48 = vsel %vm112_vm7, %v107_v44, %v109_v34  ;;  %v114_v49 = vsel %vm112_vm7, %v105_v0, %v107_v44  ;;  %v7944_v44 = vld [vmem:[%s12033_s19 + $0x20] sm:$0xf] }
  0xd0   :  { %v185_v50 = vmul.f32 %v174_v39, %v157_v47  ;;  %v186_v51 = vmul.f32 %v178_v40, %v156_v46  ;;  %v141_v52 = vmul.f32 %v130_v41, %v114_v49  ;;  %v142_v53 = vmul.f32 %v134_v42, %v113_v48  ;;  %548 = vmatpush1.bf16.msra.mxu0 %v495_v45 }
  0xd1   :  { %v978_v47 = vrot.slane %v7944_v44, %v9573_v9 }
  0xd2   :  { %v498_v55 = vpack.c.bf16 %v186_v51, %v142_v53  ;;  %v497_v56 = vpack.c.bf16 %v185_v50, %v141_v52  ;;  %v982_v52 = vrot.slane %v7944_v44, %v9571_v8 }
  0xd3   :  { %7935 = vmatmul.mubr.msk.bf16.vlgmr.msra.gmra.mxu0 %vm516_vm9, %v515_v54 }
  0xd4   :  { %588 = vmatprep.subr.bf16.mxu1 %v498_v55  ;;  %1107 = vmatprep.mubr.bf16.mxu0 %v9333_v4 }
  0xd5   :  { %589 = vmatpush1.bf16.msra.mxu1 %v497_v56 }
  0xd8   :  { %7937 = vmatmul.mubr.msk.bf16.vlgmr.msra.gmra.mxu1 %vm516_vm9, %v515_v54 }
  0xd9   :  { %1148 = vmatprep.mubr.bf16.mxu1 %v9333_v4 }
 0x193   :  { %v567_v57 = vpop.f32.mrf.mxu0 }
 0x195   :  { %v569_v58 = vpop.f32.mrf.mxu0 }
 0x196   :  { %v617_v59 = vadd.f32 %v569_v58, %v567_v57 }
 0x197   :  { %v571_v3 = vpop.f32.mrf.mxu0 }
 0x198   :  { %v608_v0 = vpop.f32.mrf.mxu1 }
 0x199   :  { %v618_v60 = vadd.f32 %v617_v59, %v608_v0  ;;  %v572_v61 = vpop.f32.mrf.mxu0 }
 0x19a   :  { %v610_v62 = vpop.f32.mrf.mxu1 }
 0x19b   :  { %v619_v63 = vadd.f32 %v618_v60, %v610_v62  ;;  %v7943_v60 = vld [vmem:[%s12033_s19 + $0x1c] sm:$0xf] }
 0x19c   :  { %v612_v5 = vpop.f32.mrf.mxu1 }
 0x19d   :  { %620 = vadd.xlane.f32.xlu0 %v619_v63  ;;  %v940_v5 = vrot.slane %v7943_v60, %v9571_v8 }
 0x19e   :  { %v613_v6 = vpop.f32.mrf.mxu1 }
 0x226   :  { %v621_v10 = vpop.xlane.xlu0 %620 }
 0x227   :  { %v623_v11 = vmul.f32 0.001953125, %v621_v10 }
 0x229   :  { %v624_v12 = vsub.f32 %v567_v57, %v623_v11  ;;  %v625_v13 = vsub.f32 %v569_v58, %v623_v11  ;;  %v626_v14 = vsub.f32 %v608_v0, %v623_v11  ;;  %v627_v15 = vsub.f32 %v610_v62, %v623_v11  ;;  %v7942_v62 = vld [vmem:[%s12033_s19 + $0x18] sm:$0xf] }
 0x22a   :  { %v898_v63 = vrot.slane %v7942_v62, %v9571_v8 }
 0x22b   :  { %v628_v16 = vmul.f32 %v624_v12, %v624_v12  ;;  %v629_v17 = vmul.f32 %v625_v13, %v625_v13  ;;  %v630_v18 = vmul.f32 %v626_v14, %v626_v14  ;;  %v631_v22 = vmul.f32 %v627_v15, %v627_v15 }
 0x22d   :  { %v632_v19 = vadd.f32 %v629_v17, %v628_v16  ;;  %v990_v16 = vrot.slane %v7944_v44, %v9592_v21 }
 0x22f   :  { %v633_v23 = vadd.f32 %v632_v19, %v630_v18 }
 0x231   :  { %v634_v24 = vadd.f32 %v633_v23, %v631_v22  ;;  %v894_v23 = vrot.slane %v7942_v62, %v9573_v9 }
 0x233   :  { %635 = vadd.xlane.f32.xlu1 %v634_v24  ;;  %v9864_v24 = vld [vmem:[%s12033_s19 + $0x14] sm:$0xf] }
 0x244   :  { %652 = vperm.xlu1 %8936, %v616_v2  }
 0x2bc   :  { %v636_v25 = vpop.xlane.xlu1 %635 }
 0x2bd   :  { %v637_v27 = vmul.f32 0.001953125, %v636_v25 }
 0x2bf   :  { %v638_v28 = vadd.f32 1e-05, %v637_v27 }
 0x2c0   :  { %v653_v32 = vpop.permute.xlu1 %652 }
 0x2c1   :  { %9259 = vrsqrt.f32 %v638_v28  ;;  %v936_v28 = vrot.slane %v7943_v60, %v9573_v9 }
 0x2ce   :  { %v9260_v30 = vpop.eup %9259 }
 0x2cf   :  { %v640_v26 = vmul.f32 %v9260_v30, %v615_v29 }
 0x2d1   :  { %643 = vperm.xlu0 %8935, %v640_v26  }
 0x34c   :  { %v644_v31 = vpop.permute.xlu0 %643 }
 0x34d   :  { %v646_v34 = vmul.f32 %v644_v31, %v624_v12  ;;  %v647_v35 = vmul.f32 %v644_v31, %v625_v13  ;;  %v648_v36 = vmul.f32 %v644_v31, %v626_v14  ;;  %v649_v1 = vmul.f32 %v644_v31, %v627_v15 }
 0x34e   :  { %v986_v15 = vrot.slane %v7944_v44, %v9590_v20 }
 0x34f   :  { %v655_v37 = vadd.f32 %v653_v32, %v646_v34  ;;  %v657_v38 = vadd.f32 %v653_v32, %v648_v36  ;;  %v656_v39 = vadd.f32 %v653_v32, %v647_v35  ;;  %v658_v42 = vadd.f32 %v653_v32, %v649_v1 }
 0x350   :  { %v852_v32 = vrot.slane %v9864_v24, %v9573_v9  ;;  %v856_v35 = vrot.slane %v9864_v24, %v9571_v8 }
 0x351   :  { %v9752_v40 = vmax.f32 %v655_v37, 0.0  ;;  %v9754_v33 = vmax.f32 %v657_v38, 0.0  ;;  %v9760_v41 = vmax.f32 %v656_v39, 0.0  ;;  %v9770_v43 = vmax.f32 %v658_v42, 0.0 }
 0x353   :  { %923 = vrot.lane.b32.xlu0 %v9754_v33, %s12057_s7  ;;  %961 = vrot.lane.b32.xlu1 %v9752_v40, %s12049_s10 }
 0x357   :  { %877 = vrot.lane.b32.xlu0 %v9752_v40, %s9327_s1  ;;  %963 = vrot.lane.b32.xlu1 %v9760_v41, %s12049_s10 }
 0x35b   :  { %837 = vrot.lane.b32.xlu0 %v9760_v41, %s9329_s28  ;;  %965 = vrot.lane.b32.xlu1 %v9754_v33, %s12049_s10 }
 0x35f   :  { %883 = vrot.lane.b32.xlu0 %v9770_v43, %s9327_s1  ;;  %879 = vrot.lane.b32.xlu1 %v9760_v41, %s9327_s1 }
 0x363   :  { %835 = vrot.lane.b32.xlu0 %v9752_v40, %s9329_s28  ;;  %881 = vrot.lane.b32.xlu1 %v9754_v33, %s9327_s1 }
 0x367   :  { %749 = vrot.lane.b32.xlu0 %v9760_v41, %s12053_s4  ;;  %921 = vrot.lane.b32.xlu1 %v9760_v41, %s12057_s7 }
 0x36b   :  { %791 = vrot.lane.b32.xlu0 %v9760_v41, %s9331_s29  ;;  %967 = vrot.lane.b32.xlu1 %v9770_v43, %s12049_s10  ;;  %s12075_s10 = sld [smem:[#allocation13_spill]] }
 0x36f   :  { %753 = vrot.lane.b32.xlu0 %v9770_v43, %s12053_s4  ;;  %919 = vrot.lane.b32.xlu1 %v9752_v40, %s12057_s7 }
 0x373   :  { %663 = vrot.lane.b32.xlu0 %v9752_v40, %s12051_s0  ;;  %839 = vrot.lane.b32.xlu1 %v9754_v33, %s9329_s28 }
 0x377   :  { %705 = vrot.lane.b32.xlu0 %v9752_v40, %s12055_s8  ;;  %925 = vrot.lane.b32.xlu1 %v9770_v43, %s12057_s7 }
 0x37b   :  { %751 = vrot.lane.b32.xlu0 %v9754_v33, %s12053_s4  ;;  %747 = vrot.lane.b32.xlu1 %v9752_v40, %s12053_s4  ;;  %s12074_s4 = sld [smem:[#allocation12_spill]] }
 0x37f   :  { %669 = vrot.lane.b32.xlu0 %v9770_v43, %s12051_s0  ;;  %789 = vrot.lane.b32.xlu1 %v9752_v40, %s9331_s29 }
 0x383   :  { %667 = vrot.lane.b32.xlu0 %v9754_v33, %s12051_s0  ;;  %841 = vrot.lane.b32.xlu1 %v9770_v43, %s9329_s28 }
 0x387   :  { %795 = vrot.lane.b32.xlu1 %v9770_v43, %s9331_s29 }
 0x38b   :  { %665 = vrot.lane.b32.xlu1 %v9760_v41, %s12051_s0  ;;  %s12073_s0 = sld [smem:[#allocation11_spill]] }
 0x38f   :  { %707 = vrot.lane.b32.xlu1 %v9760_v41, %s12055_s8 }
 0x393   :  { %793 = vrot.lane.b32.xlu1 %v9754_v33, %s9331_s29 }
 0x397   :  { %711 = vrot.lane.b32.xlu1 %v9770_v43, %s12055_s8 }
 0x39b   :  { %709 = vrot.lane.b32.xlu1 %v9754_v33, %s12055_s8  ;;  %s12084_s8 = smov 112  }
 0x3c5   :  { %v9827_v45 = vpop.permute.xlu0 %923  ;;  %v962_v46 = vpop.permute.xlu1 %961 }
 0x3c9   :  { %v9830_v48 = vpop.permute.xlu0 %877  ;;  %v964_v49 = vpop.permute.xlu1 %963 }
 0x3ca   :  { %v971_v50 = vsel %vm423_vm0, %v962_v46, %v964_v49 }
 0x3cb   :  { %v995_v51 = vmul.f32 %v978_v47, %v971_v50  ;;  %v902_v50 = vrot.slane %v7942_v62, %v9590_v20 }
 0x3cd   :  { %v838_v53 = vpop.permute.xlu0 %837  ;;  %v966_v54 = vpop.permute.xlu1 %965  ;;  %v1055_v56 = vpack.c.bf16 %v995_v51, %v995_v51 }
 0x3ce   :  { %v970_v55 = vsel %vm423_vm0, %v964_v49, %v966_v54 }
 0x3cf   :  { %v996_v57 = vmul.f32 %v982_v52, %v970_v55  ;;  %v1064_v0 = vsel %vm520_vm1, %v1055_v56, 0  ;;  %v944_v52 = vrot.slane %v7943_v60, %v9590_v20 }
 0x3d1   :  { %v1056_v58 = vpack.c.bf16 %v996_v57, %v996_v57  ;;  %v880_v59 = vpop.permute.xlu1 %879  ;;  %v884_v3 = vpop.permute.xlu0 %883 }
 0x3d2   :  { %v887_v29 = vsel %vm335_vm2, %v9830_v48, %v880_v59  ;;  %v888_v55 = vsel %vm335_vm2, %v884_v3, %v9830_v48 }
 0x3d3   :  { %7945 = vmatprep.subr.msk.bf16.mxu0 %vm520_vm1, %v1056_v58  ;;  %v911_v36 = vmul.f32 %v894_v23, %v887_v29 }
 0x3d4   :  { %1082 = vmatpush1.bf16.msra.mxu0 %v1064_v0 }
 0x3d5   :  { %v882_v61 = vpop.permute.xlu1 %881  ;;  %v9849_v10 = vpop.permute.xlu0 %835 }
 0x3d6   :  { %v886_v6 = vsel %vm335_vm2, %v880_v59, %v882_v61  ;;  %v845_v37 = vsel %vm291_vm4, %v9849_v10, %v838_v53  ;;  %v885_v56 = vsel %vm335_vm2, %v882_v61, %v884_v3 }
 0x3d7   :  { %v912_v13 = vmul.f32 %v898_v63, %v886_v6  ;;  %v869_v47 = vmul.f32 %v852_v32, %v845_v37 }
 0x3d9   :  { %v922_v11 = vpop.permute.xlu1 %921  ;;  %v9866_v2 = vpop.permute.xlu0 %749 }
 0x3da   :  { %v928_v12 = vsel %vm379_vm3, %v922_v11, %v9827_v45 }
 0x3db   :  { %v954_v14 = vmul.f32 %v940_v5, %v928_v12 }
 0x3dd   :  { %v968_v17 = vpop.permute.xlu1 %967  ;;  %v1052_v18 = vpack.c.bf16 %v954_v14, %v912_v13  ;;  %v9883_v1 = vpop.permute.xlu0 %791 }
 0x3de   :  { %v969_v19 = vsel %vm423_vm0, %v966_v54, %v968_v17  ;;  %v972_v22 = vsel %vm423_vm0, %v968_v17, %v962_v46  ;;  %v906_v46 = vrot.slane %v7942_v62, %v9592_v21  ;;  %v948_v54 = vrot.slane %v7943_v60, %v9592_v21 }
 0x3df   :  { %v997_v25 = vmul.f32 %v986_v15, %v969_v19  ;;  %v998_v27 = vmul.f32 %v990_v16, %v972_v22  ;;  %1083 = vmatprep.subr.bf16.mxu0 %v1052_v18  ;;  %v913_v62 = vmul.f32 %v902_v50, %v885_v56  ;;  %v860_v18 = vrot.slane %v9864_v24, %v9590_v20 }
 0x3e0   :  { %v914_v60 = vmul.f32 %v906_v46, %v888_v55  ;;  %v864_v19 = vrot.slane %v9864_v24, %v9592_v21 }
 0x3e1   :  { %v1057_v30 = vpack.c.bf16 %v997_v25, %v997_v25  ;;  %v1058_v26 = vpack.c.bf16 %v998_v27, %v998_v27  ;;  %v920_v31 = vpop.permute.xlu1 %919  ;;  %v754_v63 = vpop.permute.xlu0 %753 }
 0x3e2   :  { %v929_v34 = vsel %vm379_vm3, %v920_v31, %v922_v11 }
 0x3e3   :  { %v953_v38 = vmul.f32 %v936_v28, %v929_v34  ;;  %7947 = vmatprep.subr.msk.bf16.mxu1 %vm520_vm1, %v1058_v26  ;;  %v1070_v39 = vsel %vm520_vm1, %v1057_v30, 0 }
 0x3e4   :  { %1123 = vmatpush1.bf16.msra.mxu1 %v1070_v39 }
 0x3e5   :  { %v1051_v42 = vpack.c.bf16 %v953_v38, %v911_v36  ;;  %v840_v44 = vpop.permute.xlu1 %839  ;;  %v664_v13 = vpop.permute.xlu0 %663  ;;  %v7938_v38 = vld [vmem:[%s12033_s19 + $0x4] sm:$0xf] }
 0x3e6   :  { %v844_v49 = vsel %vm291_vm4, %v838_v53, %v840_v44  ;;  %v1047_v53 = vpack.c.bf16 %v869_v47, %v9752_v40  ;;  %v9911_v40 = vld [vmem:[%s12033_s19 + $0xc] sm:$0xf]  ;;  %v726_v46 = vrot.slane %v7938_v38, %v9571_v8 }
 0x3e7   :  { %v870_v51 = vmul.f32 %v856_v35, %v844_v49  ;;  %1084 = vmatpush1.bf16.msra.mxu0 %v1051_v42  ;;  %v810_v11 = vrot.slane %v9911_v40, %v9571_v8 }
 0x3e9   :  { %v926_v57 = vpop.permute.xlu1 %925  ;;  %v1048_v58 = vpack.c.bf16 %v870_v51, %v9760_v41  ;;  %v9906_v41 = vld [vmem:[%s12033_s19 + $0x8] sm:$0xf]  ;;  %v706_v28 = vpop.permute.xlu0 %705 }
 0x3ea   :  { %v927_v59 = vsel %vm379_vm3, %v9827_v45, %v926_v57  ;;  %v930_v0 = vsel %vm379_vm3, %v926_v57, %v920_v31  ;;  %v768_v6 = vrot.slane %v9906_v41, %v9571_v8  ;;  %v764_v29 = vrot.slane %v9906_v41, %v9573_v9 }
 0x3eb   :  { %v955_v5 = vmul.f32 %v944_v52, %v927_v59  ;;  %v956_v48 = vmul.f32 %v948_v54, %v930_v0  ;;  %1085 = vmatprep.subr.bf16.mxu0 %v1048_v58  ;;  %v806_v31 = vrot.slane %v9911_v40, %v9573_v9  ;;  %v772_v50 = vrot.slane %v9906_v41, %v9590_v20 }
 0x3ec   :  { %1086 = vmatpush1.bf16.msra.mxu0 %v1047_v53  ;;  %v776_v51 = vrot.slane %v9906_v41, %v9592_v21  ;;  %v814_v57 = vrot.slane %v9911_v40, %v9590_v20  ;;  %v818_v58 = vrot.slane %v9911_v40, %v9592_v21  ;;  %v722_v41 = vrot.slane %v7938_v38, %v9573_v9 }
 0x3ed   :  { %v1053_v45 = vpack.c.bf16 %v955_v5, %v913_v62  ;;  %v748_v3 = vpop.permute.xlu1 %747  ;;  %v1054_v61 = vpack.c.bf16 %v956_v48, %v914_v60  ;;  %v752_v39 = vpop.permute.xlu0 %751 }
 0x3ee   :  { %v757_v12 = vsel %vm199_vm5, %v748_v3, %v9866_v2  ;;  %v758_v24 = vsel %vm199_vm5, %v754_v63, %v748_v3  ;;  %v755_v53 = vsel %vm199_vm5, %v752_v39, %v754_v63  ;;  %v756_v59 = vsel %vm199_vm5, %v9866_v2, %v752_v39 }
 0x3ef   :  { %1124 = vmatprep.subr.bf16.mxu1 %v1054_v61  ;;  %v782_v16 = vmul.f32 %v768_v6, %v757_v12  ;;  %v781_v36 = vmul.f32 %v764_v29, %v758_v24  ;;  %v783_v40 = vmul.f32 %v772_v50, %v756_v59  ;;  %v1059_v24 = vld [vmem:[%s12072_s30] sm:$0xf]  ;;  %s9337_s30 = smov 120  }
 0x3f0   :  { %1125 = vmatpush1.bf16.msra.mxu1 %v1053_v45  ;;  %v784_v45 = vmul.f32 %v776_v51, %v755_v53 }
 0x3f1   :  { %v790_v14 = vpop.permute.xlu1 %789  ;;  %v670_v54 = vpop.permute.xlu0 %669 }
 0x3f2   :  { %v799_v15 = vsel %vm243_vm6, %v790_v14, %v9883_v1  ;;  %v674_v2 = vsel %vm112_vm7, %v670_v54, %v664_v13 }
 0x3f3   :  { %v824_v17 = vmul.f32 %v810_v11, %v799_v15 }
 0x3f5   :  { %v842_v22 = vpop.permute.xlu1 %841  ;;  %v1044_v23 = vpack.c.bf16 %v824_v17, %v782_v16  ;;  %v668_v61 = vpop.permute.xlu0 %667 }
 0x3f6   :  { %v843_v25 = vsel %vm291_vm4, %v840_v44, %v842_v22  ;;  %v846_v27 = vsel %vm291_vm4, %v842_v22, %v9849_v10 }
 0x3f7   :  { %v871_v30 = vmul.f32 %v860_v18, %v843_v25  ;;  %v872_v26 = vmul.f32 %v864_v19, %v846_v27  ;;  %1087 = vmatprep.subr.bf16.mxu0 %v1044_v23  ;;  %v730_v18 = vrot.slane %v7938_v38, %v9590_v20  ;;  %v734_v19 = vrot.slane %v7938_v38, %v9592_v21 }
 0x3f9   :  { %v1049_v32 = vpack.c.bf16 %v871_v30, %v9754_v33  ;;  %v796_v34 = vpop.permute.xlu1 %795  ;;  %v1050_v35 = vpack.c.bf16 %v872_v26, %v9770_v43  ;;  %v675_v33 = vld [vmem:[%s12033_s19] sm:$0xf] }
 0x3fa   :  { %v800_v10 = vsel %vm243_vm6, %v796_v34, %v790_v14  ;;  %v684_v43 = vrot.slane %v675_v33, %v9571_v8  ;;  %v680_v62 = vrot.slane %v675_v33, %v9573_v9  ;;  %v692_v14 = vrot.slane %v675_v33, %v9592_v21 }
 0x3fb   :  { %v823_v37 = vmul.f32 %v806_v31, %v800_v10  ;;  %1126 = vmatprep.subr.bf16.mxu1 %v1050_v35  ;;  %v688_v15 = vrot.slane %v675_v33, %v9590_v20 }
 0x3fc   :  { %1127 = vmatpush1.bf16.msra.mxu1 %v1049_v32  ;;  %v697_v16 = vmul.f32 %v680_v62, %v674_v2 }
 0x3fd   :  { %v1043_v42 = vpack.c.bf16 %v823_v37, %v781_v36  ;;  %v666_v44 = vpop.permute.xlu1 %665 }
 0x3fe   :  { %v673_v47 = vsel %vm112_vm7, %v664_v13, %v666_v44  ;;  %v671_v13 = vsel %vm112_vm7, %v668_v61, %v670_v54  ;;  %v672_v22 = vsel %vm112_vm7, %v666_v44, %v668_v61 }
 0x3ff   :  { %1088 = vmatpush1.bf16.msra.mxu0 %v1043_v42  ;;  %v698_v55 = vmul.f32 %v684_v43, %v673_v47  ;;  %v700_v29 = vmul.f32 %v692_v14, %v671_v13  ;;  %v699_v30 = vmul.f32 %v688_v15, %v672_v22  ;;  %v8952_v15 = vld [vmem:[%s12036_s22 + $0x78] sm:$0xff]  }
 0x401   :  { %v708_v49 = vpop.permute.xlu1 %707 }
 0x402   :  { %v715_v52 = vsel %vm155_vm8, %v706_v28, %v708_v49 }
 0x403   :  { %v740_v56 = vmul.f32 %v726_v46, %v715_v52 }
 0x405   :  { %v794_v0 = vpop.permute.xlu1 %793  ;;  %v1040_v60 = vpack.c.bf16 %v740_v56, %v698_v55 }
 0x406   :  { %v797_v5 = vsel %vm243_vm6, %v794_v0, %v796_v34  ;;  %v798_v48 = vsel %vm243_vm6, %v9883_v1, %v794_v0 }
 0x407   :  { %v825_v63 = vmul.f32 %v814_v57, %v798_v48  ;;  %v826_v3 = vmul.f32 %v818_v58, %v797_v5  ;;  %1089 = vmatprep.subr.bf16.mxu0 %v1040_v60  ;;  %v1158_v60 = vld [vmem:[%s12032_s18 + $0x8] sm:$0xff] }
 0x409   :  { %v1045_v6 = vpack.c.bf16 %v825_v63, %v783_v40  ;;  %v712_v11 = vpop.permute.xlu1 %711  ;;  %v1046_v12 = vpack.c.bf16 %v826_v3, %v784_v45 }
 0x40a   :  { %v716_v1 = vsel %vm155_vm8, %v712_v11, %v706_v28 }
 0x40b   :  { %v739_v17 = vmul.f32 %v722_v41, %v716_v1  ;;  %1128 = vmatprep.subr.bf16.mxu1 %v1046_v12  ;;  %v1157_v41 = vld [vmem:[%s12031_s17 + $0x8] sm:$0xff]  ;;  %v8953_v1 = vld [vmem:[%s12036_s22 + $0xf8] sm:$0xff]  }
 0x40c   :  { %1129 = vmatpush1.bf16.msra.mxu1 %v1045_v6 }
 0x40d   :  { %v1039_v23 = vpack.c.bf16 %v739_v17, %v697_v16  ;;  %v710_v25 = vpop.permute.xlu1 %709  ;;  %v8954_v16 = vld [vmem:[%s12036_s22 + $0x38] sm:$0xff]  }
 0x40e   :  { %v713_v27 = vsel %vm155_vm8, %v710_v25, %v712_v11  ;;  %v714_v28 = vsel %vm155_vm8, %v708_v49, %v710_v25  ;;  %v8955_v17 = vld [vmem:[%s12036_s22 + $0xb8] sm:$0xff]  }
 0x40f   :  { %v741_v26 = vmul.f32 %v730_v18, %v714_v28  ;;  %v742_v31 = vmul.f32 %v734_v19, %v713_v27  ;;  %1090 = vmatpush1.bf16.msra.mxu0 %v1039_v23  ;;  %v8956_v18 = vld [vmem:[%s12036_s22 + $0x70] sm:$0xff]  }
 0x410   :  { %v8957_v19 = vld [vmem:[%s12036_s22 + $0xf0] sm:$0xff]   ;;  %8423 = vmatprep.subr.bf16.mxu0 %v8952_v15 }
 0x411   :  { %v1041_v32 = vpack.c.bf16 %v741_v26, %v699_v30  ;;  %v1042_v34 = vpack.c.bf16 %v742_v31, %v700_v29  ;;  %v8958_v27 = vld [vmem:[%s12036_s22 + $0x30] sm:$0xff]   ;;  %v8960_v29 = vld [vmem:[%s12036_s22 + $0x68] sm:$0xff]  }
 0x412   :  { %7946 = vmatmul.mubr.msk.bf16.vlgmr.msra.gmra.mxu0 %vm516_vm9, %v1059_v24  ;;  %v8959_v28 = vld [vmem:[%s12036_s22 + $0xb0] sm:$0xff]   ;;  %v8961_v30 = vld [vmem:[%s12036_s22 + $0xe8] sm:$0xff]  }
 0x413   :  { %1130 = vmatprep.subr.bf16.mxu1 %v1042_v34  ;;  %8424 = vmatpush3.bf16.msra.mxu0 %v8954_v16  ;;  %v8964_v34 = vld [vmem:[%s12036_s22 + $0x60] sm:$0xff]  }
 0x414   :  { %1131 = vmatpush1.bf16.msra.mxu1 %v1041_v32  ;;  %8425 = vmatprep.subr.bf16.mxu0 %v8956_v18  ;;  %v8963_v32 = vld [vmem:[%s12036_s22 + $0xa8] sm:$0xff]  }
 0x415   :  { %8445 = vmatprep.subr.bf16.mxu1 %v8953_v1 }
 0x417   :  { %7948 = vmatmul.mubr.msk.bf16.vlgmr.msra.gmra.mxu1 %vm516_vm9, %v1059_v24  ;;  %8426 = vmatpush3.bf16.msra.mxu0 %v8958_v27  ;;  %v8962_v24 = vld [vmem:[%s12036_s22 + $0x28] sm:$0xff]  }
 0x418   :  { %8446 = vmatpush3.bf16.msra.mxu1 %v8955_v17  ;;  %8427 = vmatprep.subr.bf16.mxu0 %v8960_v29 }
 0x419   :  { %8447 = vmatprep.subr.bf16.mxu1 %v8957_v19 }
 0x41b   :  { %8428 = vmatpush3.bf16.msra.mxu0 %v8962_v24 }
 0x41c   :  { %8448 = vmatpush3.bf16.msra.mxu1 %v8959_v28  ;;  %8429 = vmatprep.subr.bf16.mxu0 %v8964_v34 }
 0x41d   :  { %8449 = vmatprep.subr.bf16.mxu1 %v8961_v30 }
 0x420   :  { %8450 = vmatpush3.bf16.msra.mxu1 %v8963_v32 }
 0x4d2   :  { %v1109_v35 = vpop.f32.mrf.mxu0 }
 0x4d4   :  { %v1111_v10 = vpop.f32.mrf.mxu0 }
 0x4d5   :  { %v1159_v36 = vadd.f32 %v1111_v10, %v1109_v35 }
 0x4d6   :  { %v1113_v37 = vpop.f32.mrf.mxu0 }
 0x4d7   :  { %v1150_v38 = vpop.f32.mrf.mxu1  ;;  %v8968_v37 = vld [vmem:[%s12036_s22 + $0x58] sm:$0xff]  }
 0x4d8   :  { %v1160_v39 = vadd.f32 %v1159_v36, %v1150_v38  ;;  %v1114_v42 = vpop.f32.mrf.mxu0  ;;  %v8967_v36 = vld [vmem:[%s12036_s22 + $0xa0] sm:$0xff]  }
 0x4d9   :  { %v1152_v44 = vpop.f32.mrf.mxu1  ;;  %v8971_v42 = vld [vmem:[%s12036_s22 + $0x98] sm:$0xff]  }
 0x4da   :  { %v1161_v33 = vadd.f32 %v1160_v39, %v1152_v44  ;;  %v8970_v39 = vld [vmem:[%s12036_s22 + $0x18] sm:$0xff]  }
 0x4db   :  { %v1154_v43 = vpop.f32.mrf.mxu1 }
 0x4dc   :  { %1162 = vadd.xlane.f32.xlu0 %v1161_v33  ;;  %v8973_v33 = vld [vmem:[%s12036_s22 + $0xd0] sm:$0xff]  }
 0x4dd   :  { %v1155_v46 = vpop.f32.mrf.mxu1  ;;  %v8974_v43 = vld [vmem:[%s12036_s22 + $0x10] sm:$0xff]  }
 0x4de   :  { %v8975_v46 = vld [vmem:[%s12036_s22 + $0x90] sm:$0xff]  }
 0x565   :  { %v1163_v47 = vpop.xlane.xlu0 %1162 }
 0x566   :  { %v1164_v49 = vmul.f32 0.001953125, %v1163_v47  ;;  %v8400_v47 = vld [vmem:[%s12033_s19 + $0x14] sm:$0xf] }
 0x568   :  { %v1165_v50 = vsub.f32 %v1109_v35, %v1164_v49  ;;  %v1166_v51 = vsub.f32 %v1111_v10, %v1164_v49  ;;  %v1167_v52 = vsub.f32 %v1150_v38, %v1164_v49  ;;  %v1168_v54 = vsub.f32 %v1152_v44, %v1164_v49  ;;  %v8965_v35 = vld [vmem:[%s12036_s22 + $0xe0] sm:$0xff]   ;;  %v8969_v38 = vld [vmem:[%s12036_s22 + $0xd8] sm:$0xff]   ;;  %v8972_v44 = vld [vmem:[%s12036_s22 + $0x50] sm:$0xff]  }
 0x569   :  { %v8966_v10 = vld [vmem:[%s12036_s22 + $0x20] sm:$0xff]   ;;  %8451 = vmatprep.subr.bf16.mxu1 %v8965_v35  ;;  %v8976_v49 = vld [vmem:[%s12036_s22 + $0x48] sm:$0xff]  }
 0x56a   :  { %v1169_v55 = vmul.f32 %v1165_v50, %v1165_v50  ;;  %v1170_v56 = vmul.f32 %v1166_v51, %v1166_v51  ;;  %v1171_v57 = vmul.f32 %v1167_v52, %v1167_v52  ;;  %v1172_v53 = vmul.f32 %v1168_v54, %v1168_v54  ;;  %8430 = vmatpush3.bf16.msra.mxu0 %v8966_v10 }
 0x56b   :  { %8452 = vmatpush3.bf16.msra.mxu1 %v8967_v36  ;;  %8431 = vmatprep.subr.bf16.mxu0 %v8968_v37  ;;  %v9334_v36 = vmov 0.0  }
 0x56c   :  { %v1173_v58 = vadd.f32 %v1170_v56, %v1169_v55  ;;  %8453 = vmatprep.subr.bf16.mxu1 %v8969_v38  ;;  %v8980_v55 = vld [vmem:[%s12036_s22 + $0x40] sm:$0xff]  }
 0x56d   :  { %v8981_v56 = vld [vmem:[%s12036_s22 + $0xc0] sm:$0xff]  }
 0x56e   :  { %v1174_v59 = vadd.f32 %v1173_v58, %v1171_v57  ;;  %8432 = vmatpush3.bf16.msra.mxu0 %v8970_v39  ;;  %v8982_v57 = vld [vmem:[%s12036_s22] sm:$0xff]  }
 0x56f   :  { %8454 = vmatpush3.bf16.msra.mxu1 %v8971_v42  ;;  %8433 = vmatprep.subr.bf16.mxu0 %v8972_v44 }
 0x570   :  { %v1175_v0 = vadd.f32 %v1174_v59, %v1172_v53  ;;  %8455 = vmatprep.subr.bf16.mxu1 %v8973_v33  ;;  %v8983_v59 = vld [vmem:[%s12036_s22 + $0x80] sm:$0xff]  }
 0x572   :  { %1176 = vadd.xlane.f32.xlu1 %v1175_v0  ;;  %8434 = vmatpush3.bf16.msra.mxu0 %v8974_v43 }
 0x573   :  { %8456 = vmatpush3.bf16.msra.mxu1 %v8975_v46  ;;  %8435 = vmatprep.subr.bf16.mxu0 %v8976_v49 }
 0x583   :  { %1193 = vperm.xlu1 %8936, %v1158_v60  }
 0x5fb   :  { %v1177_v62 = vpop.xlane.xlu1 %1176 }
 0x5fc   :  { %v1178_v5 = vmul.f32 0.001953125, %v1177_v62  ;;  %v6872_v62 = vrot.slane %v8400_v47, %v9590_v20 }
 0x5fe   :  { %v1179_v48 = vadd.f32 1e-05, %v1178_v5 }
 0x5ff   :  { %v1194_v11 = vpop.permute.xlu1 %1193 }
 0x600   :  { %9261 = vrsqrt.f32 %v1179_v48 }
 0x60d   :  { %v9262_v40 = vpop.eup %9261 }
 0x60e   :  { %v1181_v45 = vmul.f32 %v9262_v40, %v1157_v41 }
 0x610   :  { %1184 = vperm.xlu0 %8935, %v1181_v45  }
 0x68b   :  { %v1185_v63 = vpop.permute.xlu0 %1184 }
 0x68c   :  { %v1187_v3 = vmul.f32 %v1185_v63, %v1165_v50  ;;  %v1188_v2 = vmul.f32 %v1185_v63, %v1166_v51  ;;  %v1189_v61 = vmul.f32 %v1185_v63, %v1167_v52  ;;  %v1190_v6 = vmul.f32 %v1185_v63, %v1168_v54  ;;  %v8977_v50 = vld [vmem:[%s12036_s22 + $0xc8] sm:$0xff]  }
 0x68d   :  { %v8978_v51 = vld [vmem:[%s12036_s22 + $0x8] sm:$0xff]   ;;  %v6864_v54 = vrot.slane %v8400_v47, %v9573_v9  ;;  %8457 = vmatprep.subr.bf16.mxu1 %v8977_v50 }
 0x68e   :  { %v1196_v12 = vadd.f32 %v1194_v11, %v1187_v3  ;;  %v1197_v14 = vadd.f32 %v1194_v11, %v1188_v2  ;;  %v1198_v13 = vadd.f32 %v1194_v11, %v1189_v61  ;;  %v1199_v22 = vadd.f32 %v1194_v11, %v1190_v6  ;;  %v8979_v52 = vld [vmem:[%s12036_s22 + $0x88] sm:$0xff]   ;;  %8436 = vmatpush3.bf16.msra.mxu0 %v8978_v51  ;;  %s9335_s22 = smov 121  }
 0x68f   :  { %8458 = vmatpush3.bf16.msra.mxu1 %v8979_v52  ;;  %8437 = vmatprep.subr.bf16.mxu0 %v8980_v55  ;;  %v10165_v51 = vld [vmem:[%s12034_s20 + $0x8] ss:$0 sm:$0xff] }
 0x690   :  { %v10019_v23 = vmax.f32 %v1196_v12, 0.0  ;;  %v10021_v25 = vmax.f32 %v1197_v14, 0.0  ;;  %v10039_v26 = vmax.f32 %v1198_v13, 0.0  ;;  %v10041_v31 = vmax.f32 %v1199_v22, 0.0  ;;  %8459 = vmatprep.subr.bf16.mxu1 %v8981_v56  ;;  %v10171_v56 = vld [vmem:[%s12034_s20 + $0x6] ss:$0 sm:$0xff] }
 0x692   :  { %1206 = vrot.lane.b32.xlu1 %v10021_v25, %s9329_s28  ;;  %1204 = vrot.lane.b32.xlu0 %v10019_v23, %s9329_s28 }
 0x693   :  { %8438 = vmatpush3.bf16.msra.mxu0 %v8982_v57  ;;  %8460 = vmatpush3.bf16.msra.mxu1 %v8983_v59  ;;  %v10176_v57 = vld [vmem:[%s12034_s20 + $0x7] ss:$0 sm:$0xff] }
 0x694   :  { %1957 = vmatprep.subr.bf16.mxu1 %v9333_v4  ;;  %8634 = vmatprep.subr.bf16.mxu0 %v9334_v36 }
 0x696   :  { %1210 = vrot.lane.b32.xlu1 %v10041_v31, %s9329_s28  ;;  %1208 = vrot.lane.b32.xlu0 %v10039_v26, %s9329_s28 }
 0x704   :  { %v1207_v58 = vpop.permute.xlu1 %1206  ;;  %v1205_v53 = vpop.permute.xlu0 %1204 }
 0x705   :  { %v1214_v0 = vsel %vm291_vm4, %v1205_v53, %v1207_v58 }
 0x706   :  { %v10119_v60 = vmul.f32 %v6864_v54, %v1214_v0  ;;  %v1216_v63 = vmax.f32 %v10019_v23, %v1214_v0 }
 0x708   :  { %v1211_v5 = vpop.permute.xlu1 %1210  ;;  %v1209_v48 = vpop.permute.xlu0 %1208 }
 0x709   :  { %v10125_v41 = vsel %vm291_vm4, %v1211_v5, %v1205_v53  ;;  %v1212_v40 = vsel %vm291_vm4, %v1209_v48, %v1211_v5  ;;  %v10131_v45 = vsel %vm291_vm4, %v1207_v58, %v1209_v48 }
 0x70a   :  { %v1219_v3 = vmax.f32 %v10041_v31, %v10125_v41  ;;  %v1217_v2 = vmax.f32 %v10021_v25, %v10131_v45  ;;  %v1218_v61 = vmax.f32 %v10039_v26, %v1212_v40  ;;  %v10139_v6 = vmul.f32 %v6872_v62, %v1212_v40  ;;  %v10182_v62 = vld [vmem:[%s12034_s20 + $0x5] ss:$0 sm:$0xff] }
 0x70c   :  { %v8937_v11 = vpack.i.bf16 %v1217_v2, %v1216_v63  ;;  %v8942_v12 = vpack.i.bf16 %v1219_v3, %v1218_v61 }
 0x70e   :  { %8938 = vrot.lane.b32.xlu0 %v8937_v11, %s12057_s7  ;;  %8943 = vrot.lane.b32.xlu1 %v8942_v12, %s12057_s7  ;;  %v10196_v11 = vld [vmem:[%s12034_s20 + $0x2] ss:$0 sm:$0xff]  ;;  %s12082_s7 = smov 15  }
 0x780   :  { %v8939_v14 = vpop.permute.xlu0 %8938  ;;  %v8944_v15 = vpop.permute.xlu1 %8943 }
 0x781   :  { %v8941_v1 = vunpack.i.h.bf16 %v8939_v14  ;;  %v8940_v16 = vunpack.i.l.bf16 %v8939_v14  ;;  %v8946_v17 = vunpack.i.h.bf16 %v8944_v15  ;;  %v8945_v18 = vunpack.i.l.bf16 %v8944_v15 }
 0x783   :  { %v1230_v19 = vsel %vm379_vm3, %v8940_v16, %v8941_v1  ;;  %v1228_v13 = vsel %vm379_vm3, %v8945_v18, %v8946_v17  ;;  %v1229_v22 = vsel %vm379_vm3, %v8941_v1, %v8945_v18  ;;  %v1231_v27 = vsel %vm379_vm3, %v8946_v17, %v8940_v16  ;;  %v10204_v1 = vld [vmem:[%s12034_s20 + $0x1] ss:$0 sm:$0xff]  ;;  %v10209_v17 = vld [vmem:[%s12034_s20] ss:$0 sm:$0xff] }
 0x784   :  { %v1233_v28 = vmax.f32 %v1217_v2, %v1229_v22  ;;  %v1235_v29 = vmax.f32 %v1219_v3, %v1231_v27  ;;  %v1232_v30 = vmax.f32 %v1216_v63, %v1230_v19  ;;  %v1234_v24 = vmax.f32 %v1218_v61, %v1228_v13  ;;  %v10191_v61 = vld [vmem:[%s12034_s20 + $0x3] ss:$0 sm:$0xff] }
 0x786   :  { %v1237_v32 = vpack.c.bf16 %v1233_v28, %v1233_v28  ;;  %v1239_v34 = vpack.c.bf16 %v1235_v29, %v1235_v29  ;;  %v1236_v35 = vpack.c.bf16 %v1232_v30, %v1232_v30  ;;  %v1238_v10 = vpack.c.bf16 %v1234_v24, %v1234_v24  ;;  %v8984_v28 = vld [vmem:[%s12073_s0] sm:$0xff]   ;;  %s12078_s0 = sld [smem:[#allocation15_spill]] }
 0x788   :  { %1528 = vmatprep.mubr.bf16.mxu0 %v1237_v32  ;;  %1568 = vmatprep.mubr.bf16.mxu1 %v1239_v34 }
 0x789   :  { %1529 = vmatmul.mubr.bf16.vlgmr.msra.gmra.mxu0 %v1236_v35  ;;  %1569 = vmatmul.mubr.bf16.vlgmr.msra.gmra.mxu1 %v1238_v10 }
 0x78a   :  { %8644 = vmatprep.mubr.msk.bf16.mxu0 %vm9339_vm10, %v9334_v36 }
 0x849   :  { %v8439_v37 = vpop.f32.mrf.mxu0  ;;  %v8461_v38 = vpop.f32.mrf.mxu1 }
 0x84b   :  { %v8440_v39 = vpop.f32.mrf.mxu0  ;;  %v8462_v42 = vpop.f32.mrf.mxu1 }
 0x84c   :  { %v8441_v44 = vadd.f32 %v8440_v39, %v8439_v37  ;;  %v8463_v33 = vadd.f32 %v8462_v42, %v8461_v38 }
 0x84d   :  { %v8442_v43 = vpop.f32.mrf.mxu0  ;;  %v8464_v46 = vpop.f32.mrf.mxu1 }
 0x84e   :  { %v1571_v47 = vadd.f32 %v8463_v33, %v8441_v44 }
 0x84f   :  { %v8443_v49 = vpop.f32.mrf.mxu0  ;;  %v8465_v50 = vpop.f32.mrf.mxu1 }
 0x850   :  { %1636 = vrot.lane.b32.xlu1 %v1571_v47, %s9335_s22  ;;  %1660 = vrot.lane.b32.xlu0 %v1571_v47, %s9336_s9 }
 0x854   :  { %1624 = vrot.lane.b32.xlu1 %v1571_v47, %s9329_s28  ;;  %1648 = vrot.lane.b32.xlu0 %v1571_v47, %s9337_s30 }
 0x858   :  { %1611 = vrot.lane.b32.xlu1 %v1571_v47, %s9331_s29  ;;  %1599 = vrot.lane.b32.xlu0 %v1571_v47, %s9338_s2 }
 0x85c   :  { %1587 = vrot.lane.b32.xlu1 %v1571_v47, %s9340_s5  ;;  %1576 = vrot.lane.b32.xlu0 %v1571_v47, %s9341_s24 }
 0x8c2   :  { %v1637_v52 = vpop.permute.xlu1 %1636  ;;  %v1661_v54 = vpop.permute.xlu0 %1660 }
 0x8c3   :  { %v1670_v55 = vmul.f32 %v10165_v51, %v1661_v54  ;;  %v1646_v0 = vmul.f32 %v10171_v56, %v1637_v52  ;;  %v1740_v52 = vld [vmem:[%s12031_s17 + $0x10] sm:$0xff] }
 0x8c5   :  { %v1685_v58 = vpack.c.bf16 %v1670_v55, %v1670_v55 }
 0x8c6   :  { %v1625_v53 = vpop.permute.xlu1 %1624  ;;  %v1649_v59 = vpop.permute.xlu0 %1648 }
 0x8c7   :  { %v1658_v5 = vmul.f32 %v10176_v57, %v1649_v59  ;;  %v1697_v48 = vsel %vm520_vm1, %v1685_v58, 0  ;;  %v1634_v63 = vmul.f32 %v10182_v62, %v1625_v53  ;;  %v1741_v58 = vld [vmem:[%s12031_s17 + $0x18] sm:$0xff]  ;;  %v1742_v59 = vld [vmem:[%s12032_s18 + $0x10] sm:$0xff] }
 0x8c8   :  { %8635 = vmatpush3.bf16.msra.mxu0 %v1697_v48 }
 0x8c9   :  { %v1684_v40 = vpack.c.bf16 %v1658_v5, %v1646_v0  ;;  %8636 = vmatprep.subr.bf16.mxu0 %v9334_v36  ;;  %v1683_v12 = vpack.c.bf16 %v1634_v63, %v1571_v47  ;;  %v1743_v5 = vld [vmem:[%s12032_s18 + $0x18] sm:$0xff] }
 0x8ca   :  { %v1612_v3 = vpop.permute.xlu1 %1611  ;;  %v1600_v2 = vpop.permute.xlu0 %1599 }
 0x8cb   :  { %v1621_v14 = vmul.f32 %v10191_v61, %v1612_v3  ;;  %v1609_v15 = vmul.f32 %v10196_v11, %v1600_v2 }
 0x8cc   :  { %8637 = vmatpush3.bf16.msra.mxu0 %v1684_v40 }
 0x8cd   :  { %8638 = vmatprep.subr.bf16.mxu0 %v9334_v36  ;;  %v1682_v19 = vpack.c.bf16 %v1621_v14, %v1609_v15 }
 0x8ce   :  { %v1588_v16 = vpop.permute.xlu1 %1587  ;;  %v1577_v18 = vpop.permute.xlu0 %1576 }
 0x8cf   :  { %v1597_v13 = vmul.f32 %v10204_v1, %v1588_v16  ;;  %v1585_v22 = vmul.f32 %v10209_v17, %v1577_v18 }
 0x8d0   :  { %8639 = vmatpush3.bf16.msra.mxu0 %v1683_v12 }
 0x8d1   :  { %8640 = vmatprep.subr.bf16.mxu0 %v9334_v36  ;;  %v1681_v27 = vpack.c.bf16 %v1597_v13, %v1585_v22  ;;  %v8985_v13 = vld [vmem:[%s12074_s4 + $0x4] ss:$8 sps:$4 sm:$0xff]  }
 0x8d2   :  { %8015 = vmatprep.mubr.msk.bf16.mxu1 %vm1953_vm11, %v8985_v13 }
 0x8d4   :  { %8641 = vmatpush3.bf16.msra.mxu0 %v1682_v19 }
 0x8d5   :  { %8642 = vmatprep.subr.bf16.mxu0 %v9334_v36 }
 0x8d8   :  { %8643 = vmatpush3.bf16.msra.mxu0 %v1681_v27 }
 0x8d9   :  { %8648 = vmatprep.subr.bf16.mxu0 %v9334_v36 }
 0x8db   :  { %8645 = vmatmul.mubr.msk.bf16.vlgmr.msra.gmra.mxu0 %vm516_vm9, %v8984_v28 }
 0x8dc   :  { %8664 = vmatprep.mubr.msk.bf16.mxu0 %vm9339_vm10, %v9334_v36 }
 0x99b   :  { %v1733_v29 = vpop.f32.mrf.mxu0 }
 0x99c   :  { %1744 = vadd.xlane.f32.xlu0 %v1733_v29 }
 0x99d   :  { %v8646_v30 = vpop.f32.mrf.mxu0 }
 0x99f   :  { %v1736_v24 = vpop.f32.mrf.mxu0 }
 0x9a0   :  { %1746 = vadd.xlane.f32.xlu1 %v1736_v24 }
 0x9a1   :  { %v8647_v32 = vpop.f32.mrf.mxu0 }
 0xa25   :  { %v1745_v34 = vpop.xlane.xlu0 %1744 }
 0xa26   :  { %v1749_v35 = vmul.f32 0.0078125, %v1745_v34 }
 0xa28   :  { %v1751_v10 = vsub.f32 %v1733_v29, %v1749_v35 }
 0xa29   :  { %v1747_v37 = vpop.xlane.xlu1 %1746 }
 0xa2a   :  { %v1750_v38 = vmul.f32 0.0078125, %v1747_v37  ;;  %v1753_v39 = vmul.f32 %v1751_v10, %v1751_v10 }
 0xa2c   :  { %1755 = vadd.xlane.f32.xlu0 %v1753_v39  ;;  %v1752_v42 = vsub.f32 %v1736_v24, %v1750_v38 }
 0xa2e   :  { %v1754_v44 = vmul.f32 %v1752_v42, %v1752_v42 }
 0xa30   :  { %1757 = vadd.xlane.f32.xlu0 %v1754_v44 }
 0xab5   :  { %v1756_v33 = vpop.xlane.xlu0 %1755 }
 0xab6   :  { %v1759_v43 = vmul.f32 0.0078125, %v1756_v33 }
 0xab8   :  { %v1761_v46 = vadd.f32 1e-05, %v1759_v43 }
 0xab9   :  { %v1758_v47 = vpop.xlane.xlu0 %1757 }
 0xaba   :  { %9263 = vrsqrt.f32 %v1761_v46  ;;  %v1760_v49 = vmul.f32 0.0078125, %v1758_v47 }
 0xabc   :  { %v1762_v50 = vadd.f32 1e-05, %v1760_v49 }
 0xabe   :  { %9265 = vrsqrt.f32 %v1762_v50 }
 0xac7   :  { %v9264_v54 = vpop.eup %9263 }
 0xac8   :  { %v1765_v55 = vmul.f32 %v9264_v54, %v1740_v52 }
 0xaca   :  { %1769 = vperm.xlu1 %8936, %v1765_v55  }
 0xacb   :  { %v9266_v53 = vpop.eup %9265 }
 0xacc   :  { %v1766_v0 = vmul.f32 %v9266_v53, %v1741_v58 }
 0xace   :  { %1781 = vperm.xlu1 %8936, %v1742_v59   ;;  %1774 = vperm.xlu0 %8935, %v1766_v0  }
 0xad2   :  { %1786 = vperm.xlu1 %8936, %v1743_v5  }
 0xb45   :  { %v1770_v48 = vpop.permute.xlu1 %1769 }
 0xb46   :  { %v1777_v40 = vmul.f32 %v1770_v48, %v1751_v10 }
 0xb49   :  { %v1775_v63 = vpop.permute.xlu0 %1774  ;;  %v1782_v3 = vpop.permute.xlu1 %1781 }
 0xb4a   :  { %v1789_v2 = vadd.f32 %v1782_v3, %v1777_v40  ;;  %v1778_v12 = vmul.f32 %v1775_v63, %v1752_v42 }
 0xb4c   :  { %v1791_v14 = vmax.f32 %v1789_v2, 0.0 }
 0xb4d   :  { %v1787_v15 = vpop.permute.xlu1 %1786 }
 0xb4e   :  { %v1790_v16 = vadd.f32 %v1787_v15, %v1778_v12  ;;  %1885 = vrot.lane.b32.xlu0 %v1791_v14, %s9337_s30  ;;  %v8987_v12 = vld [vmem:[%s12074_s4] ss:$8 sps:$4 sm:$0xff]  }
 0xb50   :  { %v1792_v18 = vmax.f32 %v1790_v16, 0.0 }
 0xb52   :  { %1870 = vrot.lane.b32.xlu0 %v1791_v14, %s9335_s22  ;;  %1887 = vrot.lane.b32.xlu1 %v1792_v18, %s9337_s30  ;;  %v1937_v19 = vpack.c.bf16 %v1792_v18, %v1791_v14 }
 0xb56   :  { %1855 = vrot.lane.b32.xlu0 %v1791_v14, %s9329_s28  ;;  %1872 = vrot.lane.b32.xlu1 %v1792_v18, %s9335_s22 }
 0xb5a   :  { %1838 = vrot.lane.b32.xlu0 %v1791_v14, %s9331_s29  ;;  %1857 = vrot.lane.b32.xlu1 %v1792_v18, %s9329_s28 }
 0xb5e   :  { %1823 = vrot.lane.b32.xlu0 %v1791_v14, %s9338_s2  ;;  %1840 = vrot.lane.b32.xlu1 %v1792_v18, %s9331_s29 }
 0xb62   :  { %1808 = vrot.lane.b32.xlu0 %v1791_v14, %s9340_s5  ;;  %1825 = vrot.lane.b32.xlu1 %v1792_v18, %s9338_s2 }
 0xb66   :  { %1793 = vrot.lane.b32.xlu0 %v1791_v14, %s9341_s24  ;;  %1810 = vrot.lane.b32.xlu1 %v1792_v18, %s9340_s5 }
 0xb6a   :  { %1900 = vrot.lane.b32.xlu0 %v1791_v14, %s9336_s9  ;;  %1795 = vrot.lane.b32.xlu1 %v1792_v18, %s9341_s24 }
 0xb6e   :  { %1902 = vrot.lane.b32.xlu1 %v1792_v18, %s9336_s9 }
 0xbc0   :  { %v1886_v22 = vpop.permute.xlu0 %1885 }
 0xbc1   :  { %v1896_v29 = vmul.f32 %v10176_v57, %v1886_v22 }
 0xbc4   :  { %v1871_v27 = vpop.permute.xlu0 %1870  ;;  %v1888_v28 = vpop.permute.xlu1 %1887 }
 0xbc5   :  { %v1897_v30 = vmul.f32 %v10176_v57, %v1888_v28  ;;  %v1881_v35 = vmul.f32 %v10171_v56, %v1871_v27 }
 0xbc7   :  { %v1940_v24 = vpack.c.bf16 %v1897_v30, %v1896_v29 }
 0xbc8   :  { %v1856_v32 = vpop.permute.xlu0 %1855  ;;  %v1873_v34 = vpop.permute.xlu1 %1872 }
 0xbc9   :  { %v1882_v10 = vmul.f32 %v10171_v56, %v1873_v34  ;;  %1958 = vmatpush1.bf16.msra.mxu1 %v1940_v24  ;;  %v1866_v42 = vmul.f32 %v10182_v62, %v1856_v32 }
 0xbca   :  { %1959 = vmatprep.subr.bf16.mxu1 %v9333_v4 }
 0xbcb   :  { %v1939_v37 = vpack.c.bf16 %v1882_v10, %v1881_v35 }
 0xbcc   :  { %v1839_v38 = vpop.permute.xlu0 %1838  ;;  %v1858_v39 = vpop.permute.xlu1 %1857 }
 0xbcd   :  { %v1867_v44 = vmul.f32 %v10182_v62, %v1858_v39  ;;  %1960 = vmatpush1.bf16.msra.mxu1 %v1939_v37  ;;  %v1849_v47 = vmul.f32 %v10191_v61, %v1839_v38  ;;  %v1998_v37 = vld [vmem:[%s12031_s17 + $0x20] sm:$0xff] }
 0xbce   :  { %1961 = vmatprep.subr.bf16.mxu1 %v9333_v4 }
 0xbcf   :  { %v1938_v57 = vpack.c.bf16 %v1867_v44, %v1866_v42  ;;  %v1999_v42 = vld [vmem:[%s12031_s17 + $0x28] sm:$0xff] }
 0xbd0   :  { %v1824_v33 = vpop.permute.xlu0 %1823  ;;  %v1841_v43 = vpop.permute.xlu1 %1840 }
 0xbd1   :  { %1962 = vmatpush1.bf16.msra.mxu1 %v1938_v57  ;;  %v1850_v56 = vmul.f32 %v10191_v61, %v1841_v43  ;;  %v1834_v54 = vmul.f32 %v10196_v11, %v1824_v33  ;;  %v2000_v57 = vld [vmem:[%s12032_s18 + $0x20] sm:$0xff]  ;;  %v2001_v43 = vld [vmem:[%s12032_s18 + $0x28] sm:$0xff] }
 0xbd2   :  { %1963 = vmatprep.subr.bf16.mxu1 %v9333_v4 }
 0xbd3   :  { %v1936_v50 = vpack.c.bf16 %v1850_v56, %v1849_v47 }
 0xbd4   :  { %v1826_v46 = vpop.permute.xlu1 %1825  ;;  %v1809_v49 = vpop.permute.xlu0 %1808 }
 0xbd5   :  { %1964 = vmatpush1.bf16.msra.mxu1 %v1937_v19  ;;  %v1835_v62 = vmul.f32 %v10196_v11, %v1826_v46  ;;  %v1819_v61 = vmul.f32 %v10204_v1, %v1809_v49 }
 0xbd6   :  { %1965 = vmatprep.subr.bf16.mxu1 %v9333_v4 }
 0xbd7   :  { %v1935_v55 = vpack.c.bf16 %v1835_v62, %v1834_v54 }
 0xbd8   :  { %v1811_v52 = vpop.permute.xlu1 %1810  ;;  %v1794_v53 = vpop.permute.xlu0 %1793 }
 0xbd9   :  { %1966 = vmatpush1.bf16.msra.mxu1 %v1936_v50  ;;  %v1820_v58 = vmul.f32 %v10204_v1, %v1811_v52  ;;  %v1804_v40 = vmul.f32 %v10209_v17, %v1794_v53  ;;  %v8988_v50 = vld [vmem:[%s12037_s23 + $0x38] sm:$0xff]   ;;  %v8989_v52 = vld [vmem:[%s12037_s23 + $0x30] sm:$0xff]  }
 0xbda   :  { %1967 = vmatprep.subr.bf16.mxu1 %v9333_v4  ;;  %8649 = vmatpush3.bf16.msra.mxu0 %v8988_v50 }
 0xbdb   :  { %v1934_v0 = vpack.c.bf16 %v1820_v58, %v1819_v61  ;;  %8650 = vmatprep.subr.bf16.mxu0 %v9334_v36 }
 0xbdc   :  { %v1796_v59 = vpop.permute.xlu1 %1795  ;;  %v1901_v11 = vpop.permute.xlu0 %1900 }
 0xbdd   :  { %1968 = vmatpush1.bf16.msra.mxu1 %v1935_v55  ;;  %v1805_v5 = vmul.f32 %v10209_v17, %v1796_v59  ;;  %v1911_v2 = vmul.f32 %v10165_v51, %v1901_v11  ;;  %v8990_v59 = vld [vmem:[%s12037_s23 + $0x28] sm:$0xff]   ;;  %v8995_v11 = vld [vmem:[%s12037_s23] sm:$0xff]  }
 0xbde   :  { %1969 = vmatprep.subr.bf16.mxu1 %v9333_v4  ;;  %8651 = vmatpush3.bf16.msra.mxu0 %v8989_v52 }
 0xbdf   :  { %v1933_v63 = vpack.c.bf16 %v1805_v5, %v1804_v40  ;;  %8652 = vmatprep.subr.bf16.mxu0 %v9334_v36  ;;  %v8992_v5 = vld [vmem:[%s12037_s23 + $0x18] sm:$0xff]   ;;  %v8994_v40 = vld [vmem:[%s12037_s23 + $0x8] sm:$0xff]  }
 0xbe0   :  { %v1903_v48 = vpop.permute.xlu1 %1902 }
 0xbe1   :  { %1970 = vmatpush1.bf16.msra.mxu1 %v1934_v0  ;;  %v1912_v3 = vmul.f32 %v10165_v51, %v1903_v48  ;;  %v8991_v0 = vld [vmem:[%s12037_s23 + $0x20] sm:$0xff]   ;;  %v8993_v48 = vld [vmem:[%s12037_s23 + $0x10] sm:$0xff]   ;;  %s12076_s23 = sld [smem:[#allocation14_spill]] }
 0xbe2   :  { %1971 = vmatprep.subr.bf16.mxu1 %v9333_v4  ;;  %8653 = vmatpush3.bf16.msra.mxu0 %v8990_v59 }
 0xbe3   :  { %v1941_v1 = vpack.c.bf16 %v1912_v3, %v1911_v2  ;;  %8654 = vmatprep.subr.bf16.mxu0 %v9334_v36 }
 0xbe5   :  { %1972 = vmatpush1.bf16.msra.mxu1 %v1933_v63 }
 0xbe6   :  { %1987 = vmatprep.subr.bf16.mxu1 %v9333_v4  ;;  %8655 = vmatpush3.bf16.msra.mxu0 %v8991_v0 }
 0xbe7   :  { %8656 = vmatprep.subr.bf16.mxu0 %v9334_v36 }
 0xbe9   :  { %1988 = vmatpush2.bf16.msra.mxu1 %v1941_v1 }
 0xbea   :  { %8668 = vmatprep.subr.bf16.mxu1 %v9334_v36  ;;  %8657 = vmatpush3.bf16.msra.mxu0 %v8992_v5 }
 0xbeb   :  { %8658 = vmatprep.subr.bf16.mxu0 %v9334_v36 }
 0xbec   :  { %1990 = vmatmul.mubr.bf16.vlgmr.msra.gmra.mxu1 %v8987_v12 }
 0xbed   :  { %8672 = vmatprep.mubr.msk.bf16.mxu1 %vm9339_vm10, %v9334_v36 }
 0xbee   :  { %8659 = vmatpush3.bf16.msra.mxu0 %v8993_v48 }
 0xbef   :  { %8660 = vmatprep.subr.bf16.mxu0 %v9334_v36 }
 0xbf2   :  { %8661 = vmatpush3.bf16.msra.mxu0 %v8994_v40 }
 0xbf3   :  { %8662 = vmatprep.subr.bf16.mxu0 %v9334_v36 }
 0xbf6   :  { %8663 = vmatpush3.bf16.msra.mxu0 %v8995_v11 }
 0xbf7   :  { %8684 = vmatprep.subr.bf16.mxu0 %v9334_v36 }
 0xcac   :  { %v1991_v17 = vpop.f32.mrf.mxu1 }
 0xcad   :  { %2002 = vadd.xlane.f32.xlu0 %v1991_v17 }
 0xcae   :  { %v1993_v14 = vpop.f32.mrf.mxu1 }
 0xcb0   :  { %v1994_v15 = vpop.f32.mrf.mxu1 }
 0xcb1   :  { %2004 = vadd.xlane.f32.xlu1 %v1994_v15 }
 0xcb2   :  { %v1996_v51 = vpop.f32.mrf.mxu1 }
 0xd36   :  { %v2003_v16 = vpop.xlane.xlu0 %2002 }
 0xd37   :  { %v2006_v18 = vmul.f32 0.0078125, %v2003_v16 }
 0xd39   :  { %v2008_v19 = vsub.f32 %v1991_v17, %v2006_v18 }
 0xd3a   :  { %v2005_v13 = vpop.xlane.xlu1 %2004 }
 0xd3b   :  { %v2007_v22 = vmul.f32 0.0078125, %v2005_v13  ;;  %v2010_v27 = vmul.f32 %v2008_v19, %v2008_v19  ;;  %v8997_v13 = vld [vmem:[%s12035_s21 + $0x28] sm:$0xff]  }
 0xd3d   :  { %v2009_v28 = vsub.f32 %v1994_v15, %v2007_v22  ;;  %2012 = vadd.xlane.f32.xlu0 %v2010_v27  ;;  %v8998_v22 = vld [vmem:[%s12035_s21] sm:$0xff]  }
 0xd3e   :  { %v8999_v27 = vld [vmem:[%s12035_s21 + $0x20] sm:$0xff]  }
 0xd3f   :  { %v2011_v29 = vmul.f32 %v2009_v28, %v2009_v28 }
 0xd41   :  { %2014 = vadd.xlane.f32.xlu0 %v2011_v29 }
 0xdc6   :  { %v2013_v30 = vpop.xlane.xlu0 %2012 }
 0xdc7   :  { %v2016_v24 = vmul.f32 0.0078125, %v2013_v30 }
 0xdc9   :  { %v2018_v32 = vadd.f32 1e-05, %v2016_v24  ;;  %v9000_v24 = vld [vmem:[%s12035_s21 + $0x18] sm:$0xff]  }
 0xdca   :  { %v2015_v34 = vpop.xlane.xlu0 %2014 }
 0xdcb   :  { %9267 = vrsqrt.f32 %v2018_v32  ;;  %v2017_v35 = vmul.f32 0.0078125, %v2015_v34  ;;  %v9001_v32 = vld [vmem:[%s12035_s21 + $0x48] sm:$0xff]  }
 0xdcd   :  { %v2019_v10 = vadd.f32 1e-05, %v2017_v35 }
 0xdcf   :  { %9269 = vrsqrt.f32 %v2019_v10  ;;  %v9002_v10 = vld [vmem:[%s12035_s21 + $0x10] sm:$0xff]  }
 0xdd8   :  { %v9268_v38 = vpop.eup %9267 }
 0xdd9   :  { %v2022_v39 = vmul.f32 %v9268_v38, %v1998_v37  ;;  %v9003_v37 = vld [vmem:[%s12035_s21 + $0x40] sm:$0xff]   ;;  %v9004_v38 = vld [vmem:[%s12035_s21 + $0x38] sm:$0xff]  }
 0xddb   :  { %2026 = vperm.xlu1 %8936, %v2022_v39   ;;  %v9005_v39 = vld [vmem:[%s12035_s21 + $0x68] sm:$0xff]  }
 0xddc   :  { %v9270_v44 = vpop.eup %9269 }
 0xddd   :  { %v2023_v33 = vmul.f32 %v9270_v44, %v1999_v42  ;;  %v9006_v42 = vld [vmem:[%s12035_s21 + $0x30] sm:$0xff]   ;;  %v9007_v44 = vld [vmem:[%s12035_s21 + $0x60] sm:$0xff]  }
 0xddf   :  { %2038 = vperm.xlu1 %8936, %v2000_v57   ;;  %2031 = vperm.xlu0 %8935, %v2023_v33   ;;  %v9008_v57 = vld [vmem:[%s12035_s21 + $0x58] sm:$0xff]   ;;  %v9009_v33 = vld [vmem:[%s12035_s21 + $0x88] sm:$0xff]  }
 0xde3   :  { %2043 = vperm.xlu1 %8936, %v2001_v43   ;;  %v9010_v43 = vld [vmem:[%s12035_s21 + $0x50] sm:$0xff]  }
 0xe56   :  { %v2027_v56 = vpop.permute.xlu1 %2026 }
 0xe57   :  { %v2034_v46 = vmul.f32 %v2027_v56, %v2008_v19  ;;  %v8996_v19 = vld [vmem:[%s12035_s21 + $0x8] sm:$0xff]   ;;  %v9011_v56 = vld [vmem:[%s12035_s21 + $0x80] sm:$0xff]  }
 0xe58   :  { %8669 = vmatpush3.bf16.msra.mxu1 %v8996_v19 }
 0xe59   :  { %8670 = vmatprep.subr.bf16.mxu1 %v9334_v36 }
 0xe5a   :  { %v2032_v47 = vpop.permute.xlu0 %2031  ;;  %v2039_v49 = vpop.permute.xlu1 %2038 }
 0xe5b   :  { %v2046_v62 = vadd.f32 %v2039_v49, %v2034_v46  ;;  %v2035_v54 = vmul.f32 %v2032_v47, %v2009_v28  ;;  %v9012_v46 = vld [vmem:[%s12035_s21 + $0x78] sm:$0xff]   ;;  %v9013_v47 = vld [vmem:[%s12035_s21 + $0x70] sm:$0xff]   ;;  %v9014_v49 = vld [vmem:[%s12075_s10 + $0x4] ss:$8 sps:$4 sm:$0xff]  }
 0xe5c   :  { %8671 = vmatpush3.bf16.msra.mxu1 %v8998_v22 }
 0xe5d   :  { %v10302_v55 = vmax.f32 %v2046_v62, 0.0  ;;  %8676 = vmatprep.subr.bf16.mxu1 %v9334_v36 }
 0xe5e   :  { %v2044_v58 = vpop.permute.xlu1 %2043 }
 0xe5f   :  { %v2047_v53 = vadd.f32 %v2044_v58, %v2035_v54  ;;  %2050 = vrot.lane.b32.xlu0 %v10302_v55, %s9329_s28 }
 0xe61   :  { %v10310_v61 = vmax.f32 %v2047_v53, 0.0 }
 0xe63   :  { %2052 = vrot.lane.b32.xlu1 %v10310_v61, %s9329_s28 }
 0xed1   :  { %v10336_v63 = vpop.permute.xlu0 %2050 }
 0xed2   :  { %v2054_v2 = vmax.f32 %v10302_v55, %v10336_v63 }
 0xed5   :  { %v10338_v3 = vpop.permute.xlu1 %2052 }
 0xed6   :  { %v2055_v1 = vmax.f32 %v10310_v61, %v10338_v3 }
 0xed8   :  { %v8947_v12 = vpack.i.bf16 %v2055_v1, %v2054_v2 }
 0xeda   :  { %8948 = vrot.lane.b32.xlu0 %v8947_v12, %s9337_s30 }
 0xf4c   :  { %v8949_v17 = vpop.permute.xlu0 %8948 }
 0xf4d   :  { %v8951_v14 = vunpack.i.h.bf16 %v8949_v17  ;;  %v8950_v15 = vunpack.i.l.bf16 %v8949_v17 }
 0xf4f   :  { %v2061_v51 = vmax.f32 %v2055_v1, %v8951_v14  ;;  %v2060_v16 = vmax.f32 %v2054_v2, %v8950_v15 }
 0xf51   :  { %v2062_v18 = vpack.c.bf16 %v2061_v51, %v2060_v16 }
 0xf53   :  { %8665 = vmatmul.mubr.bf16.vlgmr.msra.gmra.mxu0 %v2062_v18 }
 0xf54   :  { %8688 = vmatprep.mubr.msk.bf16.mxu0 %vm9339_vm10, %v9334_v36  ;;  %8685 = vmatpush3.bf16.msra.mxu0 %v8997_v13 }
 0xf55   :  { %8686 = vmatprep.subr.bf16.mxu0 %v9334_v36 }
 0xf58   :  { %8687 = vmatpush3.bf16.msra.mxu0 %v8999_v27 }
 0xf59   :  { %8700 = vmatprep.subr.bf16.mxu0 %v9334_v36 }
0x1013   :  { %v2161_v28 = vpop.f32.mrf.mxu0 }
0x1015   :  { %v8666_v29 = vpop.f32.mrf.mxu0 }
0x1017   :  { %v2164_v30 = vpop.f32.mrf.mxu0 }
0x1018   :  { %v2168_v34 = vpack.c.bf16 %v2164_v30, %v2161_v28 }
0x1019   :  { %v8667_v35 = vpop.f32.mrf.mxu0 }
0x101a   :  { %8673 = vmatmul.mubr.msk.bf16.vlgmr.msra.gmra.mxu1 %vm2185_vm12, %v2168_v34  ;;  %8689 = vmatmul.mubr.msk.bf16.vlgmr.msra.gmra.mxu0 %vm2185_vm12, %v2168_v34 }
0x101b   :  { %8677 = vmatpush3.bf16.msra.mxu1 %v9000_v24  ;;  %8701 = vmatpush3.bf16.msra.mxu0 %v9001_v32 }
0x101c   :  { %8678 = vmatprep.subr.bf16.mxu1 %v9334_v36  ;;  %8702 = vmatprep.subr.bf16.mxu0 %v9334_v36 }
0x101d   :  { %8680 = vmatprep.mubr.msk.bf16.mxu1 %vm9339_vm10, %v9334_v36  ;;  %8704 = vmatprep.mubr.msk.bf16.mxu0 %vm9339_vm10, %v9334_v36 }
0x101f   :  { %8679 = vmatpush3.bf16.msra.mxu1 %v9002_v10  ;;  %8703 = vmatpush3.bf16.msra.mxu0 %v9003_v37 }
0x1020   :  { %8692 = vmatprep.subr.bf16.mxu1 %v9334_v36  ;;  %8716 = vmatprep.subr.bf16.mxu0 %v9334_v36 }
0x1022   :  { %8681 = vmatmul.mubr.msk.bf16.vlgmr.msra.gmra.mxu1 %vm2185_vm12, %v2168_v34  ;;  %8705 = vmatmul.mubr.msk.bf16.vlgmr.msra.gmra.mxu0 %vm2185_vm12, %v2168_v34 }
0x1023   :  { %8693 = vmatpush3.bf16.msra.mxu1 %v9004_v38  ;;  %8717 = vmatpush3.bf16.msra.mxu0 %v9005_v39 }
0x1024   :  { %8694 = vmatprep.subr.bf16.mxu1 %v9334_v36  ;;  %8718 = vmatprep.subr.bf16.mxu0 %v9334_v36 }
0x1025   :  { %8696 = vmatprep.mubr.msk.bf16.mxu1 %vm9339_vm10, %v9334_v36  ;;  %8720 = vmatprep.mubr.msk.bf16.mxu0 %vm9339_vm10, %v9334_v36 }
0x1027   :  { %8695 = vmatpush3.bf16.msra.mxu1 %v9006_v42  ;;  %8719 = vmatpush3.bf16.msra.mxu0 %v9007_v44 }
0x1028   :  { %8708 = vmatprep.subr.bf16.mxu1 %v9334_v36  ;;  %8732 = vmatprep.subr.bf16.mxu0 %v9334_v36 }
0x102a   :  { %8697 = vmatmul.mubr.msk.bf16.vlgmr.msra.gmra.mxu1 %vm2185_vm12, %v2168_v34  ;;  %8721 = vmatmul.mubr.msk.bf16.vlgmr.msra.gmra.mxu0 %vm2185_vm12, %v2168_v34 }
0x102b   :  { %8709 = vmatpush3.bf16.msra.mxu1 %v9008_v57  ;;  %8733 = vmatpush3.bf16.msra.mxu0 %v9009_v33 }
0x102c   :  { %8710 = vmatprep.subr.bf16.mxu1 %v9334_v36  ;;  %8734 = vmatprep.subr.bf16.mxu0 %v9334_v36 }
0x102d   :  { %8712 = vmatprep.mubr.msk.bf16.mxu1 %vm9339_vm10, %v9334_v36  ;;  %8736 = vmatprep.mubr.msk.bf16.mxu0 %vm9339_vm10, %v9334_v36 }
0x102f   :  { %8711 = vmatpush3.bf16.msra.mxu1 %v9010_v43  ;;  %8735 = vmatpush3.bf16.msra.mxu0 %v9011_v56 }
0x1030   :  { %8724 = vmatprep.subr.bf16.mxu1 %v9334_v36 }
0x1032   :  { %8713 = vmatmul.mubr.msk.bf16.vlgmr.msra.gmra.mxu1 %vm2185_vm12, %v2168_v34  ;;  %8737 = vmatmul.mubr.msk.bf16.vlgmr.msra.gmra.mxu0 %vm2185_vm12, %v2168_v34 }
0x1033   :  { %8725 = vmatpush3.bf16.msra.mxu1 %v9012_v46  ;;  %8728 = vmatprep.mubr.msk.bf16.mxu1 %vm9339_vm10, %v9334_v36 }
0x1034   :  { %8726 = vmatprep.subr.bf16.mxu1 %v9334_v36 }
0x1037   :  { %8727 = vmatpush3.bf16.msra.mxu1 %v9013_v47 }
0x1038   :  { %2767 = vmatprep.subr.bf16.mxu1 %v9333_v4 }
0x103a   :  { %8729 = vmatmul.mubr.msk.bf16.vlgmr.msra.gmra.mxu1 %vm2185_vm12, %v2168_v34 }
0x103b   :  { %8087 = vmatprep.mubr.msk.bf16.mxu1 %vm1953_vm11, %v9014_v49 }
0x10da   :  { %v2223_v50 = vpop.f32.mrf.mxu1  ;;  %v2343_v62 = vpop.f32.mrf.mxu0 }
0x10db   :  { %2230 = vst.msk [vmem:[#allocation4] sm:$0xff] %vm2185_vm12, %v2223_v50  ;;  %2350 = vst.msk [vmem:[#allocation4 + $0x20] sm:$0xff] %vm2185_vm12, %v2343_v62 }
0x10dc   :  { %v8674_v52 = vpop.f32.mrf.mxu1  ;;  %v8690_v54 = vpop.f32.mrf.mxu0 }
0x10de   :  { %v2226_v58 = vpop.f32.mrf.mxu1  ;;  %v2346_v53 = vpop.f32.mrf.mxu0 }
0x10df   :  { %2231 = vst.msk [vmem:[#allocation4 + $0x8] sm:$0xff] %vm2185_vm12, %v2226_v58  ;;  %2351 = vst.msk [vmem:[#allocation4 + $0x28] sm:$0xff] %vm2185_vm12, %v2346_v53 }
0x10e0   :  { %v8675_v59 = vpop.f32.mrf.mxu1  ;;  %v8691_v0 = vpop.f32.mrf.mxu0 }
0x10e2   :  { %v2283_v5 = vpop.f32.mrf.mxu1  ;;  %v2463_v48 = vpop.f32.mrf.mxu0  ;;  %v2716_v0 = vld [vmem:[#allocation4 + $0x20] sm:$0xff] }
0x10e3   :  { %2290 = vst.msk [vmem:[#allocation4 + $0x10] sm:$0xff] %vm2185_vm12, %v2283_v5  ;;  %2470 = vst.msk [vmem:[#allocation4 + $0x40] sm:$0xff] %vm2185_vm12, %v2463_v48 }
0x10e4   :  { %v8682_v40 = vpop.f32.mrf.mxu1  ;;  %v8706_v11 = vpop.f32.mrf.mxu0 }
0x10e6   :  { %v2286_v2 = vpop.f32.mrf.mxu1  ;;  %v2466_v1 = vpop.f32.mrf.mxu0  ;;  %v2717_v59 = vld [vmem:[#allocation4 + $0x28] sm:$0xff] }
0x10e7   :  { %2291 = vst.msk [vmem:[#allocation4 + $0x18] sm:$0xff] %vm2185_vm12, %v2286_v2  ;;  %2471 = vst.msk [vmem:[#allocation4 + $0x48] sm:$0xff] %vm2185_vm12, %v2466_v1  ;;  %v2732_v5 = vpack.c.bf16 %v2717_v59, %v2716_v0  ;;  %v2713_v2 = vld [vmem:[#allocation4 + $0x8] sm:$0xff]  ;;  %v2712_v1 = vld [vmem:[#allocation4] sm:$0xff] }
0x10e8   :  { %v8683_v12 = vpop.f32.mrf.mxu1  ;;  %v8707_v17 = vpop.f32.mrf.mxu0 }
0x10e9   :  { %v2730_v12 = vpack.c.bf16 %v2713_v2, %v2712_v1 }
0x10ea   :  { %v2403_v14 = vpop.f32.mrf.mxu1  ;;  %v2583_v15 = vpop.f32.mrf.mxu0  ;;  %v2720_v62 = vld [vmem:[#allocation4 + $0x40] sm:$0xff]  ;;  %v2714_v40 = vld [vmem:[#allocation4 + $0x10] sm:$0xff] }
0x10eb   :  { %2410 = vst.msk [vmem:[#allocation4 + $0x30] sm:$0xff] %vm2185_vm12, %v2403_v14  ;;  %2590 = vst.msk [vmem:[#allocation4 + $0x60] sm:$0xff] %vm2185_vm12, %v2583_v15 }
0x10ec   :  { %v8698_v51 = vpop.f32.mrf.mxu1  ;;  %v8722_v16 = vpop.f32.mrf.mxu0 }
0x10ed   :  { %v9016_v51 = vld [vmem:[%s12075_s10] ss:$8 sps:$4 sm:$0xff]   ;;  %v9017_v16 = vld [vmem:[%s12075_s10 + $0x14] ss:$8 sps:$4 sm:$0xff]  }
0x10ee   :  { %v2406_v18 = vpop.f32.mrf.mxu1  ;;  %v2586_v19 = vpop.f32.mrf.mxu0  ;;  %v2721_v50 = vld [vmem:[#allocation4 + $0x48] sm:$0xff]  ;;  %v2715_v48 = vld [vmem:[#allocation4 + $0x18] sm:$0xff] }
0x10ef   :  { %2411 = vst.msk [vmem:[#allocation4 + $0x38] sm:$0xff] %vm2185_vm12, %v2406_v18  ;;  %2591 = vst.msk [vmem:[#allocation4 + $0x68] sm:$0xff] %vm2185_vm12, %v2586_v19  ;;  %v2734_v52 = vpack.c.bf16 %v2721_v50, %v2720_v62  ;;  %v2731_v11 = vpack.c.bf16 %v2715_v48, %v2714_v40  ;;  %v9019_v18 = vld [vmem:[%s12075_s10 + $0x10] ss:$8 sps:$4 sm:$0xff]   ;;  %s12079_s10 = sld [smem:[#allocation17_spill]] }
0x10f0   :  { %v8699_v13 = vpop.f32.mrf.mxu1  ;;  %v8723_v22 = vpop.f32.mrf.mxu0  ;;  %v2821_v48 = vld [vmem:[%s12032_s18 + $0x38] sm:$0xff] }
0x10f2   :  { %v2523_v27 = vpop.f32.mrf.mxu1  ;;  %v2703_v28 = vpop.f32.mrf.mxu0  ;;  %v2724_v43 = vld [vmem:[#allocation4 + $0x60] sm:$0xff]  ;;  %v2718_v58 = vld [vmem:[#allocation4 + $0x30] sm:$0xff] }
0x10f3   :  { %2530 = vst.msk [vmem:[#allocation4 + $0x50] sm:$0xff] %vm2185_vm12, %v2523_v27  ;;  %2710 = vst.msk [vmem:[#allocation4 + $0x80] sm:$0xff] %vm2185_vm12, %v2703_v28 }
0x10f4   :  { %v8714_v29 = vpop.f32.mrf.mxu1  ;;  %v8738_v30 = vpop.f32.mrf.mxu0 }
0x10f6   :  { %v2526_v24 = vpop.f32.mrf.mxu1  ;;  %v2706_v32 = vpop.f32.mrf.mxu0  ;;  %v2725_v33 = vld [vmem:[#allocation4 + $0x68] sm:$0xff]  ;;  %v2719_v54 = vld [vmem:[#allocation4 + $0x38] sm:$0xff] }
0x10f7   :  { %2531 = vst.msk [vmem:[#allocation4 + $0x58] sm:$0xff] %vm2185_vm12, %v2526_v24  ;;  %2711 = vst.msk [vmem:[#allocation4 + $0x88] sm:$0xff] %vm2185_vm12, %v2706_v32  ;;  %v2736_v56 = vpack.c.bf16 %v2725_v33, %v2724_v43  ;;  %v2733_v53 = vpack.c.bf16 %v2719_v54, %v2718_v58 }
0x10f8   :  { %v8715_v34 = vpop.f32.mrf.mxu1  ;;  %v8739_v35 = vpop.f32.mrf.mxu0 }
0x10fa   :  { %v2643_v10 = vpop.f32.mrf.mxu1  ;;  %v2722_v47 = vld [vmem:[#allocation4 + $0x50] sm:$0xff]  ;;  %v2728_v14 = vld [vmem:[#allocation4 + $0x80] sm:$0xff] }
0x10fb   :  { %2650 = vst.msk [vmem:[#allocation4 + $0x70] sm:$0xff] %vm2185_vm12, %v2643_v10 }
0x10fc   :  { %v8730_v37 = vpop.f32.mrf.mxu1 }
0x10fe   :  { %v2646_v38 = vpop.f32.mrf.mxu1  ;;  %v2723_v46 = vld [vmem:[#allocation4 + $0x58] sm:$0xff]  ;;  %v2729_v17 = vld [vmem:[#allocation4 + $0x88] sm:$0xff] }
0x10ff   :  { %2651 = vst.msk [vmem:[#allocation4 + $0x78] sm:$0xff] %vm2185_vm12, %v2646_v38  ;;  %v2735_v49 = vpack.c.bf16 %v2723_v46, %v2722_v47  ;;  %v2738_v15 = vpack.c.bf16 %v2729_v17, %v2728_v14 }
0x1100   :  { %v8731_v39 = vpop.f32.mrf.mxu1 }
0x1102   :  { %v2726_v42 = vld [vmem:[#allocation4 + $0x70] sm:$0xff] }
0x1106   :  { %v2727_v44 = vld [vmem:[#allocation4 + $0x78] sm:$0xff] }
0x1107   :  { %v2737_v57 = vpack.c.bf16 %v2727_v44, %v2726_v42 }
0x1109   :  { %2768 = vmatpush1.bf16.msra.mxu1 %v2737_v57 }
0x110a   :  { %2769 = vmatprep.subr.bf16.mxu1 %v9333_v4 }
0x110d   :  { %2770 = vmatpush1.bf16.msra.mxu1 %v2736_v56 }
0x110e   :  { %2771 = vmatprep.subr.bf16.mxu1 %v9333_v4 }
0x1111   :  { %2772 = vmatpush1.bf16.msra.mxu1 %v2735_v49 }
0x1112   :  { %2773 = vmatprep.subr.bf16.mxu1 %v9333_v4 }
0x1115   :  { %2774 = vmatpush1.bf16.msra.mxu1 %v2734_v52 }
0x1116   :  { %2775 = vmatprep.subr.bf16.mxu1 %v9333_v4 }
0x1119   :  { %2776 = vmatpush1.bf16.msra.mxu1 %v2733_v53 }
0x111a   :  { %2777 = vmatprep.subr.bf16.mxu1 %v9333_v4 }
0x111d   :  { %2778 = vmatpush1.bf16.msra.mxu1 %v2732_v5  ;;  %v2820_v5 = vld [vmem:[%s12032_s18 + $0x30] sm:$0xff] }
0x111e   :  { %2779 = vmatprep.subr.bf16.mxu1 %v9333_v4 }
0x1121   :  { %2780 = vmatpush1.bf16.msra.mxu1 %v2731_v11 }
0x1122   :  { %2781 = vmatprep.subr.bf16.mxu1 %v9333_v4 }
0x1125   :  { %2782 = vmatpush1.bf16.msra.mxu1 %v2730_v12 }
0x1126   :  { %2797 = vmatprep.subr.bf16.mxu1 %v9333_v4 }
0x1129   :  { %2798 = vmatpush2.bf16.msra.mxu1 %v2738_v15 }
0x112c   :  { %2800 = vmatmul.mubr.bf16.vlgmr.msra.gmra.mxu1 %v9016_v51 }
0x112d   :  { %8088 = vmatprep.mubr.msk.bf16.mxu1 %vm1953_vm11, %v9017_v16 }
0x1134   :  { %2808 = vmatmul.mubr.bf16.gmra.mxu1 %v9019_v18 }
0x11ec   :  { %v2801_v19 = vpop.f32.mrf.mxu1 }
0x11ed   :  { %v2824_v13 = vsel %vm2185_vm12, %v2801_v19, 0.0 }
0x11ee   :  { %2825 = vadd.xlane.f32.xlu1 %v2824_v13  ;;  %v2803_v22 = vpop.f32.mrf.mxu1  ;;  %v2816_v13 = vld [vmem:[%s12031_s17 + $0x30] sm:$0xff] }
0x11f0   :  { %v2804_v27 = vpop.f32.mrf.mxu1 }
0x11f1   :  { %v2827_v28 = vsel %vm2185_vm12, %v2804_v27, 0.0 }
0x11f2   :  { %2828 = vadd.xlane.f32.xlu0 %v2827_v28  ;;  %v2806_v29 = vpop.f32.mrf.mxu1  ;;  %v2817_v28 = vld [vmem:[%s12031_s17 + $0x38] sm:$0xff] }
0x11f4   :  { %v2809_v30 = vpop.f32.mrf.mxu1 }
0x11f5   :  { %v2830_v24 = vsel %vm2185_vm12, %v2809_v30, 0.0 }
0x11f6   :  { %2831 = vadd.xlane.f32.xlu0 %v2830_v24  ;;  %v2811_v32 = vpop.f32.mrf.mxu1  ;;  %v2818_v24 = vld [vmem:[%s12031_s17 + $0x40] sm:$0xff] }
0x11f8   :  { %v2812_v34 = vpop.f32.mrf.mxu1 }
0x11f9   :  { %v2833_v35 = vsel %vm2185_vm12, %v2812_v34, 0.0 }
0x11fa   :  { %2834 = vadd.xlane.f32.xlu1 %v2833_v35  ;;  %v2814_v10 = vpop.f32.mrf.mxu1  ;;  %v2819_v35 = vld [vmem:[%s12031_s17 + $0x48] sm:$0xff] }
0x1277   :  { %v2826_v37 = vpop.xlane.xlu1 %2825 }
0x1278   :  { %v2837_v38 = vmul.f32 0.03125, %v2826_v37  ;;  %v2822_v37 = vld [vmem:[%s12032_s18 + $0x40] sm:$0xff] }
0x127a   :  { %v10485_v39 = vsub.f32 %v2801_v19, %v2837_v38  ;;  %v9020_v38 = vld [vmem:[%s12035_s21 + $0x8] sm:$0xff]  }
0x127b   :  { %v2829_v42 = vpop.xlane.xlu0 %2828  ;;  %8740 = vmatprep.subr.bf16.mxu0 %v9020_v38 }
0x127c   :  { %v2838_v44 = vmul.f32 0.03125, %v2829_v42  ;;  %v2845_v57 = vmul.f32 %v10485_v39, %v10485_v39  ;;  %v9021_v42 = vld [vmem:[%s12035_s21 + $0x58] sm:$0xff]   ;;  %8741 = vmatpush3.bf16.msra.mxu0 %v9020_v38 }
0x127d   :  { %8780 = vmatprep.subr.bf16.mxu1 %v9021_v42 }
0x127e   :  { %v10489_v33 = vsub.f32 %v2804_v27, %v2838_v44  ;;  %v2849_v43 = vsel %vm2185_vm12, %v2845_v57, 0.0  ;;  %v2823_v57 = vld [vmem:[%s12032_s18 + $0x48] sm:$0xff]  ;;  %8781 = vmatpush3.bf16.msra.mxu1 %v9021_v42 }
0x127f   :  { %2850 = vadd.xlane.f32.xlu0 %v2849_v43  ;;  %v2832_v56 = vpop.xlane.xlu0 %2831  ;;  %v9022_v43 = vld [vmem:[%s12035_s21] sm:$0xff]  }
0x1280   :  { %v2839_v46 = vmul.f32 0.03125, %v2832_v56  ;;  %v2846_v47 = vmul.f32 %v10489_v33, %v10489_v33  ;;  %v9023_v56 = vld [vmem:[%s12035_s21 + $0x50] sm:$0xff]   ;;  %8742 = vmatprep.subr.bf16.mxu0 %v9022_v43 }
0x1281   :  { %8782 = vmatprep.subr.bf16.mxu1 %v9023_v56  ;;  %8743 = vmatpush3.bf16.msra.mxu0 %v9022_v43 }
0x1282   :  { %v10494_v49 = vsub.f32 %v2809_v30, %v2839_v46  ;;  %v2852_v50 = vsel %vm2185_vm12, %v2846_v47, 0.0  ;;  %8783 = vmatpush3.bf16.msra.mxu1 %v9023_v56  ;;  %v9024_v46 = vld [vmem:[%s12035_s21 + $0x18] sm:$0xff]  }
0x1283   :  { %2853 = vadd.xlane.f32.xlu1 %v2852_v50  ;;  %v2835_v62 = vpop.xlane.xlu1 %2834  ;;  %v9025_v47 = vld [vmem:[%s12035_s21 + $0x78] sm:$0xff]   ;;  %8748 = vmatprep.subr.bf16.mxu0 %v9024_v46 }
0x1284   :  { %v2840_v52 = vmul.f32 0.03125, %v2835_v62  ;;  %v2847_v54 = vmul.f32 %v10494_v49, %v10494_v49  ;;  %8796 = vmatprep.subr.bf16.mxu1 %v9025_v47 }
0x1286   :  { %v10499_v58 = vsub.f32 %v2812_v34, %v2840_v52  ;;  %v2855_v53 = vsel %vm2185_vm12, %v2847_v54, 0.0 }
0x1287   :  { %2856 = vadd.xlane.f32.xlu0 %v2855_v53 }
0x1288   :  { %v2848_v59 = vmul.f32 %v10499_v58, %v10499_v58 }
0x128a   :  { %v2858_v0 = vsel %vm2185_vm12, %v2848_v59, 0.0 }
0x128b   :  { %2859 = vadd.xlane.f32.xlu1 %v2858_v0 }
0x129c   :  { %2903 = vperm.xlu1 %8936, %v2820_v5  }
0x129d   :  { %2908 = vperm.xlu0 %8935, %v2821_v48  }
0x1308   :  { %v2851_v40 = vpop.xlane.xlu0 %2850 }
0x1309   :  { %v2861_v11 = vmul.f32 0.03125, %v2851_v40 }
0x130b   :  { %v2865_v2 = vadd.f32 1e-05, %v2861_v11 }
0x130c   :  { %v2854_v1 = vpop.xlane.xlu1 %2853 }
0x130d   :  { %9271 = vrsqrt.f32 %v2865_v2  ;;  %v2862_v12 = vmul.f32 0.03125, %v2854_v1 }
0x130f   :  { %v2866_v17 = vadd.f32 1e-05, %v2862_v12 }
0x1310   :  { %v2857_v14 = vpop.xlane.xlu0 %2856 }
0x1311   :  { %9273 = vrsqrt.f32 %v2866_v17  ;;  %v2863_v15 = vmul.f32 0.03125, %v2857_v14 }
0x1313   :  { %v2867_v51 = vadd.f32 1e-05, %v2863_v15 }
0x1314   :  { %v2860_v16 = vpop.xlane.xlu1 %2859 }
0x1315   :  { %9275 = vrsqrt.f32 %v2867_v51  ;;  %v2864_v18 = vmul.f32 0.03125, %v2860_v16 }
0x1317   :  { %v2868_v19 = vadd.f32 1e-05, %v2864_v18 }
0x1318   :  { %v2909_v50 = vpop.permute.xlu0 %2908  ;;  %v2904_v62 = vpop.permute.xlu1 %2903 }
0x1319   :  { %9277 = vrsqrt.f32 %v2868_v19  ;;  %v9026_v19 = vld [vmem:[%s12035_s21 + $0x10] sm:$0xff]  }
0x131a   :  { %v9272_v22 = vpop.eup %9271 }
0x131b   :  { %v2873_v27 = vmul.f32 %v9272_v22, %v2816_v13  ;;  %v9029_v13 = vld [vmem:[%s12035_s21 + $0x20] sm:$0xff]   ;;  %v9030_v22 = vld [vmem:[%s12035_s21 + $0x38] sm:$0xff]  }
0x131d   :  { %2879 = vperm.xlu0 %8935, %v2873_v27   ;;  %v9031_v27 = vld [vmem:[%s12035_s21 + $0x30] sm:$0xff]  }
0x131e   :  { %v9274_v29 = vpop.eup %9273 }
0x131f   :  { %v2874_v30 = vmul.f32 %v9274_v29, %v2817_v28  ;;  %v9032_v28 = vld [vmem:[%s12035_s21 + $0x48] sm:$0xff]   ;;  %v9033_v29 = vld [vmem:[%s12035_s21 + $0x40] sm:$0xff]  }
0x1321   :  { %2884 = vperm.xlu1 %8936, %v2874_v30   ;;  %v9034_v30 = vld [vmem:[%s12035_s21 + $0x68] sm:$0xff]  }
0x1322   :  { %v9276_v32 = vpop.eup %9275 }
0x1323   :  { %v2875_v34 = vmul.f32 %v9276_v32, %v2818_v24  ;;  %v9035_v24 = vld [vmem:[%s12035_s21 + $0x60] sm:$0xff]   ;;  %v9036_v32 = vld [vmem:[%s12035_s21 + $0x88] sm:$0xff]  }
0x1325   :  { %2889 = vperm.xlu1 %8936, %v2875_v34   ;;  %v9037_v34 = vld [vmem:[%s12035_s21 + $0x80] sm:$0xff]  }
0x1326   :  { %v9278_v10 = vpop.eup %9277 }
0x1327   :  { %v2876_v44 = vmul.f32 %v9278_v10, %v2819_v35  ;;  %v9040_v35 = vld [vmem:[%s12076_s23 + $0x4] ss:$12 sps:$4 sm:$0xff]   ;;  %v9041_v10 = vld [vmem:[%s12076_s23 + $0x8] ss:$12 sps:$4 sm:$0xff]  }
0x1329   :  { %2913 = vperm.xlu1 %8936, %v2822_v37   ;;  %2894 = vperm.xlu0 %8935, %v2876_v44  }
0x132d   :  { %2918 = vperm.xlu0 %8935, %v2823_v57  }
0x1398   :  { %v2880_v52 = vpop.permute.xlu0 %2879 }
0x1399   :  { %v2897_v54 = vmul.f32 %v2880_v52, %v10485_v39 }
0x139b   :  { %v2921_v59 = vadd.f32 %v2904_v62, %v2897_v54 }
0x139c   :  { %v2885_v53 = vpop.permute.xlu1 %2884 }
0x139d   :  { %v2898_v0 = vmul.f32 %v2885_v53, %v10489_v33  ;;  %v2925_v40 = vmax.f32 %v2921_v59, 0.0 }
0x139f   :  { %v2922_v5 = vadd.f32 %v2909_v50, %v2898_v0 }
0x13a0   :  { %v2890_v48 = vpop.permute.xlu1 %2889 }
0x13a1   :  { %v2926_v11 = vmax.f32 %v2922_v5, 0.0  ;;  %v2899_v17 = vmul.f32 %v2890_v48, %v10494_v49  ;;  %v9027_v49 = vld [vmem:[%s12035_s21 + $0x70] sm:$0xff]  }
0x13a3   :  { %v10549_v2 = vpack.c.bf16 %v2926_v11, %v2925_v40 }
0x13a4   :  { %v2895_v1 = vpop.permute.xlu0 %2894  ;;  %v2914_v12 = vpop.permute.xlu1 %2913 }
0x13a5   :  { %8744 = vmatprep.mubr.msk.bf16.mxu0 %vm2185_vm12, %v10549_v2  ;;  %8784 = vmatprep.mubr.msk.bf16.mxu1 %vm2185_vm12, %v10549_v2  ;;  %v2900_v39 = vmul.f32 %v2895_v1, %v10499_v58  ;;  %v2923_v14 = vadd.f32 %v2914_v12, %v2899_v17  ;;  %v9028_v58 = vld [vmem:[%s12035_s21 + $0x28] sm:$0xff]  }
0x13a7   :  { %v2927_v51 = vmax.f32 %v2923_v14, 0.0 }
0x13a8   :  { %v2919_v33 = vpop.permute.xlu0 %2918 }
0x13a9   :  { %v2924_v15 = vadd.f32 %v2919_v33, %v2900_v39 }
0x13ab   :  { %v2928_v16 = vmax.f32 %v2924_v15, 0.0 }
0x13ad   :  { %v2930_v18 = vpack.c.bf16 %v2928_v16, %v2927_v51 }
0x13af   :  { %8745 = vmatmul.mubr.msk.bf16.vlgmr.msra.gmra.mxu0 %vm2185_vm12, %v2930_v18  ;;  %8785 = vmatmul.mubr.msk.bf16.vlgmr.msra.gmra.mxu1 %vm2185_vm12, %v2930_v18 }
0x13b0   :  { %8749 = vmatpush3.bf16.msra.mxu0 %v9024_v46  ;;  %8752 = vmatprep.mubr.msk.bf16.mxu0 %vm2185_vm12, %v10549_v2 }
0x13b1   :  { %8797 = vmatpush3.bf16.msra.mxu1 %v9025_v47  ;;  %8800 = vmatprep.mubr.msk.bf16.mxu1 %vm2185_vm12, %v10549_v2 }
0x13b2   :  { %8750 = vmatprep.subr.bf16.mxu0 %v9026_v19  ;;  %8798 = vmatprep.subr.bf16.mxu1 %v9027_v49 }
0x13b4   :  { %8751 = vmatpush3.bf16.msra.mxu0 %v9026_v19 }
0x13b5   :  { %8799 = vmatpush3.bf16.msra.mxu1 %v9027_v49  ;;  %8756 = vmatprep.subr.bf16.mxu0 %v9028_v58 }
0x13b7   :  { %8753 = vmatmul.mubr.msk.bf16.vlgmr.msra.gmra.mxu0 %vm2185_vm12, %v2930_v18 }
0x13b8   :  { %8801 = vmatmul.mubr.msk.bf16.vlgmr.msra.gmra.mxu1 %vm2185_vm12, %v2930_v18  ;;  %8757 = vmatpush3.bf16.msra.mxu0 %v9028_v58 }
0x13b9   :  { %8760 = vmatprep.mubr.msk.bf16.mxu0 %vm2185_vm12, %v10549_v2  ;;  %8758 = vmatprep.subr.bf16.mxu0 %v9029_v13 }
0x13ba   :  { %3688 = vmatprep.mubr.bf16.mxu1 %v9040_v35 }
0x13bc   :  { %8759 = vmatpush3.bf16.msra.mxu0 %v9029_v13 }
0x13bd   :  { %8764 = vmatprep.subr.bf16.mxu0 %v9030_v22 }
0x13bf   :  { %8761 = vmatmul.mubr.msk.bf16.vlgmr.msra.gmra.mxu0 %vm2185_vm12, %v2930_v18 }
0x13c0   :  { %8765 = vmatpush3.bf16.msra.mxu0 %v9030_v22  ;;  %8768 = vmatprep.mubr.msk.bf16.mxu0 %vm2185_vm12, %v10549_v2 }
0x13c1   :  { %8766 = vmatprep.subr.bf16.mxu0 %v9031_v27 }
0x13c4   :  { %8767 = vmatpush3.bf16.msra.mxu0 %v9031_v27 }
0x13c5   :  { %8772 = vmatprep.subr.bf16.mxu0 %v9032_v28 }
0x13c7   :  { %8769 = vmatmul.mubr.msk.bf16.vlgmr.msra.gmra.mxu0 %vm2185_vm12, %v2930_v18 }
0x13c8   :  { %8773 = vmatpush3.bf16.msra.mxu0 %v9032_v28  ;;  %8776 = vmatprep.mubr.msk.bf16.mxu0 %vm2185_vm12, %v10549_v2 }
0x13c9   :  { %8774 = vmatprep.subr.bf16.mxu0 %v9033_v29 }
0x13cc   :  { %8775 = vmatpush3.bf16.msra.mxu0 %v9033_v29 }
0x13cd   :  { %8788 = vmatprep.subr.bf16.mxu0 %v9034_v30 }
0x13cf   :  { %8777 = vmatmul.mubr.msk.bf16.vlgmr.msra.gmra.mxu0 %vm2185_vm12, %v2930_v18 }
0x13d0   :  { %8789 = vmatpush3.bf16.msra.mxu0 %v9034_v30  ;;  %8792 = vmatprep.mubr.msk.bf16.mxu0 %vm2185_vm12, %v10549_v2 }
0x13d1   :  { %8790 = vmatprep.subr.bf16.mxu0 %v9035_v24 }
0x13d4   :  { %8791 = vmatpush3.bf16.msra.mxu0 %v9035_v24 }
0x13d5   :  { %8804 = vmatprep.subr.bf16.mxu0 %v9036_v32 }
0x13d7   :  { %8793 = vmatmul.mubr.msk.bf16.vlgmr.msra.gmra.mxu0 %vm2185_vm12, %v2930_v18 }
0x13d8   :  { %8805 = vmatpush3.bf16.msra.mxu0 %v9036_v32  ;;  %8808 = vmatprep.mubr.msk.bf16.mxu0 %vm2185_vm12, %v10549_v2 }
0x13d9   :  { %8806 = vmatprep.subr.bf16.mxu0 %v9037_v34 }
0x13dc   :  { %8807 = vmatpush3.bf16.msra.mxu0 %v9037_v34 }
0x13df   :  { %8809 = vmatmul.mubr.msk.bf16.vlgmr.msra.gmra.mxu0 %vm2185_vm12, %v2930_v18 }
0x13e0   :  { %8816 = vmatprep.mubr.msk.bf16.mxu0 %vm2185_vm12, %v9041_v10 }
0x146f   :  { %v8746_v37 = vpop.f32.mrf.mxu0  ;;  %v8786_v38 = vpop.f32.mrf.mxu1 }
0x1470   :  { %3004 = vst.msk [vmem:[#allocation4 + $0x10] sm:$0xff] %vm2185_vm12, %v8746_v37  ;;  %3349 = vst.msk [vmem:[#allocation4 + $0xb0] sm:$0xff] %vm2185_vm12, %v8786_v38 }
0x1471   :  { %v2987_v42 = vpop.f32.mrf.mxu0  ;;  %v3332_v44 = vpop.f32.mrf.mxu1 }
0x1472   :  { %3002 = vst.msk [vmem:[#allocation4] sm:$0xff] %vm2185_vm12, %v2987_v42  ;;  %3347 = vst.msk [vmem:[#allocation4 + $0xa0] sm:$0xff] %vm2185_vm12, %v3332_v44 }
0x1473   :  { %v8747_v57 = vpop.f32.mrf.mxu0  ;;  %v8787_v43 = vpop.f32.mrf.mxu1 }
0x1474   :  { %3005 = vst.msk [vmem:[#allocation4 + $0x18] sm:$0xff] %vm2185_vm12, %v8747_v57  ;;  %3350 = vst.msk [vmem:[#allocation4 + $0xb8] sm:$0xff] %vm2185_vm12, %v8787_v43 }
0x1475   :  { %v2990_v56 = vpop.f32.mrf.mxu0  ;;  %v3335_v46 = vpop.f32.mrf.mxu1 }
0x1476   :  { %3003 = vst.msk [vmem:[#allocation4 + $0x8] sm:$0xff] %vm2185_vm12, %v2990_v56  ;;  %3348 = vst.msk [vmem:[#allocation4 + $0xa8] sm:$0xff] %vm2185_vm12, %v3335_v46 }
0x1477   :  { %v8754_v47 = vpop.f32.mrf.mxu0 }
0x1478   :  { %3073 = vst.msk [vmem:[#allocation4 + $0x30] sm:$0xff] %vm2185_vm12, %v8754_v47  ;;  %v8802_v50 = vpop.f32.mrf.mxu1 }
0x1479   :  { %3487 = vst.msk [vmem:[#allocation4 + $0xf0] sm:$0xff] %vm2185_vm12, %v8802_v50  ;;  %v3056_v62 = vpop.f32.mrf.mxu0 }
0x147a   :  { %3071 = vst.msk [vmem:[#allocation4 + $0x20] sm:$0xff] %vm2185_vm12, %v3056_v62  ;;  %v3470_v52 = vpop.f32.mrf.mxu1 }
0x147b   :  { %3485 = vst.msk [vmem:[#allocation4 + $0xe0] sm:$0xff] %vm2185_vm12, %v3470_v52  ;;  %v8755_v54 = vpop.f32.mrf.mxu0 }
0x147c   :  { %3074 = vst.msk [vmem:[#allocation4 + $0x38] sm:$0xff] %vm2185_vm12, %v8755_v54  ;;  %v8803_v53 = vpop.f32.mrf.mxu1 }
0x147d   :  { %3488 = vst.msk [vmem:[#allocation4 + $0xf8] sm:$0xff] %vm2185_vm12, %v8803_v53  ;;  %v3059_v59 = vpop.f32.mrf.mxu0  ;;  %v3581_v53 = vld [vmem:[#allocation4 + $0xb8] sm:$0xff] }
0x147e   :  { %3072 = vst.msk [vmem:[#allocation4 + $0x28] sm:$0xff] %vm2185_vm12, %v3059_v59  ;;  %v3473_v0 = vpop.f32.mrf.mxu1 }
0x147f   :  { %3486 = vst.msk [vmem:[#allocation4 + $0xe8] sm:$0xff] %vm2185_vm12, %v3473_v0  ;;  %v8762_v5 = vpop.f32.mrf.mxu0 }
0x1480   :  { %3142 = vst.msk [vmem:[#allocation4 + $0x50] sm:$0xff] %vm2185_vm12, %v8762_v5  ;;  %v3588_v11 = vld [vmem:[#allocation4 + $0xf0] sm:$0xff] }
0x1481   :  { %v3125_v48 = vpop.f32.mrf.mxu0  ;;  %v3580_v5 = vld [vmem:[#allocation4 + $0xb0] sm:$0xff] }
0x1482   :  { %3140 = vst.msk [vmem:[#allocation4 + $0x40] sm:$0xff] %vm2185_vm12, %v3125_v48  ;;  %v3586_v13 = vld [vmem:[#allocation4 + $0xe0] sm:$0xff]  ;;  %v3605_v48 = vpack.c.bf16 %v3581_v53, %v3580_v5 }
0x1483   :  { %v8763_v40 = vpop.f32.mrf.mxu0 }
0x1484   :  { %3143 = vst.msk [vmem:[#allocation4 + $0x58] sm:$0xff] %vm2185_vm12, %v8763_v40  ;;  %v3589_v2 = vld [vmem:[#allocation4 + $0xf8] sm:$0xff] }
0x1485   :  { %v3128_v1 = vpop.f32.mrf.mxu0  ;;  %v3609_v12 = vpack.c.bf16 %v3589_v2, %v3588_v11  ;;  %v3565_v40 = vld [vmem:[#allocation4 + $0x38] sm:$0xff] }
0x1486   :  { %3141 = vst.msk [vmem:[#allocation4 + $0x48] sm:$0xff] %vm2185_vm12, %v3128_v1  ;;  %v3587_v16 = vld [vmem:[#allocation4 + $0xe8] sm:$0xff] }
0x1487   :  { %8545 = vmatprep.subr.bf16.mxu1 %v3609_v12  ;;  %v8770_v17 = vpop.f32.mrf.mxu0  ;;  %v3608_v27 = vpack.c.bf16 %v3587_v16, %v3586_v13  ;;  %v3568_v56 = vld [vmem:[#allocation4 + $0x50] sm:$0xff]  ;;  %v3579_v1 = vld [vmem:[#allocation4 + $0xa8] sm:$0xff] }
0x1488   :  { %3211 = vst.msk [vmem:[#allocation4 + $0x70] sm:$0xff] %vm2185_vm12, %v8770_v17  ;;  %v3564_v17 = vld [vmem:[#allocation4 + $0x30] sm:$0xff] }
0x1489   :  { %v3194_v39 = vpop.f32.mrf.mxu0  ;;  %v3566_v59 = vld [vmem:[#allocation4 + $0x40] sm:$0xff] }
0x148a   :  { %3209 = vst.msk [vmem:[#allocation4 + $0x60] sm:$0xff] %vm2185_vm12, %v3194_v39  ;;  %v3597_v39 = vpack.c.bf16 %v3565_v40, %v3564_v17 }
0x148b   :  { %v8771_v14 = vpop.f32.mrf.mxu0  ;;  %v3569_v38 = vld [vmem:[#allocation4 + $0x58] sm:$0xff] }
0x148c   :  { %3212 = vst.msk [vmem:[#allocation4 + $0x78] sm:$0xff] %vm2185_vm12, %v8771_v14  ;;  %v3599_v47 = vpack.c.bf16 %v3569_v38, %v3568_v56  ;;  %v3578_v14 = vld [vmem:[#allocation4 + $0xa0] sm:$0xff] }
0x148d   :  { %v3197_v33 = vpop.f32.mrf.mxu0  ;;  %v3567_v54 = vld [vmem:[#allocation4 + $0x48] sm:$0xff] }
0x148e   :  { %3210 = vst.msk [vmem:[#allocation4 + $0x68] sm:$0xff] %vm2185_vm12, %v3197_v33  ;;  %v3598_v0 = vpack.c.bf16 %v3567_v54, %v3566_v59  ;;  %v9038_v38 = vld [vmem:[%s12076_s23] ss:$12 sps:$4 sm:$0xff]  }
0x148f   :  { %v8778_v15 = vpop.f32.mrf.mxu0  ;;  %v3572_v19 = vld [vmem:[#allocation4 + $0x70] sm:$0xff] }
0x1490   :  { %3280 = vst.msk [vmem:[#allocation4 + $0x90] sm:$0xff] %vm2185_vm12, %v8778_v15 }
0x1491   :  { %v3263_v51 = vpop.f32.mrf.mxu0  ;;  %v3570_v30 = vld [vmem:[#allocation4 + $0x60] sm:$0xff] }
0x1492   :  { %3278 = vst.msk [vmem:[#allocation4 + $0x80] sm:$0xff] %vm2185_vm12, %v3263_v51  ;;  %v3604_v51 = vpack.c.bf16 %v3579_v1, %v3578_v14 }
0x1493   :  { %v8779_v18 = vpop.f32.mrf.mxu0  ;;  %v3573_v49 = vld [vmem:[#allocation4 + $0x78] sm:$0xff] }
0x1494   :  { %3281 = vst.msk [vmem:[#allocation4 + $0x98] sm:$0xff] %vm2185_vm12, %v8779_v18  ;;  %v3601_v58 = vpack.c.bf16 %v3573_v49, %v3572_v19  ;;  %v3563_v18 = vld [vmem:[#allocation4 + $0x28] sm:$0xff]  ;;  %v3562_v49 = vld [vmem:[#allocation4 + $0x20] sm:$0xff] }
0x1495   :  { %v3266_v22 = vpop.f32.mrf.mxu0  ;;  %v3571_v28 = vld [vmem:[#allocation4 + $0x68] sm:$0xff] }
0x1496   :  { %3279 = vst.msk [vmem:[#allocation4 + $0x88] sm:$0xff] %vm2185_vm12, %v3266_v22  ;;  %8546 = vmatpush3.bf16.msra.mxu1 %v3601_v58  ;;  %v3600_v24 = vpack.c.bf16 %v3571_v28, %v3570_v30  ;;  %v3596_v58 = vpack.c.bf16 %v3563_v18, %v3562_v49  ;;  %v9042_v28 = vld [vmem:[%s12076_s23 + $0x20] ss:$12 sps:$4 sm:$0xff]   ;;  %v3560_v30 = vld [vmem:[#allocation4 + $0x10] sm:$0xff] }
0x1497   :  { %v8794_v29 = vpop.f32.mrf.mxu0  ;;  %8547 = vmatprep.subr.bf16.mxu1 %v3608_v27  ;;  %v3576_v13 = vld [vmem:[#allocation4 + $0x90] sm:$0xff]  ;;  %v3561_v27 = vld [vmem:[#allocation4 + $0x18] sm:$0xff] }
0x1498   :  { %3418 = vst.msk [vmem:[#allocation4 + $0xd0] sm:$0xff] %vm2185_vm12, %v8794_v29 }
0x1499   :  { %v3401_v32 = vpop.f32.mrf.mxu0 }
0x149a   :  { %3416 = vst.msk [vmem:[#allocation4 + $0xc0] sm:$0xff] %vm2185_vm12, %v3401_v32  ;;  %8548 = vmatpush3.bf16.msra.mxu1 %v3600_v24  ;;  %v3595_v24 = vpack.c.bf16 %v3561_v27, %v3560_v30  ;;  %v3574_v32 = vld [vmem:[#allocation4 + $0x80] sm:$0xff] }
0x149b   :  { %v8795_v34 = vpop.f32.mrf.mxu0  ;;  %v3577_v19 = vld [vmem:[#allocation4 + $0x98] sm:$0xff] }
0x149c   :  { %3419 = vst.msk [vmem:[#allocation4 + $0xd8] sm:$0xff] %vm2185_vm12, %v8795_v34  ;;  %v3603_v22 = vpack.c.bf16 %v3577_v19, %v3576_v13 }
0x149d   :  { %v3404_v35 = vpop.f32.mrf.mxu0  ;;  %v3575_v29 = vld [vmem:[#allocation4 + $0x88] sm:$0xff] }
0x149e   :  { %3417 = vst.msk [vmem:[#allocation4 + $0xc8] sm:$0xff] %vm2185_vm12, %v3404_v35  ;;  %v3602_v34 = vpack.c.bf16 %v3575_v29, %v3574_v32  ;;  %v3559_v35 = vld [vmem:[#allocation4 + $0x8] sm:$0xff] }
0x149f   :  { %v8810_v10 = vpop.f32.mrf.mxu0  ;;  %v3584_v44 = vld [vmem:[#allocation4 + $0xd0] sm:$0xff] }
0x14a0   :  { %3556 = vst.msk [vmem:[#allocation4 + $0x110] sm:$0xff] %vm2185_vm12, %v8810_v10  ;;  %v3558_v10 = vld [vmem:[#allocation4] sm:$0xff] }
0x14a1   :  { %v3539_v37 = vpop.f32.mrf.mxu0  ;;  %v3582_v50 = vld [vmem:[#allocation4 + $0xc0] sm:$0xff] }
0x14a2   :  { %3554 = vst.msk [vmem:[#allocation4 + $0x100] sm:$0xff] %vm2185_vm12, %v3539_v37  ;;  %v3594_v37 = vpack.c.bf16 %v3559_v35, %v3558_v10 }
0x14a3   :  { %v8811_v42 = vpop.f32.mrf.mxu0  ;;  %v3585_v57 = vld [vmem:[#allocation4 + $0xd8] sm:$0xff] }
0x14a4   :  { %3557 = vst.msk [vmem:[#allocation4 + $0x118] sm:$0xff] %vm2185_vm12, %v8811_v42  ;;  %v3607_v43 = vpack.c.bf16 %v3585_v57, %v3584_v44  ;;  %v9043_v42 = vld [vmem:[%s12076_s23 + $0x1c] ss:$12 sps:$4 sm:$0xff]   ;;  %v9045_v44 = vld [vmem:[%s12076_s23 + $0x18] ss:$12 sps:$4 sm:$0xff]  }
0x14a5   :  { %v3542_v46 = vpop.f32.mrf.mxu0  ;;  %v3583_v62 = vld [vmem:[#allocation4 + $0xc8] sm:$0xff] }
0x14a6   :  { %3555 = vst.msk [vmem:[#allocation4 + $0x108] sm:$0xff] %vm2185_vm12, %v3542_v46  ;;  %8549 = vmatprep.subr.bf16.mxu1 %v3607_v43  ;;  %v3606_v52 = vpack.c.bf16 %v3583_v62, %v3582_v50 }
0x14a7   :  { %8550 = vmatpush3.bf16.msra.mxu1 %v3599_v47  ;;  %v3592_v11 = vld [vmem:[#allocation4 + $0x110] sm:$0xff] }
0x14a8   :  { %8551 = vmatprep.subr.bf16.mxu1 %v3606_v52 }
0x14a9   :  { %v3590_v33 = vld [vmem:[#allocation4 + $0x100] sm:$0xff] }
0x14ab   :  { %8552 = vmatpush3.bf16.msra.mxu1 %v3598_v0  ;;  %v3593_v2 = vld [vmem:[#allocation4 + $0x118] sm:$0xff] }
0x14ac   :  { %8553 = vmatprep.subr.bf16.mxu1 %v3605_v48  ;;  %v3611_v12 = vpack.c.bf16 %v3593_v2, %v3592_v11 }
0x14ad   :  { %v3591_v15 = vld [vmem:[#allocation4 + $0x108] sm:$0xff] }
0x14ae   :  { %8812 = vmatprep.subr.bf16.mxu0 %v3611_v12  ;;  %v3610_v16 = vpack.c.bf16 %v3591_v15, %v3590_v33 }
0x14af   :  { %8554 = vmatpush3.bf16.msra.mxu1 %v3597_v39  ;;  %8813 = vmatpush3.bf16.msra.mxu0 %v3611_v12 }
0x14b0   :  { %8555 = vmatprep.subr.bf16.mxu1 %v3604_v51  ;;  %8814 = vmatprep.subr.bf16.mxu0 %v3610_v16 }
0x14b3   :  { %8556 = vmatpush3.bf16.msra.mxu1 %v3596_v58  ;;  %8815 = vmatpush3.bf16.msra.mxu0 %v3610_v16 }
0x14b4   :  { %8557 = vmatprep.subr.bf16.mxu1 %v3603_v22  ;;  %8820 = vmatprep.subr.bf16.mxu0 %v9334_v36 }
0x14b6   :  { %8817 = vmatmul.mubr.msk.bf16.vlgmr.msra.gmra.mxu0 %vm2185_vm12, %v9042_v28 }
0x14b7   :  { %8558 = vmatpush3.bf16.msra.mxu1 %v3595_v24  ;;  %8824 = vmatprep.mubr.msk.bf16.mxu0 %vm9339_vm10, %v9334_v36 }
0x14b8   :  { %8559 = vmatprep.subr.bf16.mxu1 %v3602_v34 }
0x14bb   :  { %8560 = vmatpush3.bf16.msra.mxu1 %v3594_v37 }
0x14bc   :  { %8852 = vmatprep.subr.bf16.mxu1 %v9334_v36 }
0x14be   :  { %3689 = vmatmul.mubr.bf16.vlgmr.msra.gmra.mxu1 %v9038_v38 }
0x14bf   :  { %3696 = vmatprep.mubr.bf16.mxu1 %v9043_v42 }
0x14c6   :  { %3697 = vmatmul.mubr.bf16.gmra.mxu1 %v9045_v44  ;;  %v3760_v44 = vld [vmem:[%s12032_s18 + $0x60] sm:$0xff] }
0x14c7   :  { %8856 = vmatprep.mubr.msk.bf16.mxu1 %vm9339_vm10, %v9334_v36 }
0x1576   :  { %v8818_v43 = vpop.f32.mrf.mxu0 }
0x1578   :  { %v3739_v47 = vpop.f32.mrf.mxu0 }
0x157a   :  { %v8819_v62 = vpop.f32.mrf.mxu0 }
0x157c   :  { %v3742_v0 = vpop.f32.mrf.mxu0 }
0x157e   :  { %v8561_v57 = vpop.f32.mrf.mxu1 }
0x1580   :  { %v8562_v56 = vpop.f32.mrf.mxu1 }
0x1581   :  { %v8563_v11 = vadd.f32 %v8562_v56, %v8561_v57  ;;  %v3761_v57 = vld [vmem:[%s12032_s18 + $0x68] sm:$0xff] }
0x1582   :  { %v8564_v46 = vpop.f32.mrf.mxu1 }
0x1583   :  { %v3740_v39 = vadd.f32 %v8563_v11, %v3739_v47 }
0x1584   :  { %v8565_v50 = vpop.f32.mrf.mxu1 }
0x1585   :  { %v8566_v53 = vadd.f32 %v8565_v50, %v8564_v46  ;;  %v3762_v15 = vsel %vm2185_vm12, %v3740_v39, 0.0 }
0x1586   :  { %v8567_v52 = vpop.f32.mrf.mxu1 }
0x1587   :  { %v3743_v2 = vadd.f32 %v8566_v53, %v3742_v0 }
0x1588   :  { %v8568_v54 = vpop.f32.mrf.mxu1 }
0x1589   :  { %v8569_v59 = vadd.f32 %v8568_v54, %v8567_v52  ;;  %v3765_v33 = vsel %vm2185_vm12, %v3743_v2, 0.0 }
0x158a   :  { %v8570_v5 = vpop.f32.mrf.mxu1 }
0x158b   :  { %v3748_v48 = vadd.f32 %v8818_v43, %v8569_v59 }
0x158c   :  { %v8571_v40 = vpop.f32.mrf.mxu1 }
0x158d   :  { %v8572_v1 = vadd.f32 %v8571_v40, %v8570_v5  ;;  %v3768_v12 = vsel %vm2185_vm12, %v3748_v48, 0.0 }
0x158e   :  { %3769 = vadd.xlane.f32.xlu1 %v3768_v12 }
0x158f   :  { %v3751_v17 = vadd.f32 %v8819_v62, %v8572_v1 }
0x1591   :  { %v3771_v14 = vsel %vm2185_vm12, %v3751_v17, 0.0 }
0x1592   :  { %3772 = vadd.xlane.f32.xlu0 %v3771_v14  ;;  %3766 = vadd.xlane.f32.xlu1 %v3765_v33 }
0x1596   :  { %3763 = vadd.xlane.f32.xlu0 %v3762_v15 }
0x1617   :  { %v3770_v51 = vpop.xlane.xlu1 %3769 }
0x1618   :  { %v3776_v16 = vmul.f32 0.03125, %v3770_v51 }
0x161a   :  { %v10682_v18 = vsub.f32 %v3748_v48, %v3776_v16  ;;  %v3756_v48 = vld [vmem:[%s12031_s17 + $0x60] sm:$0xff]  ;;  %v3759_v16 = vld [vmem:[%s12032_s18 + $0x58] sm:$0xff] }
0x161b   :  { %v3773_v19 = vpop.xlane.xlu0 %3772  ;;  %v3767_v49 = vpop.xlane.xlu1 %3766 }
0x161c   :  { %v3777_v58 = vmul.f32 0.03125, %v3773_v19  ;;  %v3775_v13 = vmul.f32 0.03125, %v3767_v49  ;;  %v3784_v22 = vmul.f32 %v10682_v18, %v10682_v18  ;;  %v3758_v19 = vld [vmem:[%s12032_s18 + $0x50] sm:$0xff]  ;;  %v4327_v49 = vld [vmem:[%s12077_s27 + $0x8] sm:$0xff] }
0x161e   :  { %v10686_v27 = vsub.f32 %v3751_v17, %v3777_v58  ;;  %v10688_v28 = vsub.f32 %v3743_v2, %v3775_v13  ;;  %v3792_v29 = vsel %vm2185_vm12, %v3784_v22, 0.0  ;;  %v3757_v2 = vld [vmem:[%s12031_s17 + $0x68] sm:$0xff]  ;;  %v3755_v17 = vld [vmem:[%s12031_s17 + $0x58] sm:$0xff]  ;;  %v4326_v58 = vld [vmem:[%s12077_s27] sm:$0xff] }
0x161f   :  { %3793 = vadd.xlane.f32.xlu0 %v3792_v29  ;;  %v3764_v30 = vpop.xlane.xlu0 %3763 }
0x1620   :  { %v3774_v24 = vmul.f32 0.03125, %v3764_v30  ;;  %v3785_v32 = vmul.f32 %v10686_v27, %v10686_v27  ;;  %v3783_v10 = vmul.f32 %v10688_v28, %v10688_v28 }
0x1622   :  { %v10693_v34 = vsub.f32 %v3740_v39, %v3774_v24  ;;  %v3795_v35 = vsel %vm2185_vm12, %v3785_v32, 0.0  ;;  %v3789_v38 = vsel %vm2185_vm12, %v3783_v10, 0.0  ;;  %v3754_v39 = vld [vmem:[%s12031_s17 + $0x50] sm:$0xff] }
0x1623   :  { %3796 = vadd.xlane.f32.xlu1 %v3795_v35 }
0x1624   :  { %v3782_v37 = vmul.f32 %v10693_v34, %v10693_v34 }
0x1626   :  { %v3786_v42 = vsel %vm2185_vm12, %v3782_v37, 0.0 }
0x1627   :  { %3790 = vadd.xlane.f32.xlu1 %v3789_v38  ;;  %3787 = vadd.xlane.f32.xlu0 %v3786_v42 }
0x1638   :  { %3850 = vperm.xlu1 %8936, %v3760_v44  }
0x163d   :  { %3855 = vperm.xlu0 %8935, %v3761_v57  }
0x16a8   :  { %v3794_v43 = vpop.xlane.xlu0 %3793 }
0x16a9   :  { %v3800_v56 = vmul.f32 0.03125, %v3794_v43 }
0x16ab   :  { %v3804_v46 = vadd.f32 1e-05, %v3800_v56 }
0x16ac   :  { %v3797_v47 = vpop.xlane.xlu1 %3796 }
0x16ad   :  { %9279 = vrsqrt.f32 %v3804_v46  ;;  %v3801_v50 = vmul.f32 0.03125, %v3797_v47 }
0x16af   :  { %v3805_v62 = vadd.f32 1e-05, %v3801_v50 }
0x16b0   :  { %v3791_v52 = vpop.xlane.xlu1 %3790  ;;  %v3788_v54 = vpop.xlane.xlu0 %3787 }
0x16b1   :  { %9281 = vrsqrt.f32 %v3805_v62  ;;  %v3799_v53 = vmul.f32 0.03125, %v3791_v52  ;;  %v3798_v59 = vmul.f32 0.03125, %v3788_v54 }
0x16b3   :  { %v3803_v0 = vadd.f32 1e-05, %v3799_v53  ;;  %v3802_v5 = vadd.f32 1e-05, %v3798_v59  ;;  %v10775_v59 = vld [vmem:[%s12034_s20 + $0x6] ss:$0 sm:$0xff] }
0x16b4   :  { %v3851_v22 = vpop.permute.xlu1 %3850 }
0x16b5   :  { %9283 = vrsqrt.f32 %v3803_v0 }
0x16b6   :  { %9285 = vrsqrt.f32 %v3802_v5 }
0x16b8   :  { %v3856_v13 = vpop.permute.xlu0 %3855 }
0x16ba   :  { %v9280_v40 = vpop.eup %9279 }
0x16bb   :  { %v3812_v11 = vmul.f32 %v9280_v40, %v3756_v48 }
0x16bd   :  { %3826 = vperm.xlu0 %8935, %v3812_v11  }
0x16be   :  { %v9282_v1 = vpop.eup %9281 }
0x16bf   :  { %v3813_v12 = vmul.f32 %v9282_v1, %v3757_v2  ;;  %v9048_v2 = vld [vmem:[%s12078_s0 + $0x8] sm:$0xff]   ;;  %v9049_v1 = vld [vmem:[%s12078_s0 + $0x18] sm:$0xff]  }
0x16c1   :  { %3831 = vperm.xlu1 %8936, %v3813_v12   ;;  %v9050_v12 = vld [vmem:[%s12039_s25 + $0x18] sm:$0xff]  }
0x16c2   :  { %v9284_v14 = vpop.eup %9283 }
0x16c3   :  { %v9286_v33 = vpop.eup %9285  ;;  %v3811_v15 = vmul.f32 %v9284_v14, %v3755_v17  ;;  %v9051_v17 = vld [vmem:[%s12039_s25 + $0x10] sm:$0xff]  }
0x16c4   :  { %v3810_v51 = vmul.f32 %v9286_v33, %v3754_v39 }
0x16c5   :  { %3821 = vperm.xlu0 %8935, %v3811_v15  }
0x16c6   :  { %3816 = vperm.xlu1 %8936, %v3810_v51  }
0x16c9   :  { %3845 = vperm.xlu0 %8935, %v3759_v16  }
0x16ca   :  { %3840 = vperm.xlu1 %8936, %v3758_v19  }
0x16cd   :  { %4335 = vperm.xlu0 %8935, %v4327_v49  }
0x16ce   :  { %4330 = vperm.xlu1 %8936, %v4326_v58  }
0x16d1   :  { %4537 = vrot.lane.b32.xlu0 %v10310_v61, %s9335_s22 }
0x16d2   :  { %4535 = vrot.lane.b32.xlu1 %v10302_v55, %s9335_s22 }
0x16d5   :  { %4509 = vrot.lane.b32.xlu0 %v10310_v61, %s9331_s29 }
0x16d6   :  { %4507 = vrot.lane.b32.xlu1 %v10302_v55, %s9331_s29 }
0x16d9   :  { %4494 = vrot.lane.b32.xlu0 %v10310_v61, %s9338_s2 }
0x16da   :  { %4492 = vrot.lane.b32.xlu1 %v10302_v55, %s9338_s2 }
0x16dd   :  { %4479 = vrot.lane.b32.xlu0 %v10310_v61, %s9340_s5 }
0x16de   :  { %4477 = vrot.lane.b32.xlu1 %v10302_v55, %s9340_s5 }
0x16e1   :  { %4464 = vrot.lane.b32.xlu0 %v10310_v61, %s9341_s24 }
0x16e2   :  { %4462 = vrot.lane.b32.xlu1 %v10302_v55, %s9341_s24 }
0x16e5   :  { %4567 = vrot.lane.b32.xlu0 %v10310_v61, %s9336_s9 }
0x16e6   :  { %4565 = vrot.lane.b32.xlu1 %v10302_v55, %s9336_s9 }
0x1738   :  { %v3827_v29 = vpop.permute.xlu0 %3826 }
0x1739   :  { %v3836_v30 = vmul.f32 %v3827_v29, %v10682_v18 }
0x173b   :  { %v3860_v32 = vadd.f32 %v3851_v22, %v3836_v30 }
0x173c   :  { %v3832_v24 = vpop.permute.xlu1 %3831 }
0x173d   :  { %v3837_v35 = vmul.f32 %v3832_v24, %v10686_v27  ;;  %v3864_v38 = vmax.f32 %v3860_v32, 0.0 }
0x173f   :  { %v3861_v10 = vadd.f32 %v3856_v13, %v3837_v35  ;;  %v9052_v35 = vld [vmem:[%s12039_s25 + $0x8] sm:$0xff]  }
0x1740   :  { %v3822_v37 = vpop.permute.xlu0 %3821 }
0x1741   :  { %v3865_v42 = vmax.f32 %v3861_v10, 0.0  ;;  %v3817_v44 = vpop.permute.xlu1 %3816  ;;  %v3835_v43 = vmul.f32 %v3822_v37, %v10688_v28  ;;  %v9046_v28 = vld [vmem:[%s12078_s0] sm:$0xff]  }
0x1742   :  { %v3834_v56 = vmul.f32 %v3817_v44, %v10693_v34  ;;  %v9047_v34 = vld [vmem:[%s12078_s0 + $0x10] sm:$0xff]   ;;  %s12083_s0 = smov 17  }
0x1743   :  { %v3867_v57 = vpack.c.bf16 %v3865_v42, %v3864_v38 }
0x1744   :  { %v3846_v46 = vpop.permute.xlu0 %3845 }
0x1745   :  { %v3841_v47 = vpop.permute.xlu1 %3840  ;;  %v3859_v50 = vadd.f32 %v3846_v46, %v3835_v43  ;;  %8821 = vmatpush3.bf16.msra.mxu0 %v3867_v57  ;;  %8853 = vmatpush3.bf16.msra.mxu1 %v3867_v57  ;;  %v9053_v43 = vld [vmem:[%s12039_s25] sm:$0xff]  }
0x1746   :  { %v3858_v18 = vadd.f32 %v3841_v47, %v3834_v56  ;;  %8822 = vmatprep.subr.bf16.mxu0 %v9334_v36  ;;  %8854 = vmatprep.subr.bf16.mxu1 %v9334_v36  ;;  %v9054_v47 = vld [vmem:[%s12039_s25 + $0x28] sm:$0xff]  }
0x1747   :  { %v3863_v27 = vmax.f32 %v3859_v50, 0.0 }
0x1748   :  { %v3862_v62 = vmax.f32 %v3858_v18, 0.0  ;;  %v10762_v52 = vpop.permute.xlu0 %4335  ;;  %v9055_v18 = vld [vmem:[%s12039_s25 + $0x20] sm:$0xff]  }
0x1749   :  { %v10764_v54 = vpop.permute.xlu1 %4330 }
0x174a   :  { %v3866_v53 = vpack.c.bf16 %v3863_v27, %v3862_v62 }
0x174c   :  { %8823 = vmatpush3.bf16.msra.mxu0 %v3866_v53  ;;  %8855 = vmatpush3.bf16.msra.mxu1 %v3866_v53  ;;  %v4538_v0 = vpop.permute.xlu0 %4537 }
0x174d   :  { %v4536_v5 = vpop.permute.xlu1 %4535  ;;  %8828 = vmatprep.subr.bf16.mxu0 %v9334_v36  ;;  %8868 = vmatprep.subr.bf16.mxu1 %v9334_v36  ;;  %v4547_v40 = vmul.f32 %v10775_v59, %v4538_v0 }
0x174e   :  { %v4546_v48 = vmul.f32 %v10775_v59, %v4536_v5 }
0x174f   :  { %8825 = vmatmul.mubr.msk.bf16.vlgmr.msra.gmra.mxu0 %vm2185_vm12, %v9046_v28  ;;  %8857 = vmatmul.mubr.msk.bf16.vlgmr.msra.gmra.mxu1 %vm2185_vm12, %v9047_v34  ;;  %v10852_v34 = vld [vmem:[%s12034_s20 + $0x8] ss:$0 sm:$0xff] }
0x1750   :  { %8829 = vmatpush3.bf16.msra.mxu0 %v3867_v57  ;;  %8869 = vmatpush3.bf16.msra.mxu1 %v3867_v57  ;;  %v4631_v11 = vpack.c.bf16 %v4547_v40, %v4546_v48  ;;  %v10810_v13 = vpop.permute.xlu0 %4509  ;;  %v9057_v48 = vld [vmem:[%s12039_s25 + $0x30] sm:$0xff]  }
0x1751   :  { %8830 = vmatprep.subr.bf16.mxu0 %v9334_v36  ;;  %8870 = vmatprep.subr.bf16.mxu1 %v9334_v36  ;;  %v10808_v58 = vpop.permute.xlu1 %4507 }
0x1752   :  { %8832 = vmatprep.mubr.msk.bf16.mxu0 %vm9339_vm10, %v9334_v36  ;;  %8872 = vmatprep.mubr.msk.bf16.mxu1 %vm9339_vm10, %v9334_v36 }
0x1754   :  { %8831 = vmatpush3.bf16.msra.mxu0 %v3866_v53  ;;  %8871 = vmatpush3.bf16.msra.mxu1 %v3866_v53  ;;  %v10817_v38 = vpop.permute.xlu0 %4494  ;;  %v9056_v53 = vld [vmem:[%s12039_s25 + $0x38] sm:$0xff]  }
0x1755   :  { %8601 = vmatprep.subr.bf16.mxu1 %v4631_v11  ;;  %8836 = vmatprep.subr.bf16.mxu0 %v9334_v36  ;;  %v10815_v37 = vpop.permute.xlu1 %4492 }
0x1757   :  { %8833 = vmatmul.mubr.msk.bf16.vlgmr.msra.gmra.mxu0 %vm2185_vm12, %v9048_v2  ;;  %8873 = vmatmul.mubr.msk.bf16.vlgmr.msra.gmra.mxu1 %vm2185_vm12, %v9049_v1 }
0x1758   :  { %8840 = vmatprep.mubr.msk.bf16.mxu0 %vm9339_vm10, %v9334_v36  ;;  %8837 = vmatpush3.bf16.msra.mxu0 %v9050_v12  ;;  %v10828_v46 = vpop.permute.xlu0 %4479 }
0x1759   :  { %8838 = vmatprep.subr.bf16.mxu0 %v9334_v36  ;;  %v10826_v56 = vpop.permute.xlu1 %4477 }
0x175c   :  { %8839 = vmatpush3.bf16.msra.mxu0 %v9051_v17  ;;  %v10842_v62 = vpop.permute.xlu0 %4464 }
0x175d   :  { %8844 = vmatprep.subr.bf16.mxu0 %v9334_v36  ;;  %v10840_v27 = vpop.permute.xlu1 %4462 }
0x1760   :  { %v4568_v5 = vpop.permute.xlu0 %4567 }
0x1761   :  { %v4566_v0 = vpop.permute.xlu1 %4565  ;;  %v4577_v11 = vmul.f32 %v10852_v34, %v4568_v5 }
0x1762   :  { %v4576_v40 = vmul.f32 %v10852_v34, %v4566_v0  ;;  %v9299_v0 = vld [vmem:[%s12034_s20 + $0x5] ss:$0 sm:$0xff] }
0x1763   :  { %v4532_v5 = vmul.f32 %v9299_v0, %v10338_v3 }
0x1764   :  { %v4633_v1 = vpack.c.bf16 %v4577_v11, %v4576_v40 }
0x180f   :  { %v3912_v39 = vpop.f32.mrf.mxu0  ;;  %v4139_v14 = vpop.f32.mrf.mxu1 }
0x1811   :  { %v8826_v33 = vpop.f32.mrf.mxu0  ;;  %v8858_v15 = vpop.f32.mrf.mxu1 }
0x1813   :  { %v3915_v51 = vpop.f32.mrf.mxu0  ;;  %v4142_v16 = vpop.f32.mrf.mxu1 }
0x1814   :  { %v3919_v50 = vpack.c.bf16 %v3915_v51, %v3912_v39  ;;  %v4146_v28 = vpack.c.bf16 %v4142_v16, %v4139_v14 }
0x1815   :  { %v8827_v19 = vpop.f32.mrf.mxu0  ;;  %v8859_v49 = vpop.f32.mrf.mxu1 }
0x1817   :  { %v3969_v22 = vpop.f32.mrf.mxu0  ;;  %v4255_v29 = vpop.f32.mrf.mxu1 }
0x1819   :  { %v8834_v30 = vpop.f32.mrf.mxu0  ;;  %v8874_v24 = vpop.f32.mrf.mxu1 }
0x181b   :  { %v3972_v32 = vpop.f32.mrf.mxu0  ;;  %v4258_v10 = vpop.f32.mrf.mxu1 }
0x181c   :  { %v3976_v42 = vpack.c.bf16 %v3972_v32, %v3969_v22  ;;  %v4262_v2 = vpack.c.bf16 %v4258_v10, %v4255_v29 }
0x181d   :  { %v8835_v44 = vpop.f32.mrf.mxu0  ;;  %v8875_v57 = vpop.f32.mrf.mxu1 }
0x181e   :  { %8841 = vmatmul.mubr.msk.bf16.vlgmr.msra.gmra.mxu0 %vm2185_vm12, %v3976_v42 }
0x181f   :  { %8845 = vmatpush3.bf16.msra.mxu0 %v9052_v35  ;;  %8848 = vmatprep.mubr.msk.bf16.mxu0 %vm9339_vm10, %v9334_v36 }
0x1820   :  { %8846 = vmatprep.subr.bf16.mxu0 %v9334_v36 }
0x1823   :  { %8847 = vmatpush3.bf16.msra.mxu0 %v9053_v43 }
0x1824   :  { %8860 = vmatprep.subr.bf16.mxu0 %v9334_v36 }
0x1826   :  { %8849 = vmatmul.mubr.msk.bf16.vlgmr.msra.gmra.mxu0 %vm2185_vm12, %v3919_v50 }
0x1827   :  { %8861 = vmatpush3.bf16.msra.mxu0 %v9054_v47  ;;  %8864 = vmatprep.mubr.msk.bf16.mxu0 %vm9339_vm10, %v9334_v36 }
0x1828   :  { %8862 = vmatprep.subr.bf16.mxu0 %v9334_v36 }
0x182b   :  { %8863 = vmatpush3.bf16.msra.mxu0 %v9055_v18 }
0x182c   :  { %8876 = vmatprep.subr.bf16.mxu0 %v9334_v36 }
0x182e   :  { %8865 = vmatmul.mubr.msk.bf16.vlgmr.msra.gmra.mxu0 %vm2185_vm12, %v4146_v28  ;;  %v10918_v28 = vld [vmem:[%s12034_s20 + $0x7] ss:$0 sm:$0xff] }
0x182f   :  { %8877 = vmatpush3.bf16.msra.mxu0 %v9056_v53  ;;  %8880 = vmatprep.mubr.msk.bf16.mxu0 %vm9339_vm10, %v9334_v36 }
0x1830   :  { %8878 = vmatprep.subr.bf16.mxu0 %v9334_v36 }
0x1833   :  { %8879 = vmatpush3.bf16.msra.mxu0 %v9057_v48 }
0x1834   :  { %8884 = vmatprep.subr.bf16.mxu0 %v9334_v36 }
0x1836   :  { %8881 = vmatmul.mubr.msk.bf16.vlgmr.msra.gmra.mxu0 %vm2185_vm12, %v4262_v2 }
0x1837   :  { %8885 = vmatpush3.bf16.msra.mxu0 %v4633_v1  ;;  %8888 = vmatprep.mubr.msk.bf16.mxu0 %vm9339_vm10, %v9334_v36  ;;  %v4531_v1 = vmul.f32 %v9299_v0, %v10336_v63 }
0x1838   :  { %8886 = vmatprep.subr.bf16.mxu0 %v9334_v36 }
0x18de   :  { %v4031_v12 = vpop.f32.mrf.mxu0 }
0x18e0   :  { %v8842_v17 = vpop.f32.mrf.mxu0 }
0x18e2   :  { %v4034_v39 = vpop.f32.mrf.mxu0 }
0x18e4   :  { %v8843_v14 = vpop.f32.mrf.mxu0 }
0x18e5   :  { %v4630_v14 = vpack.c.bf16 %v4532_v5, %v4531_v1 }
0x18e6   :  { %v4087_v33 = vpop.f32.mrf.mxu0 }
0x18e7   :  { %v4088_v29 = vadd.f32 %v4087_v33, %v4031_v12  ;;  %v10930_v33 = vld [vmem:[%s12034_s20 + $0x3] ss:$0 sm:$0xff] }
0x18e8   :  { %v8850_v15 = vpop.f32.mrf.mxu0 }
0x18ea   :  { %v4090_v51 = vpop.f32.mrf.mxu0 }
0x18eb   :  { %v4091_v35 = vadd.f32 %v4090_v51, %v4034_v39  ;;  %v10937_v51 = vld [vmem:[%s12034_s20 + $0x5] ss:$0 sm:$0xff] }
0x18ec   :  { %v8851_v16 = vpop.f32.mrf.mxu0 }
0x18ed   :  { %v4518_v16 = vmul.f32 %v10930_v33, %v10808_v58 }
0x18ee   :  { %v4201_v19 = vpop.f32.mrf.mxu0 }
0x18ef   :  { %v4208_v24 = vadd.f32 %v4201_v19, %v4088_v29  ;;  %v4519_v19 = vmul.f32 %v10930_v33, %v10810_v13  ;;  %v4629_v29 = vpack.c.bf16 %v10310_v61, %v10302_v55 }
0x18f0   :  { %v8866_v49 = vpop.f32.mrf.mxu0 }
0x18f2   :  { %v4204_v22 = vpop.f32.mrf.mxu0 }
0x18f3   :  { %v4209_v44 = vadd.f32 %v4204_v22, %v4091_v35  ;;  %v4628_v35 = vpack.c.bf16 %v4519_v19, %v4518_v16 }
0x18f4   :  { %v8867_v30 = vpop.f32.mrf.mxu0 }
0x18f5   :  { %v10948_v30 = vld [vmem:[%s12034_s20 + $0x2] ss:$0 sm:$0xff] }
0x18f6   :  { %v4317_v32 = vpop.f32.mrf.mxu0  ;;  %v4503_v13 = vmul.f32 %v10948_v30, %v10815_v37 }
0x18f7   :  { %v4324_v10 = vadd.f32 %v4317_v32, %v4208_v24 }
0x18f8   :  { %v8882_v42 = vpop.f32.mrf.mxu0 }
0x18f9   :  { %v10869_v57 = vadd.f32 %v10764_v54, %v4324_v10  ;;  %v4504_v10 = vmul.f32 %v10948_v30, %v10817_v38  ;;  %v10959_v42 = vld [vmem:[%s12034_s20 + $0x1] ss:$0 sm:$0xff] }
0x18fa   :  { %v4320_v43 = vpop.f32.mrf.mxu0  ;;  %v4489_v37 = vmul.f32 %v10959_v42, %v10828_v46 }
0x18fb   :  { %v4325_v47 = vadd.f32 %v4320_v43, %v4209_v44  ;;  %4432 = vrot.lane.b32.xlu1 %v10869_v57, %s9337_s30  ;;  %v4627_v43 = vpack.c.bf16 %v4504_v10, %v4503_v13 }
0x18fc   :  { %v8883_v50 = vpop.f32.mrf.mxu0 }
0x18fd   :  { %v10874_v18 = vadd.f32 %v10762_v52, %v4325_v47  ;;  %v9060_v52 = vld [vmem:[%s12079_s10 + $0x4] ss:$12 sps:$4 sm:$0xff]   ;;  %v4488_v47 = vmul.f32 %v10959_v42, %v10826_v56 }
0x18fe   :  { %4688 = vmatprep.mubr.bf16.mxu1 %v9060_v52  ;;  %v10969_v52 = vld [vmem:[%s12034_s20] ss:$0 sm:$0xff]  ;;  %s12080_s20 = sld [smem:[#allocation18_spill]] }
0x18ff   :  { %4417 = vrot.lane.b32.xlu1 %v10869_v57, %s9335_s22  ;;  %4434 = vrot.lane.b32.xlu0 %v10874_v18, %s9337_s30  ;;  %v4620_v53 = vpack.c.bf16 %v10874_v18, %v10869_v57  ;;  %v4626_v5 = vpack.c.bf16 %v4489_v37, %v4488_v47  ;;  %v4473_v46 = vmul.f32 %v10969_v52, %v10840_v27 }
0x1903   :  { %4402 = vrot.lane.b32.xlu1 %v10869_v57, %s9329_s28  ;;  %4419 = vrot.lane.b32.xlu0 %v10874_v18, %s9335_s22 }
0x1907   :  { %4385 = vrot.lane.b32.xlu1 %v10869_v57, %s9331_s29  ;;  %4404 = vrot.lane.b32.xlu0 %v10874_v18, %s9329_s28 }
0x190b   :  { %4370 = vrot.lane.b32.xlu1 %v10869_v57, %s9338_s2  ;;  %4387 = vrot.lane.b32.xlu0 %v10874_v18, %s9331_s29 }
0x190f   :  { %4355 = vrot.lane.b32.xlu1 %v10869_v57, %s9340_s5  ;;  %4372 = vrot.lane.b32.xlu0 %v10874_v18, %s9338_s2 }
0x1913   :  { %4447 = vrot.lane.b32.xlu1 %v10869_v57, %s9336_s9  ;;  %4357 = vrot.lane.b32.xlu0 %v10874_v18, %s9340_s5 }
0x1917   :  { %4340 = vrot.lane.b32.xlu1 %v10869_v57, %s9341_s24  ;;  %4449 = vrot.lane.b32.xlu0 %v10874_v18, %s9336_s9 }
0x191b   :  { %4550 = vrot.lane.b32.xlu1 %v10302_v55, %s9337_s30  ;;  %4342 = vrot.lane.b32.xlu0 %v10874_v18, %s9341_s24 }
0x191f   :  { %4552 = vrot.lane.b32.xlu0 %v10310_v61, %s9337_s30 }
0x196d   :  { %v4433_v54 = vpop.permute.xlu1 %4432 }
0x196e   :  { %v4443_v11 = vmul.f32 %v10918_v28, %v4433_v54 }
0x1971   :  { %v4418_v48 = vpop.permute.xlu1 %4417  ;;  %v4435_v40 = vpop.permute.xlu0 %4434 }
0x1972   :  { %v4444_v2 = vmul.f32 %v10918_v28, %v4435_v40  ;;  %v4428_v15 = vmul.f32 %v10775_v59, %v4418_v48  ;;  %v4474_v48 = vmul.f32 %v10969_v52, %v10842_v62 }
0x1974   :  { %v4623_v12 = vpack.c.bf16 %v4444_v2, %v4443_v11  ;;  %v4625_v18 = vpack.c.bf16 %v4474_v48, %v4473_v46 }
0x1975   :  { %v4403_v17 = vpop.permute.xlu1 %4402  ;;  %v4420_v39 = vpop.permute.xlu0 %4419 }
0x1976   :  { %v4429_v3 = vmul.f32 %v10775_v59, %v4420_v39  ;;  %8602 = vmatpush3.bf16.msra.mxu1 %v4623_v12  ;;  %v4413_v24 = vmul.f32 %v10937_v51, %v4403_v17 }
0x1977   :  { %8603 = vmatprep.subr.bf16.mxu1 %v4630_v14 }
0x1978   :  { %v4622_v63 = vpack.c.bf16 %v4429_v3, %v4428_v15 }
0x1979   :  { %v4386_v49 = vpop.permute.xlu1 %4385  ;;  %v4405_v22 = vpop.permute.xlu0 %4404 }
0x197a   :  { %v4414_v32 = vmul.f32 %v10937_v51, %v4405_v22  ;;  %8604 = vmatpush3.bf16.msra.mxu1 %v4622_v63  ;;  %v4396_v54 = vmul.f32 %v10930_v33, %v4386_v49  ;;  %v9058_v22 = vld [vmem:[%s12079_s10] ss:$12 sps:$4 sm:$0xff]  }
0x197b   :  { %8605 = vmatprep.subr.bf16.mxu1 %v4629_v29 }
0x197c   :  { %v4621_v58 = vpack.c.bf16 %v4414_v32, %v4413_v24 }
0x197d   :  { %v4371_v55 = vpop.permute.xlu1 %4370  ;;  %v4388_v61 = vpop.permute.xlu0 %4387 }
0x197e   :  { %8606 = vmatpush3.bf16.msra.mxu1 %v4621_v58  ;;  %v4397_v44 = vmul.f32 %v10930_v33, %v4388_v61  ;;  %v4381_v2 = vmul.f32 %v10948_v30, %v4371_v55  ;;  %v9061_v58 = vld [vmem:[%s12079_s10 + $0x8] ss:$12 sps:$4 sm:$0xff]  }
0x197f   :  { %8607 = vmatprep.subr.bf16.mxu1 %v4628_v35 }
0x1980   :  { %v4619_v0 = vpack.c.bf16 %v4397_v44, %v4396_v54 }
0x1981   :  { %v4356_v50 = vpop.permute.xlu1 %4355  ;;  %v4373_v38 = vpop.permute.xlu0 %4372 }
0x1982   :  { %8608 = vmatpush3.bf16.msra.mxu1 %v4620_v53  ;;  %v4382_v56 = vmul.f32 %v10948_v30, %v4373_v38  ;;  %v4366_v17 = vmul.f32 %v10959_v42, %v4356_v50 }
0x1983   :  { %8609 = vmatprep.subr.bf16.mxu1 %v4627_v43 }
0x1984   :  { %v4618_v1 = vpack.c.bf16 %v4382_v56, %v4381_v2 }
0x1985   :  { %v4448_v40 = vpop.permute.xlu1 %4447  ;;  %v4358_v11 = vpop.permute.xlu0 %4357 }
0x1986   :  { %8610 = vmatpush3.bf16.msra.mxu1 %v4619_v0  ;;  %v4367_v57 = vmul.f32 %v10959_v42, %v4358_v11  ;;  %v4458_v39 = vmul.f32 %v10852_v34, %v4448_v40 }
0x1987   :  { %8611 = vmatprep.subr.bf16.mxu1 %v4626_v5 }
0x1988   :  { %v4617_v62 = vpack.c.bf16 %v4367_v57, %v4366_v17 }
0x1989   :  { %v4341_v53 = vpop.permute.xlu1 %4340  ;;  %v4450_v12 = vpop.permute.xlu0 %4449 }
0x198a   :  { %v4459_v27 = vmul.f32 %v10852_v34, %v4450_v12  ;;  %8612 = vmatpush3.bf16.msra.mxu1 %v4618_v1  ;;  %v4351_v3 = vmul.f32 %v10969_v52, %v4341_v53 }
0x198b   :  { %8613 = vmatprep.subr.bf16.mxu1 %v4625_v18 }
0x198c   :  { %v4624_v14 = vpack.c.bf16 %v4459_v27, %v4458_v39  ;;  %v4738_v39 = vld [vmem:[%s12031_s17 + $0x70] sm:$0xff] }
0x198d   :  { %v4343_v15 = vpop.permute.xlu0 %4342  ;;  %v4551_v16 = vpop.permute.xlu1 %4550 }
0x198e   :  { %v4352_v63 = vmul.f32 %v10969_v52, %v4343_v15  ;;  %8614 = vmatpush3.bf16.msra.mxu1 %v4617_v62  ;;  %v4561_v29 = vmul.f32 %v10918_v28, %v4551_v16  ;;  %v4740_v16 = vld [vmem:[%s12032_s18 + $0x70] sm:$0xff] }
0x198f   :  { %8615 = vmatprep.subr.bf16.mxu1 %v4624_v14  ;;  %v4739_v14 = vld [vmem:[%s12031_s17 + $0x78] sm:$0xff] }
0x1990   :  { %v4616_v19 = vpack.c.bf16 %v4352_v63, %v4351_v3  ;;  %v4741_v3 = vld [vmem:[%s12032_s18 + $0x78] sm:$0xff] }
0x1991   :  { %v4553_v49 = vpop.permute.xlu0 %4552 }
0x1992   :  { %v4562_v24 = vmul.f32 %v10918_v28, %v4553_v49  ;;  %8616 = vmatpush3.bf16.msra.mxu1 %v4616_v19 }
0x1993   :  { %8892 = vmatprep.subr.bf16.mxu1 %v9334_v36 }
0x1994   :  { %v4632_v32 = vpack.c.bf16 %v4562_v24, %v4561_v29 }
0x1995   :  { %4689 = vmatmul.mubr.bf16.vlgmr.msra.gmra.mxu1 %v9058_v22 }
0x1996   :  { %8887 = vmatpush3.bf16.msra.mxu0 %v4632_v32  ;;  %8894 = vmatprep.mubr.msk.bf16.mxu1 %vm9339_vm10, %v9334_v36 }
0x1997   :  { %4953 = vmatprep.subr.bf16.mxu0 %v9333_v4 }
0x1999   :  { %8889 = vmatmul.mubr.msk.bf16.vlgmr.msra.gmra.mxu0 %vm2185_vm12, %v9061_v58 }
0x1a55   :  { %v8617_v35 = vpop.f32.mrf.mxu1 }
0x1a57   :  { %v8618_v13 = vpop.f32.mrf.mxu1 }
0x1a58   :  { %v8619_v10 = vadd.f32 %v8618_v13, %v8617_v35 }
0x1a59   :  { %v8620_v55 = vpop.f32.mrf.mxu1  ;;  %v4731_v61 = vpop.f32.mrf.mxu0 }
0x1a5a   :  { %v4732_v44 = vadd.f32 %v8619_v10, %v4731_v61  ;;  %v9062_v61 = vld [vmem:[%s12080_s20 + $0x4] ss:$8 sps:$4 sm:$0xff]  }
0x1a5b   :  { %v8621_v43 = vpop.f32.mrf.mxu1  ;;  %v8890_v47 = vpop.f32.mrf.mxu0  ;;  %8254 = vmatprep.mubr.msk.bf16.mxu0 %vm1953_vm11, %v9062_v61 }
0x1a5c   :  { %v8622_v37 = vadd.f32 %v8621_v43, %v8620_v55  ;;  %4742 = vadd.xlane.f32.xlu1 %v4732_v44 }
0x1a5d   :  { %v4734_v50 = vpop.f32.mrf.mxu0 }
0x1a5e   :  { %v4735_v38 = vadd.f32 %v8622_v37, %v4734_v50 }
0x1a5f   :  { %v8891_v54 = vpop.f32.mrf.mxu0 }
0x1a60   :  { %4744 = vadd.xlane.f32.xlu0 %v4735_v38 }
0x1ae5   :  { %v4743_v0 = vpop.xlane.xlu1 %4742 }
0x1ae6   :  { %v4746_v56 = vmul.f32 0.0078125, %v4743_v0 }
0x1ae8   :  { %v4748_v5 = vsub.f32 %v4732_v44, %v4746_v56 }
0x1ae9   :  { %v4745_v46 = vpop.xlane.xlu0 %4744 }
0x1aea   :  { %v4747_v48 = vmul.f32 0.0078125, %v4745_v46  ;;  %v4750_v40 = vmul.f32 %v4748_v5, %v4748_v5 }
0x1aec   :  { %v4749_v11 = vsub.f32 %v4735_v38, %v4747_v48  ;;  %4752 = vadd.xlane.f32.xlu0 %v4750_v40 }
0x1aee   :  { %v4751_v2 = vmul.f32 %v4749_v11, %v4749_v11 }
0x1af0   :  { %4754 = vadd.xlane.f32.xlu1 %v4751_v2 }
0x1b75   :  { %v4753_v1 = vpop.xlane.xlu0 %4752 }
0x1b76   :  { %v4756_v57 = vmul.f32 0.0078125, %v4753_v1 }
0x1b78   :  { %v4758_v18 = vadd.f32 1e-05, %v4756_v57 }
0x1b79   :  { %v4755_v53 = vpop.xlane.xlu1 %4754 }
0x1b7a   :  { %9287 = vrsqrt.f32 %v4758_v18  ;;  %v4757_v12 = vmul.f32 0.0078125, %v4755_v53 }
0x1b7c   :  { %v4759_v17 = vadd.f32 1e-05, %v4757_v12 }
0x1b7e   :  { %9289 = vrsqrt.f32 %v4759_v17 }
0x1b87   :  { %v9288_v27 = vpop.eup %9287 }
0x1b88   :  { %v4762_v62 = vmul.f32 %v9288_v27, %v4738_v39 }
0x1b8a   :  { %4766 = vperm.xlu0 %8935, %v4762_v62  }
0x1b8b   :  { %v9290_v15 = vpop.eup %9289 }
0x1b8c   :  { %v4763_v63 = vmul.f32 %v9290_v15, %v4739_v14 }
0x1b8e   :  { %4771 = vperm.xlu1 %8936, %v4763_v63   ;;  %4783 = vperm.xlu0 %8935, %v4741_v3  }
0x1b92   :  { %4778 = vperm.xlu1 %8936, %v4740_v16  }
0x1c05   :  { %v4767_v19 = vpop.permute.xlu0 %4766 }
0x1c06   :  { %v4774_v24 = vmul.f32 %v4767_v19, %v4748_v5 }
0x1c09   :  { %v4772_v49 = vpop.permute.xlu1 %4771  ;;  %v4784_v29 = vpop.permute.xlu0 %4783 }
0x1c0a   :  { %v4775_v22 = vmul.f32 %v4772_v49, %v4749_v11 }
0x1c0c   :  { %v4787_v32 = vadd.f32 %v4784_v29, %v4775_v22 }
0x1c0d   :  { %v4779_v58 = vpop.permute.xlu1 %4778 }
0x1c0e   :  { %v4789_v35 = vmax.f32 %v4787_v32, 0.0  ;;  %v4786_v13 = vadd.f32 %v4779_v58, %v4774_v24  ;;  %v9064_v32 = vld [vmem:[%s12080_s20] ss:$8 sps:$4 sm:$0xff]  }
0x1c10   :  { %v4788_v10 = vmax.f32 %v4786_v13, 0.0  ;;  %4884 = vrot.lane.b32.xlu0 %v4789_v35, %s9337_s30 }
0x1c12   :  { %4882 = vrot.lane.b32.xlu1 %v4788_v10, %s9337_s30  ;;  %v4934_v55 = vpack.c.bf16 %v4789_v35, %v4788_v10  ;;  %s12085_s30 = smov 111  }
0x1c14   :  { %4869 = vrot.lane.b32.xlu0 %v4789_v35, %s9335_s22 }
0x1c16   :  { %4867 = vrot.lane.b32.xlu1 %v4788_v10, %s9335_s22 }
0x1c18   :  { %4854 = vrot.lane.b32.xlu0 %v4789_v35, %s9329_s28 }
0x1c1a   :  { %4852 = vrot.lane.b32.xlu1 %v4788_v10, %s9329_s28 }
0x1c1c   :  { %4837 = vrot.lane.b32.xlu0 %v4789_v35, %s9331_s29 }
0x1c1e   :  { %4835 = vrot.lane.b32.xlu1 %v4788_v10, %s9331_s29 }
0x1c20   :  { %4822 = vrot.lane.b32.xlu0 %v4789_v35, %s9338_s2 }
0x1c22   :  { %4820 = vrot.lane.b32.xlu1 %v4788_v10, %s9338_s2 }
0x1c24   :  { %4807 = vrot.lane.b32.xlu0 %v4789_v35, %s9340_s5 }
0x1c26   :  { %4805 = vrot.lane.b32.xlu1 %v4788_v10, %s9340_s5 }
0x1c28   :  { %4792 = vrot.lane.b32.xlu0 %v4789_v35, %s9341_s24 }
0x1c2a   :  { %4790 = vrot.lane.b32.xlu1 %v4788_v10, %s9341_s24 }
0x1c2c   :  { %4899 = vrot.lane.b32.xlu0 %v4789_v35, %s9336_s9 }
0x1c2e   :  { %4897 = vrot.lane.b32.xlu1 %v4788_v10, %s9336_s9 }
0x1c82   :  { %v4885_v44 = vpop.permute.xlu0 %4884 }
0x1c83   :  { %v4894_v47 = vmul.f32 %v10918_v28, %v4885_v44 }
0x1c84   :  { %v4883_v43 = vpop.permute.xlu1 %4882 }
0x1c85   :  { %v4893_v37 = vmul.f32 %v10918_v28, %v4883_v43 }
0x1c86   :  { %v4870_v50 = vpop.permute.xlu0 %4869 }
0x1c87   :  { %v4937_v38 = vpack.c.bf16 %v4894_v47, %v4893_v37  ;;  %v4879_v0 = vmul.f32 %v10775_v59, %v4870_v50 }
0x1c88   :  { %v4868_v54 = vpop.permute.xlu1 %4867 }
0x1c89   :  { %v4878_v56 = vmul.f32 %v10775_v59, %v4868_v54  ;;  %4954 = vmatpush1.bf16.msra.mxu0 %v4937_v38 }
0x1c8a   :  { %v4855_v5 = vpop.permute.xlu0 %4854  ;;  %4955 = vmatprep.subr.bf16.mxu0 %v9333_v4 }
0x1c8b   :  { %v4936_v46 = vpack.c.bf16 %v4879_v0, %v4878_v56  ;;  %v4864_v40 = vmul.f32 %v10937_v51, %v4855_v5 }
0x1c8c   :  { %v4853_v48 = vpop.permute.xlu1 %4852 }
0x1c8d   :  { %v4863_v11 = vmul.f32 %v10937_v51, %v4853_v48  ;;  %4956 = vmatpush1.bf16.msra.mxu0 %v4936_v46  ;;  %v4994_v46 = vld [vmem:[%s12031_s17 + $0x80] sm:$0xff] }
0x1c8e   :  { %v4838_v2 = vpop.permute.xlu0 %4837  ;;  %4957 = vmatprep.subr.bf16.mxu0 %v9333_v4 }
0x1c8f   :  { %v4935_v28 = vpack.c.bf16 %v4864_v40, %v4863_v11  ;;  %v4847_v53 = vmul.f32 %v10930_v33, %v4838_v2  ;;  %v4995_v11 = vld [vmem:[%s12031_s17 + $0x88] sm:$0xff] }
0x1c90   :  { %v4836_v1 = vpop.permute.xlu1 %4835 }
0x1c91   :  { %4958 = vmatpush1.bf16.msra.mxu0 %v4935_v28  ;;  %v4846_v59 = vmul.f32 %v10930_v33, %v4836_v1  ;;  %v4997_v28 = vld [vmem:[%s12032_s18 + $0x88] sm:$0xff] }
0x1c92   :  { %v4823_v57 = vpop.permute.xlu0 %4822  ;;  %4959 = vmatprep.subr.bf16.mxu0 %v9333_v4 }
0x1c93   :  { %v4933_v51 = vpack.c.bf16 %v4847_v53, %v4846_v59  ;;  %v4832_v27 = vmul.f32 %v10948_v30, %v4823_v57  ;;  %v4996_v57 = vld [vmem:[%s12032_s18 + $0x80] sm:$0xff] }
0x1c94   :  { %v4821_v18 = vpop.permute.xlu1 %4820  ;;  %v6337_v59 = vld [vmem:[%s12026_s12] sm:$0xff]  ;;  %s12081_s12 = smov 16  }
0x1c95   :  { %4960 = vmatpush1.bf16.msra.mxu0 %v4934_v55  ;;  %v4831_v17 = vmul.f32 %v10948_v30, %v4821_v18  ;;  %v9065_v18 = vld [vmem:[#allocation5 + $0x1e0] ss:$16 sps:$4 sm:$0xff]   ;;  %v9067_v53 = vld [vmem:[#allocation5 + $0x1e4] ss:$16 sps:$4 sm:$0xff]  }
0x1c96   :  { %v4808_v12 = vpop.permute.xlu0 %4807  ;;  %4961 = vmatprep.subr.bf16.mxu0 %v9333_v4 }
0x1c97   :  { %v4932_v62 = vpack.c.bf16 %v4832_v27, %v4831_v17  ;;  %v4817_v33 = vmul.f32 %v10959_v42, %v4808_v12  ;;  %v9073_v12 = vld [vmem:[#allocation5 + $0x1c4] ss:$16 sps:$4 sm:$0xff]  }
0x1c98   :  { %v4806_v39 = vpop.permute.xlu1 %4805  ;;  %v9079_v17 = vld [vmem:[#allocation5 + $0x1a4] ss:$16 sps:$4 sm:$0xff]  }
0x1c99   :  { %4962 = vmatpush1.bf16.msra.mxu0 %v4933_v51  ;;  %v4816_v14 = vmul.f32 %v10959_v42, %v4806_v39  ;;  %v9071_v51 = vld [vmem:[#allocation5 + $0x1c0] ss:$16 sps:$4 sm:$0xff]   ;;  %v9085_v27 = vld [vmem:[#allocation5 + $0x184] ss:$16 sps:$4 sm:$0xff]  }
0x1c9a   :  { %4963 = vmatprep.subr.bf16.mxu0 %v9333_v4  ;;  %v4793_v15 = vpop.permute.xlu0 %4792  ;;  %v9077_v39 = vld [vmem:[#allocation5 + $0x1a0] ss:$16 sps:$4 sm:$0xff]  }
0x1c9b   :  { %v4931_v63 = vpack.c.bf16 %v4817_v33, %v4816_v14  ;;  %v4802_v49 = vmul.f32 %v10969_v52, %v4793_v15  ;;  %v9091_v14 = vld [vmem:[#allocation5 + $0x164] ss:$16 sps:$4 sm:$0xff]   ;;  %v9089_v15 = vld [vmem:[#allocation5 + $0x160] ss:$16 sps:$4 sm:$0xff]  }
0x1c9c   :  { %v4791_v3 = vpop.permute.xlu1 %4790  ;;  %v9095_v33 = vld [vmem:[#allocation5 + $0x140] ss:$16 sps:$4 sm:$0xff]  }
0x1c9d   :  { %4964 = vmatpush1.bf16.msra.mxu0 %v4932_v62  ;;  %v4801_v16 = vmul.f32 %v10969_v52, %v4791_v3  ;;  %v9083_v62 = vld [vmem:[#allocation5 + $0x180] ss:$16 sps:$4 sm:$0xff]   ;;  %v9097_v3 = vld [vmem:[#allocation5 + $0x144] ss:$16 sps:$4 sm:$0xff]  }
0x1c9e   :  { %4965 = vmatprep.subr.bf16.mxu0 %v9333_v4  ;;  %v4900_v30 = vpop.permute.xlu0 %4899 }
0x1c9f   :  { %v4930_v22 = vpack.c.bf16 %v4802_v49, %v4801_v16  ;;  %v4909_v24 = vmul.f32 %v10852_v34, %v4900_v30 }
0x1ca0   :  { %v4898_v19 = vpop.permute.xlu1 %4897 }
0x1ca1   :  { %4966 = vmatpush1.bf16.msra.mxu0 %v4931_v63  ;;  %v4908_v29 = vmul.f32 %v10852_v34, %v4898_v19 }
0x1ca2   :  { %4967 = vmatprep.subr.bf16.mxu0 %v9333_v4 }
0x1ca3   :  { %v4938_v42 = vpack.c.bf16 %v4909_v24, %v4908_v29  ;;  %v11136_v29 = vld [vmem:[%s12033_s19 + $0x18] sm:$0xf] }
0x1ca5   :  { %4968 = vmatpush1.bf16.msra.mxu0 %v4930_v22 }
0x1ca6   :  { %4983 = vmatprep.subr.bf16.mxu0 %v9333_v4 }
0x1ca9   :  { %4984 = vmatpush2.bf16.msra.mxu0 %v4938_v42 }
0x1caa   :  { %5363 = vmatprep.subr.bf16.mxu0 %v9067_v53 }
0x1cac   :  { %4986 = vmatmul.mubr.bf16.vlgmr.msra.gmra.mxu0 %v9064_v32 }
0x1cad   :  { %5395 = vmatprep.mubr.bf16.mxu0 %v9333_v4  ;;  %5364 = vmatpush1.bf16.msra.mxu0 %v9065_v18  ;;  %v9080_v18 = vld [vmem:[#allocation5 + $0x1a8] ss:$16 sps:$4 sm:$0xff]  }
0x1cae   :  { %5365 = vmatprep.subr.bf16.mxu0 %v9073_v12 }
0x1cb1   :  { %5366 = vmatpush1.bf16.msra.mxu0 %v9071_v51  ;;  %v9088_v51 = vld [vmem:[#allocation5 + $0x18c] ss:$16 sps:$4 sm:$0xff]  }
0x1cb2   :  { %5367 = vmatprep.subr.bf16.mxu0 %v9079_v17  ;;  %v9086_v17 = vld [vmem:[#allocation5 + $0x188] ss:$16 sps:$4 sm:$0xff]  }
0x1cb5   :  { %5368 = vmatpush1.bf16.msra.mxu0 %v9077_v39 }
0x1cb6   :  { %5369 = vmatprep.subr.bf16.mxu0 %v9085_v27  ;;  %v9094_v27 = vld [vmem:[#allocation5 + $0x16c] ss:$16 sps:$4 sm:$0xff]  }
0x1cb9   :  { %5370 = vmatpush1.bf16.msra.mxu0 %v9083_v62 }
0x1cba   :  { %5371 = vmatprep.subr.bf16.mxu0 %v9091_v14  ;;  %v9092_v14 = vld [vmem:[#allocation5 + $0x168] ss:$16 sps:$4 sm:$0xff]  }
0x1cbd   :  { %5372 = vmatpush1.bf16.msra.mxu0 %v9089_v15 }
0x1cbe   :  { %5373 = vmatprep.subr.bf16.mxu0 %v9097_v3  ;;  %v9100_v3 = vld [vmem:[#allocation5 + $0x14c] ss:$16 sps:$4 sm:$0xff]  }
0x1cc1   :  { %5374 = vmatpush1.bf16.msra.mxu0 %v9095_v33  ;;  %v9098_v33 = vld [vmem:[#allocation5 + $0x148] ss:$16 sps:$4 sm:$0xff]  }
0x1d6c   :  { %v4987_v52 = vpop.f32.mrf.mxu0 }
0x1d6d   :  { %4998 = vadd.xlane.f32.xlu1 %v4987_v52 }
0x1d6e   :  { %v4989_v58 = vpop.f32.mrf.mxu0 }
0x1d70   :  { %v4990_v35 = vpop.f32.mrf.mxu0 }
0x1d71   :  { %5000 = vadd.xlane.f32.xlu0 %v4990_v35 }
0x1d72   :  { %v4992_v13 = vpop.f32.mrf.mxu0 }
0x1df6   :  { %v4999_v10 = vpop.xlane.xlu1 %4998 }
0x1df7   :  { %v5002_v34 = vmul.f32 0.0078125, %v4999_v10 }
0x1df9   :  { %v11060_v55 = vsub.f32 %v4987_v52, %v5002_v34  ;;  %v6906_v52 = vrot.slane %v11136_v29, %v9573_v9 }
0x1dfa   :  { %v5001_v61 = vpop.xlane.xlu0 %5000 }
0x1dfb   :  { %v5003_v44 = vmul.f32 0.0078125, %v5001_v61  ;;  %v5006_v43 = vmul.f32 %v11060_v55, %v11060_v55 }
0x1dfd   :  { %v11064_v47 = vsub.f32 %v4990_v35, %v5003_v44  ;;  %5008 = vadd.xlane.f32.xlu0 %v5006_v43  ;;  %v5047_v44 = vld [vmem:[%s12025_s11] sm:$0xf] }
0x1dff   :  { %v5007_v37 = vmul.f32 %v11064_v47, %v11064_v47 }
0x1e01   :  { %5010 = vadd.xlane.f32.xlu1 %v5007_v37 }
0x1e86   :  { %v5009_v50 = vpop.xlane.xlu0 %5008 }
0x1e87   :  { %v5012_v38 = vmul.f32 0.0078125, %v5009_v50  ;;  %v9070_v50 = vld [vmem:[#allocation5 + $0x1ec] ss:$16 sps:$4 sm:$0xff]  }
0x1e89   :  { %v5014_v54 = vadd.f32 1e-05, %v5012_v38 }
0x1e8a   :  { %v5011_v0 = vpop.xlane.xlu1 %5010 }
0x1e8b   :  { %9291 = vrsqrt.f32 %v5014_v54  ;;  %v5013_v56 = vmul.f32 0.0078125, %v5011_v0  ;;  %v6914_v0 = vrot.slane %v11136_v29, %v9590_v20 }
0x1e8d   :  { %v5015_v5 = vadd.f32 1e-05, %v5013_v56  ;;  %v8256_v56 = vld [vmem:[%s12025_s11 + $0x4] sm:$0xf] }
0x1e8f   :  { %9293 = vrsqrt.f32 %v5015_v5  ;;  %v9068_v5 = vld [vmem:[#allocation5 + $0x1e8] ss:$16 sps:$4 sm:$0xff]  }
0x1e98   :  { %v9292_v48 = vpop.eup %9291 }
0x1e99   :  { %v5018_v40 = vmul.f32 %v9292_v48, %v4994_v46  ;;  %v9076_v48 = vld [vmem:[#allocation5 + $0x1cc] ss:$16 sps:$4 sm:$0xff]  }
0x1e9b   :  { %5022 = vperm.xlu0 %8935, %v5018_v40  }
0x1e9c   :  { %v9294_v2 = vpop.eup %9293 }
0x1e9d   :  { %v5019_v1 = vmul.f32 %v9294_v2, %v4995_v11 }
0x1e9f   :  { %5027 = vperm.xlu1 %8936, %v5019_v1   ;;  %5039 = vperm.xlu0 %8935, %v4997_v28   ;;  %v9074_v28 = vld [vmem:[#allocation5 + $0x1c8] ss:$16 sps:$4 sm:$0xff]  }
0x1ea3   :  { %5034 = vperm.xlu1 %8936, %v4996_v57   ;;  %6891 = vrot.lane.b32.xlu0 %v10021_v25, %s9327_s1 }
0x1ea7   :  { %6340 = vperm.xlu1 %8936, %v6337_v59   ;;  %6889 = vrot.lane.b32.xlu0 %v10019_v23, %s9327_s1  ;;  %v9082_v59 = vld [vmem:[#allocation5 + $0x1ac] ss:$16 sps:$4 sm:$0xff]  }
0x1eab   :  { %6893 = vrot.lane.b32.xlu1 %v10039_v26, %s9327_s1  ;;  %6815 = vrot.lane.b32.xlu0 %v10021_v25, %s9331_s29 }
0x1eaf   :  { %6813 = vrot.lane.b32.xlu1 %v10019_v23, %s9331_s29  ;;  %6819 = vrot.lane.b32.xlu0 %v10041_v31, %s9331_s29 }
0x1eb3   :  { %6895 = vrot.lane.b32.xlu1 %v10041_v31, %s9327_s1  ;;  %6731 = vrot.lane.b32.xlu0 %v10021_v25, %s12081_s12 }
0x1eb7   :  { %6729 = vrot.lane.b32.xlu1 %v10019_v23, %s12081_s12  ;;  %6773 = vrot.lane.b32.xlu0 %v10021_v25, %s12082_s7 }
0x1ebb   :  { %6771 = vrot.lane.b32.xlu1 %v10019_v23, %s12082_s7  ;;  %6735 = vrot.lane.b32.xlu0 %v10041_v31, %s12081_s12 }
0x1ebf   :  { %6817 = vrot.lane.b32.xlu1 %v10039_v26, %s9331_s29  ;;  %6687 = vrot.lane.b32.xlu0 %v10019_v23, %s12083_s0 }
0x1ec3   :  { %6777 = vrot.lane.b32.xlu1 %v10041_v31, %s12082_s7  ;;  %6733 = vrot.lane.b32.xlu0 %v10039_v26, %s12081_s12 }
0x1ec7   :  { %6689 = vrot.lane.b32.xlu1 %v10021_v25, %s12083_s0  ;;  %6933 = vrot.lane.b32.xlu0 %v10021_v25, %s12084_s8 }
0x1ecb   :  { %6775 = vrot.lane.b32.xlu1 %v10039_v26, %s12082_s7  ;;  %6975 = vrot.lane.b32.xlu0 %v10021_v25, %s12085_s30 }
0x1ecf   :  { %6693 = vrot.lane.b32.xlu1 %v10041_v31, %s12083_s0 }
0x1ed3   :  { %6691 = vrot.lane.b32.xlu1 %v10039_v26, %s12083_s0 }
0x1ed7   :  { %6935 = vrot.lane.b32.xlu1 %v10039_v26, %s12084_s8 }
0x1edb   :  { %6977 = vrot.lane.b32.xlu1 %v10039_v26, %s12085_s30 }
0x1f16   :  { %v5023_v63 = vpop.permute.xlu0 %5022 }
0x1f17   :  { %v5030_v30 = vmul.f32 %v5023_v63, %v11060_v55 }
0x1f1a   :  { %v5028_v16 = vpop.permute.xlu1 %5027  ;;  %v5040_v19 = vpop.permute.xlu0 %5039 }
0x1f1b   :  { %v5031_v49 = vmul.f32 %v5028_v16, %v11064_v47 }
0x1f1d   :  { %v5043_v22 = vadd.f32 %v5040_v19, %v5031_v49  ;;  %v9103_v49 = vld [vmem:[#allocation5 + $0x124] ss:$16 sps:$4 sm:$0xff]  }
0x1f1e   :  { %v5035_v24 = vpop.permute.xlu1 %5034  ;;  %v11138_v42 = vpop.permute.xlu0 %6891  ;;  %5375 = vmatprep.subr.bf16.mxu0 %v9103_v49  ;;  %v9130_v49 = vld [vmem:[#allocation5 + $0xac] ss:$16 sps:$4 sm:$0xff]  }
0x1f1f   :  { %v5042_v32 = vadd.f32 %v5035_v24, %v5030_v30  ;;  %v5045_v58 = vmax.f32 %v5043_v22, 0.0  ;;  %v9106_v30 = vld [vmem:[#allocation5 + $0x12c] ss:$16 sps:$4 sm:$0xff]   ;;  %v9101_v22 = vld [vmem:[#allocation5 + $0x120] ss:$16 sps:$4 sm:$0xff]  }
0x1f20   :  { %v9104_v24 = vld [vmem:[#allocation5 + $0x128] ss:$16 sps:$4 sm:$0xff]   ;;  %5376 = vmatpush1.bf16.msra.mxu0 %v9101_v22  ;;  %v9125_v22 = vld [vmem:[#allocation5 + $0xa0] ss:$16 sps:$4 sm:$0xff]  }
0x1f21   :  { %v5044_v35 = vmax.f32 %v5042_v32, 0.0  ;;  %v9109_v32 = vld [vmem:[#allocation5 + $0x104] ss:$16 sps:$4 sm:$0xff]  }
0x1f22   :  { %v11142_v13 = vpop.permute.xlu1 %6340  ;;  %v11144_v10 = vpop.permute.xlu0 %6889  ;;  %5377 = vmatprep.subr.bf16.mxu0 %v9109_v32  ;;  %v9133_v32 = vld [vmem:[#allocation5 + $0x84] ss:$16 sps:$4 sm:$0xff]  }
0x1f23   :  { %v11146_v34 = vpack.c.bf16 %v5045_v58, %v5044_v35  ;;  %v6899_v55 = vsel %vm335_vm2, %v11144_v10, %v11138_v42  ;;  %v9107_v58 = vld [vmem:[#allocation5 + $0x100] ss:$16 sps:$4 sm:$0xff]   ;;  %v9110_v35 = vld [vmem:[#allocation5 + $0x108] ss:$16 sps:$4 sm:$0xff]  }
0x1f24   :  { %v11152_v61 = vmul.f32 %v6906_v52, %v6899_v55  ;;  %v9112_v52 = vld [vmem:[#allocation5 + $0x10c] ss:$16 sps:$4 sm:$0xff]   ;;  %5378 = vmatpush1.bf16.msra.mxu0 %v9107_v58  ;;  %v9115_v55 = vld [vmem:[#allocation5 + $0xe4] ss:$16 sps:$4 sm:$0xff]   ;;  %v9131_v58 = vld [vmem:[#allocation5 + $0x80] ss:$16 sps:$4 sm:$0xff]  }
0x1f25   :  { %8893 = vmatpush3.bf16.msra.mxu1 %v11146_v34  ;;  %5605 = vmatprep.subr.bf16.mxu0 %v9115_v55  ;;  %v9139_v55 = vld [vmem:[#allocation5 + $0x64] ss:$16 sps:$4 sm:$0xff]  }
0x1f26   :  { %v7115_v43 = vpack.c.bf16 %v11152_v61, %v10119_v60  ;;  %v11160_v47 = vpop.permute.xlu1 %6893  ;;  %v11162_v37 = vpop.permute.xlu0 %6815  ;;  %8898 = vmatprep.subr.bf16.mxu1 %v9334_v36 }
0x1f28   :  { %8895 = vmatmul.mubr.msk.bf16.vlgmr.msra.gmra.mxu1 %vm1953_vm11, %v5047_v44  ;;  %v9118_v44 = vld [vmem:[#allocation5 + $0xec] ss:$16 sps:$4 sm:$0xff]  }
0x1f29   :  { %8899 = vmatpush3.bf16.msra.mxu1 %v11146_v34  ;;  %8900 = vmatprep.mubr.msk.bf16.mxu1 %vm9339_vm10, %v9334_v36 }
0x1f2a   :  { %v11169_v38 = vpop.permute.xlu1 %6813  ;;  %v11171_v54 = vpop.permute.xlu0 %6819  ;;  %5404 = vmatprep.subr.bf16.mxu1 %v9070_v50 }
0x1f2e   :  { %v11178_v46 = vpop.permute.xlu1 %6895  ;;  %v11186_v2 = vpop.permute.xlu0 %6731 }
0x1f2f   :  { %v6897_v40 = vsel %vm335_vm2, %v11160_v47, %v11178_v46 }
0x1f30   :  { %v11184_v11 = vmul.f32 %v6914_v0, %v6897_v40  ;;  %8901 = vmatmul.mubr.msk.bf16.vlgmr.msra.gmra.mxu1 %vm1953_vm11, %v8256_v56  ;;  %v9113_v40 = vld [vmem:[#allocation5 + $0xe0] ss:$16 sps:$4 sm:$0xff]  }
0x1f31   :  { %5405 = vmatpush1.bf16.msra.mxu1 %v9068_v5  ;;  %5436 = vmatprep.mubr.bf16.mxu1 %v9333_v4 }
0x1f32   :  { %v7117_v1 = vpack.c.bf16 %v11184_v11, %v10139_v6  ;;  %v11192_v57 = vpop.permute.xlu1 %6729  ;;  %5406 = vmatprep.subr.bf16.mxu1 %v9076_v48  ;;  %v11194_v53 = vpop.permute.xlu0 %6773 }
0x1f35   :  { %5407 = vmatpush1.bf16.msra.mxu1 %v9074_v28  ;;  %v9116_v28 = vld [vmem:[#allocation5 + $0xe8] ss:$16 sps:$4 sm:$0xff]  }
0x1f36   :  { %v11196_v12 = vpop.permute.xlu1 %6771  ;;  %5408 = vmatprep.subr.bf16.mxu1 %v9082_v59  ;;  %v11200_v62 = vpop.permute.xlu0 %6735 }
0x1f39   :  { %5409 = vmatpush1.bf16.msra.mxu1 %v9080_v18  ;;  %v9121_v18 = vld [vmem:[#allocation5 + $0xc4] ss:$16 sps:$4 sm:$0xff]  }
0x1f3a   :  { %v11198_v39 = vpop.permute.xlu1 %6817  ;;  %5410 = vmatprep.subr.bf16.mxu1 %v9088_v51  ;;  %v11204_v63 = vpop.permute.xlu0 %6687  ;;  %v9124_v51 = vld [vmem:[#allocation5 + $0xcc] ss:$16 sps:$4 sm:$0xff]  }
0x1f3d   :  { %5411 = vmatpush1.bf16.msra.mxu1 %v9086_v17 }
0x1f3e   :  { %v11202_v15 = vpop.permute.xlu1 %6777  ;;  %5412 = vmatprep.subr.bf16.mxu1 %v9094_v27 }
0x1f41   :  { %5413 = vmatpush1.bf16.msra.mxu1 %v9092_v14  ;;  %v9119_v14 = vld [vmem:[#allocation5 + $0xc0] ss:$16 sps:$4 sm:$0xff]  }
0x1f42   :  { %v11206_v16 = vpop.permute.xlu1 %6689  ;;  %5414 = vmatprep.subr.bf16.mxu1 %v9100_v3  ;;  %v9122_v3 = vld [vmem:[#allocation5 + $0xc8] ss:$16 sps:$4 sm:$0xff]  }
0x1f43   :  { %v11212_v19 = vsel %vm112_vm7, %v11204_v63, %v11206_v16 }
0x1f45   :  { %5415 = vmatpush1.bf16.msra.mxu1 %v9098_v33  ;;  %v9127_v33 = vld [vmem:[#allocation5 + $0xa4] ss:$16 sps:$4 sm:$0xff]  }
0x1f46   :  { %5416 = vmatprep.subr.bf16.mxu1 %v9106_v30 }
0x1f49   :  { %5417 = vmatpush1.bf16.msra.mxu1 %v9104_v24  ;;  %v9128_v24 = vld [vmem:[#allocation5 + $0xa8] ss:$16 sps:$4 sm:$0xff]  }
0x1f4a   :  { %5418 = vmatprep.subr.bf16.mxu1 %v9112_v52  ;;  %v9136_v52 = vld [vmem:[#allocation5 + $0x8c] ss:$16 sps:$4 sm:$0xff]  }
0x1f4d   :  { %5419 = vmatpush1.bf16.msra.mxu1 %v9110_v35  ;;  %v9134_v35 = vld [vmem:[#allocation5 + $0x88] ss:$16 sps:$4 sm:$0xff]  }
0x1f4e   :  { %5646 = vmatprep.subr.bf16.mxu1 %v9118_v44  ;;  %v9142_v44 = vld [vmem:[#allocation5 + $0x6c] ss:$16 sps:$4 sm:$0xff]  }
0x1fe8   :  { %v11214_v50 = vpop.f32.mrf.mxu1 }
0x1fea   :  { %v8896_v0 = vpop.f32.mrf.mxu1 }
0x1feb   :  { %v9137_v0 = vld [vmem:[#allocation5 + $0x60] ss:$16 sps:$4 sm:$0xff]  }
0x1fec   :  { %v5088_v56 = vpop.f32.mrf.mxu1 }
0x1fed   :  { %v9140_v56 = vld [vmem:[#allocation5 + $0x68] ss:$16 sps:$4 sm:$0xff]  }
0x1fee   :  { %v8897_v5 = vpop.f32.mrf.mxu1 }
0x1fef   :  { %v9145_v5 = vld [vmem:[#allocation5 + $0x44] ss:$16 sps:$4 sm:$0xff]  }
0x1ff0   :  { %v5163_v48 = vpop.f32.mrf.mxu1 }
0x1ff1   :  { %v5169_v59 = vpack.c.bf16 %v5163_v48, %v5163_v48  ;;  %v9148_v48 = vld [vmem:[#allocation5 + $0x4c] ss:$16 sps:$4 sm:$0xff]  }
0x1ff2   :  { %v8902_v17 = vpop.f32.mrf.mxu1 }
0x1ff3   :  { %5396 = vmatmul.mubr.bf16.vlgmr.msra.gmra.mxu0 %v5169_v59  ;;  %5437 = vmatmul.mubr.bf16.vlgmr.msra.gmra.mxu1 %v5169_v59  ;;  %v9151_v59 = vld [vmem:[#allocation5 + $0x24] ss:$16 sps:$4 sm:$0xff]   ;;  %v9152_v17 = vld [vmem:[#allocation5 + $0x28] ss:$16 sps:$4 sm:$0xff]  }
0x1ff4   :  { %5606 = vmatpush1.bf16.msra.mxu0 %v9113_v40  ;;  %5647 = vmatpush1.bf16.msra.mxu1 %v9116_v28  ;;  %v5166_v27 = vpop.f32.mrf.mxu1  ;;  %v9143_v40 = vld [vmem:[#allocation5 + $0x40] ss:$16 sps:$4 sm:$0xff]   ;;  %v9146_v28 = vld [vmem:[#allocation5 + $0x48] ss:$16 sps:$4 sm:$0xff]  }
0x1ff5   :  { %5607 = vmatprep.subr.bf16.mxu0 %v9121_v18  ;;  %5648 = vmatprep.subr.bf16.mxu1 %v9124_v51  ;;  %v9154_v18 = vld [vmem:[#allocation5 + $0x2c] ss:$16 sps:$4 sm:$0xff]   ;;  %v9149_v51 = vld [vmem:[#allocation5 + $0x20] ss:$16 sps:$4 sm:$0xff]   ;;  %v9157_v27 = vld [vmem:[#allocation5 + $0x4] ss:$16 sps:$4 sm:$0xff]  }
0x1ff6   :  { %v8903_v30 = vpop.f32.mrf.mxu1  ;;  %5637 = vmatprep.mubr.bf16.mxu0 %v9333_v4  ;;  %5678 = vmatprep.mubr.bf16.mxu1 %v9333_v4 }
0x1ff7   :  { %v8322_v30 = vld [vmem:[%s12025_s11 + $0x8] sm:$0xf] }
0x1ff8   :  { %5608 = vmatpush1.bf16.msra.mxu0 %v9119_v14  ;;  %5649 = vmatpush1.bf16.msra.mxu1 %v9122_v3  ;;  %v9160_v14 = vld [vmem:[#allocation5 + $0xc] ss:$16 sps:$4 sm:$0xff]   ;;  %v9155_v3 = vld [vmem:[#allocation5] ss:$16 sps:$4 sm:$0xff]  }
0x1ff9   :  { %5609 = vmatprep.subr.bf16.mxu0 %v9127_v33  ;;  %5650 = vmatprep.subr.bf16.mxu1 %v9130_v49  ;;  %v9158_v33 = vld [vmem:[#allocation5 + $0x8] ss:$16 sps:$4 sm:$0xff]   ;;  %v5091_v49 = vpack.c.bf16 %v11214_v50, %v11214_v50  ;;  %v9161_v50 = vld [vmem:[#allocation5 + $0x2e0] ss:$16 sps:$4 sm:$0xff]  }
0x1ffc   :  { %5610 = vmatpush1.bf16.msra.mxu0 %v9125_v22  ;;  %5651 = vmatpush1.bf16.msra.mxu1 %v9128_v24  ;;  %v9163_v22 = vld [vmem:[#allocation5 + $0x2e4] ss:$16 sps:$4 sm:$0xff]   ;;  %v9164_v24 = vld [vmem:[#allocation5 + $0x2e8] ss:$16 sps:$4 sm:$0xff]  }
0x1ffd   :  { %5611 = vmatprep.subr.bf16.mxu0 %v9133_v32  ;;  %5652 = vmatprep.subr.bf16.mxu1 %v9136_v52  ;;  %v9166_v32 = vld [vmem:[#allocation5 + $0x2ec] ss:$16 sps:$4 sm:$0xff]   ;;  %v9169_v52 = vld [vmem:[#allocation5 + $0x2c4] ss:$16 sps:$4 sm:$0xff]  }
0x2000   :  { %5612 = vmatpush1.bf16.msra.mxu0 %v9131_v58  ;;  %5653 = vmatpush1.bf16.msra.mxu1 %v9134_v35  ;;  %v9172_v58 = vld [vmem:[#allocation5 + $0x2cc] ss:$16 sps:$4 sm:$0xff]   ;;  %v9167_v35 = vld [vmem:[#allocation5 + $0x2c0] ss:$16 sps:$4 sm:$0xff]  }
0x2001   :  { %5613 = vmatprep.subr.bf16.mxu0 %v9139_v55  ;;  %5654 = vmatprep.subr.bf16.mxu1 %v9142_v44  ;;  %v9170_v55 = vld [vmem:[#allocation5 + $0x2c8] ss:$16 sps:$4 sm:$0xff]   ;;  %v9175_v44 = vld [vmem:[#allocation5 + $0x2a4] ss:$16 sps:$4 sm:$0xff]  }
0x2004   :  { %5614 = vmatpush1.bf16.msra.mxu0 %v9137_v0  ;;  %5655 = vmatpush1.bf16.msra.mxu1 %v9140_v56  ;;  %v9178_v0 = vld [vmem:[#allocation5 + $0x2ac] ss:$16 sps:$4 sm:$0xff]   ;;  %v9173_v56 = vld [vmem:[#allocation5 + $0x2a0] ss:$16 sps:$4 sm:$0xff]  }
0x2005   :  { %5615 = vmatprep.subr.bf16.mxu0 %v9145_v5  ;;  %5656 = vmatprep.subr.bf16.mxu1 %v9148_v48  ;;  %v9176_v5 = vld [vmem:[#allocation5 + $0x2a8] ss:$16 sps:$4 sm:$0xff]   ;;  %v9181_v48 = vld [vmem:[#allocation5 + $0x284] ss:$16 sps:$4 sm:$0xff]  }
0x2008   :  { %5616 = vmatpush1.bf16.msra.mxu0 %v9143_v40  ;;  %5657 = vmatpush1.bf16.msra.mxu1 %v9146_v28  ;;  %v9184_v40 = vld [vmem:[#allocation5 + $0x28c] ss:$16 sps:$4 sm:$0xff]   ;;  %v9179_v28 = vld [vmem:[#allocation5 + $0x280] ss:$16 sps:$4 sm:$0xff]  }
0x2009   :  { %5617 = vmatprep.subr.bf16.mxu0 %v9151_v59  ;;  %5658 = vmatprep.subr.bf16.mxu1 %v9154_v18  ;;  %v9182_v59 = vld [vmem:[#allocation5 + $0x288] ss:$16 sps:$4 sm:$0xff]   ;;  %v9187_v18 = vld [vmem:[#allocation5 + $0x264] ss:$16 sps:$4 sm:$0xff]  }
0x200c   :  { %5618 = vmatpush1.bf16.msra.mxu0 %v9149_v51  ;;  %5659 = vmatpush1.bf16.msra.mxu1 %v9152_v17  ;;  %v9190_v51 = vld [vmem:[#allocation5 + $0x26c] ss:$16 sps:$4 sm:$0xff]   ;;  %v9185_v17 = vld [vmem:[#allocation5 + $0x260] ss:$16 sps:$4 sm:$0xff]  }
0x200d   :  { %5619 = vmatprep.subr.bf16.mxu0 %v9157_v27  ;;  %5660 = vmatprep.subr.bf16.mxu1 %v9160_v14  ;;  %v9188_v27 = vld [vmem:[#allocation5 + $0x268] ss:$16 sps:$4 sm:$0xff]   ;;  %v9193_v14 = vld [vmem:[#allocation5 + $0x244] ss:$16 sps:$4 sm:$0xff]  }
0x2010   :  { %5620 = vmatpush1.bf16.msra.mxu0 %v9155_v3  ;;  %5661 = vmatpush1.bf16.msra.mxu1 %v9158_v33  ;;  %v9196_v3 = vld [vmem:[#allocation5 + $0x24c] ss:$16 sps:$4 sm:$0xff]   ;;  %v9191_v33 = vld [vmem:[#allocation5 + $0x240] ss:$16 sps:$4 sm:$0xff]  }
0x2011   :  { %8904 = vmatprep.subr.bf16.mxu0 %v9334_v36  ;;  %5926 = vmatprep.subr.bf16.mxu1 %v9163_v22  ;;  %v9197_v22 = vld [vmem:[#allocation5 + $0x220] ss:$16 sps:$4 sm:$0xff]  }
0x2013   :  { %5638 = vmatmul.mubr.bf16.vlgmr.msra.gmra.mxu0 %v5091_v49  ;;  %5679 = vmatmul.mubr.bf16.vlgmr.msra.gmra.mxu1 %v5091_v49  ;;  %v9194_v49 = vld [vmem:[#allocation5 + $0x248] ss:$16 sps:$4 sm:$0xff]  }
0x2014   :  { %8905 = vmatpush3.bf16.msra.mxu0 %v11146_v34  ;;  %8906 = vmatprep.mubr.msk.bf16.mxu0 %vm9339_vm10, %v9334_v36 }
0x2015   :  { %5958 = vmatprep.mubr.bf16.mxu1 %v9333_v4  ;;  %5967 = vmatprep.subr.bf16.mxu0 %v9166_v32  ;;  %v9205_v32 = vld [vmem:[#allocation5 + $0x204] ss:$16 sps:$4 sm:$0xff]  }
0x2016   :  { %5927 = vmatpush1.bf16.msra.mxu1 %v9161_v50  ;;  %v9202_v50 = vld [vmem:[#allocation5 + $0x22c] ss:$16 sps:$4 sm:$0xff]  }
0x2017   :  { %5928 = vmatprep.subr.bf16.mxu1 %v9169_v52  ;;  %v9208_v52 = vld [vmem:[#allocation5 + $0x20c] ss:$16 sps:$4 sm:$0xff]  }
0x201a   :  { %5929 = vmatpush1.bf16.msra.mxu1 %v9167_v35  ;;  %v9206_v35 = vld [vmem:[#allocation5 + $0x208] ss:$16 sps:$4 sm:$0xff]  }
0x201b   :  { %8907 = vmatmul.mubr.msk.bf16.vlgmr.msra.gmra.mxu0 %vm1953_vm11, %v8322_v30  ;;  %5930 = vmatprep.subr.bf16.mxu1 %v9175_v44  ;;  %v9199_v30 = vld [vmem:[#allocation5 + $0x224] ss:$16 sps:$4 sm:$0xff]  }
0x201c   :  { %5999 = vmatprep.mubr.bf16.mxu0 %v9333_v4  ;;  %5968 = vmatpush1.bf16.msra.mxu0 %v9164_v24  ;;  %v9200_v24 = vld [vmem:[#allocation5 + $0x228] ss:$16 sps:$4 sm:$0xff]  }
0x201d   :  { %5969 = vmatprep.subr.bf16.mxu0 %v9172_v58  ;;  %v9203_v58 = vld [vmem:[#allocation5 + $0x200] ss:$16 sps:$4 sm:$0xff]  }
0x201e   :  { %5931 = vmatpush1.bf16.msra.mxu1 %v9173_v56 }
0x201f   :  { %5932 = vmatprep.subr.bf16.mxu1 %v9181_v48 }
0x2020   :  { %5970 = vmatpush1.bf16.msra.mxu0 %v9170_v55  ;;  %v9211_v55 = vld [vmem:[#allocation5 + $0x3e4] ss:$16 sps:$4 sm:$0xff]  }
0x2021   :  { %5971 = vmatprep.subr.bf16.mxu0 %v9178_v0 }
0x2022   :  { %5933 = vmatpush1.bf16.msra.mxu1 %v9179_v28 }
0x2023   :  { %5934 = vmatprep.subr.bf16.mxu1 %v9187_v18 }
0x2024   :  { %5972 = vmatpush1.bf16.msra.mxu0 %v9176_v5 }
0x2025   :  { %5973 = vmatprep.subr.bf16.mxu0 %v9184_v40 }
0x2026   :  { %5935 = vmatpush1.bf16.msra.mxu1 %v9185_v17 }
0x2027   :  { %5936 = vmatprep.subr.bf16.mxu1 %v9193_v14 }
0x2028   :  { %5974 = vmatpush1.bf16.msra.mxu0 %v9182_v59 }
0x2029   :  { %5975 = vmatprep.subr.bf16.mxu0 %v9190_v51 }
0x202a   :  { %5937 = vmatpush1.bf16.msra.mxu1 %v9191_v33 }
0x202b   :  { %5938 = vmatprep.subr.bf16.mxu1 %v9199_v30 }
0x202c   :  { %5976 = vmatpush1.bf16.msra.mxu0 %v9188_v27 }
0x202d   :  { %5977 = vmatprep.subr.bf16.mxu0 %v9196_v3 }
0x202e   :  { %5939 = vmatpush1.bf16.msra.mxu1 %v9197_v22 }
0x202f   :  { %5940 = vmatprep.subr.bf16.mxu1 %v9205_v32 }
0x2030   :  { %5978 = vmatpush1.bf16.msra.mxu0 %v9194_v49 }
0x2031   :  { %5979 = vmatprep.subr.bf16.mxu0 %v9202_v50 }
0x2032   :  { %5941 = vmatpush1.bf16.msra.mxu1 %v9203_v58 }
0x2033   :  { %8910 = vmatprep.subr.bf16.mxu1 %v9334_v36 }
0x2034   :  { %5980 = vmatpush1.bf16.msra.mxu0 %v9200_v24 }
0x2035   :  { %5981 = vmatprep.subr.bf16.mxu0 %v9208_v52  ;;  %v9209_v52 = vld [vmem:[#allocation5 + $0x3e0] ss:$16 sps:$4 sm:$0xff]  }
0x2038   :  { %5982 = vmatpush1.bf16.msra.mxu0 %v9206_v35  ;;  %v9214_v35 = vld [vmem:[#allocation5 + $0x3c4] ss:$16 sps:$4 sm:$0xff]  }
0x2039   :  { %6251 = vmatprep.subr.bf16.mxu0 %v9211_v55 }
0x20b3   :  { %v5397_v44 = vpop.f32.mrf.mxu0  ;;  %v5438_v0 = vpop.f32.mrf.mxu1 }
0x20b5   :  { %v5399_v56 = vpop.f32.mrf.mxu0  ;;  %v5440_v5 = vpop.f32.mrf.mxu1 }
0x20b7   :  { %v5401_v48 = vpop.f32.mrf.mxu0  ;;  %v5442_v40 = vpop.f32.mrf.mxu1 }
0x20b8   :  { %v9220_v48 = vld [vmem:[#allocation5 + $0x3ec] ss:$16 sps:$4 sm:$0xff]   ;;  %v9215_v40 = vld [vmem:[#allocation5 + $0x3a0] ss:$16 sps:$4 sm:$0xff]  }
0x20b9   :  { %v5402_v28 = vpop.f32.mrf.mxu0  ;;  %v5443_v59 = vpop.f32.mrf.mxu1 }
0x20ba   :  { %v9218_v28 = vld [vmem:[#allocation5 + $0x3e8] ss:$16 sps:$4 sm:$0xff]   ;;  %v8356_v59 = vld [vmem:[%s12025_s11 + $0xc] sm:$0xf] }
0x20d3   :  { %v5639_v18 = vpop.f32.mrf.mxu0  ;;  %v5680_v51 = vpop.f32.mrf.mxu1 }
0x20d4   :  { %v11231_v17 = vadd.f32 %v5639_v18, %v5397_v44  ;;  %v11233_v27 = vadd.f32 %v5680_v51, %v5438_v0  ;;  %v9212_v0 = vld [vmem:[#allocation5 + $0x3c0] ss:$16 sps:$4 sm:$0xff]   ;;  %v9226_v18 = vld [vmem:[#allocation5 + $0x3cc] ss:$16 sps:$4 sm:$0xff]   ;;  %v9224_v51 = vld [vmem:[#allocation5 + $0x3c8] ss:$16 sps:$4 sm:$0xff]  }
0x20d5   :  { %v5641_v14 = vpop.f32.mrf.mxu0  ;;  %v5682_v3 = vpop.f32.mrf.mxu1 }
0x20d6   :  { %v11235_v33 = vadd.f32 %v5641_v14, %v5399_v56  ;;  %v11237_v49 = vadd.f32 %v5682_v3, %v5440_v5  ;;  %v9217_v56 = vld [vmem:[#allocation5 + $0x3a4] ss:$16 sps:$4 sm:$0xff]   ;;  %v9232_v3 = vld [vmem:[#allocation5 + $0x3ac] ss:$16 sps:$4 sm:$0xff]  }
0x20d7   :  { %v5643_v30 = vpop.f32.mrf.mxu0  ;;  %v5684_v50 = vpop.f32.mrf.mxu1  ;;  %v9229_v14 = vld [vmem:[#allocation5 + $0x364] ss:$16 sps:$4 sm:$0xff]  }
0x20d8   :  { %v9227_v30 = vld [vmem:[#allocation5 + $0x360] ss:$16 sps:$4 sm:$0xff]   ;;  %v9230_v50 = vld [vmem:[#allocation5 + $0x3a8] ss:$16 sps:$4 sm:$0xff]  }
0x20d9   :  { %v5644_v22 = vpop.f32.mrf.mxu0  ;;  %v5685_v24 = vpop.f32.mrf.mxu1 }
0x20da   :  { %v9235_v22 = vld [vmem:[#allocation5 + $0x344] ss:$16 sps:$4 sm:$0xff]   ;;  %v9238_v24 = vld [vmem:[#allocation5 + $0x38c] ss:$16 sps:$4 sm:$0xff]  }
0x20db   :  { %v5726_v32 = vpop.f32.mrf.mxu0 }
0x20dc   :  { %v5732_v58 = vpack.c.bf16 %v5726_v32, %v5726_v32  ;;  %v9233_v32 = vld [vmem:[#allocation5 + $0x340] ss:$16 sps:$4 sm:$0xff]  }
0x20dd   :  { %v8908_v55 = vpop.f32.mrf.mxu0 }
0x20de   :  { %5959 = vmatmul.mubr.bf16.vlgmr.msra.gmra.mxu1 %v5732_v58  ;;  %6000 = vmatmul.mubr.bf16.vlgmr.msra.gmra.mxu0 %v5732_v58  ;;  %v9241_v58 = vld [vmem:[#allocation5 + $0x324] ss:$16 sps:$4 sm:$0xff]   ;;  %v6910_v55 = vrot.slane %v11136_v29, %v9571_v8 }
0x20df   :  { %8911 = vmatpush3.bf16.msra.mxu1 %v11146_v34  ;;  %6252 = vmatpush1.bf16.msra.mxu0 %v9209_v52  ;;  %v5729_v44 = vpop.f32.mrf.mxu0  ;;  %v9223_v34 = vld [vmem:[#allocation5 + $0x384] ss:$16 sps:$4 sm:$0xff]   ;;  %v9236_v52 = vld [vmem:[#allocation5 + $0x388] ss:$16 sps:$4 sm:$0xff]  }
0x20e0   :  { %6253 = vmatprep.subr.bf16.mxu0 %v9214_v35  ;;  %8912 = vmatprep.mubr.msk.bf16.mxu1 %vm9339_vm10, %v9334_v36  ;;  %v9221_v36 = vld [vmem:[#allocation5 + $0x380] ss:$16 sps:$4 sm:$0xff]   ;;  %v9244_v35 = vld [vmem:[#allocation5 + $0x36c] ss:$16 sps:$4 sm:$0xff]  }
0x20e1   :  { %v8909_v5 = vpop.f32.mrf.mxu0  ;;  %6292 = vmatprep.subr.bf16.mxu1 %v9220_v48  ;;  %6283 = vmatprep.mubr.bf16.mxu0 %v9333_v4  ;;  %v6898_v48 = vsel %vm335_vm2, %v11138_v42, %v11160_v47  ;;  %v9239_v44 = vld [vmem:[#allocation5 + $0x320] ss:$16 sps:$4 sm:$0xff]   ;;  %v9253_v47 = vld [vmem:[#allocation5 + $0x32c] ss:$16 sps:$4 sm:$0xff]  }
0x20e3   :  { %6254 = vmatpush1.bf16.msra.mxu0 %v9212_v0  ;;  %v9242_v0 = vld [vmem:[#allocation5 + $0x368] ss:$16 sps:$4 sm:$0xff]  }
0x20e4   :  { %6255 = vmatprep.subr.bf16.mxu0 %v9217_v56  ;;  %v9300_v56 = vld [vmem:[%s12033_s19 + $0x14] sm:$0xf] }
0x20e5   :  { %v6868_v5 = vrot.slane %v9300_v56, %v9571_v8 }
0x20e6   :  { %8913 = vmatmul.mubr.msk.bf16.vlgmr.msra.gmra.mxu1 %vm1953_vm11, %v8356_v59  ;;  %v6924_v59 = vmul.f32 %v6910_v55, %v6898_v48 }
0x20e7   :  { %6256 = vmatpush1.bf16.msra.mxu0 %v9215_v40  ;;  %6293 = vmatpush1.bf16.msra.mxu1 %v9218_v28  ;;  %v9247_v40 = vld [vmem:[#allocation5 + $0x304] ss:$16 sps:$4 sm:$0xff]   ;;  %v9250_v28 = vld [vmem:[#allocation5 + $0x34c] ss:$16 sps:$4 sm:$0xff]   ;;  %v6882_v42 = vmul.f32 %v6868_v5, %v10131_v45 }
0x20e8   :  { %6257 = vmatprep.subr.bf16.mxu0 %v9223_v34  ;;  %6294 = vmatprep.subr.bf16.mxu1 %v9226_v18  ;;  %v9245_v34 = vld [vmem:[#allocation5 + $0x300] ss:$16 sps:$4 sm:$0xff]   ;;  %v9248_v18 = vld [vmem:[#allocation5 + $0x348] ss:$16 sps:$4 sm:$0xff]   ;;  %v9256_v45 = vld [vmem:[#allocation5 + $0x30c] ss:$16 sps:$4 sm:$0xff]  }
0x20e9   :  { %6324 = vmatprep.mubr.bf16.mxu1 %v9333_v4  ;;  %v8397_v5 = vld [vmem:[%s12033_s19 + $0x4] sm:$0xf] }
0x20eb   :  { %6258 = vmatpush1.bf16.msra.mxu0 %v9221_v36  ;;  %6295 = vmatpush1.bf16.msra.mxu1 %v9224_v51  ;;  %v6918_v36 = vrot.slane %v11136_v29, %v9592_v21  ;;  %v7116_v51 = vpack.c.bf16 %v6924_v59, %v6882_v42  ;;  %v6824_v42 = vsel %vm243_vm6, %v11171_v54, %v11169_v38 }
0x20ec   :  { %6259 = vmatprep.subr.bf16.mxu0 %v9229_v14  ;;  %6296 = vmatprep.subr.bf16.mxu1 %v9232_v3  ;;  %v6900_v14 = vsel %vm335_vm2, %v11178_v46, %v11144_v10  ;;  %v9251_v3 = vld [vmem:[#allocation5 + $0x328] ss:$16 sps:$4 sm:$0xff]   ;;  %v8399_v10 = vld [vmem:[%s12033_s19 + $0xc] sm:$0xf] }
0x20ed   :  { %v6842_v55 = vrot.slane %v8399_v10, %v9592_v21 }
0x20ef   :  { %6260 = vmatpush1.bf16.msra.mxu0 %v9227_v30  ;;  %6297 = vmatpush1.bf16.msra.mxu1 %v9230_v50  ;;  %v6876_v30 = vrot.slane %v9300_v56, %v9592_v21  ;;  %v6926_v50 = vmul.f32 %v6918_v36, %v6900_v14  ;;  %v6750_v14 = vrot.slane %v8397_v5, %v9571_v8 }
0x20f0   :  { %6261 = vmatprep.subr.bf16.mxu0 %v9235_v22  ;;  %6298 = vmatprep.subr.bf16.mxu1 %v9238_v24  ;;  %v9254_v22 = vld [vmem:[#allocation5 + $0x308] ss:$16 sps:$4 sm:$0xff]  }
0x20f1   :  { %v6884_v24 = vmul.f32 %v6876_v30, %v10125_v41  ;;  %v6823_v41 = vsel %vm243_vm6, %v11169_v38, %v11162_v37  ;;  %v6822_v30 = vsel %vm243_vm6, %v11162_v37, %v11198_v39  ;;  %v6734_v38 = vpop.permute.xlu0 %6733  ;;  %v6739_v37 = vsel %vm155_vm8, %v11192_v57, %v11186_v2 }
0x20f3   :  { %6262 = vmatpush1.bf16.msra.mxu0 %v9233_v32  ;;  %6299 = vmatpush1.bf16.msra.mxu1 %v9236_v52  ;;  %v7118_v29 = vpack.c.bf16 %v6926_v50, %v6884_v24  ;;  %v6834_v52 = vrot.slane %v8399_v10, %v9571_v8  ;;  %v6758_v50 = vrot.slane %v8397_v5, %v9592_v21 }
0x20f4   :  { %6263 = vmatprep.subr.bf16.mxu0 %v9241_v58  ;;  %6300 = vmatprep.subr.bf16.mxu1 %v9244_v35 }
0x20f5   :  { %v6848_v59 = vmul.f32 %v6834_v52, %v6823_v41  ;;  %v6737_v41 = vsel %vm155_vm8, %v6734_v38, %v11200_v62 }
0x20f7   :  { %6264 = vmatpush1.bf16.msra.mxu0 %v9239_v44  ;;  %6301 = vmatpush1.bf16.msra.mxu1 %v9242_v0  ;;  %v8398_v0 = vld [vmem:[%s12033_s19 + $0x8] sm:$0xf] }
0x20f8   :  { %6265 = vmatprep.subr.bf16.mxu0 %v9247_v40  ;;  %6302 = vmatprep.subr.bf16.mxu1 %v9250_v28 }
0x20fb   :  { %6266 = vmatpush1.bf16.msra.mxu0 %v9245_v34  ;;  %6303 = vmatpush1.bf16.msra.mxu1 %v9248_v18  ;;  %v6830_v34 = vrot.slane %v8399_v10, %v9573_v9  ;;  %v6776_v18 = vpop.permute.xlu1 %6775 }
0x20fc   :  { %7133 = vmatprep.subr.bf16.mxu0 %v7116_v51  ;;  %6304 = vmatprep.subr.bf16.mxu1 %v9253_v47  ;;  %v6779_v24 = vsel %vm199_vm5, %v6776_v18, %v11202_v15 }
0x20ff   :  { %6305 = vmatpush1.bf16.msra.mxu1 %v9251_v3  ;;  %v6781_v3 = vsel %vm199_vm5, %v11196_v12, %v11194_v53 }
0x2100   :  { %6306 = vmatprep.subr.bf16.mxu1 %v9256_v45  ;;  %v6788_v45 = vrot.slane %v8398_v0, %v9573_v9 }
0x2103   :  { %6307 = vmatpush1.bf16.msra.mxu1 %v9254_v22  ;;  %v6796_v22 = vrot.slane %v8398_v0, %v9590_v20 }
0x2104   :  { %7174 = vmatprep.subr.bf16.mxu1 %v7118_v29 }
0x219e   :  { %v5960_v46 = vpop.f32.mrf.mxu1  ;;  %v6001_v32 = vpop.f32.mrf.mxu0 }
0x219f   :  { %v11272_v58 = vadd.f32 %v5960_v46, %v11231_v17  ;;  %v11275_v35 = vadd.f32 %v6001_v32, %v11233_v27  ;;  %v6821_v17 = vsel %vm243_vm6, %v11198_v39, %v11171_v54  ;;  %v6800_v54 = vrot.slane %v8398_v0, %v9592_v21 }
0x21a0   :  { %v5962_v48 = vpop.f32.mrf.mxu1  ;;  %v6003_v44 = vpop.f32.mrf.mxu0  ;;  %v6850_v47 = vmul.f32 %v6842_v55, %v6821_v17  ;;  %v7112_v46 = vpack.c.bf16 %v10021_v25, %v6848_v59  ;;  %v6764_v25 = vmul.f32 %v6750_v14, %v6739_v37  ;;  %v6766_v59 = vmul.f32 %v6758_v50, %v6737_v41 }
0x21a1   :  { %v11290_v27 = vadd.f32 %v5962_v48, %v11235_v33  ;;  %v11293_v56 = vadd.f32 %v6003_v44, %v11237_v49  ;;  %v6792_v33 = vrot.slane %v8398_v0, %v9571_v8  ;;  %v6838_v49 = vrot.slane %v8399_v10, %v9590_v20 }
0x21a2   :  { %v5964_v40 = vpop.f32.mrf.mxu1  ;;  %v6005_v28 = vpop.f32.mrf.mxu0  ;;  %v6847_v10 = vmul.f32 %v6830_v34, %v6824_v42  ;;  %v7114_v48 = vpack.c.bf16 %v10041_v31, %v6850_v47  ;;  %v6782_v44 = vsel %vm199_vm5, %v11202_v15, %v11196_v12  ;;  %v6780_v0 = vsel %vm199_vm5, %v11194_v53, %v6776_v18 }
0x21a3   :  { %v6806_v32 = vmul.f32 %v6792_v33, %v6781_v3  ;;  %v6849_v52 = vmul.f32 %v6838_v49, %v6822_v30  ;;  %v6808_v17 = vmul.f32 %v6800_v54, %v6779_v24  ;;  %v6746_v40 = vrot.slane %v8397_v5, %v9573_v9 }
0x21a4   :  { %v5965_v36 = vpop.f32.mrf.mxu1  ;;  %v6006_v51 = vpop.f32.mrf.mxu0  ;;  %v6754_v28 = vrot.slane %v8397_v5, %v9590_v20  ;;  %v6740_v53 = vsel %vm155_vm8, %v11200_v62, %v11192_v57  ;;  %v6738_v15 = vsel %vm155_vm8, %v11186_v2, %v6734_v38  ;;  %v7111_v60 = vpack.c.bf16 %v10019_v23, %v6847_v10 }
0x21a5   :  { %v7113_v61 = vpack.c.bf16 %v10039_v26, %v6849_v52  ;;  %v6807_v6 = vmul.f32 %v6796_v22, %v6780_v0  ;;  %v7110_v5 = vpack.c.bf16 %v6808_v17, %v6766_v59  ;;  %v6763_v34 = vmul.f32 %v6746_v40, %v6740_v53  ;;  %v11451_v22 = vpop.permute.xlu0 %6933  ;;  %v6699_v17 = vld [vmem:[%s12033_s19] sm:$0xf] }
0x21a6   :  { %v6051_v29 = vpop.f32.mrf.mxu1  ;;  %v6765_v18 = vmul.f32 %v6754_v28, %v6738_v15  ;;  %v6704_v53 = vrot.slane %v6699_v17, %v9573_v9 }
0x21a7   :  { %v6057_v39 = vpack.c.bf16 %v6051_v29, %v6051_v29 }
0x21a8   :  { %v8914_v55 = vpop.f32.mrf.mxu1  ;;  %v7109_v2 = vpack.c.bf16 %v6807_v6, %v6765_v18 }
0x21a9   :  { %6284 = vmatmul.mubr.bf16.vlgmr.msra.gmra.mxu0 %v6057_v39  ;;  %6325 = vmatmul.mubr.bf16.vlgmr.msra.gmra.mxu1 %v6057_v39  ;;  %v11455_v29 = vpop.permute.xlu0 %6975 }
0x21aa   :  { %7134 = vmatpush1.bf16.msra.mxu0 %v7115_v43  ;;  %7175 = vmatpush1.bf16.msra.mxu1 %v7117_v1  ;;  %v6054_v12 = vpop.f32.mrf.mxu1  ;;  %v6805_v43 = vmul.f32 %v6788_v45, %v6782_v44  ;;  %v7108_v1 = vpack.c.bf16 %v6806_v32, %v6764_v25  ;;  %v6694_v45 = vpop.permute.xlu1 %6693  ;;  %v8396_v25 = vld [vmem:[%s12033_s19 + $0x20] sm:$0xf] }
0x21ab   :  { %7135 = vmatprep.subr.bf16.mxu0 %v7112_v46  ;;  %7176 = vmatprep.subr.bf16.mxu1 %v7114_v48  ;;  %v6708_v12 = vrot.slane %v6699_v17, %v9571_v8  ;;  %v6662_v15 = vrot.slane %v8396_v25, %v9573_v9  ;;  %v6666_v59 = vrot.slane %v8396_v25, %v9571_v8 }
0x21ac   :  { %v8915_v11 = vpop.f32.mrf.mxu1  ;;  %v7107_v57 = vpack.c.bf16 %v6805_v43, %v6763_v34 }
0x21ae   :  { %7136 = vmatpush1.bf16.msra.mxu0 %v7111_v60  ;;  %7177 = vmatpush1.bf16.msra.mxu1 %v7113_v61  ;;  %v6692_v50 = vpop.permute.xlu1 %6691  ;;  %v6698_v60 = vsel %vm112_vm7, %v6694_v45, %v11204_v63  ;;  %v11512_v63 = vld [vmem:[%s12033_s19 + $0x18] sm:$0xf] }
0x21af   :  { %7137 = vmatprep.subr.bf16.mxu0 %v7108_v1  ;;  %7178 = vmatprep.subr.bf16.mxu1 %v7110_v5  ;;  %v6722_v1 = vmul.f32 %v6708_v12, %v11212_v19  ;;  %v6721_v5 = vmul.f32 %v6704_v53, %v6698_v60  ;;  %v6578_v19 = vrot.slane %v11512_v63, %v9573_v9 }
0x21b2   :  { %7138 = vmatpush1.bf16.msra.mxu0 %v7107_v57  ;;  %7179 = vmatpush1.bf16.msra.mxu1 %v7109_v2  ;;  %v11453_v24 = vpop.permute.xlu1 %6935  ;;  %v11517_v57 = vld [vmem:[%s12033_s19 + $0x1c] sm:$0xf] }
0x21b6   :  { %v11457_v10 = vpop.permute.xlu1 %6977 }
0x2269   :  { %v6285_v62 = vpop.f32.mrf.mxu0  ;;  %v6326_v42 = vpop.f32.mrf.mxu1 }
0x226a   :  { %v6333_v33 = vadd.f32 %v6285_v62, %v11272_v58  ;;  %v6335_v26 = vadd.f32 %v6326_v42, %v11275_v35 }
0x226b   :  { %v6287_v49 = vpop.f32.mrf.mxu0  ;;  %v6328_v47 = vpop.f32.mrf.mxu1 }
0x226c   :  { %v11357_v36 = vadd.f32 %v11142_v13, %v6333_v33  ;;  %v11360_v51 = vadd.f32 %v11142_v13, %v6335_v26  ;;  %v6334_v35 = vadd.f32 %v6287_v49, %v11290_v27  ;;  %v6336_v54 = vadd.f32 %v6328_v47, %v11293_v56 }
0x226d   :  { %v6289_v14 = vpop.f32.mrf.mxu0  ;;  %v6330_v3 = vpop.f32.mrf.mxu1  ;;  %v6582_v26 = vrot.slane %v11512_v63, %v9571_v8  ;;  %v6620_v49 = vrot.slane %v11517_v57, %v9573_v9  ;;  %v6624_v47 = vrot.slane %v11517_v57, %v9571_v8 }
0x226e   :  { %6649 = vrot.lane.b32.xlu1 %v11360_v51, %s12085_s30  ;;  %6645 = vrot.lane.b32.xlu0 %v11357_v36, %s12085_s30  ;;  %v11392_v38 = vadd.f32 %v11142_v13, %v6334_v35  ;;  %v11404_v27 = vadd.f32 %v11142_v13, %v6336_v54  ;;  %v11437_v13 = vld [vmem:[%s12027_s13] sm:$0xff]  ;;  %v6695_v35 = vsel %vm112_vm7, %v6692_v50, %v6694_v45 }
0x226f   :  { %v6290_v30 = vpop.f32.mrf.mxu0  ;;  %v6331_v58 = vpop.f32.mrf.mxu1  ;;  %v8405_v56 = vcombine.high %v11437_v13, %v11437_v13  ;;  %v6696_v54 = vsel %vm112_vm7, %v11206_v16, %v6692_v50 }
0x2270   :  { %v6712_v30 = vrot.slane %v6699_v17, %v9590_v20  ;;  %v6716_v58 = vrot.slane %v6699_v17, %v9592_v21  ;;  %v6674_v17 = vrot.slane %v8396_v25, %v9592_v21 }
0x2271   :  { %8406 = vmatprep.mubr.msk.bf16.mxu0 %vm1953_vm11, %v8405_v56  ;;  %8407 = vmatprep.mubr.msk.bf16.mxu1 %vm1953_vm11, %v8405_v56 }
0x2272   :  { %6565 = vrot.lane.b32.xlu1 %v11360_v51, %s9327_s1  ;;  %6561 = vrot.lane.b32.xlu0 %v11357_v36, %s9327_s1 }
0x2276   :  { %6607 = vrot.lane.b32.xlu1 %v11360_v51, %s12084_s8  ;;  %6519 = vrot.lane.b32.xlu0 %v11357_v36, %s9329_s28 }
0x227a   :  { %6603 = vrot.lane.b32.xlu1 %v11357_v36, %s12084_s8  ;;  %6347 = vrot.lane.b32.xlu0 %v11357_v36, %s12083_s0 }
0x227e   :  { %6523 = vrot.lane.b32.xlu1 %v11360_v51, %s9329_s28  ;;  %6389 = vrot.lane.b32.xlu0 %v11357_v36, %s12081_s12 }
0x2282   :  { %6431 = vrot.lane.b32.xlu1 %v11357_v36, %s12082_s7  ;;  %6435 = vrot.lane.b32.xlu0 %v11360_v51, %s12082_s7 }
0x2286   :  { %6473 = vrot.lane.b32.xlu1 %v11357_v36, %s9331_s29  ;;  %6351 = vrot.lane.b32.xlu0 %v11360_v51, %s12083_s0 }
0x228a   :  { %6477 = vrot.lane.b32.xlu1 %v11360_v51, %s9331_s29  ;;  %6647 = vrot.lane.b32.xlu0 %v11392_v38, %s12085_s30 }
0x228e   :  { %6393 = vrot.lane.b32.xlu1 %v11360_v51, %s12081_s12  ;;  %6563 = vrot.lane.b32.xlu0 %v11392_v38, %s9327_s1 }
0x2292   :  { %6609 = vrot.lane.b32.xlu1 %v11404_v27, %s12084_s8  ;;  %6605 = vrot.lane.b32.xlu0 %v11392_v38, %s12084_s8 }
0x2296   :  { %6525 = vrot.lane.b32.xlu1 %v11404_v27, %s9329_s28  ;;  %6651 = vrot.lane.b32.xlu0 %v11404_v27, %s12085_s30 }
0x229a   :  { %6479 = vrot.lane.b32.xlu1 %v11404_v27, %s9331_s29  ;;  %6521 = vrot.lane.b32.xlu0 %v11392_v38, %s9329_s28 }
0x229e   :  { %6349 = vrot.lane.b32.xlu1 %v11392_v38, %s12083_s0  ;;  %6567 = vrot.lane.b32.xlu0 %v11404_v27, %s9327_s1 }
0x22a2   :  { %6391 = vrot.lane.b32.xlu1 %v11392_v38, %s12081_s12  ;;  %6433 = vrot.lane.b32.xlu0 %v11392_v38, %s12082_s7 }
0x22a6   :  { %6395 = vrot.lane.b32.xlu1 %v11404_v27, %s12081_s12  ;;  %6475 = vrot.lane.b32.xlu0 %v11392_v38, %s9331_s29 }
0x22aa   :  { %6973 = vrot.lane.b32.xlu1 %v10019_v23, %s12085_s30  ;;  %6437 = vrot.lane.b32.xlu0 %v11404_v27, %s12082_s7 }
0x22ae   :  { %6979 = vrot.lane.b32.xlu1 %v10041_v31, %s12085_s30  ;;  %6353 = vrot.lane.b32.xlu0 %v11404_v27, %s12083_s0 }
0x22b2   :  { %6931 = vrot.lane.b32.xlu0 %v10019_v23, %s12084_s8 }
0x22b6   :  { %6937 = vrot.lane.b32.xlu0 %v10041_v31, %s12084_s8 }
0x22e0   :  { %v11459_v37 = vpop.permute.xlu1 %6649  ;;  %v11461_v39 = vpop.permute.xlu0 %6645 }
0x22e4   :  { %v11463_v46 = vpop.permute.xlu1 %6565  ;;  %v11465_v23 = vpop.permute.xlu0 %6561 }
0x22e8   :  { %v11467_v32 = vpop.permute.xlu1 %6607  ;;  %v11469_v31 = vpop.permute.xlu0 %6519 }
0x22ec   :  { %v11471_v52 = vpop.permute.xlu1 %6603  ;;  %v11473_v41 = vpop.permute.xlu0 %6347 }
0x22f0   :  { %v11475_v55 = vpop.permute.xlu1 %6523  ;;  %v11477_v48 = vpop.permute.xlu0 %6389 }
0x22f4   :  { %v11479_v44 = vpop.permute.xlu1 %6431  ;;  %v11481_v0 = vpop.permute.xlu0 %6435 }
0x22f8   :  { %v11489_v40 = vpop.permute.xlu1 %6473  ;;  %v11491_v28 = vpop.permute.xlu0 %6351 }
0x22fc   :  { %v11500_v61 = vpop.permute.xlu1 %6477  ;;  %v6648_v43 = vpop.permute.xlu0 %6647 }
0x22fd   :  { %v6654_v6 = vsel %vm423_vm0, %v6648_v43, %v11459_v37  ;;  %v6655_v11 = vsel %vm423_vm0, %v11461_v39, %v6648_v43 }
0x22fe   :  { %v6679_v34 = vmul.f32 %v6662_v15, %v6655_v11  ;;  %v6680_v18 = vmul.f32 %v6666_v59, %v6654_v6  ;;  %v6670_v59 = vrot.slane %v8396_v25, %v9590_v20 }
0x2300   :  { %v7103_v2 = vpack.c.bf16 %v6721_v5, %v6679_v34  ;;  %v11519_v62 = vpop.permute.xlu1 %6393  ;;  %v6564_v42 = vpop.permute.xlu0 %6563  ;;  %v7104_v33 = vpack.c.bf16 %v6722_v1, %v6680_v18  ;;  %v6723_v5 = vmul.f32 %v6712_v30, %v6696_v54  ;;  %v6724_v34 = vmul.f32 %v6716_v58, %v6695_v35  ;;  %v8393_v18 = vld [vmem:[%s12033_s19 + $0x14] sm:$0xf] }
0x2301   :  { %v6570_v14 = vsel %vm335_vm2, %v6564_v42, %v11463_v46  ;;  %v6571_v3 = vsel %vm335_vm2, %v11465_v23, %v6564_v42 }
0x2302   :  { %7139 = vmatprep.subr.bf16.mxu0 %v7104_v33  ;;  %v6595_v60 = vmul.f32 %v6578_v19, %v6571_v3  ;;  %v6596_v45 = vmul.f32 %v6582_v26, %v6570_v14  ;;  %v6536_v19 = vrot.slane %v8393_v18, %v9573_v9  ;;  %v6540_v26 = vrot.slane %v8393_v18, %v9571_v8 }
0x2303   :  { %7140 = vmatpush1.bf16.msra.mxu0 %v7103_v2  ;;  %v6548_v14 = vrot.slane %v8393_v18, %v9592_v21 }
0x2304   :  { %v6610_v56 = vpop.permute.xlu1 %6609  ;;  %v6606_v12 = vpop.permute.xlu0 %6605 }
0x2305   :  { %v6612_v53 = vsel %vm379_vm3, %v6606_v12, %v11467_v32  ;;  %v6613_v15 = vsel %vm379_vm3, %v11471_v52, %v6606_v12 }
0x2306   :  { %v6637_v43 = vmul.f32 %v6620_v49, %v6613_v15  ;;  %v6638_v6 = vmul.f32 %v6624_v47, %v6612_v53  ;;  %v6628_v49 = vrot.slane %v11517_v57, %v9590_v20  ;;  %v11566_v47 = vld [vmem:[%s12033_s19 + $0x1c] sm:$0xf]  ;;  %v6586_v53 = vrot.slane %v11512_v63, %v9590_v20 }
0x2307   :  { %v6611_v15 = vsel %vm379_vm3, %v11467_v32, %v6610_v56 }
0x2308   :  { %v7099_v11 = vpack.c.bf16 %v6637_v43, %v6595_v60  ;;  %v6526_v16 = vpop.permute.xlu1 %6525  ;;  %v6652_v50 = vpop.permute.xlu0 %6651  ;;  %v7100_v1 = vpack.c.bf16 %v6638_v6, %v6596_v45  ;;  %v6952_v45 = vrot.slane %v11566_v47, %v9571_v8  ;;  %v6940_v43 = vsel %vm379_vm3, %v11451_v22, %v11453_v24 }
0x2309   :  { %v6653_v2 = vsel %vm423_vm0, %v11459_v37, %v6652_v50  ;;  %v6656_v25 = vsel %vm423_vm0, %v6652_v50, %v11461_v39  ;;  %v11571_v37 = vld [vmem:[%s12033_s19 + $0x20] sm:$0xf]  ;;  %v6632_v39 = vrot.slane %v11517_v57, %v9592_v21  ;;  %v6590_v57 = vrot.slane %v11512_v63, %v9592_v21 }
0x230a   :  { %v6681_v42 = vmul.f32 %v6670_v59, %v6653_v2  ;;  %v6682_v33 = vmul.f32 %v6674_v17, %v6656_v25  ;;  %7141 = vmatprep.subr.bf16.mxu0 %v7100_v1  ;;  %v6614_v59 = vsel %vm379_vm3, %v6610_v56, %v11471_v52  ;;  %v6994_v63 = vrot.slane %v11571_v37, %v9571_v8  ;;  %v11631_v25 = vld [vmem:[%s12033_s19] sm:$0xf] }
0x230b   :  { %7142 = vmatpush1.bf16.msra.mxu0 %v7099_v11  ;;  %v6530_v32 = vsel %vm291_vm4, %v6526_v16, %v11469_v31  ;;  %v6982_v52 = vsel %vm423_vm0, %v11455_v29, %v11457_v10  ;;  %v6544_v56 = vrot.slane %v8393_v18, %v9590_v20  ;;  %v6527_v18 = vsel %vm291_vm4, %v11475_v55, %v6526_v16 }
0x230c   :  { %v7105_v3 = vpack.c.bf16 %v6723_v5, %v6681_v42  ;;  %v11576_v30 = vpop.permute.xlu1 %6479  ;;  %v6522_v58 = vpop.permute.xlu0 %6521  ;;  %v7106_v35 = vpack.c.bf16 %v6724_v34, %v6682_v33  ;;  %v6639_v5 = vmul.f32 %v6628_v49, %v6611_v15  ;;  %v6640_v34 = vmul.f32 %v6632_v39, %v6614_v59 }
0x230d   :  { %v6528_v54 = vsel %vm291_vm4, %v6522_v58, %v11475_v55  ;;  %v6529_v12 = vsel %vm291_vm4, %v11469_v31, %v6522_v58  ;;  %v11617_v31 = vld [vmem:[%s12033_s19 + $0xc] sm:$0xf]  ;;  %v11643_v55 = vmul.f32 %v6994_v63, %v6982_v52 }
0x230e   :  { %v6553_v17 = vmul.f32 %v6536_v19, %v6529_v12  ;;  %v6554_v60 = vmul.f32 %v6540_v26, %v6528_v54  ;;  %7180 = vmatprep.subr.bf16.mxu1 %v7106_v35  ;;  %v11633_v19 = vmul.f32 %v6952_v45, %v6940_v43  ;;  %v6490_v16 = vrot.slane %v11617_v31, %v9573_v9 }
0x230f   :  { %7181 = vmatpush1.bf16.msra.mxu1 %v7105_v3  ;;  %v6555_v3 = vmul.f32 %v6544_v56, %v6527_v18  ;;  %v6502_v58 = vrot.slane %v11617_v31, %v9592_v21  ;;  %v6368_v35 = vrot.slane %v11631_v25, %v9571_v8  ;;  %v6372_v54 = vrot.slane %v11631_v25, %v9590_v20 }
0x2310   :  { %v7095_v6 = vpack.c.bf16 %v6553_v17, %v11357_v36  ;;  %v11611_v11 = vpop.permute.xlu1 %6349  ;;  %v6568_v50 = vpop.permute.xlu0 %6567  ;;  %v7096_v1 = vpack.c.bf16 %v6554_v60, %v11392_v38  ;;  %v6556_v38 = vmul.f32 %v6548_v14, %v6530_v32  ;;  %v6494_v15 = vrot.slane %v11617_v31, %v9571_v8 }
0x2311   :  { %v6569_v2 = vsel %vm335_vm2, %v11463_v46, %v6568_v50  ;;  %v6572_v36 = vsel %vm335_vm2, %v6568_v50, %v11465_v23  ;;  %v11638_v46 = vld [vmem:[%s12033_s19 + $0x4] sm:$0xf]  ;;  %v8391_v23 = vld [vmem:[%s12033_s19 + $0x8] sm:$0xf]  ;;  %v6498_v32 = vrot.slane %v11617_v31, %v9590_v20  ;;  %v6990_v56 = vrot.slane %v11571_v37, %v9573_v9 }
0x2312   :  { %v6597_v42 = vmul.f32 %v6586_v53, %v6569_v2  ;;  %v6598_v33 = vmul.f32 %v6590_v57, %v6572_v36  ;;  %7143 = vmatprep.subr.bf16.mxu0 %v7096_v1  ;;  %v6410_v12 = vrot.slane %v11638_v46, %v9571_v8  ;;  %v6452_v53 = vrot.slane %v8391_v23, %v9571_v8 }
0x2313   :  { %7144 = vmatpush1.bf16.msra.mxu0 %v7095_v6  ;;  %v7098_v57 = vpack.c.bf16 %v6556_v38, %v11404_v27  ;;  %v6414_v59 = vrot.slane %v11638_v46, %v9590_v20  ;;  %v6456_v17 = vrot.slane %v8391_v23, %v9590_v20  ;;  %v6406_v45 = vrot.slane %v11638_v46, %v9573_v9 }
0x2314   :  { %v7101_v26 = vpack.c.bf16 %v6639_v5, %v6597_v42  ;;  %v6392_v49 = vpop.permute.xlu1 %6391  ;;  %v6434_v39 = vpop.permute.xlu0 %6433  ;;  %v7102_v14 = vpack.c.bf16 %v6640_v34, %v6598_v33  ;;  %v6484_v27 = vsel %vm243_vm6, %v11576_v30, %v11489_v40  ;;  %v6418_v43 = vrot.slane %v11638_v46, %v9592_v21 }
0x2315   :  { %v6441_v60 = vsel %vm199_vm5, %v11479_v44, %v6434_v39  ;;  %v7097_v6 = vpack.c.bf16 %v6555_v3, %v11360_v51  ;;  %v6481_v50 = vsel %vm243_vm6, %v11500_v61, %v11576_v30  ;;  %v6448_v5 = vrot.slane %v8391_v23, %v9573_v9 }
0x2316   :  { %7182 = vmatprep.subr.bf16.mxu1 %v7102_v14  ;;  %v6399_v34 = vsel %vm155_vm8, %v11477_v48, %v6392_v49  ;;  %v6466_v31 = vmul.f32 %v6452_v53, %v6441_v60  ;;  %v6460_v36 = vrot.slane %v8391_v23, %v9592_v21  ;;  %v6507_v51 = vmul.f32 %v6490_v16, %v6484_v27 }
0x2317   :  { %7183 = vmatpush1.bf16.msra.mxu1 %v7101_v26  ;;  %v6364_v30 = vrot.slane %v11631_v25, %v9573_v9  ;;  %v6510_v38 = vmul.f32 %v6502_v58, %v6481_v50  ;;  %v6357_v42 = vsel %vm112_vm7, %v11473_v41, %v11611_v11  ;;  %v6398_v33 = vsel %vm155_vm8, %v6392_v49, %v11519_v62 }
0x2318   :  { %v6396_v63 = vpop.permute.xlu1 %6395  ;;  %7184 = vmatprep.subr.bf16.mxu1 %v7098_v57  ;;  %v6476_v52 = vpop.permute.xlu0 %6475  ;;  %v6440_v16 = vsel %vm199_vm5, %v6434_v39, %v11481_v0  ;;  %v6356_v39 = vsel %vm112_vm7, %v11611_v11, %v11491_v28  ;;  %v6382_v57 = vmul.f32 %v6368_v35, %v6357_v42 }
0x2319   :  { %v6483_v1 = vsel %vm243_vm6, %v11489_v40, %v6476_v52  ;;  %v6482_v18 = vsel %vm243_vm6, %v6476_v52, %v11500_v61  ;;  %v6376_v40 = vrot.slane %v11631_v25, %v9592_v21  ;;  %v6424_v61 = vmul.f32 %v6410_v12, %v6399_v34 }
0x231a   :  { %v6508_v2 = vmul.f32 %v6494_v15, %v6483_v1  ;;  %v6400_v3 = vsel %vm155_vm8, %v6396_v63, %v11477_v48  ;;  %v6509_v49 = vmul.f32 %v6498_v32, %v6482_v18  ;;  %v6425_v15 = vmul.f32 %v6414_v59, %v6398_v33 }
0x231b   :  { %7185 = vmatpush1.bf16.msra.mxu1 %v7097_v6  ;;  %v6467_v48 = vmul.f32 %v6456_v17, %v6440_v16  ;;  %v6423_v52 = vmul.f32 %v6406_v45, %v6400_v3  ;;  %v7088_v35 = vpack.c.bf16 %v6424_v61, %v6382_v57  ;;  %v7120_v17 = vpack.c.bf16 %v11643_v55, %v11633_v19 }
0x231c   :  { %v6438_v46 = vpop.permute.xlu0 %6437  ;;  %v7092_v23 = vpack.c.bf16 %v6508_v2, %v6466_v31  ;;  %v6974_v58 = vpop.permute.xlu1 %6973  ;;  %v6956_v19 = vrot.slane %v11566_v47, %v9590_v20  ;;  %v6960_v25 = vrot.slane %v11566_v47, %v9592_v21 }
0x231d   :  { %v6439_v26 = vsel %vm199_vm5, %v11481_v0, %v6438_v46  ;;  %v6442_v14 = vsel %vm199_vm5, %v6438_v46, %v11479_v44  ;;  %v6397_v0 = vsel %vm155_vm8, %v11519_v62, %v6396_v63  ;;  %v6948_v44 = vrot.slane %v11566_v47, %v9573_v9 }
0x231e   :  { %v6465_v53 = vmul.f32 %v6448_v5, %v6442_v14  ;;  %v6468_v12 = vmul.f32 %v6460_v36, %v6439_v26  ;;  %7145 = vmatprep.subr.bf16.mxu0 %v7092_v23  ;;  %v6426_v50 = vmul.f32 %v6418_v43, %v6397_v0  ;;  %v7093_v62 = vpack.c.bf16 %v6509_v49, %v6467_v48 }
0x231f   :  { %v6983_v59 = vsel %vm423_vm0, %v6974_v58, %v11455_v29  ;;  %v7002_v29 = vrot.slane %v11571_v37, %v9592_v21 }
0x2320   :  { %v7091_v60 = vpack.c.bf16 %v6507_v51, %v6465_v53  ;;  %v6354_v27 = vpop.permute.xlu0 %6353  ;;  %v7094_v32 = vpack.c.bf16 %v6510_v38, %v6468_v12  ;;  %v6980_v45 = vpop.permute.xlu1 %6979 }
0x2321   :  { %v6355_v6 = vsel %vm112_vm7, %v11491_v28, %v6354_v27  ;;  %v6358_v11 = vsel %vm112_vm7, %v6354_v27, %v11473_v41  ;;  %v6383_v28 = vmul.f32 %v6372_v54, %v6356_v39  ;;  %v6998_v41 = vrot.slane %v11571_v37, %v9590_v20 }
0x2322   :  { %v6381_v63 = vmul.f32 %v6364_v30, %v6358_v11  ;;  %v6384_v1 = vmul.f32 %v6376_v40, %v6355_v6  ;;  %7146 = vmatpush1.bf16.msra.mxu0 %v7091_v60  ;;  %7186 = vmatprep.subr.bf16.mxu1 %v7094_v32  ;;  %v7007_v54 = vmul.f32 %v6990_v56, %v6983_v59  ;;  %v7216_v11 = vld [vmem:[%s12032_s18 + $0x90] sm:$0xff] }
0x2323   :  { %7147 = vmatprep.subr.bf16.mxu0 %v7088_v35  ;;  %7187 = vmatpush1.bf16.msra.mxu1 %v7093_v62  ;;  %v7089_v55 = vpack.c.bf16 %v6425_v15, %v6383_v28  ;;  %v6981_v36 = vsel %vm423_vm0, %v11457_v10, %v6980_v45  ;;  %v8404_v56 = vcombine.low %v11437_v13, %v11437_v13 }
0x2324   :  { %v7087_v43 = vpack.c.bf16 %v6423_v52, %v6381_v63  ;;  %v6932_v5 = vpop.permute.xlu0 %6931  ;;  %v7090_v34 = vpack.c.bf16 %v6426_v50, %v6384_v1  ;;  %v7009_v30 = vmul.f32 %v6998_v41, %v6981_v36  ;;  %v7215_v63 = vld [vmem:[%s12031_s17 + $0x90] sm:$0xff]  ;;  %v8414_v36 = vld [vmem:[%s12033_s19 + $0x20] sm:$0xf] }
0x2325   :  { %v6941_v31 = vsel %vm379_vm3, %v6932_v5, %v11451_v22  ;;  %v6984_v22 = vsel %vm423_vm0, %v6980_v45, %v6974_v58 }
0x2326   :  { %v6965_v2 = vmul.f32 %v6948_v44, %v6941_v31  ;;  %7148 = vmatpush1.bf16.msra.mxu0 %v7087_v43  ;;  %7188 = vmatprep.subr.bf16.mxu1 %v7090_v34  ;;  %v7010_v40 = vmul.f32 %v7002_v29, %v6984_v22  ;;  %v7577_v22 = vrot.slane %v8414_v36, %v9573_v9 }
0x2327   :  { %7163 = vmatprep.subr.bf16.mxu0 %v7120_v17  ;;  %7189 = vmatpush1.bf16.msra.mxu1 %v7089_v55 }
0x2328   :  { %v7119_v51 = vpack.c.bf16 %v7007_v54, %v6965_v2  ;;  %v6938_v18 = vpop.permute.xlu0 %6937 }
0x2329   :  { %v6939_v47 = vsel %vm379_vm3, %v11453_v24, %v6938_v18  ;;  %v6942_v37 = vsel %vm379_vm3, %v6938_v18, %v6932_v5 }
0x232a   :  { %v6967_v10 = vmul.f32 %v6956_v19, %v6939_v47  ;;  %v6968_v38 = vmul.f32 %v6960_v25, %v6942_v37  ;;  %7164 = vmatpush2.bf16.msra.mxu0 %v7119_v51 }
0x232c   :  { %v7121_v42 = vpack.c.bf16 %v7009_v30, %v6967_v10  ;;  %v7122_v33 = vpack.c.bf16 %v7010_v40, %v6968_v38 }
0x232d   :  { %7166 = vmatmul.mubr.bf16.vlgmr.msra.gmra.mxu0 %v8404_v56 }
0x232e   :  { %7204 = vmatprep.subr.bf16.mxu1 %v7122_v33  ;;  %7706 = vmatprep.mubr.bf16.mxu0 %v9333_v4  ;;  %v8412_v33 = vld [vmem:[%s12033_s19 + $0x18] sm:$0xf] }
0x232f   :  { %7205 = vmatpush2.bf16.msra.mxu1 %v7121_v42 }
0x2332   :  { %7207 = vmatmul.mubr.bf16.vlgmr.msra.gmra.mxu1 %v8404_v56  ;;  %v7581_v56 = vrot.slane %v8414_v36, %v9571_v8 }
0x2333   :  { %7747 = vmatprep.mubr.bf16.mxu1 %v9333_v4 }
0x23ed   :  { %v7167_v24 = vpop.f32.mrf.mxu0 }
0x23ef   :  { %v7169_v46 = vpop.f32.mrf.mxu0 }
0x23f0   :  { %v7217_v23 = vadd.f32 %v7169_v46, %v7167_v24 }
0x23f1   :  { %v7171_v61 = vpop.f32.mrf.mxu0 }
0x23f2   :  { %v7208_v13 = vpop.f32.mrf.mxu1 }
0x23f3   :  { %v7218_v16 = vadd.f32 %v7217_v23, %v7208_v13  ;;  %v7172_v26 = vpop.f32.mrf.mxu0 }
0x23f4   :  { %v7210_v14 = vpop.f32.mrf.mxu1  ;;  %v7585_v26 = vrot.slane %v8414_v36, %v9590_v20 }
0x23f5   :  { %v7219_v3 = vadd.f32 %v7218_v16, %v7210_v14 }
0x23f6   :  { %v7212_v49 = vpop.f32.mrf.mxu1 }
0x23f7   :  { %7220 = vadd.xlane.f32.xlu0 %v7219_v3 }
0x23f8   :  { %v7213_v58 = vpop.f32.mrf.mxu1 }
0x2480   :  { %v7221_v53 = vpop.xlane.xlu0 %7220 }
0x2481   :  { %v7222_v12 = vmul.f32 0.001953125, %v7221_v53 }
0x2483   :  { %v7223_v39 = vsub.f32 %v7167_v24, %v7222_v12  ;;  %v7224_v57 = vsub.f32 %v7169_v46, %v7222_v12  ;;  %v7225_v0 = vsub.f32 %v7208_v13, %v7222_v12  ;;  %v7226_v44 = vsub.f32 %v7210_v14, %v7222_v12  ;;  %v8413_v24 = vld [vmem:[%s12033_s19 + $0x1c] sm:$0xf] }
0x2484   :  { %v7497_v13 = vrot.slane %v8412_v33, %v9571_v8  ;;  %v7589_v14 = vrot.slane %v8414_v36, %v9592_v21  ;;  %v7539_v3 = vrot.slane %v8413_v24, %v9571_v8  ;;  %v7535_v12 = vrot.slane %v8413_v24, %v9573_v9 }
0x2485   :  { %v7227_v15 = vmul.f32 %v7223_v39, %v7223_v39  ;;  %v7228_v48 = vmul.f32 %v7224_v57, %v7224_v57  ;;  %v7229_v60 = vmul.f32 %v7225_v0, %v7225_v0  ;;  %v7230_v32 = vmul.f32 %v7226_v44, %v7226_v44 }
0x2486   :  { %v7505_v36 = vrot.slane %v8412_v33, %v9592_v21 }
0x2487   :  { %v7231_v27 = vadd.f32 %v7228_v48, %v7227_v15 }
0x2489   :  { %v7232_v52 = vadd.f32 %v7231_v27, %v7229_v60 }
0x248b   :  { %v7233_v6 = vadd.f32 %v7232_v52, %v7230_v32  ;;  %v11879_v32 = vld [vmem:[%s12033_s19 + $0x14] sm:$0xf] }
0x248d   :  { %7234 = vadd.xlane.f32.xlu1 %v7233_v6 }
0x249e   :  { %7251 = vperm.xlu1 %8936, %v7216_v11  }
0x2516   :  { %v7235_v35 = vpop.xlane.xlu1 %7234 }
0x2517   :  { %v7236_v50 = vmul.f32 0.001953125, %v7235_v35 }
0x2519   :  { %v7237_v62 = vadd.f32 1e-05, %v7236_v50 }
0x251a   :  { %v7252_v43 = vpop.permute.xlu1 %7251 }
0x251b   :  { %9295 = vrsqrt.f32 %v7237_v62 }
0x2528   :  { %v9296_v1 = vpop.eup %9295 }
0x2529   :  { %v7239_v59 = vmul.f32 %v9296_v1, %v7215_v63 }
0x252b   :  { %7242 = vperm.xlu0 %8935, %v7239_v59  }
0x25a6   :  { %v7243_v17 = vpop.permute.xlu0 %7242 }
0x25a7   :  { %v7245_v28 = vmul.f32 %v7243_v17, %v7223_v39  ;;  %v7246_v41 = vmul.f32 %v7243_v17, %v7224_v57  ;;  %v7247_v45 = vmul.f32 %v7243_v17, %v7225_v0  ;;  %v7248_v25 = vmul.f32 %v7243_v17, %v7226_v44 }
0x25a8   :  { %v7493_v44 = vrot.slane %v8412_v33, %v9573_v9 }
0x25a9   :  { %v7254_v5 = vadd.f32 %v7252_v43, %v7245_v28  ;;  %v7255_v34 = vadd.f32 %v7252_v43, %v7246_v41  ;;  %v7256_v29 = vadd.f32 %v7252_v43, %v7247_v45  ;;  %v7257_v54 = vadd.f32 %v7252_v43, %v7248_v25 }
0x25aa   :  { %v7455_v28 = vrot.slane %v11879_v32, %v9571_v8  ;;  %v7547_v25 = vrot.slane %v8413_v24, %v9592_v21 }
0x25ab   :  { %v11773_v31 = vmax.f32 %v7254_v5, 0.0  ;;  %v11775_v19 = vmax.f32 %v7255_v34, 0.0  ;;  %v11781_v55 = vmax.f32 %v7256_v29, 0.0  ;;  %v11791_v2 = vmax.f32 %v7257_v54, 0.0 }
0x25ac   :  { %v7543_v34 = vrot.slane %v8413_v24, %v9590_v20  ;;  %v7501_v54 = vrot.slane %v8412_v33, %v9590_v20 }
0x25ad   :  { %7562 = vrot.lane.b32.xlu1 %v11775_v19, %s12085_s30  ;;  %7560 = vrot.lane.b32.xlu0 %v11773_v31, %s12085_s30 }
0x25b1   :  { %7478 = vrot.lane.b32.xlu1 %v11775_v19, %s9327_s1  ;;  %7564 = vrot.lane.b32.xlu0 %v11781_v55, %s12085_s30 }
0x25b5   :  { %7520 = vrot.lane.b32.xlu1 %v11775_v19, %s12084_s8  ;;  %7480 = vrot.lane.b32.xlu0 %v11781_v55, %s9327_s1 }
0x25b9   :  { %7566 = vrot.lane.b32.xlu1 %v11791_v2, %s12085_s30  ;;  %7522 = vrot.lane.b32.xlu0 %v11781_v55, %s12084_s8 }
0x25bd   :  { %7518 = vrot.lane.b32.xlu1 %v11773_v31, %s12084_s8  ;;  %7476 = vrot.lane.b32.xlu0 %v11773_v31, %s9327_s1 }
0x25c1   :  { %7438 = vrot.lane.b32.xlu1 %v11781_v55, %s9329_s28  ;;  %7436 = vrot.lane.b32.xlu0 %v11775_v19, %s9329_s28 }
0x25c5   :  { %7524 = vrot.lane.b32.xlu1 %v11791_v2, %s12084_s8  ;;  %7482 = vrot.lane.b32.xlu0 %v11791_v2, %s9327_s1 }
0x25c9   :  { %7346 = vrot.lane.b32.xlu1 %v11773_v31, %s12082_s7  ;;  %7434 = vrot.lane.b32.xlu0 %v11773_v31, %s9329_s28 }
0x25cd   :  { %7388 = vrot.lane.b32.xlu1 %v11773_v31, %s9331_s29  ;;  %7348 = vrot.lane.b32.xlu0 %v11775_v19, %s12082_s7 }
0x25d1   :  { %7440 = vrot.lane.b32.xlu1 %v11791_v2, %s9329_s28  ;;  %7390 = vrot.lane.b32.xlu0 %v11775_v19, %s9331_s29 }
0x25d5   :  { %7394 = vrot.lane.b32.xlu1 %v11791_v2, %s9331_s29  ;;  %7352 = vrot.lane.b32.xlu0 %v11791_v2, %s12082_s7 }
0x25d9   :  { %7264 = vrot.lane.b32.xlu1 %v11775_v19, %s12083_s0  ;;  %7262 = vrot.lane.b32.xlu0 %v11773_v31, %s12083_s0 }
0x25dd   :  { %7306 = vrot.lane.b32.xlu1 %v11775_v19, %s12081_s12  ;;  %7304 = vrot.lane.b32.xlu0 %v11773_v31, %s12081_s12 }
0x25e1   :  { %7392 = vrot.lane.b32.xlu1 %v11781_v55, %s9331_s29  ;;  %7350 = vrot.lane.b32.xlu0 %v11781_v55, %s12082_s7 }
0x25e5   :  { %7310 = vrot.lane.b32.xlu1 %v11791_v2, %s12081_s12  ;;  %7268 = vrot.lane.b32.xlu0 %v11791_v2, %s12083_s0 }
0x25e9   :  { %7308 = vrot.lane.b32.xlu1 %v11781_v55, %s12081_s12  ;;  %7266 = vrot.lane.b32.xlu0 %v11781_v55, %s12083_s0 }
0x261f   :  { %v7563_v51 = vpop.permute.xlu1 %7562  ;;  %v7561_v18 = vpop.permute.xlu0 %7560 }
0x2620   :  { %v7570_v47 = vsel %vm423_vm0, %v7561_v18, %v7563_v51 }
0x2621   :  { %v7594_v37 = vmul.f32 %v7577_v22, %v7570_v47  ;;  %v7451_v47 = vrot.slane %v11879_v32, %v9573_v9 }
0x2623   :  { %v7479_v30 = vpop.permute.xlu1 %7478  ;;  %v7565_v40 = vpop.permute.xlu0 %7564  ;;  %v7654_v38 = vpack.c.bf16 %v7594_v37, %v7594_v37 }
0x2624   :  { %v7569_v10 = vsel %vm423_vm0, %v7563_v51, %v7565_v40 }
0x2625   :  { %v7595_v42 = vmul.f32 %v7581_v56, %v7569_v10  ;;  %v7663_v16 = vsel %vm520_vm1, %v7654_v38, 0 }
0x2627   :  { %v7655_v46 = vpack.c.bf16 %v7595_v42, %v7595_v42  ;;  %v7521_v23 = vpop.permute.xlu1 %7520  ;;  %v7481_v61 = vpop.permute.xlu0 %7480 }
0x2628   :  { %v7485_v49 = vsel %vm335_vm2, %v7479_v30, %v7481_v61 }
0x2629   :  { %8415 = vmatprep.subr.msk.bf16.mxu0 %vm520_vm1, %v7655_v46  ;;  %v7511_v15 = vmul.f32 %v7497_v13, %v7485_v49 }
0x262a   :  { %7681 = vmatpush1.bf16.msra.mxu0 %v7663_v16 }
0x262b   :  { %v7567_v58 = vpop.permute.xlu1 %7566  ;;  %v7523_v53 = vpop.permute.xlu0 %7522 }
0x262c   :  { %v7568_v39 = vsel %vm423_vm0, %v7565_v40, %v7567_v58  ;;  %v7571_v57 = vsel %vm423_vm0, %v7567_v58, %v7561_v18  ;;  %v7527_v0 = vsel %vm379_vm3, %v7521_v23, %v7523_v53 }
0x262d   :  { %v7596_v48 = vmul.f32 %v7585_v26, %v7568_v39  ;;  %v7597_v60 = vmul.f32 %v7589_v14, %v7571_v57  ;;  %v7553_v27 = vmul.f32 %v7539_v3, %v7527_v0  ;;  %v8410_v26 = vld [vmem:[%s12033_s19 + $0xc] sm:$0xf] }
0x262e   :  { %v7409_v39 = vrot.slane %v8410_v26, %v9571_v8 }
0x262f   :  { %v7656_v52 = vpack.c.bf16 %v7596_v48, %v7596_v48  ;;  %v7657_v6 = vpack.c.bf16 %v7597_v60, %v7597_v60  ;;  %v7519_v11 = vpop.permute.xlu1 %7518  ;;  %v7477_v35 = vpop.permute.xlu0 %7476  ;;  %v7651_v50 = vpack.c.bf16 %v7553_v27, %v7511_v15 }
0x2630   :  { %v7528_v62 = vsel %vm379_vm3, %v7519_v11, %v7521_v23  ;;  %v7486_v63 = vsel %vm335_vm2, %v7477_v35, %v7479_v30 }
0x2631   :  { %v7552_v1 = vmul.f32 %v7535_v12, %v7528_v62  ;;  %v7510_v59 = vmul.f32 %v7493_v44, %v7486_v63  ;;  %7682 = vmatprep.subr.bf16.mxu0 %v7651_v50  ;;  %8417 = vmatprep.subr.msk.bf16.mxu1 %vm520_vm1, %v7657_v6  ;;  %v7669_v17 = vsel %vm520_vm1, %v7656_v52, 0  ;;  %v7463_v12 = vrot.slane %v11879_v32, %v9592_v21 }
0x2632   :  { %7722 = vmatpush1.bf16.msra.mxu1 %v7669_v17 }
0x2633   :  { %v7650_v41 = vpack.c.bf16 %v7552_v1, %v7510_v59  ;;  %v7439_v45 = vpop.permute.xlu1 %7438  ;;  %v7437_v43 = vpop.permute.xlu0 %7436 }
0x2634   :  { %v7443_v5 = vsel %vm291_vm4, %v7437_v43, %v7439_v45 }
0x2635   :  { %v7469_v29 = vmul.f32 %v7455_v28, %v7443_v5  ;;  %7683 = vmatpush1.bf16.msra.mxu0 %v7650_v41 }
0x2637   :  { %v7525_v22 = vpop.permute.xlu1 %7524  ;;  %v7483_v51 = vpop.permute.xlu0 %7482  ;;  %v7647_v18 = vpack.c.bf16 %v7469_v29, %v11775_v19 }
0x2638   :  { %v7526_v37 = vsel %vm379_vm3, %v7523_v53, %v7525_v22  ;;  %v7529_v56 = vsel %vm379_vm3, %v7525_v22, %v7519_v11  ;;  %v7484_v30 = vsel %vm335_vm2, %v7481_v61, %v7483_v51  ;;  %v7487_v40 = vsel %vm335_vm2, %v7483_v51, %v7477_v35  ;;  %v11911_v61 = vld [vmem:[%s12033_s19 + $0x8] sm:$0xf] }
0x2639   :  { %v7554_v10 = vmul.f32 %v7543_v34, %v7526_v37  ;;  %v7555_v38 = vmul.f32 %v7547_v25, %v7529_v56  ;;  %v7512_v42 = vmul.f32 %v7501_v54, %v7484_v30  ;;  %v7513_v33 = vmul.f32 %v7505_v36, %v7487_v40  ;;  %7684 = vmatprep.subr.bf16.mxu0 %v7647_v18 }
0x263a   :  { %v7367_v58 = vrot.slane %v11911_v61, %v9571_v8  ;;  %v7459_v53 = vrot.slane %v11879_v32, %v9590_v20  ;;  %v7363_v27 = vrot.slane %v11911_v61, %v9573_v9  ;;  %v7413_v51 = vrot.slane %v8410_v26, %v9590_v20 }
0x263b   :  { %v7652_v19 = vpack.c.bf16 %v7554_v10, %v7512_v42  ;;  %v7347_v24 = vpop.permute.xlu1 %7346  ;;  %v7435_v46 = vpop.permute.xlu0 %7434  ;;  %v7653_v23 = vpack.c.bf16 %v7555_v38, %v7513_v33  ;;  %v7417_v18 = vrot.slane %v8410_v26, %v9592_v21  ;;  %v7371_v56 = vrot.slane %v11911_v61, %v9590_v20 }
0x263c   :  { %v7444_v13 = vsel %vm291_vm4, %v7435_v46, %v7437_v43 }
0x263d   :  { %v7468_v16 = vmul.f32 %v7451_v47, %v7444_v13  ;;  %7723 = vmatprep.subr.bf16.mxu1 %v7653_v23 }
0x263e   :  { %7724 = vmatpush1.bf16.msra.mxu1 %v7652_v19 }
0x263f   :  { %v7646_v14 = vpack.c.bf16 %v7468_v16, %v11773_v31  ;;  %v7389_v3 = vpop.permute.xlu1 %7388  ;;  %v7349_v49 = vpop.permute.xlu0 %7348  ;;  %v7405_v31 = vrot.slane %v8410_v26, %v9573_v9 }
0x2640   :  { %v7356_v57 = vsel %vm199_vm5, %v7347_v24, %v7349_v49 }
0x2641   :  { %7685 = vmatpush1.bf16.msra.mxu0 %v7646_v14  ;;  %v7381_v32 = vmul.f32 %v7367_v58, %v7356_v57 }
0x2643   :  { %v7441_v0 = vpop.permute.xlu1 %7440  ;;  %v7391_v44 = vpop.permute.xlu0 %7390 }
0x2644   :  { %v7442_v15 = vsel %vm291_vm4, %v7439_v45, %v7441_v0  ;;  %v7445_v48 = vsel %vm291_vm4, %v7441_v0, %v7435_v46  ;;  %v7398_v60 = vsel %vm243_vm6, %v7389_v3, %v7391_v44  ;;  %v8408_v45 = vld [vmem:[%s12033_s19 + $0x4] sm:$0xf] }
0x2645   :  { %v7470_v52 = vmul.f32 %v7459_v53, %v7442_v15  ;;  %v7471_v6 = vmul.f32 %v7463_v12, %v7445_v48  ;;  %v7423_v11 = vmul.f32 %v7409_v39, %v7398_v60  ;;  %v7325_v29 = vrot.slane %v8408_v45, %v9571_v8 }
0x2646   :  { %v7321_v38 = vrot.slane %v8408_v45, %v9573_v9  ;;  %v7329_v12 = vrot.slane %v8408_v45, %v9590_v20  ;;  %v7333_v39 = vrot.slane %v8408_v45, %v9592_v21 }
0x2647   :  { %v7648_v35 = vpack.c.bf16 %v7470_v52, %v11781_v55  ;;  %v7395_v50 = vpop.permute.xlu1 %7394  ;;  %v7353_v62 = vpop.permute.xlu0 %7352  ;;  %v7643_v63 = vpack.c.bf16 %v7423_v11, %v7381_v32  ;;  %v7649_v1 = vpack.c.bf16 %v7471_v6, %v11791_v2  ;;  %v7274_v55 = vld [vmem:[%s12033_s19] sm:$0xf] }
0x2648   :  { %v7399_v59 = vsel %vm243_vm6, %v7395_v50, %v7389_v3  ;;  %v7357_v17 = vsel %vm199_vm5, %v7353_v62, %v7347_v24  ;;  %v7283_v34 = vrot.slane %v7274_v55, %v9571_v8  ;;  %v7375_v8 = vrot.slane %v11911_v61, %v9592_v21 }
0x2649   :  { %v7422_v28 = vmul.f32 %v7405_v31, %v7399_v59  ;;  %v7380_v41 = vmul.f32 %v7363_v27, %v7357_v17  ;;  %7686 = vmatprep.subr.bf16.mxu0 %v7643_v63  ;;  %7725 = vmatprep.subr.bf16.mxu1 %v7649_v1  ;;  %v7279_v42 = vrot.slane %v7274_v55, %v9573_v9 }
0x264a   :  { %7726 = vmatpush1.bf16.msra.mxu1 %v7648_v35  ;;  %v7287_v0 = vrot.slane %v7274_v55, %v9590_v20  ;;  %v7658_v35 = vld [vmem:[%s12028_s14] sm:$0xf] }
0x264b   :  { %v7642_v2 = vpack.c.bf16 %v7422_v28, %v7380_v41  ;;  %v7265_v43 = vpop.permute.xlu1 %7264  ;;  %v7263_v5 = vpop.permute.xlu0 %7262 }
0x264c   :  { %v7272_v25 = vsel %vm112_vm7, %v7263_v5, %v7265_v43 }
0x264d   :  { %7687 = vmatpush1.bf16.msra.mxu0 %v7642_v2  ;;  %v7297_v47 = vmul.f32 %v7283_v34, %v7272_v25 }
0x264f   :  { %v7307_v54 = vpop.permute.xlu1 %7306  ;;  %v7305_v36 = vpop.permute.xlu0 %7304 }
0x2650   :  { %v7314_v22 = vsel %vm155_vm8, %v7305_v36, %v7307_v54 }
0x2651   :  { %v7339_v37 = vmul.f32 %v7325_v29, %v7314_v22 }
0x2653   :  { %v7393_v30 = vpop.permute.xlu1 %7392  ;;  %v7351_v40 = vpop.permute.xlu0 %7350  ;;  %v7639_v10 = vpack.c.bf16 %v7339_v37, %v7297_v47 }
0x2654   :  { %v7396_v33 = vsel %vm243_vm6, %v7393_v30, %v7395_v50  ;;  %v7397_v19 = vsel %vm243_vm6, %v7391_v44, %v7393_v30  ;;  %v7354_v24 = vsel %vm199_vm5, %v7351_v40, %v7353_v62  ;;  %v7355_v46 = vsel %vm199_vm5, %v7349_v49, %v7351_v40 }
0x2655   :  { %v7424_v23 = vmul.f32 %v7413_v51, %v7397_v19  ;;  %v7425_v13 = vmul.f32 %v7417_v18, %v7396_v33  ;;  %v7382_v16 = vmul.f32 %v7371_v56, %v7355_v46  ;;  %v7383_v61 = vmul.f32 %v7375_v8, %v7354_v24  ;;  %7688 = vmatprep.subr.bf16.mxu0 %v7639_v10  ;;  %v7757_v8 = vld [vmem:[%s12032_s18 + $0x98] sm:$0xff]  ;;  %v7808_v19 = vld [vmem:[%s12030_s16] sm:$0x7] }
0x2656   :  { %v7291_v44 = vrot.slane %v7274_v55, %v9592_v21 }
0x2657   :  { %v7644_v26 = vpack.c.bf16 %v7424_v23, %v7382_v16  ;;  %v7311_v14 = vpop.permute.xlu1 %7310  ;;  %v7269_v9 = vpop.permute.xlu0 %7268  ;;  %v7645_v3 = vpack.c.bf16 %v7425_v13, %v7383_v61 }
0x2658   :  { %v7315_v58 = vsel %vm155_vm8, %v7311_v14, %v7305_v36  ;;  %v7273_v53 = vsel %vm112_vm7, %v7269_v9, %v7263_v5 }
0x2659   :  { %v7338_v49 = vmul.f32 %v7321_v38, %v7315_v58  ;;  %v7296_v57 = vmul.f32 %v7279_v42, %v7273_v53  ;;  %7727 = vmatprep.subr.bf16.mxu1 %v7645_v3  ;;  %v7756_v38 = vld [vmem:[%s12031_s17 + $0x98] sm:$0xff] }
0x265a   :  { %7728 = vmatpush1.bf16.msra.mxu1 %v7644_v26 }
0x265b   :  { %v7638_v31 = vpack.c.bf16 %v7338_v49, %v7296_v57  ;;  %v7309_v15 = vpop.permute.xlu1 %7308  ;;  %v7267_v48 = vpop.permute.xlu0 %7266 }
0x265c   :  { %v7312_v60 = vsel %vm155_vm8, %v7309_v15, %v7311_v14  ;;  %v7313_v27 = vsel %vm155_vm8, %v7307_v54, %v7309_v15  ;;  %v7270_v32 = vsel %vm112_vm7, %v7267_v48, %v7269_v9  ;;  %v7271_v52 = vsel %vm112_vm7, %v7265_v43, %v7267_v48  ;;  %v7803_v48 = vld [vmem:[%s12029_s15] sm:$0x3] }
0x265d   :  { %v7340_v6 = vmul.f32 %v7329_v12, %v7313_v27  ;;  %v7341_v20 = vmul.f32 %v7333_v39, %v7312_v60  ;;  %v7298_v11 = vmul.f32 %v7287_v0, %v7271_v52  ;;  %v7299_v21 = vmul.f32 %v7291_v44, %v7270_v32  ;;  %7689 = vmatpush1.bf16.msra.mxu0 %v7638_v31 }
0x265f   :  { %v7640_v50 = vpack.c.bf16 %v7340_v6, %v7298_v11  ;;  %v7641_v62 = vpack.c.bf16 %v7341_v20, %v7299_v21 }
0x2660   :  { %8416 = vmatmul.mubr.msk.bf16.vlgmr.msra.gmra.mxu0 %vm516_vm9, %v7658_v35 }
0x2661   :  { %7729 = vmatprep.subr.bf16.mxu1 %v7641_v62  ;;  %7862 = vmatprep.mubr.bf16.mxu0 %v9333_v4 }
0x2662   :  { %7730 = vmatpush1.bf16.msra.mxu1 %v7640_v50 }
0x2665   :  { %8418 = vmatmul.mubr.msk.bf16.vlgmr.msra.gmra.mxu1 %vm516_vm9, %v7658_v35 }
0x2666   :  { %7903 = vmatprep.mubr.bf16.mxu1 %v9333_v4 }
0x2720   :  { %v7708_v7 = vpop.f32.mrf.mxu0 }
0x2722   :  { %v7710_v63 = vpop.f32.mrf.mxu0 }
0x2723   :  { %v7758_v1 = vadd.f32 %v7710_v63, %v7708_v7 }
0x2724   :  { %v7712_v59 = vpop.f32.mrf.mxu0 }
0x2725   :  { %v7749_v17 = vpop.f32.mrf.mxu1 }
0x2726   :  { %v7759_v28 = vadd.f32 %v7758_v1, %v7749_v17  ;;  %v7713_v41 = vpop.f32.mrf.mxu0 }
0x2727   :  { %v7751_v55 = vpop.f32.mrf.mxu1 }
0x2728   :  { %v7760_v45 = vadd.f32 %v7759_v28, %v7751_v55 }
0x2729   :  { %v7753_v2 = vpop.f32.mrf.mxu1 }
0x272a   :  { %7761 = vadd.xlane.f32.xlu0 %v7760_v45 }
0x272b   :  { %v7754_v43 = vpop.f32.mrf.mxu1 }
0x27b3   :  { %v7762_v5 = vpop.xlane.xlu0 %7761 }
0x27b4   :  { %v7763_v34 = vmul.f32 0.001953125, %v7762_v5 }
0x27b6   :  { %v7764_v29 = vsub.f32 %v7708_v7, %v7763_v34  ;;  %v7765_v25 = vsub.f32 %v7710_v63, %v7763_v34  ;;  %v7766_v54 = vsub.f32 %v7749_v17, %v7763_v34  ;;  %v7767_v36 = vsub.f32 %v7751_v55, %v7763_v34 }
0x27b8   :  { %v7768_v22 = vmul.f32 %v7764_v29, %v7764_v29  ;;  %v7769_v4 = vmul.f32 %v7765_v25, %v7765_v25  ;;  %v7770_v51 = vmul.f32 %v7766_v54, %v7766_v54  ;;  %v7771_v47 = vmul.f32 %v7767_v36, %v7767_v36 }
0x27ba   :  { %v7772_v18 = vadd.f32 %v7769_v4, %v7768_v22 }
0x27bc   :  { %v7773_v37 = vadd.f32 %v7772_v18, %v7770_v51 }
0x27be   :  { %v7774_v56 = vadd.f32 %v7773_v37, %v7771_v47 }
0x27c0   :  { %7775 = vadd.xlane.f32.xlu1 %v7774_v56 }
0x27d1   :  { %7792 = vperm.xlu1 %8936, %v7757_v8  }
0x2849   :  { %v7776_v30 = vpop.xlane.xlu1 %7775 }
0x284a   :  { %v7777_v40 = vmul.f32 0.001953125, %v7776_v30 }
0x284c   :  { %v7778_v10 = vadd.f32 1e-05, %v7777_v40 }
0x284d   :  { %v7793_v61 = vpop.permute.xlu1 %7792 }
0x284e   :  { %9297 = vrsqrt.f32 %v7778_v10 }
0x285b   :  { %v9298_v42 = vpop.eup %9297 }
0x285c   :  { %v7780_v33 = vmul.f32 %v9298_v42, %v7756_v38 }
0x285e   :  { %7783 = vperm.xlu0 %8935, %v7780_v33  }
0x2862   :  { %7811 = vperm.xlu0 %8935, %v7808_v19  }
0x28d9   :  { %v7784_v24 = vpop.permute.xlu0 %7783 }
0x28da   :  { %v7786_v46 = vmul.f32 %v7784_v24, %v7764_v29  ;;  %v7787_v23 = vmul.f32 %v7784_v24, %v7765_v25  ;;  %v7788_v13 = vmul.f32 %v7784_v24, %v7766_v54  ;;  %v7789_v16 = vmul.f32 %v7784_v24, %v7767_v36 }
0x28dc   :  { %v7796_v26 = vadd.f32 %v7793_v61, %v7787_v23  ;;  %v7798_v14 = vadd.f32 %v7793_v61, %v7789_v16  ;;  %v7795_v9 = vadd.f32 %v7793_v61, %v7786_v46  ;;  %v7797_v3 = vadd.f32 %v7793_v61, %v7788_v13 }
0x28dd   :  { %v7812_v32 = vpop.permute.xlu0 %7811 }
0x28de   :  { %v7800_v58 = vmax.f32 %v7796_v26, 0.0  ;;  %v7802_v53 = vmax.f32 %v7798_v14, 0.0  ;;  %v7799_v12 = vmax.f32 %v7795_v9, 0.0  ;;  %v7801_v39 = vmax.f32 %v7797_v3, 0.0 }
0x28e0   :  { %v7805_v49 = vpack.c.bf16 %v7800_v58, %v7800_v58  ;;  %v7807_v57 = vpack.c.bf16 %v7802_v53, %v7802_v53  ;;  %v7804_v0 = vpack.c.bf16 %v7799_v12, %v7799_v12  ;;  %v7806_v44 = vpack.c.bf16 %v7801_v39, %v7801_v39 }
0x28e2   :  { %8419 = vmatprep.subr.msk.bf16.mxu0 %vm520_vm1, %v7805_v49  ;;  %8421 = vmatprep.subr.msk.bf16.mxu1 %vm520_vm1, %v7807_v57  ;;  %v7819_v31 = vsel %vm520_vm1, %v7804_v0, 0  ;;  %v7825_v15 = vsel %vm520_vm1, %v7806_v44, 0 }
0x28e3   :  { %7845 = vmatpush1.bf16.msra.mxu0 %v7819_v31  ;;  %7886 = vmatpush1.bf16.msra.mxu1 %v7825_v15 }
0x28e6   :  { %8420 = vmatmul.mubr.msk.bf16.vlgmr.msra.gmra.mxu0 %vm7814_vm13, %v7803_v48  ;;  %8422 = vmatmul.mubr.msk.bf16.vlgmr.msra.gmra.mxu1 %vm7814_vm13, %v7803_v48 }
0x29a6   :  { %v7864_v60 = vpop.f32.mrf.mxu0  ;;  %v7905_v27 = vpop.f32.mrf.mxu1 }
0x29a7   :  { %v7865_v20 = vadd.f32 %v7864_v60, %v7812_v32  ;;  %v7906_v11 = vadd.f32 %v7905_v27, %v7812_v32 }
0x29a8   :  { %v7866_v52 = vpop.f32.mrf.mxu0  ;;  %v7907_v6 = vpop.f32.mrf.mxu1 }
0x29a9   :  { %v7867_v21 = vadd.f32 %v7866_v52, %v7812_v32  ;;  %v7908_v35 = vadd.f32 %v7907_v6, %v7812_v32 }
0x29aa   :  { %v7868_v50 = vpop.f32.mrf.mxu0  ;;  %v7909_v62 = vpop.f32.mrf.mxu1 }
0x29ab   :  { %v7916_v7 = vcombine.low %v7865_v20, %v7867_v21  ;;  %v7917_v63 = vcombine.low %v7906_v11, %v7908_v35 }
0x29ac   :  { %v7869_v1 = vpop.f32.mrf.mxu0  ;;  %v7910_v59 = vpop.f32.mrf.mxu1 }
0x29ad   :  { %7920 = vst [vmem:[%s12040_s26] sm:$0x77] %v7916_v7  ;;  %7921 = vst [vmem:[%s12040_s26 + $0x8] sm:$0x77] %v7917_v63 }
0x29ae   :  { %7926 = vsyncpa [#allocation6], 1 }

</bundles_post_ra>
